<compile_context>
chip_gen: v5e
topology: v5e:2x2
jax: 0.10.0
libtpu: 0.0.40
codegen_flags: <defaults>
</compile_context>

<pallas_src>
import functools

import jax
import jax.numpy as jnp
from jax.experimental import pallas as pl
from jax.experimental.pallas import tpu as pltpu

BN_EPS = 1e-5


# ------------------------------ small helpers -------------------------------

def _round_up(x, m):
    return ((x + m - 1) // m) * m


def _full_spec(shape):
    """BlockSpec covering the full array with a constant block index.

    Works for any grid rank (index_map ignores grid indices), so weights/shifts
    stay resident in VMEM across all grid steps.
    """
    nd = len(shape)
    return pl.BlockSpec(tuple(shape), lambda *_: (0,) * nd)


# ------------------------------ Pallas kernels ------------------------------

def _stn_point_kernel(x_ref, w1, t1, w2, t2, w3, t3, o_ref, acc_ref):
    """Fused STN per-point MLP (D->64->128->1024, BN+ReLU folded) + max over points."""
    t = pl.program_id(1)

    @pl.when(t == 0)
    def _():
        acc_ref[...] = jnp.full_like(acc_ref, -jnp.inf)

    xt = x_ref[0]                                                    # (TILE_N, D) f32
    h = jnp.dot(xt, w1[...], preferred_element_type=jnp.float32) + t1[...]
    h = jnp.maximum(h, 0.0)                                          # (TILE_N, 64)
    h = jnp.dot(h, w2[...], preferred_element_type=jnp.float32) + t2[...]
    h = jnp.maximum(h, 0.0)                                          # (TILE_N, 128)
    # 128 -> 1024 is the heavy matmul: bf16 operands, f32 accumulate on the MXU.
    h = jnp.dot(h.astype(jnp.bfloat16), w3[...],
                preferred_element_type=jnp.float32) + t3[...]
    h = jnp.maximum(h, 0.0)                                          # (TILE_N, 1024)

    acc_ref[...] = jnp.maximum(acc_ref[...], jnp.max(h, axis=0, keepdims=True))

    @pl.when(t == pl.num_programs(1) - 1)
    def _():
        o_ref[0] = acc_ref[...]


def _feat_point_kernel(x_ref, tr_ref, w1, t1, w2, t2, w3, t3, w4, t4, w5, t5,
                       o_ref, acc_ref):
    """Fused PointNetfeat per-point path: (x @ trans) -> conv1..conv5 -> max over points."""
    t = pl.program_id(1)

    @pl.when(t == 0)
    def _():
        acc_ref[...] = jnp.full_like(acc_ref, -jnp.inf)

    xt = x_ref[0]                                                    # (TILE_N, D)
    xt = jnp.dot(xt, tr_ref[0], preferred_element_type=jnp.float32)  # bmm folded in
    h = jnp.maximum(jnp.dot(xt, w1[...], preferred_element_type=jnp.float32) + t1[...], 0.0)
    h = jnp.maximum(jnp.dot(h, w2[...], preferred_element_type=jnp.float32) + t2[...], 0.0)
    h = jnp.maximum(jnp.dot(h, w3[...], preferred_element_type=jnp.float32) + t3[...], 0.0)
    h = jnp.maximum(jnp.dot(h, w4[...], preferred_element_type=jnp.float32) + t4[...], 0.0)
    # conv5: BN, no ReLU; heavy 128->1024 matmul in bf16 with f32 accumulate.
    h = jnp.dot(h.astype(jnp.bfloat16), w5[...],
                preferred_element_type=jnp.float32) + t5[...]        # (TILE_N, 1024)

    acc_ref[...] = jnp.maximum(acc_ref[...], jnp.max(h, axis=0, keepdims=True))

    @pl.when(t == pl.num_programs(1) - 1)
    def _():
        o_ref[0] = acc_ref[...]


def _stn_head_kernel(g_ref, w1, t1, w2, t2, w3, b3, eye_ref, o_ref):
    """Fused STN head: fc1+BN+ReLU, fc2+BN+ReLU, fc3, + flattened identity."""
    h = jnp.dot(g_ref[...].astype(jnp.bfloat16), w1[...],
                preferred_element_type=jnp.float32) + t1[...]
    h = jnp.maximum(h, 0.0)                                          # (B, 512)
    h = jnp.maximum(jnp.dot(h, w2[...], preferred_element_type=jnp.float32) + t2[...], 0.0)
    o_ref[...] = (jnp.dot(h, w3[...], preferred_element_type=jnp.float32)
                  + b3[...] + eye_ref[...])                          # (B, D*D)


def _cls_head_kernel(g_ref, w1, t1, w2, t2, w3, b3, o_ref):
    """Fused classifier head: fc1+BN+ReLU, (dropout=id) fc2+BN+ReLU, fc3 + log_softmax."""
    h = jnp.dot(g_ref[...].astype(jnp.bfloat16), w1[...],
                preferred_element_type=jnp.float32) + t1[...]
    h = jnp.maximum(h, 0.0)                                          # (B, 512)
    h = jnp.maximum(jnp.dot(h, w2[...], preferred_element_type=jnp.float32) + t2[...], 0.0)
    y = jnp.dot(h, w3[...], preferred_element_type=jnp.float32) + b3[...]  # (B, k)
    z = y - jnp.max(y, axis=-1, keepdims=True)
    o_ref[...] = z - jnp.log(jnp.sum(jnp.exp(z), axis=-1, keepdims=True))


# ------------------------------ kernel wrappers ------------------------------

def stn_point_fused(x_bnd, p, tile_n):
    B, n_pad, D = x_bnd.shape
    nt = n_pad // tile_n
    out = pl.pallas_call(
        _stn_point_kernel,
        out_shape=jax.ShapeDtypeStruct((B, 1, 1024), jnp.float32),
        grid=(B, nt),
        in_specs=[
            pl.BlockSpec((1, tile_n, D), lambda b, t: (b, t, 0)),
            _full_spec(p["conv1"]["w"].shape), _full_spec(p["conv1"]["t"].shape),
            _full_spec(p["conv2"]["w"].shape), _full_spec(p["conv2"]["t"].shape),
            _full_spec(p["conv3"]["w"].shape), _full_spec(p["conv3"]["t"].shape),
        ],
        out_specs=pl.BlockSpec((1, 1, 1024), lambda b, t: (b, 0, 0)),
        scratch_shapes=[pltpu.VMEM((1, 1024), jnp.float32)],
        compiler_params=pltpu.CompilerParams(
            dimension_semantics=("parallel", "arbitrary")),
    )(x_bnd,
      p["conv1"]["w"], p["conv1"]["t"],
      p["conv2"]["w"], p["conv2"]["t"],
      p["conv3"]["w"], p["conv3"]["t"])
    return out.reshape(B, 1024)


def feat_point_fused(x_bnd, trans, fp, tile_n):
    B, n_pad, D = x_bnd.shape
    nt = n_pad // tile_n
    out = pl.pallas_call(
        _feat_point_kernel,
        out_shape=jax.ShapeDtypeStruct((B, 1, 1024), jnp.float32),
        grid=(B, nt),
        in_specs=[
            pl.BlockSpec((1, tile_n, D), lambda b, t: (b, t, 0)),
            pl.BlockSpec((1, D, D), lambda b, t: (b, 0, 0)),
            _full_spec(fp["conv1"]["w"].shape), _full_spec(fp["conv1"]["t"].shape),
            _full_spec(fp["conv2"]["w"].shape), _full_spec(fp["conv2"]["t"].shape),
            _full_spec(fp["conv3"]["w"].shape), _full_spec(fp["conv3"]["t"].shape),
            _full_spec(fp["conv4"]["w"].shape), _full_spec(fp["conv4"]["t"].shape),
            _full_spec(fp["conv5"]["w"].shape), _full_spec(fp["conv5"]["t"].shape),
        ],
        out_specs=pl.BlockSpec((1, 1, 1024), lambda b, t: (b, 0, 0)),
        scratch_shapes=[pltpu.VMEM((1, 1024), jnp.float32)],
        compiler_params=pltpu.CompilerParams(
            dimension_semantics=("parallel", "arbitrary")),
    )(x_bnd, trans,
      fp["conv1"]["w"], fp["conv1"]["t"],
      fp["conv2"]["w"], fp["conv2"]["t"],
      fp["conv3"]["w"], fp["conv3"]["t"],
      fp["conv4"]["w"], fp["conv4"]["t"],
      fp["conv5"]["w"], fp["conv5"]["t"])
    return out.reshape(B, 1024)


def stn_head(g, p, d):
    B = g.shape[0]
    eye = jnp.eye(d, dtype=jnp.float32).reshape(1, d * d)
    out = pl.pallas_call(
        _stn_head_kernel,
        out_shape=jax.ShapeDtypeStruct((B, d * d), jnp.float32),
        in_specs=[
            _full_spec(g.shape),
            _full_spec(p["fc1"]["w"].shape), _full_spec(p["fc1"]["t"].shape),
            _full_spec(p["fc2"]["w"].shape), _full_spec(p["fc2"]["t"].shape),
            _full_spec(p["fc3"]["w"].shape), _full_spec(p["fc3"]["t"].shape),
            _full_spec(eye.shape),
        ],
        out_specs=_full_spec((B, d * d)),
    )(g, p["fc1"]["w"], p["fc1"]["t"], p["fc2"]["w"], p["fc2"]["t"],
      p["fc3"]["w"], p["fc3"]["t"], eye)
    return out.reshape(B, d, d)


def cls_head(g, params):
    B = g.shape[0]
    k = params["fc3"]["w"].shape[1]
    return pl.pallas_call(
        _cls_head_kernel,
        out_shape=jax.ShapeDtypeStruct((B, k), jnp.float32),
        in_specs=[
            _full_spec(g.shape),
            _full_spec(params["fc1"]["w"].shape), _full_spec(params["fc1"]["t"].shape),
            _full_spec(params["fc2"]["w"].shape), _full_spec(params["fc2"]["t"].shape),
            _full_spec(params["fc3"]["w"].shape), _full_spec(params["fc3"]["t"].shape),
        ],
        out_specs=_full_spec((B, k)),
    )(g, params["fc1"]["w"], params["fc1"]["t"],
      params["fc2"]["w"], params["fc2"]["t"],
      params["fc3"]["w"], params["fc3"]["t"])


# ----------------------- parameter construction (glue) ----------------------

def _init_layer(key, c_in, c_out, with_bn=True, bf16_w=False):
    """Random layer params with the BN scale folded into the weights.

    relu(BN(x @ W + b)) == relu(x @ (W*s) + t) with s = gamma/sqrt(var+eps),
    t = (b - mean)*s + beta.  For with_bn=False, 't' is simply the raw bias.
    """
    ks = jax.random.split(key, 6)
    w = jax.random.normal(ks[0], (c_in, c_out), jnp.float32) / jnp.sqrt(jnp.float32(c_in))
    b = 0.1 * jax.random.normal(ks[1], (c_out,), jnp.float32)
    if with_bn:
        gamma = 1.0 + 0.1 * jax.random.normal(ks[2], (c_out,), jnp.float32)
        beta = 0.1 * jax.random.normal(ks[3], (c_out,), jnp.float32)
        mean = 0.1 * jax.random.normal(ks[4], (c_out,), jnp.float32)
        var = 0.9 + 0.2 * jnp.abs(jax.random.normal(ks[5], (c_out,), jnp.float32))
        s = gamma / jnp.sqrt(var + BN_EPS)
        w = w * s[None, :]                       # BN scale folded into weights
        t = (b - mean) * s + beta
    else:
        t = b
    if bf16_w:
        w = w.astype(jnp.bfloat16)               # heavy layers run bf16 on the MXU
    return {"w": w, "t": t.reshape(1, c_out).astype(jnp.float32)}


def init_pointnet_cls_params(key, input_dim=3, k=2):
    ks = jax.random.split(key, 14)
    stn = {
        "conv1": _init_layer(ks[0], input_dim, 64),
        "conv2": _init_layer(ks[1], 64, 128),
        "conv3": _init_layer(ks[2], 128, 1024, bf16_w=True),
        "fc1": _init_layer(ks[3], 1024, 512, bf16_w=True),
        "fc2": _init_layer(ks[4], 512, 256),
        "fc3": _init_layer(ks[5], 256, input_dim * input_dim, with_bn=False),
    }
    feat = {
        "stn": stn,
        "conv1": _init_layer(ks[6], input_dim, 64),
        "conv2": _init_layer(ks[7], 64, 64),
        "conv3": _init_layer(ks[8], 64, 64),
        "conv4": _init_layer(ks[9], 64, 128),
        "conv5": _init_layer(ks[10], 128, 1024, bf16_w=True),
    }
    return {
        "feat": feat,
        "fc1": _init_layer(ks[11], 1024, 512, bf16_w=True),
        "fc2": _init_layer(ks[12], 512, 256),
        "fc3": _init_layer(ks[13], 256, k, with_bn=False),
    }


# ------------------------------ forward (glue) -------------------------------

def pointnet_cls_forward(x_bcn, params, *, tile_n=512):
    """x_bcn: (B, D, N) — PyTorch NCW layout at the module boundary."""
    B, D, N = x_bcn.shape
    fp = params["feat"]

    # Channel-last per-point layout. Pad N to a tile multiple by duplicating
    # point 0 — max over points is invariant to duplicated points.
    x_bnd = jnp.transpose(x_bcn, (0, 2, 1)).astype(jnp.float32)        # (B, N, D)
    tile_n = min(tile_n, _round_up(N, 8))                              # 256/512-aligned at scale
    n_pad = (-N) % tile_n
    if n_pad:
        pad = jnp.broadcast_to(x_bnd[:, :1, :], (B, n_pad, D))
        x_bnd = jnp.concatenate([x_bnd, pad], axis=1)

    # STN: fused per-point MLP + max-pool, then fused fc head (+ identity).
    g_stn = stn_point_fused(x_bnd, fp["stn"], tile_n)                  # (B, 1024)
    trans = stn_head(g_stn, fp["stn"], D)                              # (B, D, D)

    # PointNetfeat (global_feat=True): bmm(x, trans) + conv1..5 + max-pool, all fused.
    g = feat_point_fused(x_bnd, trans, fp, tile_n)                     # (B, 1024)

    # Classifier head: fc1+bn+relu, (dropout=id) fc2+bn+relu, fc3 + log_softmax.
    logp = cls_head(g, params)                                         # (B, k)
    return logp, trans, None


# ----------------------------------- main ------------------------------------

if __name__ == "__main__":
    key = jax.random.PRNGKey(0)
    pkey, xkey = jax.random.split(key)

    INPUT_DIM, K_CLASSES = 3, 2
    B, N = 2, 16
    params = init_pointnet_cls_params(pkey, input_dim=INPUT_DIM, k=K_CLASSES)
    x = jax.random.normal(xkey, (B, INPUT_DIM, N), jnp.float32)        # NCW, like torch

    fwd = jax.jit(functools.partial(pointnet_cls_forward, tile_n=512))
    logp, trans, trans_feat = fwd(x, params)
    jax.block_until_ready((logp, trans))

    assert logp.shape == (B, K_CLASSES)
    assert trans.shape == (B, INPUT_DIM, INPUT_DIM)
    assert trans_feat is None
    assert bool(jnp.all(jnp.isfinite(logp)))
    # log_softmax rows must exp-sum to 1
    assert jnp.allclose(jnp.sum(jnp.exp(logp), axis=1), 1.0, atol=1e-4)
    print("KERNEL_OK")
</pallas_src>

<mosaic_0001>
module attributes {stable_mosaic.version = 11 : i64} {
  func.func @_stn_point_kernel(%arg0: i32, %arg1: i32, %arg2: memref<1x16x3xf32, #tpu.memory_space<vmem>>, %arg3: memref<3x64xf32, #tpu.memory_space<vmem>>, %arg4: memref<1x64xf32, #tpu.memory_space<vmem>>, %arg5: memref<64x128xf32, #tpu.memory_space<vmem>>, %arg6: memref<1x128xf32, #tpu.memory_space<vmem>>, %arg7: memref<128x1024xbf16, #tpu.memory_space<vmem>>, %arg8: memref<1x1024xf32, #tpu.memory_space<vmem>>, %arg9: memref<1x1x1024xf32, #tpu.memory_space<vmem>>, %arg10: memref<1x1024xf32, #tpu.memory_space<vmem>>) attributes {dimension_semantics = [#tpu.dimension_semantics<parallel>, #tpu.dimension_semantics<arbitrary>], iteration_bounds = array<i64: 2, 1>, scalar_prefetch = 0 : i64, scratch_operands = 1 : i64, tpu.core_type = #tpu.core_type<tc>, window_params = [{transform_indices = @transform_0, window_bounds = array<i64: 1, 16, 3>}, {pipeline_mode = #tpu.pipeline_mode<synchronous>, transform_indices = @transform_1, window_bounds = array<i64: 3, 64>}, {pipeline_mode = #tpu.pipeline_mode<synchronous>, transform_indices = @transform_2, window_bounds = array<i64: 1, 64>}, {pipeline_mode = #tpu.pipeline_mode<synchronous>, transform_indices = @transform_3, window_bounds = array<i64: 64, 128>}, {pipeline_mode = #tpu.pipeline_mode<synchronous>, transform_indices = @transform_4, window_bounds = array<i64: 1, 128>}, {pipeline_mode = #tpu.pipeline_mode<synchronous>, transform_indices = @transform_5, window_bounds = array<i64: 128, 1024>}, {pipeline_mode = #tpu.pipeline_mode<synchronous>, transform_indices = @transform_6, window_bounds = array<i64: 1, 1024>}, {transform_indices = @transform_7, window_bounds = array<i64: 1, 1, 1024>}]} {
    %c0_i32 = arith.constant 0 : i32
    %0 = arith.cmpi eq, %arg1, %c0_i32 : i32
    %1 = arith.extui %0 : i1 to i32
    %c0_i32_0 = arith.constant 0 : i32
    %2 = arith.cmpi ne, %1, %c0_i32_0 : i32
    scf.if %2 {
      %cst_27 = arith.constant 0xFF800000 : f32
      %35 = vector.broadcast %cst_27 : f32 to vector<1x1024xf32>
      %c0_28 = arith.constant 0 : index
      %c0_29 = arith.constant 0 : index
      %36 = vector.load %arg10[%c0_28, %c0_29] : memref<1x1024xf32, #tpu.memory_space<vmem>>, vector<1x1024xf32>
      tpu.vector_store %arg10[%c0_28, %c0_29], %35 {strides = array<i32>} : memref<1x1024xf32, #tpu.memory_space<vmem>>, vector<1x1024xf32>,
    } else {
    }
    %c0 = arith.constant 0 : index
    %c0_1 = arith.constant 0 : index
    %c0_2 = arith.constant 0 : index
    %3 = vector.load %arg2[%c0, %c0_1, %c0_2] : memref<1x16x3xf32, #tpu.memory_space<vmem>>, vector<1x16x3xf32>
    %4 = vector.shape_cast %3 : vector<1x16x3xf32> to vector<16x3xf32>
    %c0_3 = arith.constant 0 : index
    %c0_4 = arith.constant 0 : index
    %5 = vector.load %arg3[%c0_3, %c0_4] : memref<3x64xf32, #tpu.memory_space<vmem>>, vector<3x64xf32>
    %cst = arith.constant dense<0.000000e+00> : vector<16x64xf32>
    %6 = tpu.matmul %4, %5, %cst {dimension_numbers = #tpu.dot_dimension_numbers<[1], [0], [0], [1], [0, 0, 1, 1], [], []>} : vector<16x3xf32>, vector<3x64xf32>, vector<16x64xf32> -> vector<16x64xf32>
    %c0_5 = arith.constant 0 : index
    %c0_6 = arith.constant 0 : index
    %7 = vector.load %arg4[%c0_5, %c0_6] : memref<1x64xf32, #tpu.memory_space<vmem>>, vector<1x64xf32>
    %8 = vector.broadcast %7 : vector<1x64xf32> to vector<16x64xf32>
    %9 = arith.addf %6, %8 : vector<16x64xf32>
    %cst_7 = arith.constant 0.000000e+00 : f32
    %10 = vector.broadcast %cst_7 : f32 to vector<16x64xf32>
    %11 = arith.maximumf %9, %10 : vector<16x64xf32>
    %c0_8 = arith.constant 0 : index
    %c0_9 = arith.constant 0 : index
    %12 = vector.load %arg5[%c0_8, %c0_9] : memref<64x128xf32, #tpu.memory_space<vmem>>, vector<64x128xf32>
    %cst_10 = arith.constant dense<0.000000e+00> : vector<16x128xf32>
    %13 = tpu.matmul %11, %12, %cst_10 {dimension_numbers = #tpu.dot_dimension_numbers<[1], [0], [0], [1], [0, 0, 1, 1], [], []>} : vector<16x64xf32>, vector<64x128xf32>, vector<16x128xf32> -> vector<16x128xf32>
    %c0_11 = arith.constant 0 : index
    %c0_12 = arith.constant 0 : index
    %14 = vector.load %arg6[%c0_11, %c0_12] : memref<1x128xf32, #tpu.memory_space<vmem>>, vector<1x128xf32>
    %15 = vector.broadcast %14 : vector<1x128xf32> to vector<16x128xf32>
    %16 = arith.addf %13, %15 : vector<16x128xf32>
    %cst_13 = arith.constant 0.000000e+00 : f32
    %17 = vector.broadcast %cst_13 : f32 to vector<16x128xf32>
    %18 = arith.maximumf %16, %17 : vector<16x128xf32>
    %19 = arith.truncf %18 : vector<16x128xf32> to vector<16x128xbf16>
    %c0_14 = arith.constant 0 : index
    %c0_15 = arith.constant 0 : index
    %20 = vector.load %arg7[%c0_14, %c0_15] : memref<128x1024xbf16, #tpu.memory_space<vmem>>, vector<128x1024xbf16>
    %cst_16 = arith.constant dense<0.000000e+00> : vector<16x1024xf32>
    %21 = tpu.matmul %19, %20, %cst_16 {dimension_numbers = #tpu.dot_dimension_numbers<[1], [0], [0], [1], [0, 0, 1, 1], [], []>} : vector<16x128xbf16>, vector<128x1024xbf16>, vector<16x1024xf32> -> vector<16x1024xf32>
    %c0_17 = arith.constant 0 : index
    %c0_18 = arith.constant 0 : index
    %22 = vector.load %arg8[%c0_17, %c0_18] : memref<1x1024xf32, #tpu.memory_space<vmem>>, vector<1x1024xf32>
    %23 = vector.broadcast %22 : vector<1x1024xf32> to vector<16x1024xf32>
    %24 = arith.addf %21, %23 : vector<16x1024xf32>
    %cst_19 = arith.constant 0.000000e+00 : f32
    %25 = vector.broadcast %cst_19 : f32 to vector<16x1024xf32>
    %26 = arith.maximumf %24, %25 : vector<16x1024xf32>
    %c0_20 = arith.constant 0 : index
    %c0_21 = arith.constant 0 : index
    %27 = vector.load %arg10[%c0_20, %c0_21] : memref<1x1024xf32, #tpu.memory_space<vmem>>, vector<1x1024xf32>
    %cst_22 = arith.constant dense<0xFF800000> : vector<1024xf32>
    %28 = vector.multi_reduction <maximumf>, %26, %cst_22 [0] : vector<16x1024xf32> to vector<1024xf32>
    %29 = vector.shape_cast %28 : vector<1024xf32> to vector<1x1024xf32>
    %30 = arith.maximumf %27, %29 : vector<1x1024xf32>
    %c0_23 = arith.constant 0 : index
    %c0_24 = arith.constant 0 : index
    %31 = vector.load %arg10[%c0_23, %c0_24] : memref<1x1024xf32, #tpu.memory_space<vmem>>, vector<1x1024xf32>
    tpu.vector_store %arg10[%c0_23, %c0_24], %30 {strides = array<i32>} : memref<1x1024xf32, #tpu.memory_space<vmem>>, vector<1x1024xf32>,
    %c0_i32_25 = arith.constant 0 : i32
    %32 = arith.cmpi eq, %arg1, %c0_i32_25 : i32
    %33 = arith.extui %32 : i1 to i32
    %c0_i32_26 = arith.constant 0 : i32
    %34 = arith.cmpi ne, %33, %c0_i32_26 : i32
    scf.if %34 {
      %c0_27 = arith.constant 0 : index
      %c0_28 = arith.constant 0 : index
      %35 = vector.load %arg10[%c0_27, %c0_28] : memref<1x1024xf32, #tpu.memory_space<vmem>>, vector<1x1024xf32>
      %c0_29 = arith.constant 0 : index
      %c0_30 = arith.constant 0 : index
      %c0_31 = arith.constant 0 : index
      %36 = vector.load %arg9[%c0_29, %c0_30, %c0_31] : memref<1x1x1024xf32, #tpu.memory_space<vmem>>, vector<1x1x1024xf32>
      %37 = vector.shape_cast %36 : vector<1x1x1024xf32> to vector<1x1024xf32>
      %38 = vector.shape_cast %35 : vector<1x1024xf32> to vector<1x1x1024xf32>
      tpu.vector_store %arg9[%c0_29, %c0_30, %c0_31], %38 {strides = array<i32>} : memref<1x1x1024xf32, #tpu.memory_space<vmem>>, vector<1x1x1024xf32>,
    } else {
    }
    return
  }
  func.func @transform_0(%arg0: i32, %arg1: i32) -> (i32, i32, i32) {
    %c0_i32 = arith.constant 0 : i32
    %c0_i32_0 = arith.constant 0 : i32
    return %arg0, %arg1, %c0_i32 : i32, i32, i32
  }
  func.func @transform_1(%arg0: i32, %arg1: i32) -> (i32, i32) {
    %c0_i32 = arith.constant 0 : i32
    %c0_i32_0 = arith.constant 0 : i32
    %c0_i32_1 = arith.constant 0 : i32
    return %c0_i32, %c0_i32_0 : i32, i32
  }
  func.func @transform_2(%arg0: i32, %arg1: i32) -> (i32, i32) {
    %c0_i32 = arith.constant 0 : i32
    %c0_i32_0 = arith.constant 0 : i32
    %c0_i32_1 = arith.constant 0 : i32
    return %c0_i32, %c0_i32_0 : i32, i32
  }
  func.func @transform_3(%arg0: i32, %arg1: i32) -> (i32, i32) {
    %c0_i32 = arith.constant 0 : i32
    %c0_i32_0 = arith.constant 0 : i32
    %c0_i32_1 = arith.constant 0 : i32
    return %c0_i32, %c0_i32_0 : i32, i32
  }
  func.func @transform_4(%arg0: i32, %arg1: i32) -> (i32, i32) {
    %c0_i32 = arith.constant 0 : i32
    %c0_i32_0 = arith.constant 0 : i32
    %c0_i32_1 = arith.constant 0 : i32
    return %c0_i32, %c0_i32_0 : i32, i32
  }
  func.func @transform_5(%arg0: i32, %arg1: i32) -> (i32, i32) {
    %c0_i32 = arith.constant 0 : i32
    %c0_i32_0 = arith.constant 0 : i32
    %c0_i32_1 = arith.constant 0 : i32
    return %c0_i32, %c0_i32_0 : i32, i32
  }
  func.func @transform_6(%arg0: i32, %arg1: i32) -> (i32, i32) {
    %c0_i32 = arith.constant 0 : i32
    %c0_i32_0 = arith.constant 0 : i32
    %c0_i32_1 = arith.constant 0 : i32
    return %c0_i32, %c0_i32_0 : i32, i32
  }
  func.func @transform_7(%arg0: i32, %arg1: i32) -> (i32, i32, i32) {
    %c0_i32 = arith.constant 0 : i32
    %c0_i32_0 = arith.constant 0 : i32
    %c0_i32_1 = arith.constant 0 : i32
    return %arg0, %c0_i32, %c0_i32_0 : i32, i32, i32
  }
}

module attributes {stable_mosaic.version = 11 : i64} {
  func.func @_stn_head_kernel(%arg0: memref<2x1024xf32, #tpu.memory_space<vmem>>, %arg1: memref<1024x512xbf16, #tpu.memory_space<vmem>>, %arg2: memref<1x512xf32, #tpu.memory_space<vmem>>, %arg3: memref<512x256xf32, #tpu.memory_space<vmem>>, %arg4: memref<1x256xf32, #tpu.memory_space<vmem>>, %arg5: memref<256x9xf32, #tpu.memory_space<vmem>>, %arg6: memref<1x9xf32, #tpu.memory_space<vmem>>, %arg7: memref<1x9xf32, #tpu.memory_space<vmem>>, %arg8: memref<2x9xf32, #tpu.memory_space<vmem>>) attributes {dimension_semantics = [], scalar_prefetch = 0 : i64, scratch_operands = 0 : i64, tpu.core_type = #tpu.core_type<tc>} {
    %c0 = arith.constant 0 : index
    %c0_0 = arith.constant 0 : index
    %0 = vector.load %arg0[%c0, %c0_0] : memref<2x1024xf32, #tpu.memory_space<vmem>>, vector<2x1024xf32>
    %1 = arith.truncf %0 : vector<2x1024xf32> to vector<2x1024xbf16>
    %c0_1 = arith.constant 0 : index
    %c0_2 = arith.constant 0 : index
    %2 = vector.load %arg1[%c0_1, %c0_2] : memref<1024x512xbf16, #tpu.memory_space<vmem>>, vector<1024x512xbf16>
    %cst = arith.constant dense<0.000000e+00> : vector<2x512xf32>
    %3 = tpu.matmul %1, %2, %cst {dimension_numbers = #tpu.dot_dimension_numbers<[1], [0], [0], [1], [0, 0, 1, 1], [], []>} : vector<2x1024xbf16>, vector<1024x512xbf16>, vector<2x512xf32> -> vector<2x512xf32>
    %c0_3 = arith.constant 0 : index
    %c0_4 = arith.constant 0 : index
    %4 = vector.load %arg2[%c0_3, %c0_4] : memref<1x512xf32, #tpu.memory_space<vmem>>, vector<1x512xf32>
    %5 = vector.broadcast %4 : vector<1x512xf32> to vector<2x512xf32>
    %6 = arith.addf %3, %5 : vector<2x512xf32>
    %cst_5 = arith.constant 0.000000e+00 : f32
    %7 = vector.broadcast %cst_5 : f32 to vector<2x512xf32>
    %8 = arith.maximumf %6, %7 : vector<2x512xf32>
    %c0_6 = arith.constant 0 : index
    %c0_7 = arith.constant 0 : index
    %9 = vector.load %arg3[%c0_6, %c0_7] : memref<512x256xf32, #tpu.memory_space<vmem>>, vector<512x256xf32>
    %cst_8 = arith.constant dense<0.000000e+00> : vector<2x256xf32>
    %10 = tpu.matmul %8, %9, %cst_8 {dimension_numbers = #tpu.dot_dimension_numbers<[1], [0], [0], [1], [0, 0, 1, 1], [], []>} : vector<2x512xf32>, vector<512x256xf32>, vector<2x256xf32> -> vector<2x256xf32>
    %c0_9 = arith.constant 0 : index
    %c0_10 = arith.constant 0 : index
    %11 = vector.load %arg4[%c0_9, %c0_10] : memref<1x256xf32, #tpu.memory_space<vmem>>, vector<1x256xf32>
    %12 = vector.broadcast %11 : vector<1x256xf32> to vector<2x256xf32>
    %13 = arith.addf %10, %12 : vector<2x256xf32>
    %cst_11 = arith.constant 0.000000e+00 : f32
    %14 = vector.broadcast %cst_11 : f32 to vector<2x256xf32>
    %15 = arith.maximumf %13, %14 : vector<2x256xf32>
    %c0_12 = arith.constant 0 : index
    %c0_13 = arith.constant 0 : index
    %16 = vector.load %arg5[%c0_12, %c0_13] : memref<256x9xf32, #tpu.memory_space<vmem>>, vector<256x9xf32>
    %cst_14 = arith.constant dense<0.000000e+00> : vector<2x9xf32>
    %17 = tpu.matmul %15, %16, %cst_14 {dimension_numbers = #tpu.dot_dimension_numbers<[1], [0], [0], [1], [0, 0, 1, 1], [], []>} : vector<2x256xf32>, vector<256x9xf32>, vector<2x9xf32> -> vector<2x9xf32>
    %c0_15 = arith.constant 0 : index
    %c0_16 = arith.constant 0 : index
    %18 = vector.load %arg6[%c0_15, %c0_16] : memref<1x9xf32, #tpu.memory_space<vmem>>, vector<1x9xf32>
    %19 = vector.broadcast %18 : vector<1x9xf32> to vector<2x9xf32>
    %20 = arith.addf %17, %19 : vector<2x9xf32>
    %c0_17 = arith.constant 0 : index
    %c0_18 = arith.constant 0 : index
    %21 = vector.load %arg7[%c0_17, %c0_18] : memref<1x9xf32, #tpu.memory_space<vmem>>, vector<1x9xf32>
    %22 = vector.broadcast %21 : vector<1x9xf32> to vector<2x9xf32>
    %23 = arith.addf %20, %22 : vector<2x9xf32>
    %c0_19 = arith.constant 0 : index
    %c0_20 = arith.constant 0 : index
    %24 = vector.load %arg8[%c0_19, %c0_20] : memref<2x9xf32, #tpu.memory_space<vmem>>, vector<2x9xf32>
    tpu.vector_store %arg8[%c0_19, %c0_20], %23 {strides = array<i32>} : memref<2x9xf32, #tpu.memory_space<vmem>>, vector<2x9xf32>,
    return
  }
}

module attributes {stable_mosaic.version = 11 : i64} {
  func.func @_feat_point_kernel(%arg0: i32, %arg1: i32, %arg2: memref<1x16x3xf32, #tpu.memory_space<vmem>>, %arg3: memref<1x3x3xf32, #tpu.memory_space<vmem>>, %arg4: memref<3x64xf32, #tpu.memory_space<vmem>>, %arg5: memref<1x64xf32, #tpu.memory_space<vmem>>, %arg6: memref<64x64xf32, #tpu.memory_space<vmem>>, %arg7: memref<1x64xf32, #tpu.memory_space<vmem>>, %arg8: memref<64x64xf32, #tpu.memory_space<vmem>>, %arg9: memref<1x64xf32, #tpu.memory_space<vmem>>, %arg10: memref<64x128xf32, #tpu.memory_space<vmem>>, %arg11: memref<1x128xf32, #tpu.memory_space<vmem>>, %arg12: memref<128x1024xbf16, #tpu.memory_space<vmem>>, %arg13: memref<1x1024xf32, #tpu.memory_space<vmem>>, %arg14: memref<1x1x1024xf32, #tpu.memory_space<vmem>>, %arg15: memref<1x1024xf32, #tpu.memory_space<vmem>>) attributes {dimension_semantics = [#tpu.dimension_semantics<parallel>, #tpu.dimension_semantics<arbitrary>], iteration_bounds = array<i64: 2, 1>, scalar_prefetch = 0 : i64, scratch_operands = 1 : i64, tpu.core_type = #tpu.core_type<tc>, window_params = [{transform_indices = @transform_0, window_bounds = array<i64: 1, 16, 3>}, {transform_indices = @transform_1, window_bounds = array<i64: 1, 3, 3>}, {pipeline_mode = #tpu.pipeline_mode<synchronous>, transform_indices = @transform_2, window_bounds = array<i64: 3, 64>}, {pipeline_mode = #tpu.pipeline_mode<synchronous>, transform_indices = @transform_3, window_bounds = array<i64: 1, 64>}, {pipeline_mode = #tpu.pipeline_mode<synchronous>, transform_indices = @transform_4, window_bounds = array<i64: 64, 64>}, {pipeline_mode = #tpu.pipeline_mode<synchronous>, transform_indices = @transform_5, window_bounds = array<i64: 1, 64>}, {pipeline_mode = #tpu.pipeline_mode<synchronous>, transform_indices = @transform_6, window_bounds = array<i64: 64, 64>}, {pipeline_mode = #tpu.pipeline_mode<synchronous>, transform_indices = @transform_7, window_bounds = array<i64: 1, 64>}, {pipeline_mode = #tpu.pipeline_mode<synchronous>, transform_indices = @transform_8, window_bounds = array<i64: 64, 128>}, {pipeline_mode = #tpu.pipeline_mode<synchronous>, transform_indices = @transform_9, window_bounds = array<i64: 1, 128>}, {pipeline_mode = #tpu.pipeline_mode<synchronous>, transform_indices = @transform_10, window_bounds = array<i64: 128, 1024>}, {pipeline_mode = #tpu.pipeline_mode<synchronous>, transform_indices = @transform_11, window_bounds = array<i64: 1, 1024>}, {transform_indices = @transform_12, window_bounds = array<i64: 1, 1, 1024>}]} {
    %c0_i32 = arith.constant 0 : i32
    %0 = arith.cmpi eq, %arg1, %c0_i32 : i32
    %1 = arith.extui %0 : i1 to i32
    %c0_i32_0 = arith.constant 0 : i32
    %2 = arith.cmpi ne, %1, %c0_i32_0 : i32
    scf.if %2 {
      %cst_42 = arith.constant 0xFF800000 : f32
      %50 = vector.broadcast %cst_42 : f32 to vector<1x1024xf32>
      %c0_43 = arith.constant 0 : index
      %c0_44 = arith.constant 0 : index
      %51 = vector.load %arg15[%c0_43, %c0_44] : memref<1x1024xf32, #tpu.memory_space<vmem>>, vector<1x1024xf32>
      tpu.vector_store %arg15[%c0_43, %c0_44], %50 {strides = array<i32>} : memref<1x1024xf32, #tpu.memory_space<vmem>>, vector<1x1024xf32>,
    } else {
    }
    %c0 = arith.constant 0 : index
    %c0_1 = arith.constant 0 : index
    %c0_2 = arith.constant 0 : index
    %3 = vector.load %arg2[%c0, %c0_1, %c0_2] : memref<1x16x3xf32, #tpu.memory_space<vmem>>, vector<1x16x3xf32>
    %4 = vector.shape_cast %3 : vector<1x16x3xf32> to vector<16x3xf32>
    %c0_3 = arith.constant 0 : index
    %c0_4 = arith.constant 0 : index
    %c0_5 = arith.constant 0 : index
    %5 = vector.load %arg3[%c0_3, %c0_4, %c0_5] : memref<1x3x3xf32, #tpu.memory_space<vmem>>, vector<1x3x3xf32>
    %6 = vector.shape_cast %5 : vector<1x3x3xf32> to vector<3x3xf32>
    %cst = arith.constant dense<0.000000e+00> : vector<16x3xf32>
    %7 = tpu.matmul %4, %6, %cst {dimension_numbers = #tpu.dot_dimension_numbers<[1], [0], [0], [1], [0, 0, 1, 1], [], []>} : vector<16x3xf32>, vector<3x3xf32>, vector<16x3xf32> -> vector<16x3xf32>
    %c0_6 = arith.constant 0 : index
    %c0_7 = arith.constant 0 : index
    %8 = vector.load %arg4[%c0_6, %c0_7] : memref<3x64xf32, #tpu.memory_space<vmem>>, vector<3x64xf32>
    %cst_8 = arith.constant dense<0.000000e+00> : vector<16x64xf32>
    %9 = tpu.matmul %7, %8, %cst_8 {dimension_numbers = #tpu.dot_dimension_numbers<[1], [0], [0], [1], [0, 0, 1, 1], [], []>} : vector<16x3xf32>, vector<3x64xf32>, vector<16x64xf32> -> vector<16x64xf32>
    %c0_9 = arith.constant 0 : index
    %c0_10 = arith.constant 0 : index
    %10 = vector.load %arg5[%c0_9, %c0_10] : memref<1x64xf32, #tpu.memory_space<vmem>>, vector<1x64xf32>
    %11 = vector.broadcast %10 : vector<1x64xf32> to vector<16x64xf32>
    %12 = arith.addf %9, %11 : vector<16x64xf32>
    %cst_11 = arith.constant 0.000000e+00 : f32
    %13 = vector.broadcast %cst_11 : f32 to vector<16x64xf32>
    %14 = arith.maximumf %12, %13 : vector<16x64xf32>
    %c0_12 = arith.constant 0 : index
    %c0_13 = arith.constant 0 : index
    %15 = vector.load %arg6[%c0_12, %c0_13] : memref<64x64xf32, #tpu.memory_space<vmem>>, vector<64x64xf32>
    %cst_14 = arith.constant dense<0.000000e+00> : vector<16x64xf32>
    %16 = tpu.matmul %14, %15, %cst_14 {dimension_numbers = #tpu.dot_dimension_numbers<[1], [0], [0], [1], [0, 0, 1, 1], [], []>} : vector<16x64xf32>, vector<64x64xf32>, vector<16x64xf32> -> vector<16x64xf32>
    %c0_15 = arith.constant 0 : index
    %c0_16 = arith.constant 0 : index
    %17 = vector.load %arg7[%c0_15, %c0_16] : memref<1x64xf32, #tpu.memory_space<vmem>>, vector<1x64xf32>
    %18 = vector.broadcast %17 : vector<1x64xf32> to vector<16x64xf32>
    %19 = arith.addf %16, %18 : vector<16x64xf32>
    %cst_17 = arith.constant 0.000000e+00 : f32
    %20 = vector.broadcast %cst_17 : f32 to vector<16x64xf32>
    %21 = arith.maximumf %19, %20 : vector<16x64xf32>
    %c0_18 = arith.constant 0 : index
    %c0_19 = arith.constant 0 : index
    %22 = vector.load %arg8[%c0_18, %c0_19] : memref<64x64xf32, #tpu.memory_space<vmem>>, vector<64x64xf32>
    %cst_20 = arith.constant dense<0.000000e+00> : vector<16x64xf32>
    %23 = tpu.matmul %21, %22, %cst_20 {dimension_numbers = #tpu.dot_dimension_numbers<[1], [0], [0], [1], [0, 0, 1, 1], [], []>} : vector<16x64xf32>, vector<64x64xf32>, vector<16x64xf32> -> vector<16x64xf32>
    %c0_21 = arith.constant 0 : index
    %c0_22 = arith.constant 0 : index
    %24 = vector.load %arg9[%c0_21, %c0_22] : memref<1x64xf32, #tpu.memory_space<vmem>>, vector<1x64xf32>
    %25 = vector.broadcast %24 : vector<1x64xf32> to vector<16x64xf32>
    %26 = arith.addf %23, %25 : vector<16x64xf32>
    %cst_23 = arith.constant 0.000000e+00 : f32
    %27 = vector.broadcast %cst_23 : f32 to vector<16x64xf32>
    %28 = arith.maximumf %26, %27 : vector<16x64xf32>
    %c0_24 = arith.constant 0 : index
    %c0_25 = arith.constant 0 : index
    %29 = vector.load %arg10[%c0_24, %c0_25] : memref<64x128xf32, #tpu.memory_space<vmem>>, vector<64x128xf32>
    %cst_26 = arith.constant dense<0.000000e+00> : vector<16x128xf32>
    %30 = tpu.matmul %28, %29, %cst_26 {dimension_numbers = #tpu.dot_dimension_numbers<[1], [0], [0], [1], [0, 0, 1, 1], [], []>} : vector<16x64xf32>, vector<64x128xf32>, vector<16x128xf32> -> vector<16x128xf32>
    %c0_27 = arith.constant 0 : index
    %c0_28 = arith.constant 0 : index
    %31 = vector.load %arg11[%c0_27, %c0_28] : memref<1x128xf32, #tpu.memory_space<vmem>>, vector<1x128xf32>
    %32 = vector.broadcast %31 : vector<1x128xf32> to vector<16x128xf32>
    %33 = arith.addf %30, %32 : vector<16x128xf32>
    %cst_29 = arith.constant 0.000000e+00 : f32
    %34 = vector.broadcast %cst_29 : f32 to vector<16x128xf32>
    %35 = arith.maximumf %33, %34 : vector<16x128xf32>
    %36 = arith.truncf %35 : vector<16x128xf32> to vector<16x128xbf16>
    %c0_30 = arith.constant 0 : index
    %c0_31 = arith.constant 0 : index
    %37 = vector.load %arg12[%c0_30, %c0_31] : memref<128x1024xbf16, #tpu.memory_space<vmem>>, vector<128x1024xbf16>
    %cst_32 = arith.constant dense<0.000000e+00> : vector<16x1024xf32>
    %38 = tpu.matmul %36, %37, %cst_32 {dimension_numbers = #tpu.dot_dimension_numbers<[1], [0], [0], [1], [0, 0, 1, 1], [], []>} : vector<16x128xbf16>, vector<128x1024xbf16>, vector<16x1024xf32> -> vector<16x1024xf32>
    %c0_33 = arith.constant 0 : index
    %c0_34 = arith.constant 0 : index
    %39 = vector.load %arg13[%c0_33, %c0_34] : memref<1x1024xf32, #tpu.memory_space<vmem>>, vector<1x1024xf32>
    %40 = vector.broadcast %39 : vector<1x1024xf32> to vector<16x1024xf32>
    %41 = arith.addf %38, %40 : vector<16x1024xf32>
    %c0_35 = arith.constant 0 : index
    %c0_36 = arith.constant 0 : index
    %42 = vector.load %arg15[%c0_35, %c0_36] : memref<1x1024xf32, #tpu.memory_space<vmem>>, vector<1x1024xf32>
    %cst_37 = arith.constant dense<0xFF800000> : vector<1024xf32>
    %43 = vector.multi_reduction <maximumf>, %41, %cst_37 [0] : vector<16x1024xf32> to vector<1024xf32>
    %44 = vector.shape_cast %43 : vector<1024xf32> to vector<1x1024xf32>
    %45 = arith.maximumf %42, %44 : vector<1x1024xf32>
    %c0_38 = arith.constant 0 : index
    %c0_39 = arith.constant 0 : index
    %46 = vector.load %arg15[%c0_38, %c0_39] : memref<1x1024xf32, #tpu.memory_space<vmem>>, vector<1x1024xf32>
    tpu.vector_store %arg15[%c0_38, %c0_39], %45 {strides = array<i32>} : memref<1x1024xf32, #tpu.memory_space<vmem>>, vector<1x1024xf32>,
    %c0_i32_40 = arith.constant 0 : i32
    %47 = arith.cmpi eq, %arg1, %c0_i32_40 : i32
    %48 = arith.extui %47 : i1 to i32
    %c0_i32_41 = arith.constant 0 : i32
    %49 = arith.cmpi ne, %48, %c0_i32_41 : i32
    scf.if %49 {
      %c0_42 = arith.constant 0 : index
      %c0_43 = arith.constant 0 : index
      %50 = vector.load %arg15[%c0_42, %c0_43] : memref<1x1024xf32, #tpu.memory_space<vmem>>, vector<1x1024xf32>
      %c0_44 = arith.constant 0 : index
      %c0_45 = arith.constant 0 : index
      %c0_46 = arith.constant 0 : index
      %51 = vector.load %arg14[%c0_44, %c0_45, %c0_46] : memref<1x1x1024xf32, #tpu.memory_space<vmem>>, vector<1x1x1024xf32>
      %52 = vector.shape_cast %51 : vector<1x1x1024xf32> to vector<1x1024xf32>
      %53 = vector.shape_cast %50 : vector<1x1024xf32> to vector<1x1x1024xf32>
      tpu.vector_store %arg14[%c0_44, %c0_45, %c0_46], %53 {strides = array<i32>} : memref<1x1x1024xf32, #tpu.memory_space<vmem>>, vector<1x1x1024xf32>,
    } else {
    }
    return
  }
  func.func @transform_0(%arg0: i32, %arg1: i32) -> (i32, i32, i32) {
    %c0_i32 = arith.constant 0 : i32
    %c0_i32_0 = arith.constant 0 : i32
    return %arg0, %arg1, %c0_i32 : i32, i32, i32
  }
  func.func @transform_1(%arg0: i32, %arg1: i32) -> (i32, i32, i32) {
    %c0_i32 = arith.constant 0 : i32
    %c0_i32_0 = arith.constant 0 : i32
    %c0_i32_1 = arith.constant 0 : i32
    return %arg0, %c0_i32, %c0_i32_0 : i32, i32, i32
  }
  func.func @transform_2(%arg0: i32, %arg1: i32) -> (i32, i32) {
    %c0_i32 = arith.constant 0 : i32
    %c0_i32_0 = arith.constant 0 : i32
    %c0_i32_1 = arith.constant 0 : i32
    return %c0_i32, %c0_i32_0 : i32, i32
  }
  func.func @transform_3(%arg0: i32, %arg1: i32) -> (i32, i32) {
    %c0_i32 = arith.constant 0 : i32
    %c0_i32_0 = arith.constant 0 : i32
    %c0_i32_1 = arith.constant 0 : i32
    return %c0_i32, %c0_i32_0 : i32, i32
  }
  func.func @transform_4(%arg0: i32, %arg1: i32) -> (i32, i32) {
    %c0_i32 = arith.constant 0 : i32
    %c0_i32_0 = arith.constant 0 : i32
    %c0_i32_1 = arith.constant 0 : i32
    return %c0_i32, %c0_i32_0 : i32, i32
  }
  func.func @transform_5(%arg0: i32, %arg1: i32) -> (i32, i32) {
    %c0_i32 = arith.constant 0 : i32
    %c0_i32_0 = arith.constant 0 : i32
    %c0_i32_1 = arith.constant 0 : i32
    return %c0_i32, %c0_i32_0 : i32, i32
  }
  func.func @transform_6(%arg0: i32, %arg1: i32) -> (i32, i32) {
    %c0_i32 = arith.constant 0 : i32
    %c0_i32_0 = arith.constant 0 : i32
    %c0_i32_1 = arith.constant 0 : i32
    return %c0_i32, %c0_i32_0 : i32, i32
  }
  func.func @transform_7(%arg0: i32, %arg1: i32) -> (i32, i32) {
    %c0_i32 = arith.constant 0 : i32
    %c0_i32_0 = arith.constant 0 : i32
    %c0_i32_1 = arith.constant 0 : i32
    return %c0_i32, %c0_i32_0 : i32, i32
  }
  func.func @transform_8(%arg0: i32, %arg1: i32) -> (i32, i32) {
    %c0_i32 = arith.constant 0 : i32
    %c0_i32_0 = arith.constant 0 : i32
    %c0_i32_1 = arith.constant 0 : i32
    return %c0_i32, %c0_i32_0 : i32, i32
  }
  func.func @transform_9(%arg0: i32, %arg1: i32) -> (i32, i32) {
    %c0_i32 = arith.constant 0 : i32
    %c0_i32_0 = arith.constant 0 : i32
    %c0_i32_1 = arith.constant 0 : i32
    return %c0_i32, %c0_i32_0 : i32, i32
  }
  func.func @transform_10(%arg0: i32, %arg1: i32) -> (i32, i32) {
    %c0_i32 = arith.constant 0 : i32
    %c0_i32_0 = arith.constant 0 : i32
    %c0_i32_1 = arith.constant 0 : i32
    return %c0_i32, %c0_i32_0 : i32, i32
  }
  func.func @transform_11(%arg0: i32, %arg1: i32) -> (i32, i32) {
    %c0_i32 = arith.constant 0 : i32
    %c0_i32_0 = arith.constant 0 : i32
    %c0_i32_1 = arith.constant 0 : i32
    return %c0_i32, %c0_i32_0 : i32, i32
  }
  func.func @transform_12(%arg0: i32, %arg1: i32) -> (i32, i32, i32) {
    %c0_i32 = arith.constant 0 : i32
    %c0_i32_0 = arith.constant 0 : i32
    %c0_i32_1 = arith.constant 0 : i32
    return %arg0, %c0_i32, %c0_i32_0 : i32, i32, i32
  }
}

module attributes {stable_mosaic.version = 11 : i64} {
  func.func @_cls_head_kernel(%arg0: memref<2x1024xf32, #tpu.memory_space<vmem>>, %arg1: memref<1024x512xbf16, #tpu.memory_space<vmem>>, %arg2: memref<1x512xf32, #tpu.memory_space<vmem>>, %arg3: memref<512x256xf32, #tpu.memory_space<vmem>>, %arg4: memref<1x256xf32, #tpu.memory_space<vmem>>, %arg5: memref<256x2xf32, #tpu.memory_space<vmem>>, %arg6: memref<1x2xf32, #tpu.memory_space<vmem>>, %arg7: memref<2x2xf32, #tpu.memory_space<vmem>>) attributes {dimension_semantics = [], scalar_prefetch = 0 : i64, scratch_operands = 0 : i64, tpu.core_type = #tpu.core_type<tc>} {
    %c0 = arith.constant 0 : index
    %c0_0 = arith.constant 0 : index
    %0 = vector.load %arg0[%c0, %c0_0] : memref<2x1024xf32, #tpu.memory_space<vmem>>, vector<2x1024xf32>
    %1 = arith.truncf %0 : vector<2x1024xf32> to vector<2x1024xbf16>
    %c0_1 = arith.constant 0 : index
    %c0_2 = arith.constant 0 : index
    %2 = vector.load %arg1[%c0_1, %c0_2] : memref<1024x512xbf16, #tpu.memory_space<vmem>>, vector<1024x512xbf16>
    %cst = arith.constant dense<0.000000e+00> : vector<2x512xf32>
    %3 = tpu.matmul %1, %2, %cst {dimension_numbers = #tpu.dot_dimension_numbers<[1], [0], [0], [1], [0, 0, 1, 1], [], []>} : vector<2x1024xbf16>, vector<1024x512xbf16>, vector<2x512xf32> -> vector<2x512xf32>
    %c0_3 = arith.constant 0 : index
    %c0_4 = arith.constant 0 : index
    %4 = vector.load %arg2[%c0_3, %c0_4] : memref<1x512xf32, #tpu.memory_space<vmem>>, vector<1x512xf32>
    %5 = vector.broadcast %4 : vector<1x512xf32> to vector<2x512xf32>
    %6 = arith.addf %3, %5 : vector<2x512xf32>
    %cst_5 = arith.constant 0.000000e+00 : f32
    %7 = vector.broadcast %cst_5 : f32 to vector<2x512xf32>
    %8 = arith.maximumf %6, %7 : vector<2x512xf32>
    %c0_6 = arith.constant 0 : index
    %c0_7 = arith.constant 0 : index
    %9 = vector.load %arg3[%c0_6, %c0_7] : memref<512x256xf32, #tpu.memory_space<vmem>>, vector<512x256xf32>
    %cst_8 = arith.constant dense<0.000000e+00> : vector<2x256xf32>
    %10 = tpu.matmul %8, %9, %cst_8 {dimension_numbers = #tpu.dot_dimension_numbers<[1], [0], [0], [1], [0, 0, 1, 1], [], []>} : vector<2x512xf32>, vector<512x256xf32>, vector<2x256xf32> -> vector<2x256xf32>
    %c0_9 = arith.constant 0 : index
    %c0_10 = arith.constant 0 : index
    %11 = vector.load %arg4[%c0_9, %c0_10] : memref<1x256xf32, #tpu.memory_space<vmem>>, vector<1x256xf32>
    %12 = vector.broadcast %11 : vector<1x256xf32> to vector<2x256xf32>
    %13 = arith.addf %10, %12 : vector<2x256xf32>
    %cst_11 = arith.constant 0.000000e+00 : f32
    %14 = vector.broadcast %cst_11 : f32 to vector<2x256xf32>
    %15 = arith.maximumf %13, %14 : vector<2x256xf32>
    %c0_12 = arith.constant 0 : index
    %c0_13 = arith.constant 0 : index
    %16 = vector.load %arg5[%c0_12, %c0_13] : memref<256x2xf32, #tpu.memory_space<vmem>>, vector<256x2xf32>
    %cst_14 = arith.constant dense<0.000000e+00> : vector<2x2xf32>
    %17 = tpu.matmul %15, %16, %cst_14 {dimension_numbers = #tpu.dot_dimension_numbers<[1], [0], [0], [1], [0, 0, 1, 1], [], []>} : vector<2x256xf32>, vector<256x2xf32>, vector<2x2xf32> -> vector<2x2xf32>
    %c0_15 = arith.constant 0 : index
    %c0_16 = arith.constant 0 : index
    %18 = vector.load %arg6[%c0_15, %c0_16] : memref<1x2xf32, #tpu.memory_space<vmem>>, vector<1x2xf32>
    %19 = vector.broadcast %18 : vector<1x2xf32> to vector<2x2xf32>
    %20 = arith.addf %17, %19 : vector<2x2xf32>
    %cst_17 = arith.constant dense<0xFF800000> : vector<2xf32>
    %21 = vector.multi_reduction <maximumf>, %20, %cst_17 [1] : vector<2x2xf32> to vector<2xf32>
    %22 = vector.shape_cast %21 : vector<2xf32> to vector<2x1xf32>
    %23 = vector.broadcast %22 : vector<2x1xf32> to vector<2x2xf32>
    %24 = arith.subf %20, %23 : vector<2x2xf32>
    %25 = math.exp %24 : vector<2x2xf32>
    %cst_18 = arith.constant dense<0.000000e+00> : vector<2xf32>
    %26 = vector.multi_reduction <add>, %25, %cst_18 [1] : vector<2x2xf32> to vector<2xf32>
    %27 = vector.shape_cast %26 : vector<2xf32> to vector<2x1xf32>
    %28 = math.log %27 : vector<2x1xf32>
    %29 = vector.broadcast %28 : vector<2x1xf32> to vector<2x2xf32>
    %30 = arith.subf %24, %29 : vector<2x2xf32>
    %c0_19 = arith.constant 0 : index
    %c0_20 = arith.constant 0 : index
    %31 = vector.load %arg7[%c0_19, %c0_20] : memref<2x2xf32, #tpu.memory_space<vmem>>, vector<2x2xf32>
    tpu.vector_store %arg7[%c0_19, %c0_20], %30 {strides = array<i32>} : memref<2x2xf32, #tpu.memory_space<vmem>>, vector<2x2xf32>,
    return
  }
}

</mosaic_0001>

<bundles_post_ra>
// kernel: pointnet_cls_forward.6
= control target key start
LH: loop header
LB: loop body
LE: loop exit
PB: predicated region body
PF: predicated region fallthrough
CT: control target
= control target key end

     0   :  { %17 = vsyncpa [#allocation4], 0  ;;  %s1899_s21 = smov 0   ;;  %s1901_s22 = smov 0   ;;  %s2045_s0 = inlined_call_operand.vmem [shape: f32[2,16,3], index: 0, kind: input, shape index: {}]   ;;  %s2046_s1 = inlined_call_operand.vmem [shape: f32[2,3,3], index: 1, kind: input, shape index: {}]   ;;  %s2047_s2 = inlined_call_operand.vmem [shape: f32[3,64], index: 2, kind: input, shape index: {}]   ;;  %s2048_s3 = inlined_call_operand.vmem [shape: f32[1,64], index: 3, kind: input, shape index: {}]   ;;  %s2049_s4 = inlined_call_operand.vmem [shape: f32[64,64], index: 4, kind: input, shape index: {}]   ;;  %s2050_s5 = inlined_call_operand.vmem [shape: f32[1,64], index: 5, kind: input, shape index: {}]   ;;  %s2051_s6 = inlined_call_operand.vmem [shape: f32[64,64], index: 6, kind: input, shape index: {}]   ;;  %s2052_s7 = inlined_call_operand.vmem [shape: f32[1,64], index: 7, kind: input, shape index: {}]   ;;  %s2053_s8 = inlined_call_operand.vmem [shape: f32[64,128], index: 8, kind: input, shape index: {}]   ;;  %s2054_s9 = inlined_call_operand.vmem [shape: f32[1,128], index: 9, kind: input, shape index: {}]   ;;  %s2055_s10 = inlined_call_operand.hbm [shape: bf16[128,1024], index: 10, kind: input, shape index: {}]   ;;  %s2056_s11 = inlined_call_operand.vmem [shape: f32[1,1024], index: 11, kind: input, shape index: {}]   ;;  %s2057_s12 = inlined_call_operand.vmem [shape: f32[2,1,1024], index: 12, kind: output, shape index: {}]  }
   0x1   :  { %s1903_s23 = smov 0  }
   0x2 LB: > { %s1386_s24 = sadd.s32 4294967295, %s1829_s23   ;;  %s35_s25 = sadd.s32 1, %s1825_s22  ;;  %s1829_s23 = sphi %s1903_s23, %s23_s23   ;;  %s1825_s22 = sphi %s1901_s22, %s2059_s22   ;;  %s1821_s21 = sphi %s1899_s21, %s2058_s21  }
   0x3   : > { %p37_p0 = scmp.ge.s32.totalorder %s35_s25, 2  ;;  %p1388_p1 = scmp.ge.s32.totalorder %s1829_s23, 1 }
   0x4   : > { %p330_p2 = scmp.lt.s32.totalorder %s1829_s23, 3  ;;  %p1740_p4 = scmp.eq.s32.totalorder %s1386_s24, 0 }
   0x5   : > { %s2061_s25 = smov (%p37_p0, %s35_s25), 0  ;;  %s365_s28 = sshll.u32 %s2055_s10, 4  ;;  %s366_s28 = int_to_ptr.hbm [resolvable:$true] %s365_s28 }
   0x6   : > { %p331_p3 = pnand %p1388_p1, %p330_p2  ;;  %s1831_s29 = smov [#allocation3]  }
   0x7   : > { %s367_s30 = sshll.u32 %s1831_s29, 4  ;;  %s1832_s13 = smov 512   ;;  %s368_s30 = int_to_ptr.vmem [resolvable:$true] %s367_s30 }
   0x8   : > { %p1736_p5 = pneg %p331_p3  ;;  %s1833_s14 = smov 32  }
   0x9   : > { %406 = sbr.rel (%p331_p3) target bundleno = 869 (0x365), region = 68 }
   0xa   : > { %p1737_p6 = pnand %p1740_p4, %p1736_p5 }
   0xc   : > { %1739 = dma.hbm_to_vmem [thread:$0]  (!%p1737_p6), %s366_s28, 8192, %s368_s30, [#allocation4], %s1832_s13, %s1832_s13, %s1833_s14  }
   0xe   : > { %1816 = dma.done.wait (%p1740_p4), [#allocation4], 8192  }
   0xf   : > { %1818 = vsyncadd (%p1740_p4), [#allocation4], 4294959104  ;;  %p457_p7 = scmp.lt.s32.totalorder %s1821_s21, 1  ;;  %vm489_vm0 = vcmask 1042432   ;;  %vm482_vm1 = vcmask 23552   ;;  %v562_v4 = vld [vmem:[%s2049_s4 + $0x38] sm:$0xff] }
  0x10   : > { %v516_v3 = vld [vmem:[%s2047_s2] sm:$0x7]  ;;  %v561_v5 = vld [vmem:[%s2049_s4 + $0x30] sm:$0xff]  ;;  %582 = vmatpush.msra.mxu2 %v562_v4  ;;  %v560_v6 = vld [vmem:[%s2049_s4 + $0x28] sm:$0xff]  ;;  %vm567_vm2 = vcmask 523264   ;;  %vm1272_vm3 = vcmask 1040384  }
  0x11   : > { %s2063_s21 = smov (!%p457_p7, %s1821_s21), 1  ;;  %1400 = vmatpush.msk.msra.mxu1 %vm489_vm0, %v516_v3  ;;  %v559_v7 = vld [vmem:[%s2049_s4 + $0x20] sm:$0xff]  ;;  %v558_v8 = vld [vmem:[%s2049_s4 + $0x18] sm:$0xff]  ;;  %v557_v11 = vld [vmem:[%s2049_s4 + $0x10] sm:$0xff]  ;;  %vm1274_vm4 = vcmask 1042434   ;;  %vm1276_vm5 = vcmask 1041408  }
  0x12   : > { %s1395_s15 = sshll.u32 %s2063_s21, 2  ;;  %s1667_s19 = sshll.u32 %s2063_s21, 4  ;;  %583 = vmatpush.msra.mxu2 %v561_v5  ;;  %v556_v12 = vld [vmem:[%s2049_s4 + $0x8] sm:$0xff]  ;;  %v555_v13 = vld [vmem:[%s2049_s4] sm:$0xff]  ;;  %v606_v14 = vld [vmem:[%s2051_s6 + $0x38] sm:$0xff]  ;;  %vm1278_vm6 = vcmask 1044484  }
  0x13   : > { %s469_s18 = scalar_lea.vmem %s2046_s1, %s1395_s15  ;;  %s464_s26 = scalar_lea.vmem %s2045_s0, %s1667_s19  ;;  %v605_v15 = vld [vmem:[%s2051_s6 + $0x30] sm:$0xff]  ;;  %625 = vmatpush.msra.mxu3 %v606_v14  ;;  %v604_v16 = vld [vmem:[%s2051_s6 + $0x28] sm:$0xff]  ;;  %v603_v17 = vld [vmem:[%s2051_s6 + $0x20] sm:$0xff]  ;;  %vm1280_vm7 = vcmask 1046534   ;;  %vm1282_vm8 = vcmask 1045508   ;;  %vm1284_vm9 = vcmask 1043456  }
  0x14   : > { %v481_v0 = vld [vmem:[%s469_s18] sm:$0x7]  ;;  %v480_v2 = vld [vmem:[%s464_s26 + $0x8] sm:$0xff]  ;;  %584 = vmatpush.msra.mxu2 %v560_v6  ;;  %v602_v18 = vld [vmem:[%s2051_s6 + $0x18] sm:$0xff]  ;;  %s1396_s13 = sshll.u32 %s2063_s21, 3 }
  0x15   : > { %1397 = vmatpush.msk.msra.mxu0 %vm489_vm0, %v481_v0  ;;  %v479_v1 = vld [vmem:[%s464_s26] sm:$0xff]  ;;  %626 = vmatpush.msra.mxu3 %v605_v15  ;;  %v601_v26 = vld [vmem:[%s2051_s6 + $0x10] sm:$0xff]  ;;  %v600_v27 = vld [vmem:[%s2051_s6 + $0x8] sm:$0xff]  ;;  %s473_s16 = scalar_lea.vmem %s2057_s12, %s1396_s13 }
  0x16   : > { %1398 = vmatmul.msk.f32.vlgmr.msra.gmra.mxu0 %vm482_vm1, %v479_v1  ;;  %585 = vmatpush.msra.mxu2 %v559_v7  ;;  %v1769_v19 = vld [vmem:[%s2048_s3] ss:$0 sm:$0xff]  ;;  %v649_v29 = vld [vmem:[%s2053_s8 + $0x38] sm:$0xff]  ;;  %v648_v30 = vld [vmem:[%s2053_s8 + $0x30] sm:$0xff] }
  0x17   : > { %627 = vmatpush.msra.mxu3 %v604_v16  ;;  %v599_v28 = vld [vmem:[%s2051_s6] sm:$0xff]  ;;  %668 = vmatpush.msrb.mxu0 %v649_v29  ;;  %v647_v31 = vld [vmem:[%s2053_s8 + $0x28] sm:$0xff]  ;;  %v645_v33 = vld [vmem:[%s2053_s8 + $0x18] sm:$0xff] }
  0x18   : > { %586 = vmatpush.msra.mxu2 %v558_v8  ;;  %v646_v32 = vld [vmem:[%s2053_s8 + $0x20] sm:$0xff]  ;;  %v644_v34 = vld [vmem:[%s2053_s8 + $0x10] sm:$0xff]  ;;  %v643_v42 = vld [vmem:[%s2053_s8 + $0x8] sm:$0xff] }
  0x19   : > { %628 = vmatpush.msra.mxu3 %v603_v17  ;;  %669 = vmatpush.msrb.mxu0 %v648_v30  ;;  %v1770_v35 = vld [vmem:[%s2050_s5] ss:$0 sm:$0xff]  ;;  %v1724_v46 = vld [vmem:[#allocation3 + $0x1c4] sm:$0xf]  ;;  %v1643_v49 = vld [vmem:[#allocation3 + $0x1c8] sm:$0xf] }
  0x1a   : > { %587 = vmatpush.msra.mxu2 %v557_v11  ;;  %v642_v43 = vld [vmem:[%s2053_s8] sm:$0xff]  ;;  %v1729_v50 = vld [vmem:[#allocation3 + $0x1e4] sm:$0xf0]  ;;  %v1725_v53 = vld [vmem:[#allocation3 + $0x1cc] sm:$0xf] }
  0x1b   : > { %629 = vmatpush.msra.mxu3 %v602_v18  ;;  %670 = vmatpush.msrb.mxu0 %v647_v31  ;;  %v1635_v44 = vld [vmem:[#allocation3 + $0x1c0] sm:$0xf]  ;;  %v1637_v48 = vld [vmem:[#allocation3 + $0x1e0] sm:$0xf0]  ;;  %v1644_v52 = vor.u32 %v1729_v50, %v1643_v49  ;;  %v1645_v54 = vld [vmem:[#allocation3 + $0x1e8] sm:$0xf0] }
  0x1c   : > { %588 = vmatpush.msra.mxu2 %v556_v12  ;;  %v1728_v45 = vld [vmem:[#allocation3 + $0x1dc] sm:$0xf0]  ;;  %v1640_v51 = vor.u32 %v1724_v46, %v1637_v48  ;;  %v1648_v56 = vor.u32 %v1725_v53, %v1645_v54  ;;  %v1716_v58 = vld [vmem:[#allocation3 + $0x184] sm:$0xf]  ;;  %v1611_v62 = vld [vmem:[#allocation3 + $0x188] sm:$0xf] }
  0x1d   : > { %630 = vmatpush.msra.mxu3 %v601_v26  ;;  %671 = vmatpush.msrb.mxu0 %v646_v32  ;;  %v1636_v47 = vor.u32 %v1728_v45, %v1635_v44  ;;  %v1603_v55 = vld [vmem:[#allocation3 + $0x180] sm:$0xf]  ;;  %v1605_v59 = vld [vmem:[#allocation3 + $0x1a0] sm:$0xf0]  ;;  %v1721_v63 = vld [vmem:[#allocation3 + $0x1a4] sm:$0xf0] }
  0x1e   : > { %1399 = vmatmul.msk.f32.gmra.mxu0 %vm482_vm1, %v480_v2  ;;  %589 = vmatpush.msra.mxu2 %v555_v13  ;;  %v1720_v57 = vld [vmem:[#allocation3 + $0x19c] sm:$0xf0]  ;;  %v1608_v61 = vor.u32 %v1716_v58, %v1605_v59  ;;  %v1717_v0 = vld [vmem:[#allocation3 + $0x18c] sm:$0xf]  ;;  %v1612_v1 = vor.u32 %v1721_v63, %v1611_v62  ;;  %v1708_v6 = vld [vmem:[#allocation3 + $0x144] sm:$0xf] }
  0x1f   : > { %631 = vmatpush.msra.mxu3 %v600_v27  ;;  %672 = vmatpush.msrb.mxu0 %v645_v33  ;;  %v1604_v60 = vor.u32 %v1720_v57, %v1603_v55  ;;  %v1613_v2 = vld [vmem:[#allocation3 + $0x1a8] sm:$0xf0]  ;;  %v1571_v3 = vld [vmem:[#allocation3 + $0x140] sm:$0xf]  ;;  %v1573_v7 = vld [vmem:[#allocation3 + $0x160] sm:$0xf0] }
  0x20   : > { %1088 = vmatpush.bf16.msrb.mxu1 %v1636_v47  ;;  %1102 = vmatpush.bf16.msrb.mxu2 %v1640_v51  ;;  %v1712_v4 = vld [vmem:[#allocation3 + $0x15c] sm:$0xf0]  ;;  %v1616_v5 = vor.u32 %v1717_v0, %v1613_v2  ;;  %v1579_v8 = vld [vmem:[#allocation3 + $0x148] sm:$0xf]  ;;  %v1709_v11 = vld [vmem:[#allocation3 + $0x14c] sm:$0xf]  ;;  %v1576_v13 = vor.u32 %v1708_v6, %v1573_v7 }
  0x21   : > { %632 = vmatpush.msra.mxu3 %v599_v28  ;;  %673 = vmatpush.msrb.mxu0 %v644_v34  ;;  %v1581_v12 = vld [vmem:[#allocation3 + $0x168] sm:$0xf0]  ;;  %v1539_v15 = vld [vmem:[#allocation3 + $0x100] sm:$0xf]  ;;  %v1700_v17 = vld [vmem:[#allocation3 + $0x104] sm:$0xf] }
  0x22   : > { %v1704_v16 = vld [vmem:[#allocation3 + $0x11c] sm:$0xf0]  ;;  %v1584_v18 = vor.u32 %v1709_v11, %v1581_v12  ;;  %v1692_v29 = vld [vmem:[#allocation3 + $0xc4] sm:$0xf]  ;;  %v1515_v32 = vld [vmem:[#allocation3 + $0xc8] sm:$0xf] }
  0x23   : > { %674 = vmatpush.msrb.mxu0 %v643_v42  ;;  %1116 = vmatpush.bf16.msrb.mxu3 %v1644_v52  ;;  %v1507_v27 = vld [vmem:[#allocation3 + $0xc0] sm:$0xf]  ;;  %v1509_v31 = vld [vmem:[#allocation3 + $0xe0] sm:$0xf0]  ;;  %v1697_v33 = vld [vmem:[#allocation3 + $0xe4] sm:$0xf0] }
  0x24   : > { %1089 = vmatpush.bf16.msrb.mxu1 %v1604_v60  ;;  %1103 = vmatpush.bf16.msrb.mxu2 %v1608_v61  ;;  %v1696_v28 = vld [vmem:[#allocation3 + $0xdc] sm:$0xf0]  ;;  %v1693_v34 = vld [vmem:[#allocation3 + $0xcc] sm:$0xf]  ;;  %v1477_v44 = vld [vmem:[#allocation3 + $0xa0] sm:$0xf0] }
  0x25   : > { %675 = vmatpush.msrb.mxu0 %v642_v43  ;;  %v1684_v43 = vld [vmem:[#allocation3 + $0x84] sm:$0xf]  ;;  %v1483_v45 = vld [vmem:[#allocation3 + $0x88] sm:$0xf]  ;;  %v1685_v47 = vld [vmem:[#allocation3 + $0x8c] sm:$0xf] }
  0x26   : > { %v1689_v46 = vld [vmem:[#allocation3 + $0xa4] sm:$0xf0]  ;;  %v1485_v48 = vld [vmem:[#allocation3 + $0xa8] sm:$0xf0]  ;;  %v1480_v52 = vor.u32 %v1684_v43, %v1477_v44  ;;  %v1443_v53 = vld [vmem:[#allocation3 + $0x40] sm:$0xf] }
  0x27   : > { %1130 = vmatpush.bf16.msra.mxu0 %v1648_v56  ;;  %1117 = vmatpush.bf16.msrb.mxu3 %v1612_v1  ;;  %v1680_v54 = vld [vmem:[#allocation3 + $0x5c] sm:$0xf0]  ;;  %v1676_v55 = vld [vmem:[#allocation3 + $0x44] sm:$0xf]  ;;  %v1484_v56 = vor.u32 %v1689_v46, %v1483_v45  ;;  %v1488_v57 = vor.u32 %v1685_v47, %v1485_v48  ;;  %v1451_v59 = vld [vmem:[#allocation3 + $0x48] sm:$0xf] }
  0x28   : > { %1104 = vmatpush.bf16.msrb.mxu2 %v1576_v13  ;;  %v1445_v58 = vld [vmem:[#allocation3 + $0x60] sm:$0xf0]  ;;  %v1681_v60 = vld [vmem:[#allocation3 + $0x64] sm:$0xf0]  ;;  %v1677_v62 = vld [vmem:[#allocation3 + $0x4c] sm:$0xf]  ;;  %v1444_v0 = vor.u32 %v1680_v54, %v1443_v53 }
  0x29   : > { %v1453_v63 = vld [vmem:[#allocation3 + $0x68] sm:$0xf0]  ;;  %v1448_v1 = vor.u32 %v1676_v55, %v1445_v58  ;;  %v1411_v2 = vld [vmem:[#allocation3] sm:$0xf]  ;;  %v1668_v6 = vld [vmem:[#allocation3 + $0x4] sm:$0xf] }
  0x2a   : > { %v1413_v7 = vld [vmem:[#allocation3 + $0x20] sm:$0xf0]  ;;  %v1421_v11 = vld [vmem:[#allocation3 + $0x28] sm:$0xf0]  ;;  %v1587_v43 = vld [vmem:[#allocation3 + $0x150] sm:$0xf] }
  0x2b   : > { %1131 = vmatpush.bf16.msra.mxu0 %v1616_v5  ;;  %v1456_v5 = vor.u32 %v1677_v62, %v1453_v63  ;;  %v1714_v44 = vld [vmem:[#allocation3 + $0x16c] sm:$0xf0]  ;;  %v1710_v45 = vld [vmem:[#allocation3 + $0x154] sm:$0xf]  ;;  %v1595_v48 = vld [vmem:[#allocation3 + $0x158] sm:$0xf] }
  0x2c   : > { %v1588_v46 = vor.u32 %v1714_v44, %v1587_v43  ;;  %v1589_v47 = vld [vmem:[#allocation3 + $0x170] sm:$0xf0]  ;;  %v1597_v53 = vld [vmem:[#allocation3 + $0x178] sm:$0xf0]  ;;  %v1555_v55 = vld [vmem:[#allocation3 + $0x110] sm:$0xf] }
  0x2d   : > { %v1435_v43 = vld [vmem:[#allocation3 + $0x18] sm:$0xf] }
  0x2e   : > { %v1675_v44 = vld [vmem:[#allocation3 + $0x34] sm:$0xf0] }
  0x2f   : > { %1132 = vmatpush.bf16.msra.mxu0 %v1584_v18 }
  0x93   : > { %v510_v9 = vpop.f32.mrf.mxu0 }
  0x94   : > { %1401 = vmatmul.msk.f32.vlgmr.msra.gmra.mxu1 %vm482_vm1, %v510_v9  ;;  %v1572_v9 = vor.u32 %v1712_v4, %v1571_v3  ;;  %v1672_v3 = vld [vmem:[#allocation3 + $0x1c] sm:$0xf0]  ;;  %v1452_v4 = vor.u32 %v1681_v60, %v1451_v59  ;;  %v1557_v59 = vld [vmem:[#allocation3 + $0x130] sm:$0xf0]  ;;  %v1563_v60 = vld [vmem:[#allocation3 + $0x118] sm:$0xf] }
  0x95   : > { %v1412_v13 = vor.u32 %v1672_v3, %v1411_v2  ;;  %v1523_v3 = vld [vmem:[#allocation3 + $0xd0] sm:$0xf] }
  0x96   : > { %1090 = vmatpush.bf16.msrb.mxu1 %v1572_v9  ;;  %v1673_v9 = vld [vmem:[#allocation3 + $0x24] sm:$0xf0] }
  0x9b   : > { %v513_v10 = vpop.f32.mrf.mxu0 }
  0x9c   : > { %1402 = vmatmul.msk.f32.gmra.mxu1 %vm482_vm1, %v513_v10  ;;  %v1713_v10 = vld [vmem:[#allocation3 + $0x164] sm:$0xf0] }
  0x9d   : > { %v1580_v14 = vor.u32 %v1713_v10, %v1579_v8  ;;  %v1419_v8 = vld [vmem:[#allocation3 + $0x8] sm:$0xf]  ;;  %v1669_v10 = vld [vmem:[#allocation3 + $0xc] sm:$0xf] }
  0x9f   : > { %1118 = vmatpush.bf16.msrb.mxu3 %v1580_v14 }
 0x111   : > { %v547_v20 = vpop.f32.mrf.mxu1 }
 0x112   : > { %v548_v21 = vadd.f32 %v1769_v19, %v547_v20  ;;  %v1547_v20 = vld [vmem:[#allocation3 + $0x108] sm:$0xf] }
 0x114   : > { %v553_v22 = vmax.f32 %v548_v21, 0.0  ;;  %v1705_v21 = vld [vmem:[#allocation3 + $0x124] sm:$0xf0] }
 0x115   : > { %v1548_v26 = vor.u32 %v1705_v21, %v1547_v20  ;;  %v1730_v20 = vld [vmem:[#allocation3 + $0x1ec] sm:$0xf0]  ;;  %v1726_v21 = vld [vmem:[#allocation3 + $0x1d4] sm:$0xf] }
 0x116   : > { %1403 = vmatmul.msk.f32.vlgmr.msra.gmra.mxu2 %vm567_vm2, %v553_v22  ;;  %v1701_v22 = vld [vmem:[#allocation3 + $0x10c] sm:$0xf] }
 0x117   : > { %1119 = vmatpush.bf16.msrb.mxu3 %v1548_v26 }
 0x119   : > { %v550_v23 = vpop.f32.mrf.mxu1 }
 0x11a   : > { %v551_v24 = vadd.f32 %v1769_v19, %v550_v23  ;;  %v1541_v19 = vld [vmem:[#allocation3 + $0x120] sm:$0xf0]  ;;  %v1549_v23 = vld [vmem:[#allocation3 + $0x128] sm:$0xf0] }
 0x11b   : > { %v1552_v30 = vor.u32 %v1701_v22, %v1549_v23  ;;  %v1653_v23 = vld [vmem:[#allocation3 + $0x1f0] sm:$0xf0] }
 0x11c   : > { %v554_v25 = vmax.f32 %v551_v24, 0.0  ;;  %v1540_v24 = vor.u32 %v1704_v16, %v1539_v15  ;;  %v1416_v15 = vor.u32 %v1668_v6, %v1413_v7  ;;  %v1420_v16 = vor.u32 %v1673_v9, %v1419_v8  ;;  %v1525_v7 = vld [vmem:[#allocation3 + $0xf0] sm:$0xf0]  ;;  %v1531_v8 = vld [vmem:[#allocation3 + $0xd8] sm:$0xf] }
 0x11d   : > { %1133 = vmatpush.bf16.msra.mxu0 %v1552_v30  ;;  %v1656_v26 = vor.u32 %v1726_v21, %v1653_v23  ;;  %v1699_v9 = vld [vmem:[#allocation3 + $0xf4] sm:$0xf0]  ;;  %v1687_v23 = vld [vmem:[#allocation3 + $0x9c] sm:$0xf] }
 0x11e   : > { %1404 = vmatmul.msk.f32.gmra.mxu2 %vm567_vm2, %v554_v25  ;;  %v1544_v25 = vor.u32 %v1700_v17, %v1541_v19  ;;  %1091 = vmatpush.bf16.msrb.mxu1 %v1540_v24  ;;  %v1424_v17 = vor.u32 %v1669_v10, %v1421_v11  ;;  %v1651_v19 = vld [vmem:[#allocation3 + $0x1d0] sm:$0xf]  ;;  %v1659_v24 = vld [vmem:[#allocation3 + $0x1d8] sm:$0xf]  ;;  %v1532_v11 = vor.u32 %v1699_v9, %v1531_v8 }
 0x11f   : > { %v1652_v22 = vor.u32 %v1730_v20, %v1651_v19  ;;  %v1499_v21 = vld [vmem:[#allocation3 + $0x98] sm:$0xf] }
 0x120   : > { %1105 = vmatpush.bf16.msrb.mxu2 %v1544_v25  ;;  %v1731_v25 = vld [vmem:[#allocation3 + $0x1f4] sm:$0xf0] }
 0x199   : > { %v591_v36 = vpop.f32.mrf.mxu2 }
 0x19a   : > { %v592_v37 = vadd.f32 %v1770_v35, %v591_v36  ;;  %v1508_v36 = vor.u32 %v1696_v28, %v1507_v27  ;;  %v1660_v27 = vor.u32 %v1731_v25, %v1659_v24  ;;  %v1727_v28 = vld [vmem:[#allocation3 + $0x1dc] sm:$0xf] }
 0x19b   : > { %v1501_v25 = vld [vmem:[#allocation3 + $0xb8] sm:$0xf0] }
 0x19c   : > { %v597_v38 = vmax.f32 %v592_v37, 0.0  ;;  %v1771_v37 = vld [vmem:[%s2052_s7] ss:$0 sm:$0xff]  ;;  %1092 = vmatpush.bf16.msrb.mxu1 %v1508_v36  ;;  %v1627_v36 = vld [vmem:[#allocation3 + $0x198] sm:$0xf] }
 0x19e   : > { %1405 = vmatmul.msk.f32.vlgmr.msra.gmra.mxu3 %vm567_vm2, %v597_v38  ;;  %v1512_v38 = vor.u32 %v1692_v29, %v1509_v31  ;;  %v1661_v29 = vld [vmem:[#allocation3 + $0x1f8] sm:$0xf0]  ;;  %v1619_v31 = vld [vmem:[#allocation3 + $0x190] sm:$0xf] }
 0x19f   : > { %v1664_v30 = vor.u32 %v1727_v28, %v1661_v29  ;;  %v1504_v28 = vor.u32 %v1687_v23, %v1501_v25  ;;  %v1678_v29 = vld [vmem:[#allocation3 + $0x54] sm:$0xf] }
 0x1a0   : > { %1106 = vmatpush.bf16.msrb.mxu2 %v1512_v38 }
 0x1a1   : > { %v594_v39 = vpop.f32.mrf.mxu2 }
 0x1a2   : > { %v595_v40 = vadd.f32 %v1770_v35, %v594_v39  ;;  %v1517_v35 = vld [vmem:[#allocation3 + $0xe8] sm:$0xf0]  ;;  %v1516_v39 = vor.u32 %v1697_v33, %v1515_v32  ;;  %v1722_v32 = vld [vmem:[#allocation3 + $0x1ac] sm:$0xf0]  ;;  %v1718_v33 = vld [vmem:[#allocation3 + $0x194] sm:$0xf] }
 0x1a3   : > { %v1520_v42 = vor.u32 %v1693_v34, %v1517_v35  ;;  %v1620_v34 = vor.u32 %v1722_v32, %v1619_v31  ;;  %v1621_v35 = vld [vmem:[#allocation3 + $0x1b0] sm:$0xf0]  ;;  %v1467_v31 = vld [vmem:[#allocation3 + $0x58] sm:$0xf] }
 0x1a4   : > { %v598_v41 = vmax.f32 %v595_v40, 0.0  ;;  %v1475_v40 = vld [vmem:[#allocation3 + $0x80] sm:$0xf]  ;;  %1120 = vmatpush.bf16.msrb.mxu3 %v1516_v39  ;;  %1107 = vmatpush.bf16.msrb.mxu2 %v1480_v52  ;;  %v1624_v38 = vor.u32 %v1718_v33, %v1621_v35  ;;  %v1711_v52 = vld [vmem:[#allocation3 + $0x15c] sm:$0xf] }
 0x1a5   : > { %1134 = vmatpush.bf16.msra.mxu0 %v1520_v42  ;;  %v1600_v54 = vor.u32 %v1711_v52, %v1597_v53  ;;  %v1683_v33 = vld [vmem:[#allocation3 + $0x74] sm:$0xf0]  ;;  %v1469_v35 = vld [vmem:[#allocation3 + $0x78] sm:$0xf0]  ;;  %v1772_v52 = vld [vmem:[%s2054_s9] ss:$0 sm:$0xff] }
 0x1a6   : > { %1406 = vmatmul.msk.f32.gmra.mxu3 %vm567_vm2, %v598_v41  ;;  %v1688_v41 = vld [vmem:[#allocation3 + $0x9c] sm:$0xf0] }
 0x1a7   : > { %v1476_v50 = vor.u32 %v1688_v41, %v1475_v40  ;;  %v1719_v40 = vld [vmem:[#allocation3 + $0x19c] sm:$0xf] }
 0x1a8   : > { %1121 = vmatpush.bf16.msrb.mxu3 %v1484_v56  ;;  %1108 = vmatpush.bf16.msrb.mxu2 %v1448_v1  ;;  %v1629_v41 = vld [vmem:[#allocation3 + $0x1b8] sm:$0xf0]  ;;  %v1706_v56 = vld [vmem:[#allocation3 + $0x12c] sm:$0xf0] }
 0x1a9   : > { %1093 = vmatpush.bf16.msrb.mxu1 %v1476_v50  ;;  %1135 = vmatpush.bf16.msra.mxu0 %v1488_v57  ;;  %v1632_v42 = vor.u32 %v1719_v40, %v1629_v41  ;;  %v1592_v50 = vor.u32 %v1710_v45, %v1589_v47  ;;  %v1702_v57 = vld [vmem:[#allocation3 + $0x114] sm:$0xf]  ;;  %v1556_v58 = vor.u32 %v1706_v56, %v1555_v55  ;;  %v1565_v1 = vld [vmem:[#allocation3 + $0x138] sm:$0xf0] }
 0x1aa   : > { %v1560_v62 = vor.u32 %v1702_v57, %v1557_v59  ;;  %v1670_v40 = vld [vmem:[#allocation3 + $0x14] sm:$0xf]  ;;  %v1671_v45 = vld [vmem:[#allocation3 + $0x1c] sm:$0xf] }
 0x1ac   : > { %1122 = vmatpush.bf16.msrb.mxu3 %v1452_v4  ;;  %1109 = vmatpush.bf16.msrb.mxu2 %v1416_v15  ;;  %v1698_v4 = vld [vmem:[#allocation3 + $0xec] sm:$0xf0] }
 0x1ad   : > { %1094 = vmatpush.bf16.msrb.mxu1 %v1444_v0  ;;  %1136 = vmatpush.bf16.msra.mxu0 %v1456_v5  ;;  %v1703_v0 = vld [vmem:[#allocation3 + $0x11c] sm:$0xf]  ;;  %v1694_v5 = vld [vmem:[#allocation3 + $0xd4] sm:$0xf]  ;;  %v1524_v6 = vor.u32 %v1698_v4, %v1523_v3 }
 0x1ae   : > { %v1568_v2 = vor.u32 %v1703_v0, %v1565_v1  ;;  %v1528_v10 = vor.u32 %v1694_v5, %v1525_v7  ;;  %v750_v0 = vld [vmem:[%s2056_s11] sm:$0xff] }
 0x1af   : > { %v755_v3 = vperm.slane %v750_v0, 3  ;;  %v754_v4 = vperm.slane %v750_v0, 2  ;;  %v756_v23 = vperm.slane %v750_v0, 4 }
 0x1b0   : > { %1123 = vmatpush.bf16.msrb.mxu3 %v1420_v16  ;;  %1158 = vmatpush.bf16.msra.mxu2 %v1656_v26  ;;  %v1690_v16 = vld [vmem:[#allocation3 + $0xac] sm:$0xf0] }
 0x1b1   : > { %1095 = vmatpush.bf16.msrb.mxu1 %v1412_v13  ;;  %1137 = vmatpush.bf16.msra.mxu0 %v1424_v17  ;;  %v1533_v13 = vld [vmem:[#allocation3 + $0xf8] sm:$0xf0]  ;;  %v1686_v17 = vld [vmem:[#allocation3 + $0x94] sm:$0xf]  ;;  %v1459_v26 = vld [vmem:[#allocation3 + $0x50] sm:$0xf] }
 0x1b4   : > { %1172 = vmatpush.bf16.msra.mxu3 %v1660_v27  ;;  %1159 = vmatpush.bf16.msra.mxu2 %v1624_v38  ;;  %v1682_v27 = vld [vmem:[#allocation3 + $0x6c] sm:$0xf0] }
 0x1b5   : > { %1144 = vmatpush.bf16.msra.mxu1 %v1652_v22  ;;  %v1691_v22 = vld [vmem:[#allocation3 + $0xb4] sm:$0xf0]  ;;  %v1460_v32 = vor.u32 %v1682_v27, %v1459_v26  ;;  %v1427_v38 = vld [vmem:[#allocation3 + $0x10] sm:$0xf]  ;;  %v759_v26 = vperm.slane %v750_v0, 7 }
 0x1b6   : > { %v1500_v24 = vor.u32 %v1691_v22, %v1499_v21 }
 0x1b8   : > { %1160 = vmatpush.bf16.msra.mxu2 %v1592_v50 }
 0x1b9   : > { %1145 = vmatpush.bf16.msra.mxu1 %v1620_v34  ;;  %v1679_v34 = vld [vmem:[#allocation3 + $0x5c] sm:$0xf] }
 0x1ba   : > { %v1472_v41 = vor.u32 %v1679_v34, %v1469_v35 }
 0x1bc   : > { %1161 = vmatpush.bf16.msra.mxu2 %v1560_v62 }
 0x1bd   : > { %1146 = vmatpush.bf16.msra.mxu1 %v1588_v46  ;;  %v1437_v46 = vld [vmem:[#allocation3 + $0x38] sm:$0xf0] }
 0x1be   : > { %v1440_v50 = vor.u32 %v1671_v45, %v1437_v46 }
 0x1c0   : > { %1162 = vmatpush.bf16.msra.mxu2 %v1528_v10  ;;  %v752_v10 = vperm.slane %v750_v0, 0 }
 0x1c1   : > { %1147 = vmatpush.bf16.msra.mxu1 %v1556_v58 }
 0x1c5   : > { %1148 = vmatpush.bf16.msra.mxu1 %v1524_v6 }
 0x221   : > { %v634_v49 = vpop.f32.mrf.mxu3 }
 0x222   : > { %v635_v51 = vadd.f32 %v1771_v37, %v634_v49  ;;  %v1715_v49 = vld [vmem:[#allocation3 + $0x174] sm:$0xf0] }
 0x224   : > { %v640_v61 = vmax.f32 %v635_v51, 0.0  ;;  %v1596_v51 = vor.u32 %v1715_v49, %v1595_v48  ;;  %v1436_v49 = vor.u32 %v1675_v44, %v1435_v43 }
 0x226   : > { %1407 = vmatmul.msk.f32.vlgmr.msrb.gmra.mxu0 %vm567_vm2, %v640_v61  ;;  %v1707_v61 = vld [vmem:[#allocation3 + $0x134] sm:$0xf0] }
 0x227   : > { %1186 = vmatpush.bf16.msrb.mxu0 %v1664_v30  ;;  %v1564_v63 = vor.u32 %v1707_v61, %v1563_v60  ;;  %v1461_v30 = vld [vmem:[#allocation3 + $0x70] sm:$0xf0] }
 0x229   : > { %v637_v12 = vpop.f32.mrf.mxu3 }
 0x22a   : > { %v638_v14 = vadd.f32 %v1771_v37, %v637_v12  ;;  %v1723_v37 = vld [vmem:[#allocation3 + $0x1b4] sm:$0xf0]  ;;  %v1695_v12 = vld [vmem:[#allocation3 + $0xdc] sm:$0xf] }
 0x22b   : > { %v1628_v39 = vor.u32 %v1723_v37, %v1627_v36  ;;  %1187 = vmatpush.bf16.msrb.mxu0 %v1632_v42  ;;  %v1536_v15 = vor.u32 %v1695_v12, %v1533_v13  ;;  %v1464_v36 = vor.u32 %v1678_v29, %v1461_v30  ;;  %v1468_v37 = vor.u32 %v1683_v33, %v1467_v31  ;;  %v1429_v42 = vld [vmem:[#allocation3 + $0x30] sm:$0xf0] }
 0x22c   : > { %v641_v18 = vmax.f32 %v638_v14, 0.0  ;;  %v1491_v14 = vld [vmem:[#allocation3 + $0x90] sm:$0xf]  ;;  %v1432_v48 = vor.u32 %v1670_v40, %v1429_v42  ;;  %v758_v40 = vperm.slane %v750_v0, 6 }
 0x22d   : > { %1173 = vmatpush.bf16.msra.mxu3 %v1628_v39  ;;  %v1492_v19 = vor.u32 %v1690_v16, %v1491_v14  ;;  %v1674_v39 = vld [vmem:[#allocation3 + $0x2c] sm:$0xf0] }
 0x22e   : > { %1408 = vmatmul.msk.f32.gmra.mxu0 %vm567_vm2, %v641_v18  ;;  %v1493_v18 = vld [vmem:[#allocation3 + $0xb0] sm:$0xf0]  ;;  %v1428_v47 = vor.u32 %v1674_v39, %v1427_v38  ;;  %v757_v39 = vperm.slane %v750_v0, 5 }
 0x22f   : > { %1188 = vmatpush.bf16.msrb.mxu0 %v1600_v54  ;;  %v1496_v20 = vor.u32 %v1686_v17, %v1493_v18  ;;  %1149 = vmatpush.bf16.msra.mxu1 %v1492_v19 }
 0x231   : > { %1174 = vmatpush.bf16.msra.mxu3 %v1596_v51  ;;  %1163 = vmatpush.bf16.msra.mxu2 %v1496_v20 }
 0x233   : > { %1189 = vmatpush.bf16.msrb.mxu0 %v1568_v2  ;;  %1150 = vmatpush.bf16.msra.mxu1 %v1460_v32  ;;  %v753_v2 = vperm.slane %v750_v0, 1 }
 0x235   : > { %1175 = vmatpush.bf16.msra.mxu3 %v1564_v63  ;;  %1164 = vmatpush.bf16.msra.mxu2 %v1464_v36 }
 0x237   : > { %1190 = vmatpush.bf16.msrb.mxu0 %v1536_v15  ;;  %1151 = vmatpush.bf16.msra.mxu1 %v1428_v47 }
 0x239   : > { %1176 = vmatpush.bf16.msra.mxu3 %v1532_v11  ;;  %1165 = vmatpush.bf16.msra.mxu2 %v1432_v48 }
 0x23b   : > { %1191 = vmatpush.bf16.msrb.mxu0 %v1504_v28 }
 0x23d   : > { %1177 = vmatpush.bf16.msra.mxu3 %v1500_v24 }
 0x23f   : > { %1192 = vmatpush.bf16.msrb.mxu0 %v1472_v41 }
 0x241   : > { %1178 = vmatpush.bf16.msra.mxu3 %v1468_v37 }
 0x243   : > { %1193 = vmatpush.bf16.msrb.mxu0 %v1440_v50 }
 0x245   : > { %1179 = vmatpush.bf16.msra.mxu3 %v1436_v49 }
 0x2a3   : > { %v677_v51 = vpop.f32.mrf.mxu0 }
 0x2a4   : > { %v678_v53 = vadd.f32 %v1772_v52, %v677_v51 }
 0x2a6   : > { %v683_v56 = vmax.f32 %v678_v53, 0.0 }
 0x2ab   : > { %v680_v54 = vpop.f32.mrf.mxu0 }
 0x2ac   : > { %v681_v55 = vadd.f32 %v1772_v52, %v680_v54 }
 0x2ae   : > { %v684_v57 = vmax.f32 %v681_v55, 0.0 }
 0x2b0   : > { %v685_v58 = vpack.c.bf16 %v684_v57, %v683_v56 }
 0x2b2   : > { %1096 = vmatmul.bf16.vlgmr.msrb.gmra.mxu1 %v685_v58  ;;  %1110 = vmatmul.bf16.vlgmr.msrb.gmra.mxu2 %v685_v58 }
 0x2b3   : > { %1124 = vmatmul.bf16.vlgmr.msrb.gmra.mxu3 %v685_v58  ;;  %1138 = vmatmul.bf16.vlgmr.msra.gmra.mxu0 %v685_v58 }
 0x2c2   : > { %1152 = vmatmul.bf16.vlgmr.msra.gmra.mxu1 %v685_v58  ;;  %1166 = vmatmul.bf16.vlgmr.msra.gmra.mxu2 %v685_v58 }
 0x2c3   : > { %1180 = vmatmul.bf16.vlgmr.msra.gmra.mxu3 %v685_v58  ;;  %1194 = vmatmul.bf16.vlgmr.msrb.gmra.mxu0 %v685_v58 }
 0x32f   : > { %v1097_v59 = vpop.f32.mrf.mxu1 }
 0x330   : > { %v1139_v60 = vpop.f32.mrf.mxu0  ;;  %v1098_v20 = vadd.f32 %v1097_v59, %v752_v10 }
 0x331   : > { %v1140_v11 = vadd.f32 %v1139_v60, %v755_v3 }
 0x335   : > { %v1111_v61 = vpop.f32.mrf.mxu2 }
 0x336   : > { %v1125_v62 = vpop.f32.mrf.mxu3  ;;  %v1112_v7 = vadd.f32 %v1111_v61, %v753_v2 }
 0x337   : > { %v1099_v63 = vpop.f32.mrf.mxu1  ;;  %v1126_v12 = vadd.f32 %v1125_v62, %v754_v4 }
 0x338   : > { %v1141_v1 = vpop.f32.mrf.mxu0  ;;  %v1100_v17 = vadd.f32 %v1099_v63, %v752_v10 }
 0x339   : > { %v1142_v5 = vadd.f32 %v1141_v1, %v755_v3 }
 0x33a   : > { %v1201_v24 = vmax.f32 %v1098_v20, %v1100_v17 }
 0x33b   : > { %v1222_v18 = vmax.f32 %v1140_v11, %v1142_v5 }
 0x33c   : > { %v1202_v35 = vrot.slane %v1201_v24, 4 }
 0x33d   : > { %v1113_v6 = vpop.f32.mrf.mxu2  ;;  %v1223_v25 = vrot.slane %v1222_v18, 4 }
 0x33e   : > { %v1114_v8 = vadd.f32 %v1113_v6, %v753_v2  ;;  %v1127_v9 = vpop.f32.mrf.mxu3  ;;  %v1203_v46 = vmax.f32 %v1201_v24, %v1202_v35 }
 0x33f   : > { %v1128_v13 = vadd.f32 %v1127_v9, %v754_v4  ;;  %v1153_v14 = vpop.f32.mrf.mxu1  ;;  %v1224_v36 = vmax.f32 %v1222_v18, %v1223_v25 }
 0x340   : > { %v1208_v15 = vmax.f32 %v1112_v7, %v1114_v8  ;;  %v1195_v16 = vpop.f32.mrf.mxu0  ;;  %v1154_v32 = vadd.f32 %v1153_v14, %v756_v23  ;;  %v1204_v61 = vrot.slane %v1203_v46, 2 }
 0x341   : > { %v1215_v19 = vmax.f32 %v1126_v12, %v1128_v13  ;;  %v1196_v37 = vadd.f32 %v1195_v16, %v759_v26  ;;  %v1225_v47 = vrot.slane %v1224_v36, 2 }
 0x342   : > { %v1209_v21 = vrot.slane %v1208_v15, 4  ;;  %v1205_v8 = vmax.f32 %v1203_v46, %v1204_v61 }
 0x343   : > { %v1216_v22 = vrot.slane %v1215_v19, 4  ;;  %v1226_v62 = vmax.f32 %v1224_v36, %v1225_v47 }
 0x344   : > { %v1210_v29 = vmax.f32 %v1208_v15, %v1209_v21  ;;  %v1206_v18 = vrot.slane %v1205_v8, 1 }
 0x345   : > { %v1167_v27 = vpop.f32.mrf.mxu2  ;;  %v1217_v30 = vmax.f32 %v1215_v19, %v1216_v22  ;;  %v1227_v9 = vrot.slane %v1226_v62, 1 }
 0x346   : > { %v1181_v28 = vpop.f32.mrf.mxu3  ;;  %v1211_v42 = vrot.slane %v1210_v29, 2  ;;  %v1168_v50 = vadd.f32 %v1167_v27, %v757_v39 }
 0x347   : > { %v1155_v31 = vpop.f32.mrf.mxu1  ;;  %v1218_v43 = vrot.slane %v1217_v30, 2  ;;  %v1182_v51 = vadd.f32 %v1181_v28, %v758_v40  ;;  %v1228_v19 = vmax.f32 %v1226_v62, %v1227_v9  ;;  %v1207_v28 = vmax.f32 %v1205_v8, %v1206_v18 }
 0x348   : > { %v1156_v33 = vadd.f32 %v1155_v31, %v756_v23  ;;  %v1197_v34 = vpop.f32.mrf.mxu0  ;;  %v1212_v55 = vmax.f32 %v1210_v29, %v1211_v42 }
 0x349   : > { %v1198_v38 = vadd.f32 %v1197_v34, %v759_v26  ;;  %v1219_v56 = vmax.f32 %v1217_v30, %v1218_v43  ;;  %v1267_v29 = vrot.slane %v1228_v19, 5 }
 0x34a   : > { %v1229_v41 = vmax.f32 %v1154_v32, %v1156_v33  ;;  %v1213_v3 = vrot.slane %v1212_v55, 1 }
 0x34b   : > { %v1250_v44 = vmax.f32 %v1196_v37, %v1198_v38  ;;  %v1220_v4 = vrot.slane %v1219_v56, 1 }
 0x34c   : > { %v1230_v45 = vrot.slane %v1229_v41, 4  ;;  %v1214_v13 = vmax.f32 %v1212_v55, %v1213_v3 }
 0x34d   : > { %v1251_v48 = vrot.slane %v1250_v44, 4  ;;  %v1169_v49 = vpop.f32.mrf.mxu2  ;;  %v1221_v14 = vmax.f32 %v1219_v56, %v1220_v4 }
 0x34e   : > { %v1231_v52 = vmax.f32 %v1229_v41, %v1230_v45  ;;  %v1170_v53 = vadd.f32 %v1169_v49, %v757_v39  ;;  %v1183_v54 = vpop.f32.mrf.mxu3  ;;  %v1265_v23 = vrot.slane %v1214_v13, 7 }
 0x34f   : > { %v1252_v57 = vmax.f32 %v1250_v44, %v1251_v48  ;;  %v1184_v58 = vadd.f32 %v1183_v54, %v758_v40  ;;  %v1266_v24 = vrot.slane %v1221_v14, 6 }
 0x350   : > { %v1232_v59 = vrot.slane %v1231_v52, 2  ;;  %v1236_v60 = vmax.f32 %v1168_v50, %v1170_v53  ;;  %v1273_v33 = vsel %vm1272_vm3, %v1207_v28, %v1265_v23 }
 0x351   : > { %v1253_v63 = vrot.slane %v1252_v57, 2  ;;  %v1243_v0 = vmax.f32 %v1182_v51, %v1184_v58  ;;  %v1275_v34 = vsel %vm1274_vm4, %v1266_v24, %v1267_v29 }
 0x352   : > { %v1233_v1 = vmax.f32 %v1231_v52, %v1232_v59  ;;  %v1237_v2 = vrot.slane %v1236_v60, 4  ;;  %v1277_v39 = vsel %vm1276_vm5, %v1273_v33, %v1275_v34 }
 0x353   : > { %v1254_v5 = vmax.f32 %v1252_v57, %v1253_v63  ;;  %v1244_v6 = vrot.slane %v1243_v0, 4 }
 0x354   : > { %v1238_v7 = vmax.f32 %v1236_v60, %v1237_v2  ;;  %v1234_v11 = vrot.slane %v1233_v1, 1 }
 0x355   : > { %v1245_v10 = vmax.f32 %v1243_v0, %v1244_v6  ;;  %v1255_v15 = vrot.slane %v1254_v5, 1 }
 0x356   : > { %v1239_v12 = vrot.slane %v1238_v7, 2  ;;  %v1235_v21 = vmax.f32 %v1233_v1, %v1234_v11 }
 0x357   : > { %v1246_v16 = vrot.slane %v1245_v10, 2  ;;  %v1256_v25 = vmax.f32 %v1254_v5, %v1255_v15 }
 0x358   : > { %v1240_v17 = vmax.f32 %v1238_v7, %v1239_v12  ;;  %v1268_v31 = vrot.slane %v1235_v21, 4 }
 0x359   : > { %v1247_v20 = vmax.f32 %v1245_v10, %v1246_v16  ;;  %v1271_v35 = vrot.slane %v1256_v25, 1 }
 0x35a   : > { %v1241_v22 = vrot.slane %v1240_v17, 1 }
 0x35b   : > { %v1248_v26 = vrot.slane %v1247_v20, 1 }
 0x35c   : > { %v1242_v27 = vmax.f32 %v1240_v17, %v1241_v22 }
 0x35d   : > { %v1249_v30 = vmax.f32 %v1247_v20, %v1248_v26 }
 0x35e   : > { %v1269_v32 = vrot.slane %v1242_v27, 3 }
 0x35f   : > { %v1270_v36 = vrot.slane %v1249_v30, 2 }
 0x360   : > { %v1279_v37 = vsel %vm1278_vm6, %v1268_v31, %v1269_v32 }
 0x361   : > { %v1281_v38 = vsel %vm1280_vm7, %v1270_v36, %v1271_v35 }
 0x362   : > { %v1283_v40 = vsel %vm1282_vm8, %v1279_v37, %v1281_v38 }
 0x363   : > { %v1285_v41 = vsel %vm1284_vm9, %v1277_v39, %v1283_v40 }
 0x364   : > { %1293 = vst [vmem:[%s473_s16] sm:$0xff] %v1285_v41 }
 0x365 PF: > { %s23_s23 = sadd.s32 1, %s1829_s23   ;;  %s2058_s21 = smov %s1825_s22 }
 0x366   : > { %p20_p8 = scmp.ge.s32.totalorder %s23_s23, 4   ;;  %s2059_s22 = smov %s2061_s25 }
 0x368   :  { %22 = sbr.rel (!%p20_p8) target bundleno = 2 (0x2), region = 114 }
 0x36d   :  { %1313 = vsyncpa [#allocation4], 1 }
 0x36e   :  { %1315 = vsyncpa [#allocation4 + $0x1], 1 }

// kernel: pointnet_cls_forward.4
= control target key start
LH: loop header
LB: loop body
LE: loop exit
PB: predicated region body
PF: predicated region fallthrough
CT: control target
= control target key end

     0   :  { %12 = vsyncpa [#allocation4], 0  ;;  %s1769_s0 = inlined_call_operand.vmem [shape: f32[2,16,3], index: 0, kind: input, shape index: {}]   ;;  %s1770_s1 = inlined_call_operand.vmem [shape: f32[3,64], index: 1, kind: input, shape index: {}]   ;;  %s1771_s2 = inlined_call_operand.vmem [shape: f32[1,64], index: 2, kind: input, shape index: {}]   ;;  %s1772_s3 = inlined_call_operand.hbm [shape: f32[64,128], index: 3, kind: input, shape index: {}]   ;;  %s1773_s4 = inlined_call_operand.vmem [shape: f32[1,128], index: 4, kind: input, shape index: {}]   ;;  %s1774_s5 = inlined_call_operand.hbm [shape: bf16[128,1024], index: 5, kind: input, shape index: {}]   ;;  %s1775_s6 = inlined_call_operand.vmem [shape: f32[1,1024], index: 6, kind: input, shape index: {}]   ;;  %s1776_s7 = inlined_call_operand.vmem [shape: f32[2,1,1024], index: 7, kind: output, shape index: {}]  }
   0x1   :  { %13 = vsyncpa [#allocation6], 0  ;;  %s1675_s24 = smov 0   ;;  %s1677_s25 = smov 0  }
   0x2   :  { %s1679_s26 = smov 0  }
   0x3 LB: > { %s1146_s27 = sadd.s32 4294967295, %s1627_s26   ;;  %s31_s28 = sadd.s32 1, %s1623_s25  ;;  %s1627_s26 = sphi %s1679_s26, %s19_s26   ;;  %s1623_s25 = sphi %s1677_s25, %s1780_s25   ;;  %s1619_s24 = sphi %s1675_s24, %s1779_s24  }
   0x4   : > { %p33_p0 = scmp.ge.s32.totalorder %s31_s28, 2  ;;  %p1148_p1 = scmp.ge.s32.totalorder %s1627_s26, 1 }
   0x5   : > { %p216_p2 = scmp.lt.s32.totalorder %s1627_s26, 3  ;;  %p1700_p4 = scmp.eq.s32.totalorder %s1146_s27, 0 }
   0x6   : > { %s1782_s28 = smov (%p33_p0, %s31_s28), 0  ;;  %s233_s10 = sshll.u32 %s1772_s3, 4  ;;  %s234_s10 = int_to_ptr.hbm [resolvable:$true] %s233_s10 }
   0x7   : > { %p1696_p3 = pnand %p1148_p1, %p216_p2  ;;  %s1629_s11 = smov [#allocation3]  }
   0x8   : > { %s235_s12 = sshll.u32 %s1629_s11, 4  ;;  %s250_s15 = sshll.u32 %s1774_s5, 4  ;;  %s236_s12 = int_to_ptr.vmem [resolvable:$true] %s235_s12  ;;  %s251_s15 = int_to_ptr.hbm [resolvable:$true] %s250_s15 }
   0x9   : > { %p1494_p5 = pneg %p1696_p3  ;;  %s1630_s16 = smov 128  }
   0xa   : > { %s1631_s17 = smov 8   ;;  %s1632_s18 = smov [#allocation5]  }
   0xb   : > { %p1495_p6 = pnand %p1700_p4, %p1494_p5  ;;  %s252_s19 = sshll.u32 %s1632_s18, 4  ;;  %s253_s19 = int_to_ptr.vmem [resolvable:$true] %s252_s19 }
   0xc   : > { %s1633_s20 = smov 512   ;;  %s1634_s21 = smov 32  }
   0xd   : > { %1497 = dma.hbm_to_vmem [thread:$0]  (!%p1495_p6), %s234_s10, 1024, %s236_s12, [#allocation4], %s1630_s16, %s1630_s16, %s1631_s17  }
   0xe   : > { %1500 = dma.hbm_to_vmem [thread:$0]  (!%p1495_p6), %s251_s15, 8192, %s253_s19, [#allocation6], %s1633_s20, %s1633_s20, %s1634_s21  }
   0xf   : > { %284 = sbr.rel (%p1696_p3) target bundleno = 479 (0x1df), region = 48 }
  0x14   : > { %1610 = dma.done.wait (%p1700_p4), [#allocation4], 1024  }
  0x15   : > { %1612 = vsyncadd (%p1700_p4), [#allocation4], 4294966272 }
  0x16   : > { %1614 = dma.done.wait (%p1700_p4), [#allocation6], 8192  }
  0x17   : > { %1616 = vsyncadd (%p1700_p4), [#allocation6], 4294959104  ;;  %p326_p7 = scmp.lt.s32.totalorder %s1619_s24, 1  ;;  %vm358_vm0 = vcmask 1042432   ;;  %vm351_vm1 = vcmask 23552   ;;  %v394_v2 = vld [vmem:[#allocation3 + $0x38] sm:$0xff] }
  0x18   : > { %v346_v0 = vld [vmem:[%s1770_s1] sm:$0x7]  ;;  %v393_v3 = vld [vmem:[#allocation3 + $0x30] sm:$0xff]  ;;  %414 = vmatpush.msra.mxu1 %v394_v2  ;;  %v392_v4 = vld [vmem:[#allocation3 + $0x28] sm:$0xff]  ;;  %vm399_vm2 = vcmask 523264   ;;  %vm1034_vm3 = vcmask 1040384  }
  0x19   : > { %s1784_s24 = smov (!%p326_p7, %s1619_s24), 1  ;;  %1158 = vmatpush.msk.msra.mxu0 %vm358_vm0, %v346_v0  ;;  %v391_v5 = vld [vmem:[#allocation3 + $0x20] sm:$0xff]  ;;  %v390_v7 = vld [vmem:[#allocation3 + $0x18] sm:$0xff]  ;;  %v389_v8 = vld [vmem:[#allocation3 + $0x10] sm:$0xff]  ;;  %vm1036_vm4 = vcmask 1042434   ;;  %vm1038_vm5 = vcmask 1041408  }
  0x1a   : > { %s1421_s22 = sshll.u32 %s1784_s24, 4  ;;  %415 = vmatpush.msra.mxu1 %v393_v3  ;;  %v388_v9 = vld [vmem:[#allocation3 + $0x8] sm:$0xff]  ;;  %v387_v10 = vld [vmem:[#allocation3] sm:$0xff]  ;;  %s1157_s15 = sshll.u32 %s1784_s24, 3  ;;  %vm1042_vm6 = vcmask 1046534   ;;  %vm1040_vm7 = vcmask 1044484  }
  0x1b   : > { %s333_s29 = scalar_lea.vmem %s1769_s0, %s1421_s22  ;;  %v1389_v11 = vld [vmem:[#allocation5 + $0x1c0] sm:$0xf]  ;;  %v1478_v13 = vld [vmem:[#allocation5 + $0x1c4] sm:$0xf]  ;;  %v1397_v16 = vld [vmem:[#allocation5 + $0x1c8] sm:$0xf]  ;;  %s338_s18 = scalar_lea.vmem %s1776_s7, %s1157_s15 }
  0x1c   : > { %v344_v1 = vld [vmem:[%s333_s29] sm:$0xff]  ;;  %416 = vmatpush.msra.mxu1 %v392_v4  ;;  %v345_v6 = vld [vmem:[%s333_s29 + $0x8] sm:$0xff]  ;;  %vm1044_vm8 = vcmask 1045508   ;;  %vm1046_vm9 = vcmask 1043456  }
  0x1d   : > { %1159 = vmatmul.msk.f32.vlgmr.msra.gmra.mxu0 %vm351_vm1, %v344_v1  ;;  %v1482_v12 = vld [vmem:[#allocation5 + $0x1dc] sm:$0xf0]  ;;  %v1391_v15 = vld [vmem:[#allocation5 + $0x1e0] sm:$0xf0]  ;;  %v1483_v17 = vld [vmem:[#allocation5 + $0x1e4] sm:$0xf0] }
  0x1e   : > { %417 = vmatpush.msra.mxu1 %v391_v5  ;;  %v1390_v14 = vor.u32 %v1482_v12, %v1389_v11  ;;  %v1394_v18 = vor.u32 %v1478_v13, %v1391_v15  ;;  %v1398_v19 = vor.u32 %v1483_v17, %v1397_v16  ;;  %v1479_v20 = vld [vmem:[#allocation5 + $0x1cc] sm:$0xf]  ;;  %v1357_v22 = vld [vmem:[#allocation5 + $0x180] sm:$0xf]  ;;  %v1470_v25 = vld [vmem:[#allocation5 + $0x184] sm:$0xf] }
  0x1f   : > { %v1399_v21 = vld [vmem:[#allocation5 + $0x1e8] sm:$0xf0]  ;;  %v1474_v24 = vld [vmem:[#allocation5 + $0x19c] sm:$0xf0]  ;;  %v1359_v26 = vld [vmem:[#allocation5 + $0x1a0] sm:$0xf0] }
  0x20   : > { %418 = vmatpush.msra.mxu1 %v390_v7  ;;  %834 = vmatpush.bf16.msra.mxu2 %v1390_v14  ;;  %v1402_v23 = vor.u32 %v1479_v20, %v1399_v21  ;;  %v1358_v27 = vor.u32 %v1474_v24, %v1357_v22  ;;  %v1362_v28 = vor.u32 %v1470_v25, %v1359_v26  ;;  %v1365_v29 = vld [vmem:[#allocation5 + $0x188] sm:$0xf]  ;;  %v1471_v31 = vld [vmem:[#allocation5 + $0x18c] sm:$0xf]  ;;  %v1325_v34 = vld [vmem:[#allocation5 + $0x140] sm:$0xf] }
  0x21   : > { %848 = vmatpush.bf16.msra.mxu3 %v1394_v18  ;;  %862 = vmatpush.bf16.msrb.mxu0 %v1398_v19  ;;  %v1475_v30 = vld [vmem:[#allocation5 + $0x1a4] sm:$0xf0]  ;;  %v1367_v33 = vld [vmem:[#allocation5 + $0x1a8] sm:$0xf0]  ;;  %v1466_v35 = vld [vmem:[#allocation5 + $0x15c] sm:$0xf0] }
  0x22   : > { %419 = vmatpush.msra.mxu1 %v389_v8  ;;  %v1366_v32 = vor.u32 %v1475_v30, %v1365_v29  ;;  %v1370_v36 = vor.u32 %v1471_v31, %v1367_v33  ;;  %v1462_v37 = vld [vmem:[#allocation5 + $0x144] sm:$0xf]  ;;  %v1333_v39 = vld [vmem:[#allocation5 + $0x148] sm:$0xf]  ;;  %v1326_v40 = vor.u32 %v1466_v35, %v1325_v34  ;;  %v1463_v42 = vld [vmem:[#allocation5 + $0x14c] sm:$0xf] }
  0x23   : > { %v1327_v38 = vld [vmem:[#allocation5 + $0x160] sm:$0xf0]  ;;  %v1467_v41 = vld [vmem:[#allocation5 + $0x164] sm:$0xf0]  ;;  %v1335_v43 = vld [vmem:[#allocation5 + $0x168] sm:$0xf0] }
  0x24   : > { %420 = vmatpush.msra.mxu1 %v388_v9  ;;  %835 = vmatpush.bf16.msra.mxu2 %v1358_v27  ;;  %v1330_v44 = vor.u32 %v1462_v37, %v1327_v38  ;;  %v1334_v45 = vor.u32 %v1467_v41, %v1333_v39  ;;  %v1293_v46 = vld [vmem:[#allocation5 + $0x100] sm:$0xf]  ;;  %v1454_v48 = vld [vmem:[#allocation5 + $0x104] sm:$0xf]  ;;  %v1338_v49 = vor.u32 %v1463_v42, %v1335_v43  ;;  %v1301_v51 = vld [vmem:[#allocation5 + $0x108] sm:$0xf] }
  0x25   : > { %1160 = vmatmul.msk.f32.gmra.mxu0 %vm351_vm1, %v345_v6  ;;  %849 = vmatpush.bf16.msra.mxu3 %v1362_v28  ;;  %v1458_v47 = vld [vmem:[#allocation5 + $0x11c] sm:$0xf0]  ;;  %v1295_v50 = vld [vmem:[#allocation5 + $0x120] sm:$0xf0]  ;;  %v1459_v52 = vld [vmem:[#allocation5 + $0x124] sm:$0xf0] }
  0x26   : > { %421 = vmatpush.msra.mxu1 %v387_v10  ;;  %863 = vmatpush.bf16.msrb.mxu0 %v1366_v32  ;;  %v1455_v53 = vld [vmem:[#allocation5 + $0x10c] sm:$0xf]  ;;  %v1294_v55 = vor.u32 %v1458_v47, %v1293_v46  ;;  %v1298_v56 = vor.u32 %v1454_v48, %v1295_v50  ;;  %v1302_v57 = vor.u32 %v1459_v52, %v1301_v51  ;;  %v1261_v58 = vld [vmem:[#allocation5 + $0xc0] sm:$0xf]  ;;  %v1446_v60 = vld [vmem:[#allocation5 + $0xc4] sm:$0xf] }
  0x27   : > { %v1303_v54 = vld [vmem:[#allocation5 + $0x128] sm:$0xf0]  ;;  %v1450_v59 = vld [vmem:[#allocation5 + $0xdc] sm:$0xf0]  ;;  %v1263_v62 = vld [vmem:[#allocation5 + $0xe0] sm:$0xf0] }
  0x28   : > { %876 = vmatpush.bf16.msrb.mxu1 %v1402_v23  ;;  %836 = vmatpush.bf16.msra.mxu2 %v1326_v40  ;;  %v1306_v61 = vor.u32 %v1455_v53, %v1303_v54  ;;  %v1269_v63 = vld [vmem:[#allocation5 + $0xc8] sm:$0xf]  ;;  %v1447_v1 = vld [vmem:[#allocation5 + $0xcc] sm:$0xf]  ;;  %v1262_v3 = vor.u32 %v1450_v59, %v1261_v58  ;;  %v1535_v4 = vld [vmem:[%s1771_s2] ss:$0 sm:$0xff]  ;;  %v1266_v5 = vor.u32 %v1446_v60, %v1263_v62 }
  0x29   : > { %850 = vmatpush.bf16.msra.mxu3 %v1330_v44  ;;  %v1451_v0 = vld [vmem:[#allocation5 + $0xe4] sm:$0xf0]  ;;  %v1271_v2 = vld [vmem:[#allocation5 + $0xe8] sm:$0xf0]  ;;  %v1229_v7 = vld [vmem:[#allocation5 + $0x80] sm:$0xf] }
  0x2a   : > { %864 = vmatpush.bf16.msrb.mxu0 %v1334_v45  ;;  %v1270_v6 = vor.u32 %v1451_v0, %v1269_v63  ;;  %v1442_v8 = vld [vmem:[#allocation5 + $0x9c] sm:$0xf0]  ;;  %v1274_v9 = vor.u32 %v1447_v1, %v1271_v2  ;;  %v1438_v10 = vld [vmem:[#allocation5 + $0x84] sm:$0xf]  ;;  %v1237_v12 = vld [vmem:[#allocation5 + $0x88] sm:$0xf] }
  0x2b   : > { %v1231_v11 = vld [vmem:[#allocation5 + $0xa0] sm:$0xf0]  ;;  %v1443_v13 = vld [vmem:[#allocation5 + $0xa4] sm:$0xf0]  ;;  %v1439_v14 = vld [vmem:[#allocation5 + $0x8c] sm:$0xf]  ;;  %v1230_v17 = vor.u32 %v1442_v8, %v1229_v7 }
  0x2c   : > { %877 = vmatpush.bf16.msrb.mxu1 %v1370_v36  ;;  %837 = vmatpush.bf16.msra.mxu2 %v1294_v55  ;;  %v1239_v15 = vld [vmem:[#allocation5 + $0xa8] sm:$0xf0]  ;;  %v1234_v19 = vor.u32 %v1438_v10, %v1231_v11  ;;  %v1197_v20 = vld [vmem:[#allocation5 + $0x40] sm:$0xf]  ;;  %v1430_v22 = vld [vmem:[#allocation5 + $0x44] sm:$0xf]  ;;  %v1238_v23 = vor.u32 %v1443_v13, %v1237_v12 }
  0x2d   : > { %851 = vmatpush.bf16.msra.mxu3 %v1298_v56  ;;  %v1434_v21 = vld [vmem:[#allocation5 + $0x5c] sm:$0xf0]  ;;  %v1242_v24 = vor.u32 %v1439_v14, %v1239_v15  ;;  %v1199_v25 = vld [vmem:[#allocation5 + $0x60] sm:$0xf0]  ;;  %v1205_v26 = vld [vmem:[#allocation5 + $0x48] sm:$0xf] }
  0x2e   : > { %865 = vmatpush.bf16.msrb.mxu0 %v1302_v57  ;;  %v1435_v27 = vld [vmem:[#allocation5 + $0x64] sm:$0xf0]  ;;  %v1431_v29 = vld [vmem:[#allocation5 + $0x4c] sm:$0xf]  ;;  %v1198_v31 = vor.u32 %v1434_v21, %v1197_v20  ;;  %v1202_v32 = vor.u32 %v1430_v22, %v1199_v25  ;;  %v1165_v33 = vld [vmem:[#allocation5] sm:$0xf] }
  0x2f   : > { %v1207_v30 = vld [vmem:[#allocation5 + $0x68] sm:$0xf0]  ;;  %v1426_v34 = vld [vmem:[#allocation5 + $0x1c] sm:$0xf0]  ;;  %v1206_v35 = vor.u32 %v1435_v27, %v1205_v26  ;;  %v1422_v37 = vld [vmem:[#allocation5 + $0x4] sm:$0xf] }
  0x30   : > { %878 = vmatpush.bf16.msrb.mxu1 %v1338_v49  ;;  %838 = vmatpush.bf16.msra.mxu2 %v1262_v3  ;;  %v1210_v36 = vor.u32 %v1431_v29, %v1207_v30  ;;  %v1167_v38 = vld [vmem:[#allocation5 + $0x20] sm:$0xf0]  ;;  %v1173_v39 = vld [vmem:[#allocation5 + $0x8] sm:$0xf]  ;;  %v1423_v41 = vld [vmem:[#allocation5 + $0xc] sm:$0xf]  ;;  %v1166_v44 = vor.u32 %v1426_v34, %v1165_v33 }
  0x31   : > { %852 = vmatpush.bf16.msra.mxu3 %v1266_v5  ;;  %v1427_v40 = vld [vmem:[#allocation5 + $0x24] sm:$0xf0]  ;;  %v1175_v42 = vld [vmem:[#allocation5 + $0x28] sm:$0xf0]  ;;  %v1170_v46 = vor.u32 %v1422_v37, %v1167_v38  ;;  %v1405_v50 = vld [vmem:[#allocation5 + $0x1d0] sm:$0xf] }
  0x32   : > { %866 = vmatpush.bf16.msrb.mxu0 %v1270_v6  ;;  %v1174_v47 = vor.u32 %v1427_v40, %v1173_v39  ;;  %v1178_v48 = vor.u32 %v1423_v41, %v1175_v42  ;;  %v1484_v51 = vld [vmem:[#allocation5 + $0x1ec] sm:$0xf0]  ;;  %v1480_v52 = vld [vmem:[#allocation5 + $0x1d4] sm:$0xf]  ;;  %v1413_v55 = vld [vmem:[#allocation5 + $0x1d8] sm:$0xf] }
  0x33   : > { %v1406_v53 = vor.u32 %v1484_v51, %v1405_v50  ;;  %v1407_v54 = vld [vmem:[#allocation5 + $0x1f0] sm:$0xf0]  ;;  %v1485_v56 = vld [vmem:[#allocation5 + $0x1f4] sm:$0xf0]  ;;  %v1481_v59 = vld [vmem:[#allocation5 + $0x1dc] sm:$0xf] }
  0x34   : > { %879 = vmatpush.bf16.msrb.mxu1 %v1306_v61  ;;  %839 = vmatpush.bf16.msra.mxu2 %v1230_v17  ;;  %v1410_v57 = vor.u32 %v1480_v52, %v1407_v54  ;;  %v1414_v58 = vor.u32 %v1485_v56, %v1413_v55  ;;  %v1415_v60 = vld [vmem:[#allocation5 + $0x1f8] sm:$0xf0]  ;;  %v1373_v62 = vld [vmem:[#allocation5 + $0x190] sm:$0xf]  ;;  %v1472_v0 = vld [vmem:[#allocation5 + $0x194] sm:$0xf] }
  0x35   : > { %853 = vmatpush.bf16.msra.mxu3 %v1234_v19  ;;  %v1418_v61 = vor.u32 %v1481_v59, %v1415_v60  ;;  %v1476_v63 = vld [vmem:[#allocation5 + $0x1ac] sm:$0xf0]  ;;  %v1375_v2 = vld [vmem:[#allocation5 + $0x1b0] sm:$0xf0]  ;;  %v1381_v3 = vld [vmem:[#allocation5 + $0x198] sm:$0xf] }
  0x36   : > { %867 = vmatpush.bf16.msrb.mxu0 %v1238_v23  ;;  %v1374_v1 = vor.u32 %v1476_v63, %v1373_v62  ;;  %v1378_v5 = vor.u32 %v1472_v0, %v1375_v2  ;;  %v1473_v7 = vld [vmem:[#allocation5 + $0x19c] sm:$0xf]  ;;  %v1341_v10 = vld [vmem:[#allocation5 + $0x150] sm:$0xf]  ;;  %v1464_v12 = vld [vmem:[#allocation5 + $0x154] sm:$0xf] }
  0x37   : > { %v1383_v8 = vld [vmem:[#allocation5 + $0x1b8] sm:$0xf0]  ;;  %v1468_v11 = vld [vmem:[#allocation5 + $0x16c] sm:$0xf0]  ;;  %v1343_v14 = vld [vmem:[#allocation5 + $0x170] sm:$0xf0] }
  0x38   : > { %880 = vmatpush.bf16.msrb.mxu1 %v1274_v9  ;;  %840 = vmatpush.bf16.msra.mxu2 %v1198_v31  ;;  %v1386_v9 = vor.u32 %v1473_v7, %v1383_v8  ;;  %v1342_v13 = vor.u32 %v1468_v11, %v1341_v10  ;;  %v1349_v15 = vld [vmem:[#allocation5 + $0x158] sm:$0xf]  ;;  %v1346_v17 = vor.u32 %v1464_v12, %v1343_v14  ;;  %v1465_v19 = vld [vmem:[#allocation5 + $0x15c] sm:$0xf]  ;;  %v1309_v22 = vld [vmem:[#allocation5 + $0x110] sm:$0xf] }
  0x39   : > { %854 = vmatpush.bf16.msra.mxu3 %v1202_v32  ;;  %v1351_v20 = vld [vmem:[#allocation5 + $0x178] sm:$0xf0]  ;;  %v1460_v23 = vld [vmem:[#allocation5 + $0x12c] sm:$0xf0]  ;;  %v1311_v26 = vld [vmem:[#allocation5 + $0x130] sm:$0xf0] }
  0x3a   : > { %868 = vmatpush.bf16.msrb.mxu0 %v1206_v35  ;;  %v1354_v21 = vor.u32 %v1465_v19, %v1351_v20  ;;  %v1310_v25 = vor.u32 %v1460_v23, %v1309_v22  ;;  %v1317_v27 = vld [vmem:[#allocation5 + $0x118] sm:$0xf]  ;;  %v1457_v31 = vld [vmem:[#allocation5 + $0x11c] sm:$0xf]  ;;  %v1277_v34 = vld [vmem:[#allocation5 + $0xd0] sm:$0xf] }
  0x3b   : > { %v1319_v32 = vld [vmem:[#allocation5 + $0x138] sm:$0xf0]  ;;  %v1452_v35 = vld [vmem:[#allocation5 + $0xec] sm:$0xf0]  ;;  %v1279_v38 = vld [vmem:[#allocation5 + $0xf0] sm:$0xf0] }
  0x3c   : > { %881 = vmatpush.bf16.msrb.mxu1 %v1242_v24  ;;  %841 = vmatpush.bf16.msra.mxu2 %v1166_v44  ;;  %v1456_v24 = vld [vmem:[#allocation5 + $0x114] sm:$0xf]  ;;  %v1322_v33 = vor.u32 %v1457_v31, %v1319_v32  ;;  %v1278_v37 = vor.u32 %v1452_v35, %v1277_v34  ;;  %v1285_v39 = vld [vmem:[#allocation5 + $0xd8] sm:$0xf]  ;;  %v1287_v44 = vld [vmem:[#allocation5 + $0xf8] sm:$0xf0] }
  0x3d   : > { %855 = vmatpush.bf16.msra.mxu3 %v1170_v46  ;;  %v1314_v29 = vor.u32 %v1456_v24, %v1311_v26  ;;  %v1453_v40 = vld [vmem:[#allocation5 + $0xf4] sm:$0xf0]  ;;  %v1441_v54 = vld [vmem:[#allocation5 + $0x9c] sm:$0xf]  ;;  %v1432_v60 = vld [vmem:[#allocation5 + $0x54] sm:$0xf] }
  0x3e   : > { %869 = vmatpush.bf16.msrb.mxu0 %v1174_v47  ;;  %v1286_v42 = vor.u32 %v1453_v40, %v1285_v39  ;;  %v1444_v47 = vld [vmem:[#allocation5 + $0xac] sm:$0xf0]  ;;  %v1253_v52 = vld [vmem:[#allocation5 + $0x98] sm:$0xf]  ;;  %v1255_v56 = vld [vmem:[#allocation5 + $0xb8] sm:$0xf0] }
  0x3f   : > { %v1258_v59 = vor.u32 %v1441_v54, %v1255_v56  ;;  %v1221_v62 = vld [vmem:[#allocation5 + $0x58] sm:$0xf]  ;;  %v1223_v2 = vld [vmem:[#allocation5 + $0x78] sm:$0xf0]  ;;  %v1424_v7 = vld [vmem:[#allocation5 + $0x14] sm:$0xf] }
  0x40   : > { %882 = vmatpush.bf16.msrb.mxu1 %v1210_v36  ;;  %890 = vmatpush.bf16.msrb.mxu2 %v1406_v53  ;;  %v1448_v36 = vld [vmem:[#allocation5 + $0xd4] sm:$0xf]  ;;  %v1445_v53 = vld [vmem:[#allocation5 + $0xb4] sm:$0xf0]  ;;  %v1425_v12 = vld [vmem:[#allocation5 + $0x1c] sm:$0xf] }
  0x41   : > { %904 = vmatpush.bf16.msrb.mxu3 %v1410_v57  ;;  %v1282_v41 = vor.u32 %v1448_v36, %v1279_v38  ;;  %v1254_v55 = vor.u32 %v1445_v53, %v1253_v52  ;;  %v1213_v57 = vld [vmem:[#allocation5 + $0x50] sm:$0xf]  ;;  %v1437_v0 = vld [vmem:[#allocation5 + $0x74] sm:$0xf0]  ;;  %v1536_v19 = vld [vmem:[%s1773_s4] ss:$0 sm:$0xff] }
  0x42   : > { %918 = vmatpush.bf16.msra.mxu0 %v1414_v58  ;;  %v1436_v58 = vld [vmem:[#allocation5 + $0x6c] sm:$0xf0]  ;;  %v1189_v10 = vld [vmem:[#allocation5 + $0x18] sm:$0xf] }
  0x43   : > { %v1214_v63 = vor.u32 %v1436_v58, %v1213_v57  ;;  %v1429_v11 = vld [vmem:[#allocation5 + $0x34] sm:$0xf0] }
  0x44   : > { %883 = vmatpush.bf16.msrb.mxu1 %v1178_v48  ;;  %891 = vmatpush.bf16.msrb.mxu2 %v1374_v1  ;;  %v1440_v48 = vld [vmem:[#allocation5 + $0x94] sm:$0xf]  ;;  %v1433_v1 = vld [vmem:[#allocation5 + $0x5c] sm:$0xf] }
  0x45   : > { %905 = vmatpush.bf16.msrb.mxu3 %v1378_v5  ;;  %v1181_v5 = vld [vmem:[#allocation5 + $0x10] sm:$0xf]  ;;  %v1226_v8 = vor.u32 %v1433_v1, %v1223_v2 }
  0x48   : > { %892 = vmatpush.bf16.msrb.mxu2 %v1342_v13  ;;  %v1191_v13 = vld [vmem:[#allocation5 + $0x38] sm:$0xf0] }
  0x49   : > { %906 = vmatpush.bf16.msrb.mxu3 %v1346_v17  ;;  %v1194_v17 = vor.u32 %v1425_v12, %v1191_v13 }
  0x4c   : > { %893 = vmatpush.bf16.msrb.mxu2 %v1310_v25 }
  0x4d   : > { %907 = vmatpush.bf16.msrb.mxu3 %v1314_v29 }
  0x50   : > { %894 = vmatpush.bf16.msrb.mxu2 %v1278_v37 }
  0x51   : > { %908 = vmatpush.bf16.msrb.mxu3 %v1282_v41 }
  0x9a   : > { %v379_v16 = vpop.f32.mrf.mxu0 }
  0x9b   : > { %v380_v18 = vadd.f32 %v1535_v4, %v379_v16  ;;  %v1469_v16 = vld [vmem:[#allocation5 + $0x174] sm:$0xf0] }
  0x9d   : > { %v385_v28 = vmax.f32 %v380_v18, 0.0  ;;  %v1350_v18 = vor.u32 %v1469_v16, %v1349_v15  ;;  %v1190_v16 = vor.u32 %v1429_v11, %v1189_v10 }
  0x9f   : > { %1161 = vmatmul.msk.f32.vlgmr.msra.gmra.mxu1 %vm399_vm2, %v385_v28  ;;  %v1461_v28 = vld [vmem:[#allocation5 + $0x134] sm:$0xf0] }
  0xa0   : > { %932 = vmatpush.bf16.msra.mxu1 %v1418_v61  ;;  %v1318_v30 = vor.u32 %v1461_v28, %v1317_v27  ;;  %v1215_v61 = vld [vmem:[#allocation5 + $0x70] sm:$0xf0]  ;;  %v1746_v28 = vld [vmem:[%s1775_s6] sm:$0xff] }
  0xa1   : > { %v500_v29 = vperm.slane %v1746_v28, 2  ;;  %v501_v32 = vperm.slane %v1746_v28, 3  ;;  %v499_v34 = vperm.slane %v1746_v28, 1  ;;  %v498_v40 = vperm.slane %v1746_v28, 0 }
  0xa2   : > { %v382_v43 = vpop.f32.mrf.mxu0 }
  0xa3   : > { %v383_v45 = vadd.f32 %v1535_v4, %v382_v43  ;;  %v1477_v4 = vld [vmem:[#allocation5 + $0x1b4] sm:$0xf0]  ;;  %v1449_v43 = vld [vmem:[#allocation5 + $0xdc] sm:$0xf] }
  0xa4   : > { %v1382_v6 = vor.u32 %v1477_v4, %v1381_v3  ;;  %933 = vmatpush.bf16.msra.mxu1 %v1386_v9  ;;  %v1290_v46 = vor.u32 %v1449_v43, %v1287_v44  ;;  %v1218_v3 = vor.u32 %v1432_v60, %v1215_v61  ;;  %v1222_v4 = vor.u32 %v1437_v0, %v1221_v62  ;;  %v1183_v9 = vld [vmem:[#allocation5 + $0x30] sm:$0xf0] }
  0xa5   : > { %v386_v49 = vmax.f32 %v383_v45, 0.0  ;;  %v1245_v45 = vld [vmem:[#allocation5 + $0x90] sm:$0xf]  ;;  %v1186_v15 = vor.u32 %v1424_v7, %v1183_v9  ;;  %v504_v60 = vperm.slane %v1746_v28, 6  ;;  %v505_v62 = vperm.slane %v1746_v28, 7 }
  0xa6   : > { %919 = vmatpush.bf16.msra.mxu0 %v1382_v6  ;;  %v1246_v50 = vor.u32 %v1444_v47, %v1245_v45  ;;  %v1428_v6 = vld [vmem:[#allocation5 + $0x2c] sm:$0xf0]  ;;  %v502_v7 = vperm.slane %v1746_v28, 4  ;;  %v503_v9 = vperm.slane %v1746_v28, 5 }
  0xa7   : > { %1162 = vmatmul.msk.f32.gmra.mxu1 %vm399_vm2, %v386_v49  ;;  %v1247_v49 = vld [vmem:[#allocation5 + $0xb0] sm:$0xf0]  ;;  %v1182_v14 = vor.u32 %v1428_v6, %v1181_v5 }
  0xa8   : > { %934 = vmatpush.bf16.msra.mxu1 %v1354_v21  ;;  %v1250_v51 = vor.u32 %v1440_v48, %v1247_v49  ;;  %895 = vmatpush.bf16.msrb.mxu2 %v1246_v50 }
  0xaa   : > { %920 = vmatpush.bf16.msra.mxu0 %v1350_v18  ;;  %909 = vmatpush.bf16.msrb.mxu3 %v1250_v51 }
  0xac   : > { %935 = vmatpush.bf16.msra.mxu1 %v1322_v33  ;;  %896 = vmatpush.bf16.msrb.mxu2 %v1214_v63 }
  0xae   : > { %921 = vmatpush.bf16.msra.mxu0 %v1318_v30  ;;  %910 = vmatpush.bf16.msrb.mxu3 %v1218_v3 }
  0xb0   : > { %936 = vmatpush.bf16.msra.mxu1 %v1290_v46  ;;  %897 = vmatpush.bf16.msrb.mxu2 %v1182_v14 }
  0xb2   : > { %922 = vmatpush.bf16.msra.mxu0 %v1286_v42  ;;  %911 = vmatpush.bf16.msrb.mxu3 %v1186_v15 }
  0xb4   : > { %937 = vmatpush.bf16.msra.mxu1 %v1258_v59 }
  0xb6   : > { %923 = vmatpush.bf16.msra.mxu0 %v1254_v55 }
  0xb8   : > { %938 = vmatpush.bf16.msra.mxu1 %v1226_v8 }
  0xba   : > { %924 = vmatpush.bf16.msra.mxu0 %v1222_v4 }
  0xbc   : > { %939 = vmatpush.bf16.msra.mxu1 %v1194_v17 }
  0xbe   : > { %925 = vmatpush.bf16.msra.mxu0 %v1190_v16 }
 0x11c   : > { %v423_v18 = vpop.f32.mrf.mxu1 }
 0x11d   : > { %v424_v20 = vadd.f32 %v1536_v19, %v423_v18 }
 0x11f   : > { %v429_v23 = vmax.f32 %v424_v20, 0.0 }
 0x124   : > { %v426_v21 = vpop.f32.mrf.mxu1 }
 0x125   : > { %v427_v22 = vadd.f32 %v1536_v19, %v426_v21 }
 0x127   : > { %v430_v24 = vmax.f32 %v427_v22, 0.0 }
 0x129   : > { %v431_v25 = vpack.c.bf16 %v430_v24, %v429_v23 }
 0x12b   : > { %842 = vmatmul.bf16.vlgmr.msra.gmra.mxu2 %v431_v25  ;;  %856 = vmatmul.bf16.vlgmr.msra.gmra.mxu3 %v431_v25 }
 0x12c   : > { %870 = vmatmul.bf16.vlgmr.msrb.gmra.mxu0 %v431_v25  ;;  %884 = vmatmul.bf16.vlgmr.msrb.gmra.mxu1 %v431_v25 }
 0x13b   : > { %898 = vmatmul.bf16.vlgmr.msrb.gmra.mxu2 %v431_v25  ;;  %912 = vmatmul.bf16.vlgmr.msrb.gmra.mxu3 %v431_v25 }
 0x13c   : > { %926 = vmatmul.bf16.vlgmr.msra.gmra.mxu0 %v431_v25  ;;  %940 = vmatmul.bf16.vlgmr.msra.gmra.mxu1 %v431_v25 }
 0x1a9   : > { %v871_v26 = vpop.f32.mrf.mxu0  ;;  %v885_v27 = vpop.f32.mrf.mxu1 }
 0x1aa   : > { %v872_v33 = vadd.f32 %v871_v26, %v500_v29  ;;  %v886_v39 = vadd.f32 %v885_v27, %v501_v32 }
 0x1ac   : > { %v948_v42 = vmax.f32 %v872_v33, 0.0  ;;  %v949_v50 = vmax.f32 %v886_v39, 0.0 }
 0x1ae   : > { %v843_v30 = vpop.f32.mrf.mxu2  ;;  %v857_v31 = vpop.f32.mrf.mxu3 }
 0x1af   : > { %v858_v43 = vadd.f32 %v857_v31, %v499_v34  ;;  %v844_v51 = vadd.f32 %v843_v30, %v498_v40 }
 0x1b1   : > { %v873_v35 = vpop.f32.mrf.mxu0  ;;  %v887_v36 = vpop.f32.mrf.mxu1  ;;  %v947_v52 = vmax.f32 %v858_v43, 0.0  ;;  %v946_v61 = vmax.f32 %v844_v51, 0.0 }
 0x1b2   : > { %v874_v37 = vadd.f32 %v873_v35, %v500_v29  ;;  %v888_v38 = vadd.f32 %v887_v36, %v501_v32 }
 0x1b4   : > { %v956_v41 = vmax.f32 %v874_v37, 0.0  ;;  %v957_v44 = vmax.f32 %v888_v38, 0.0 }
 0x1b6   : > { %v845_v45 = vpop.f32.mrf.mxu2  ;;  %v859_v46 = vpop.f32.mrf.mxu3  ;;  %v977_v47 = vmax.f32 %v948_v42, %v956_v41  ;;  %v984_v56 = vmax.f32 %v949_v50, %v957_v44 }
 0x1b7   : > { %v846_v48 = vadd.f32 %v845_v45, %v498_v40  ;;  %v860_v49 = vadd.f32 %v859_v46, %v499_v34 }
 0x1b8   : > { %v978_v58 = vrot.slane %v977_v47, 4  ;;  %v985_v0 = vrot.slane %v984_v56, 4 }
 0x1b9   : > { %v955_v53 = vmax.f32 %v860_v49, 0.0  ;;  %v927_v54 = vpop.f32.mrf.mxu0  ;;  %v941_v55 = vpop.f32.mrf.mxu1  ;;  %v954_v57 = vmax.f32 %v846_v48, 0.0 }
 0x1ba   : > { %v979_v4 = vmax.f32 %v977_v47, %v978_v58  ;;  %v928_v5 = vadd.f32 %v927_v54, %v504_v60  ;;  %v942_v6 = vadd.f32 %v941_v55, %v505_v62  ;;  %v986_v12 = vmax.f32 %v984_v56, %v985_v0 }
 0x1bb   : > { %v970_v59 = vmax.f32 %v947_v52, %v955_v53  ;;  %v963_v1 = vmax.f32 %v946_v61, %v954_v57 }
 0x1bc   : > { %v980_v16 = vrot.slane %v979_v4, 2  ;;  %v952_v17 = vmax.f32 %v928_v5, 0.0  ;;  %v953_v18 = vmax.f32 %v942_v6, 0.0  ;;  %v987_v24 = vrot.slane %v986_v12, 2 }
 0x1bd   : > { %v971_v63 = vrot.slane %v970_v59, 4  ;;  %v964_v13 = vrot.slane %v963_v1, 4 }
 0x1be   : > { %v899_v2 = vpop.f32.mrf.mxu2  ;;  %v913_v3 = vpop.f32.mrf.mxu3  ;;  %v981_v32 = vmax.f32 %v979_v4, %v980_v16  ;;  %v988_v40 = vmax.f32 %v986_v12, %v987_v24 }
 0x1bf   : > { %v972_v8 = vmax.f32 %v970_v59, %v971_v63  ;;  %v900_v19 = vadd.f32 %v899_v2, %v502_v7  ;;  %v914_v23 = vadd.f32 %v913_v3, %v503_v9  ;;  %v965_v25 = vmax.f32 %v963_v1, %v964_v13 }
 0x1c0   : > { %v982_v48 = vrot.slane %v981_v32, 1  ;;  %v989_v52 = vrot.slane %v988_v40, 1 }
 0x1c1   : > { %v929_v10 = vpop.f32.mrf.mxu0  ;;  %v943_v11 = vpop.f32.mrf.mxu1  ;;  %v973_v22 = vrot.slane %v972_v8, 2  ;;  %v950_v33 = vmax.f32 %v900_v19, 0.0  ;;  %v951_v37 = vmax.f32 %v914_v23, 0.0  ;;  %v966_v41 = vrot.slane %v965_v25, 2 }
 0x1c2   : > { %v930_v14 = vadd.f32 %v929_v10, %v504_v60  ;;  %v944_v15 = vadd.f32 %v943_v11, %v505_v62  ;;  %v983_v63 = vmax.f32 %v981_v32, %v982_v48  ;;  %v990_v0 = vmax.f32 %v988_v40, %v989_v52 }
 0x1c3   : > { %v974_v36 = vmax.f32 %v972_v8, %v973_v22  ;;  %v967_v53 = vmax.f32 %v965_v25, %v966_v41 }
 0x1c4   : > { %v960_v20 = vmax.f32 %v930_v14, 0.0  ;;  %v961_v21 = vmax.f32 %v944_v15, 0.0  ;;  %v1029_v10 = vrot.slane %v990_v0, 5 }
 0x1c5   : > { %v975_v49 = vrot.slane %v974_v36, 1  ;;  %v968_v1 = vrot.slane %v967_v53, 1 }
 0x1c6   : > { %v1005_v26 = vmax.f32 %v952_v17, %v960_v20  ;;  %v1012_v27 = vmax.f32 %v953_v18, %v961_v21  ;;  %v901_v29 = vpop.f32.mrf.mxu2  ;;  %v915_v28 = vpop.f32.mrf.mxu3 }
 0x1c7   : > { %v902_v30 = vadd.f32 %v901_v29, %v502_v7  ;;  %v916_v31 = vadd.f32 %v915_v28, %v503_v9  ;;  %v976_v60 = vmax.f32 %v974_v36, %v975_v49  ;;  %v1028_v9 = vrot.slane %v983_v63, 6 }
 0x1c8   : > { %v1006_v34 = vrot.slane %v1005_v26, 4  ;;  %v1013_v35 = vrot.slane %v1012_v27, 4  ;;  %v969_v11 = vmax.f32 %v967_v53, %v968_v1 }
 0x1c9   : > { %v958_v38 = vmax.f32 %v902_v30, 0.0  ;;  %v959_v39 = vmax.f32 %v916_v31, 0.0  ;;  %v1027_v6 = vrot.slane %v976_v60, 7  ;;  %v1037_v19 = vsel %vm1036_vm4, %v1028_v9, %v1029_v10 }
 0x1ca   : > { %v1007_v42 = vmax.f32 %v1005_v26, %v1006_v34  ;;  %v1014_v43 = vmax.f32 %v1012_v27, %v1013_v35 }
 0x1cb   : > { %v991_v44 = vmax.f32 %v950_v33, %v958_v38  ;;  %v998_v45 = vmax.f32 %v951_v37, %v959_v39  ;;  %v1035_v16 = vsel %vm1034_vm3, %v969_v11, %v1027_v6 }
 0x1cc   : > { %v1008_v46 = vrot.slane %v1007_v42, 2  ;;  %v1015_v47 = vrot.slane %v1014_v43, 2  ;;  %v1039_v22 = vsel %vm1038_vm5, %v1035_v16, %v1037_v19 }
 0x1cd   : > { %v992_v50 = vrot.slane %v991_v44, 4  ;;  %v999_v51 = vrot.slane %v998_v45, 4 }
 0x1ce   : > { %v1009_v54 = vmax.f32 %v1007_v42, %v1008_v46  ;;  %v1016_v55 = vmax.f32 %v1014_v43, %v1015_v47 }
 0x1cf   : > { %v993_v56 = vmax.f32 %v991_v44, %v992_v50  ;;  %v1000_v57 = vmax.f32 %v998_v45, %v999_v51 }
 0x1d0   : > { %v1010_v58 = vrot.slane %v1009_v54, 1  ;;  %v1017_v59 = vrot.slane %v1016_v55, 1 }
 0x1d1   : > { %v994_v61 = vrot.slane %v993_v56, 2  ;;  %v1001_v62 = vrot.slane %v1000_v57, 2 }
 0x1d2   : > { %v1011_v2 = vmax.f32 %v1009_v54, %v1010_v58  ;;  %v1018_v3 = vmax.f32 %v1016_v55, %v1017_v59 }
 0x1d3   : > { %v995_v4 = vmax.f32 %v993_v56, %v994_v61  ;;  %v1002_v5 = vmax.f32 %v1000_v57, %v1001_v62 }
 0x1d4   : > { %v1032_v12 = vrot.slane %v1011_v2, 2  ;;  %v1033_v13 = vrot.slane %v1018_v3, 1 }
 0x1d5   : > { %v996_v7 = vrot.slane %v995_v4, 1  ;;  %v1003_v8 = vrot.slane %v1002_v5, 1 }
 0x1d6   : > { %v1043_v20 = vsel %vm1042_vm6, %v1032_v12, %v1033_v13 }
 0x1d7   : > { %v997_v14 = vmax.f32 %v995_v4, %v996_v7  ;;  %v1004_v15 = vmax.f32 %v1002_v5, %v1003_v8 }
 0x1d9   : > { %v1030_v17 = vrot.slane %v997_v14, 4  ;;  %v1031_v18 = vrot.slane %v1004_v15, 3 }
 0x1db   : > { %v1041_v21 = vsel %vm1040_vm7, %v1030_v17, %v1031_v18 }
 0x1dc   : > { %v1045_v23 = vsel %vm1044_vm8, %v1041_v21, %v1043_v20 }
 0x1dd   : > { %v1047_v24 = vsel %vm1046_vm9, %v1039_v22, %v1045_v23 }
 0x1de   : > { %1055 = vst [vmem:[%s338_s18] sm:$0xff] %v1047_v24 }
 0x1df PF: > { %s19_s26 = sadd.s32 1, %s1627_s26   ;;  %s1779_s24 = smov %s1623_s25 }
 0x1e0   : > { %p16_p8 = scmp.ge.s32.totalorder %s19_s26, 4   ;;  %s1780_s25 = smov %s1782_s28 }
 0x1e2   :  { %18 = sbr.rel (!%p16_p8) target bundleno = 3 (0x3), region = 95 }
 0x1e7   :  { %1075 = vsyncpa [#allocation4], 1 }
 0x1e8   :  { %1077 = vsyncpa [#allocation4 + $0x1], 1 }
 0x1e9   :  { %1078 = vsyncpa [#allocation6], 1 }

// kernel: pointnet_cls_forward.5
= control target key start
LH: loop header
LB: loop body
LE: loop exit
PB: predicated region body
PF: predicated region fallthrough
CT: control target
= control target key end

     0   :  { %13 = vsyncpa [#allocation3], 0  ;;  %s4048_s0 = inlined_call_operand.vmem [shape: f32[2,1024], index: 0, kind: input, shape index: {}]   ;;  %s4049_s1 = inlined_call_operand.hbm [shape: bf16[1024,512], index: 1, kind: input, shape index: {}]   ;;  %s4050_s2 = inlined_call_operand.vmem [shape: f32[1,512], index: 2, kind: input, shape index: {}]   ;;  %s4051_s3 = inlined_call_operand.hbm [shape: f32[512,256], index: 3, kind: input, shape index: {}]   ;;  %s4052_s4 = inlined_call_operand.vmem [shape: f32[1,256], index: 4, kind: input, shape index: {}]   ;;  %s4053_s5 = inlined_call_operand.vmem [shape: f32[256,9], index: 5, kind: input, shape index: {}]   ;;  %s4054_s6 = inlined_call_operand.vmem [shape: f32[1,9], index: 6, kind: input, shape index: {}]   ;;  %s4055_s7 = inlined_call_operand.vmem [shape: f32[1,9], index: 7, kind: input, shape index: {}]   ;;  %s4056_s8 = inlined_call_operand.vmem [shape: f32[2,9], index: 8, kind: output, shape index: {}]  }
   0x1   :  { %s21_s29 = sshll.u32 %s4049_s1, 4  ;;  %s22_s29 = int_to_ptr.hbm [resolvable:$true] %s21_s29 }
   0x2   :  { %14 = vsyncpa [#allocation5], 0  ;;  %s3782_s30 = smov [#allocation2]   ;;  %s36_s12 = sshll.u32 %s4051_s3, 4  ;;  %s37_s12 = int_to_ptr.hbm [resolvable:$true] %s36_s12 }
   0x3   :  { %s23_s9 = sshll.u32 %s3782_s30, 4  ;;  %s3783_s13 = smov 256   ;;  %s24_s9 = int_to_ptr.vmem [resolvable:$true] %s23_s9 }
   0x4   :  { %s3784_s14 = smov 16   ;;  %s3785_s15 = smov [#allocation4]  }
   0x5   :  { %29 = dma.hbm_to_vmem [thread:$0]  %s22_s29, 32768, %s24_s9, [#allocation3], %s3783_s13, %s3783_s13, %s3784_s14  }
   0x6   :  { %s38_s16 = sshll.u32 %s3785_s15, 4  ;;  %s39_s16 = int_to_ptr.vmem [resolvable:$true] %s38_s16 }
   0x7   :  { %44 = dma.hbm_to_vmem [thread:$0]  %s37_s12, 16384, %s39_s16, [#allocation5], %s3783_s13, %s3783_s13, %s3784_s14  }
   0x8   :  { %3778 = dma.done.wait [#allocation3], 32768  }
   0x9   :  { %3779 = vsyncadd [#allocation3], 4294934528 }
   0xa   :  { %3780 = dma.done.wait [#allocation5], 16384  }
   0xb   :  { %3781 = vsyncadd [#allocation5], 4294950912  ;;  %v2557_v0 = vld [vmem:[#allocation2 + $0xe0] sm:$0xf]  ;;  %v3497_v1 = vld [vmem:[#allocation2 + $0xec] sm:$0xf0] }
   0xc   :  { %v2685_v2 = vld [vmem:[#allocation2 + $0x1e0] sm:$0xf]  ;;  %v2558_v3 = vor.u32 %v3497_v1, %v2557_v0  ;;  %v3529_v4 = vld [vmem:[#allocation2 + $0x1ec] sm:$0xf0]  ;;  %vm2435_vm0 = vcmask 66560  }
   0xd   :  { %v2813_v5 = vld [vmem:[#allocation2 + $0x2e0] sm:$0xf]  ;;  %v3561_v6 = vld [vmem:[#allocation2 + $0x2ec] sm:$0xf0]  ;;  %v2686_v7 = vor.u32 %v3529_v4, %v2685_v2 }
   0xe   :  { %v2814_v8 = vor.u32 %v3561_v6, %v2813_v5  ;;  %v2941_v9 = vld [vmem:[#allocation2 + $0x3e0] sm:$0xf]  ;;  %v3593_v10 = vld [vmem:[#allocation2 + $0x3ec] sm:$0xf0]  ;;  %1638 = vmatpush.bf16.msra.mxu0 %v2558_v3 }
   0xf   :  { %v2541_v11 = vld [vmem:[#allocation2 + $0xc0] sm:$0xf]  ;;  %v2942_v12 = vor.u32 %v3593_v10, %v2941_v9  ;;  %v3493_v13 = vld [vmem:[#allocation2 + $0xcc] sm:$0xf0]  ;;  %1651 = vmatpush.bf16.msra.mxu1 %v2686_v7 }
  0x10   :  { %v2669_v14 = vld [vmem:[#allocation2 + $0x1c0] sm:$0xf]  ;;  %v3525_v15 = vld [vmem:[#allocation2 + $0x1cc] sm:$0xf0]  ;;  %1664 = vmatpush.bf16.msra.mxu2 %v2814_v8  ;;  %v2542_v16 = vor.u32 %v3493_v13, %v2541_v11 }
  0x11   :  { %v2670_v17 = vor.u32 %v3525_v15, %v2669_v14  ;;  %v2797_v18 = vld [vmem:[#allocation2 + $0x2c0] sm:$0xf]  ;;  %v3557_v19 = vld [vmem:[#allocation2 + $0x2cc] sm:$0xf0]  ;;  %1677 = vmatpush.bf16.msra.mxu3 %v2942_v12 }
  0x12   :  { %v2925_v20 = vld [vmem:[#allocation2 + $0x3c0] sm:$0xf]  ;;  %v2798_v21 = vor.u32 %v3557_v19, %v2797_v18  ;;  %v3589_v22 = vld [vmem:[#allocation2 + $0x3cc] sm:$0xf0]  ;;  %1639 = vmatpush.bf16.msra.mxu0 %v2542_v16 }
  0x13   :  { %v2525_v23 = vld [vmem:[#allocation2 + $0xa0] sm:$0xf]  ;;  %v3489_v24 = vld [vmem:[#allocation2 + $0xac] sm:$0xf0]  ;;  %v2926_v25 = vor.u32 %v3589_v22, %v2925_v20  ;;  %1652 = vmatpush.bf16.msra.mxu1 %v2670_v17 }
  0x14   :  { %v2653_v26 = vld [vmem:[#allocation2 + $0x1a0] sm:$0xf]  ;;  %v3521_v27 = vld [vmem:[#allocation2 + $0x1ac] sm:$0xf0]  ;;  %v2526_v29 = vor.u32 %v3489_v24, %v2525_v23  ;;  %1665 = vmatpush.bf16.msra.mxu2 %v2798_v21 }
  0x15   :  { %v2781_v28 = vld [vmem:[#allocation2 + $0x2a0] sm:$0xf]  ;;  %v3553_v30 = vld [vmem:[#allocation2 + $0x2ac] sm:$0xf0]  ;;  %v2654_v33 = vor.u32 %v3521_v27, %v2653_v26  ;;  %1678 = vmatpush.bf16.msra.mxu3 %v2926_v25 }
  0x16   :  { %v2909_v31 = vld [vmem:[#allocation2 + $0x3a0] sm:$0xf]  ;;  %v3585_v32 = vld [vmem:[#allocation2 + $0x3ac] sm:$0xf0]  ;;  %v2782_v34 = vor.u32 %v3553_v30, %v2781_v28  ;;  %1640 = vmatpush.bf16.msra.mxu0 %v2526_v29 }
  0x17   :  { %v2509_v35 = vld [vmem:[#allocation2 + $0x80] sm:$0xf]  ;;  %v3485_v36 = vld [vmem:[#allocation2 + $0x8c] sm:$0xf0]  ;;  %v2910_v38 = vor.u32 %v3585_v32, %v2909_v31  ;;  %1653 = vmatpush.bf16.msra.mxu1 %v2654_v33 }
  0x18   :  { %v2637_v37 = vld [vmem:[#allocation2 + $0x180] sm:$0xf]  ;;  %v3517_v39 = vld [vmem:[#allocation2 + $0x18c] sm:$0xf0]  ;;  %v2510_v44 = vor.u32 %v3485_v36, %v2509_v35  ;;  %1666 = vmatpush.bf16.msra.mxu2 %v2782_v34 }
  0x19   :  { %v2765_v40 = vld [vmem:[#allocation2 + $0x280] sm:$0xf]  ;;  %v3549_v41 = vld [vmem:[#allocation2 + $0x28c] sm:$0xf0]  ;;  %v2638_v45 = vor.u32 %v3517_v39, %v2637_v37  ;;  %1679 = vmatpush.bf16.msra.mxu3 %v2910_v38 }
  0x1a   :  { %v2893_v42 = vld [vmem:[#allocation2 + $0x380] sm:$0xf]  ;;  %v3581_v43 = vld [vmem:[#allocation2 + $0x38c] sm:$0xf0]  ;;  %v2766_v46 = vor.u32 %v3549_v41, %v2765_v40  ;;  %1641 = vmatpush.bf16.msra.mxu0 %v2510_v44 }
  0x1b   :  { %v2493_v47 = vld [vmem:[#allocation2 + $0x60] sm:$0xf]  ;;  %v3481_v48 = vld [vmem:[#allocation2 + $0x6c] sm:$0xf0]  ;;  %v2894_v50 = vor.u32 %v3581_v43, %v2893_v42  ;;  %1654 = vmatpush.bf16.msra.mxu1 %v2638_v45 }
  0x1c   :  { %v2621_v49 = vld [vmem:[#allocation2 + $0x160] sm:$0xf]  ;;  %v3513_v51 = vld [vmem:[#allocation2 + $0x16c] sm:$0xf0]  ;;  %v2494_v56 = vor.u32 %v3481_v48, %v2493_v47  ;;  %1667 = vmatpush.bf16.msra.mxu2 %v2766_v46 }
  0x1d   :  { %v2749_v52 = vld [vmem:[#allocation2 + $0x260] sm:$0xf]  ;;  %v3545_v53 = vld [vmem:[#allocation2 + $0x26c] sm:$0xf0]  ;;  %v2622_v57 = vor.u32 %v3513_v51, %v2621_v49  ;;  %1680 = vmatpush.bf16.msra.mxu3 %v2894_v50 }
  0x1e   :  { %v2877_v54 = vld [vmem:[#allocation2 + $0x360] sm:$0xf]  ;;  %v3577_v55 = vld [vmem:[#allocation2 + $0x36c] sm:$0xf0]  ;;  %v2750_v58 = vor.u32 %v3545_v53, %v2749_v52  ;;  %1642 = vmatpush.bf16.msra.mxu0 %v2494_v56 }
  0x1f   :  { %v2477_v59 = vld [vmem:[#allocation2 + $0x40] sm:$0xf]  ;;  %v3477_v60 = vld [vmem:[#allocation2 + $0x4c] sm:$0xf0]  ;;  %v2878_v62 = vor.u32 %v3577_v55, %v2877_v54  ;;  %1655 = vmatpush.bf16.msra.mxu1 %v2622_v57 }
  0x20   :  { %v2605_v61 = vld [vmem:[#allocation2 + $0x140] sm:$0xf]  ;;  %v3509_v63 = vld [vmem:[#allocation2 + $0x14c] sm:$0xf0]  ;;  %v2478_v4 = vor.u32 %v3477_v60, %v2477_v59  ;;  %1668 = vmatpush.bf16.msra.mxu2 %v2750_v58 }
  0x21   :  { %v2733_v0 = vld [vmem:[#allocation2 + $0x240] sm:$0xf]  ;;  %v3541_v1 = vld [vmem:[#allocation2 + $0x24c] sm:$0xf0]  ;;  %v2606_v5 = vor.u32 %v3509_v63, %v2605_v61  ;;  %1681 = vmatpush.bf16.msra.mxu3 %v2878_v62 }
  0x22   :  { %v2861_v2 = vld [vmem:[#allocation2 + $0x340] sm:$0xf]  ;;  %v3573_v3 = vld [vmem:[#allocation2 + $0x34c] sm:$0xf0]  ;;  %v2734_v6 = vor.u32 %v3541_v1, %v2733_v0  ;;  %1643 = vmatpush.bf16.msra.mxu0 %v2478_v4 }
  0x23   :  { %v2461_v7 = vld [vmem:[#allocation2 + $0x20] sm:$0xf]  ;;  %v3473_v8 = vld [vmem:[#allocation2 + $0x2c] sm:$0xf0]  ;;  %v2862_v10 = vor.u32 %v3573_v3, %v2861_v2  ;;  %1656 = vmatpush.bf16.msra.mxu1 %v2606_v5  ;;  %v61_v2 = vld [vmem:[%s4048_s0] sm:$0xff] }
  0x24   :  { %v2589_v9 = vld [vmem:[#allocation2 + $0x120] sm:$0xf]  ;;  %v3505_v11 = vld [vmem:[#allocation2 + $0x12c] sm:$0xf0]  ;;  %v2462_v16 = vor.u32 %v3473_v8, %v2461_v7  ;;  %1669 = vmatpush.bf16.msra.mxu2 %v2734_v6  ;;  %65 = vst [vmem:[#allocation1] ss:$4 sm:$0xff] %v61_v2 }
  0x25   :  { %v2717_v12 = vld [vmem:[#allocation2 + $0x220] sm:$0xf]  ;;  %v3537_v13 = vld [vmem:[#allocation2 + $0x22c] sm:$0xf0]  ;;  %v2590_v19 = vor.u32 %v3505_v11, %v2589_v9  ;;  %1682 = vmatpush.bf16.msra.mxu3 %v2862_v10 }
  0x26   :  { %v2845_v14 = vld [vmem:[#allocation2 + $0x320] sm:$0xf]  ;;  %v3569_v15 = vld [vmem:[#allocation2 + $0x32c] sm:$0xf0]  ;;  %v2718_v20 = vor.u32 %v3537_v13, %v2717_v12  ;;  %1644 = vmatpush.bf16.msra.mxu0 %v2462_v16 }
  0x27   :  { %v2445_v17 = vld [vmem:[#allocation2] sm:$0xf]  ;;  %v3469_v18 = vld [vmem:[#allocation2 + $0xc] sm:$0xf0]  ;;  %v2846_v24 = vor.u32 %v3569_v15, %v2845_v14  ;;  %1657 = vmatpush.bf16.msra.mxu1 %v2590_v19 }
  0x28   :  { %v2573_v21 = vld [vmem:[#allocation2 + $0x100] sm:$0xf]  ;;  %v3501_v22 = vld [vmem:[#allocation2 + $0x10c] sm:$0xf0]  ;;  %v2446_v31 = vor.u32 %v3469_v18, %v2445_v17  ;;  %1670 = vmatpush.bf16.msra.mxu2 %v2718_v20 }
  0x29   :  { %v2701_v23 = vld [vmem:[#allocation2 + $0x200] sm:$0xf]  ;;  %v3533_v25 = vld [vmem:[#allocation2 + $0x20c] sm:$0xf0]  ;;  %v2574_v35 = vor.u32 %v3501_v22, %v2573_v21  ;;  %1683 = vmatpush.bf16.msra.mxu3 %v2846_v24 }
  0x2a   :  { %v2829_v26 = vld [vmem:[#allocation2 + $0x300] sm:$0xf]  ;;  %v3565_v27 = vld [vmem:[#allocation2 + $0x30c] sm:$0xf0]  ;;  %v2702_v36 = vor.u32 %v3533_v25, %v2701_v23  ;;  %1645 = vmatpush.bf16.msra.mxu0 %v2446_v31 }
  0x2b   :  { %v3069_v28 = vld [vmem:[#allocation2 + $0x4e0] sm:$0xf]  ;;  %v3625_v29 = vld [vmem:[#allocation2 + $0x4ec] sm:$0xf0]  ;;  %v2830_v39 = vor.u32 %v3565_v27, %v2829_v26  ;;  %1658 = vmatpush.bf16.msra.mxu1 %v2574_v35 }
  0x2c   :  { %v3197_v30 = vld [vmem:[#allocation2 + $0x5e0] sm:$0xf]  ;;  %v3657_v32 = vld [vmem:[#allocation2 + $0x5ec] sm:$0xf0]  ;;  %v3070_v40 = vor.u32 %v3625_v29, %v3069_v28  ;;  %1671 = vmatpush.bf16.msra.mxu2 %v2702_v36 }
  0x2d   :  { %v3325_v33 = vld [vmem:[#allocation2 + $0x6e0] sm:$0xf]  ;;  %v3689_v34 = vld [vmem:[#allocation2 + $0x6ec] sm:$0xf0]  ;;  %v3198_v41 = vor.u32 %v3657_v32, %v3197_v30  ;;  %1684 = vmatpush.bf16.msra.mxu3 %v2830_v39 }
  0x2e   :  { %v3453_v37 = vld [vmem:[#allocation2 + $0x7e0] sm:$0xf]  ;;  %v3721_v38 = vld [vmem:[#allocation2 + $0x7ec] sm:$0xf0]  ;;  %v3326_v42 = vor.u32 %v3689_v34, %v3325_v33  ;;  %1690 = vmatpush.bf16.msrb.mxu0 %v3070_v40 }
  0x2f   :  { %v3053_v43 = vld [vmem:[#allocation2 + $0x4c0] sm:$0xf]  ;;  %v3621_v44 = vld [vmem:[#allocation2 + $0x4cc] sm:$0xf0]  ;;  %v3454_v46 = vor.u32 %v3721_v38, %v3453_v37  ;;  %1703 = vmatpush.bf16.msrb.mxu1 %v3198_v41 }
  0x30   :  { %v3181_v45 = vld [vmem:[#allocation2 + $0x5c0] sm:$0xf]  ;;  %v3653_v47 = vld [vmem:[#allocation2 + $0x5cc] sm:$0xf0]  ;;  %v3054_v52 = vor.u32 %v3621_v44, %v3053_v43  ;;  %1716 = vmatpush.bf16.msrb.mxu2 %v3326_v42 }
  0x31   :  { %v3309_v48 = vld [vmem:[#allocation2 + $0x6c0] sm:$0xf]  ;;  %v3685_v49 = vld [vmem:[#allocation2 + $0x6cc] sm:$0xf0]  ;;  %v3182_v53 = vor.u32 %v3653_v47, %v3181_v45  ;;  %1729 = vmatpush.bf16.msrb.mxu3 %v3454_v46 }
  0x32   :  { %v3437_v50 = vld [vmem:[#allocation2 + $0x7c0] sm:$0xf]  ;;  %v3717_v51 = vld [vmem:[#allocation2 + $0x7cc] sm:$0xf0]  ;;  %v3310_v54 = vor.u32 %v3685_v49, %v3309_v48  ;;  %1691 = vmatpush.bf16.msrb.mxu0 %v3054_v52 }
  0x33   :  { %v3037_v55 = vld [vmem:[#allocation2 + $0x4a0] sm:$0xf]  ;;  %v3617_v56 = vld [vmem:[#allocation2 + $0x4ac] sm:$0xf0]  ;;  %v3438_v58 = vor.u32 %v3717_v51, %v3437_v50  ;;  %1704 = vmatpush.bf16.msrb.mxu1 %v3182_v53 }
  0x34   :  { %v3165_v57 = vld [vmem:[#allocation2 + $0x5a0] sm:$0xf]  ;;  %v3649_v59 = vld [vmem:[#allocation2 + $0x5ac] sm:$0xf0]  ;;  %v3038_v0 = vor.u32 %v3617_v56, %v3037_v55  ;;  %1717 = vmatpush.bf16.msrb.mxu2 %v3310_v54 }
  0x35   :  { %v3293_v60 = vld [vmem:[#allocation2 + $0x6a0] sm:$0xf]  ;;  %v3681_v61 = vld [vmem:[#allocation2 + $0x6ac] sm:$0xf0]  ;;  %v3166_v3 = vor.u32 %v3649_v59, %v3165_v57  ;;  %1730 = vmatpush.bf16.msrb.mxu3 %v3438_v58 }
  0x36   :  { %v3421_v62 = vld [vmem:[#allocation2 + $0x7a0] sm:$0xf]  ;;  %v3713_v63 = vld [vmem:[#allocation2 + $0x7ac] sm:$0xf0]  ;;  %v3294_v4 = vor.u32 %v3681_v61, %v3293_v60  ;;  %1692 = vmatpush.bf16.msrb.mxu0 %v3038_v0 }
  0x37   :  { %v3021_v1 = vld [vmem:[#allocation2 + $0x480] sm:$0xf]  ;;  %v3613_v5 = vld [vmem:[#allocation2 + $0x48c] sm:$0xf0]  ;;  %v3422_v7 = vor.u32 %v3713_v63, %v3421_v62  ;;  %1705 = vmatpush.bf16.msrb.mxu1 %v3166_v3 }
  0x38   :  { %v3149_v6 = vld [vmem:[#allocation2 + $0x580] sm:$0xf]  ;;  %v3645_v8 = vld [vmem:[#allocation2 + $0x58c] sm:$0xf0]  ;;  %v3022_v13 = vor.u32 %v3613_v5, %v3021_v1  ;;  %1718 = vmatpush.bf16.msrb.mxu2 %v3294_v4 }
  0x39   :  { %v3277_v9 = vld [vmem:[#allocation2 + $0x680] sm:$0xf]  ;;  %v3677_v10 = vld [vmem:[#allocation2 + $0x68c] sm:$0xf0]  ;;  %v3150_v15 = vor.u32 %v3645_v8, %v3149_v6  ;;  %1731 = vmatpush.bf16.msrb.mxu3 %v3422_v7  ;;  %v3495_v6 = vld [vmem:[#allocation2 + $0xe4] sm:$0xf] }
  0x3a   :  { %v3405_v11 = vld [vmem:[#allocation2 + $0x780] sm:$0xf]  ;;  %v3709_v12 = vld [vmem:[#allocation2 + $0x78c] sm:$0xf0]  ;;  %v3278_v16 = vor.u32 %v3677_v10, %v3277_v9  ;;  %1693 = vmatpush.bf16.msrb.mxu0 %v3022_v13  ;;  %v2559_v7 = vld [vmem:[#allocation2 + $0xf0] sm:$0xf0] }
  0x3b   :  { %v3005_v14 = vld [vmem:[#allocation2 + $0x460] sm:$0xf]  ;;  %v3609_v17 = vld [vmem:[#allocation2 + $0x46c] sm:$0xf0]  ;;  %v3406_v20 = vor.u32 %v3709_v12, %v3405_v11  ;;  %1706 = vmatpush.bf16.msrb.mxu1 %v3150_v15  ;;  %v3527_v8 = vld [vmem:[#allocation2 + $0x1e4] sm:$0xf] }
  0x3c   :  { %v3133_v18 = vld [vmem:[#allocation2 + $0x560] sm:$0xf]  ;;  %v3641_v19 = vld [vmem:[#allocation2 + $0x56c] sm:$0xf0]  ;;  %v3006_v27 = vor.u32 %v3609_v17, %v3005_v14  ;;  %1719 = vmatpush.bf16.msrb.mxu2 %v3278_v16  ;;  %v2687_v9 = vld [vmem:[#allocation2 + $0x1f0] sm:$0xf0] }
  0x3d   :  { %v3261_v21 = vld [vmem:[#allocation2 + $0x660] sm:$0xf]  ;;  %v3673_v22 = vld [vmem:[#allocation2 + $0x66c] sm:$0xf0]  ;;  %v3134_v28 = vor.u32 %v3641_v19, %v3133_v18  ;;  %1732 = vmatpush.bf16.msrb.mxu3 %v3406_v20  ;;  %v3559_v10 = vld [vmem:[#allocation2 + $0x2e4] sm:$0xf] }
  0x3e   :  { %v3389_v23 = vld [vmem:[#allocation2 + $0x760] sm:$0xf]  ;;  %v3705_v24 = vld [vmem:[#allocation2 + $0x76c] sm:$0xf0]  ;;  %v3262_v32 = vor.u32 %v3673_v22, %v3261_v21  ;;  %1694 = vmatpush.bf16.msrb.mxu0 %v3006_v27  ;;  %v2815_v12 = vld [vmem:[#allocation2 + $0x2f0] sm:$0xf0]  ;;  %v2562_v21 = vor.u32 %v3495_v6, %v2559_v7 }
  0x3f   :  { %v2989_v25 = vld [vmem:[#allocation2 + $0x440] sm:$0xf]  ;;  %v3605_v26 = vld [vmem:[#allocation2 + $0x44c] sm:$0xf0]  ;;  %v3390_v37 = vor.u32 %v3705_v24, %v3389_v23  ;;  %1707 = vmatpush.bf16.msrb.mxu1 %v3134_v28  ;;  %v3591_v13 = vld [vmem:[#allocation2 + $0x3e4] sm:$0xf]  ;;  %v2690_v24 = vor.u32 %v3527_v8, %v2687_v9 }
  0x40   :  { %v3117_v29 = vld [vmem:[#allocation2 + $0x540] sm:$0xf]  ;;  %v70_v30 = vld.sshfl [vmem:[#allocation1 + $0x10] sm:$0xff pattern:$0x73625140]  ;;  %v2990_v45 = vor.u32 %v3605_v26, %v2989_v25  ;;  %1720 = vmatpush.bf16.msrb.mxu2 %v3262_v32  ;;  %v2818_v25 = vor.u32 %v3559_v10, %v2815_v12 }
  0x41   :  { %v68_v31 = vld.sshfl [vmem:[#allocation1] sm:$0xff pattern:$0x73625140]  ;;  %v3840_v33 = vpack.c.bf16 %v70_v30, %v70_v30  ;;  %v71_v35 = vld.sshfl [vmem:[#allocation1 + $0x18] sm:$0xff pattern:$0x73625140]  ;;  %1733 = vmatpush.bf16.msrb.mxu3 %v3390_v37 }
  0x42   :  { %v3842_v34 = vpack.c.bf16 %v68_v31, %v68_v31  ;;  %v69_v36 = vld.sshfl [vmem:[#allocation1 + $0x8] sm:$0xff pattern:$0x73625140]  ;;  %v3637_v38 = vld [vmem:[#allocation2 + $0x54c] sm:$0xf0]  ;;  %v3844_v41 = vpack.c.bf16 %v71_v35, %v71_v35  ;;  %1695 = vmatpush.bf16.msrb.mxu0 %v2990_v45 }
  0x43   :  { %v3245_v39 = vld [vmem:[#allocation2 + $0x640] sm:$0xf]  ;;  %v3669_v40 = vld [vmem:[#allocation2 + $0x64c] sm:$0xf0]  ;;  %v3846_v42 = vpack.c.bf16 %v69_v36, %v69_v36  ;;  %1672 = vmatmul.bf16.vlgmr.msra.gmra.mxu2 %v3840_v33  ;;  %v3118_v48 = vor.u32 %v3637_v38, %v3117_v29  ;;  %v2943_v14 = vld [vmem:[#allocation2 + $0x3f0] sm:$0xf0] }
  0x44   :  { %v3373_v43 = vld [vmem:[#allocation2 + $0x740] sm:$0xf]  ;;  %v3701_v44 = vld [vmem:[#allocation2 + $0x74c] sm:$0xf0]  ;;  %1646 = vmatmul.bf16.vlgmr.msra.gmra.mxu0 %v3842_v34  ;;  %1685 = vmatmul.bf16.vlgmr.msra.gmra.mxu3 %v3844_v41  ;;  %v3246_v49 = vor.u32 %v3669_v40, %v3245_v39  ;;  %v3491_v17 = vld [vmem:[#allocation2 + $0xc4] sm:$0xf]  ;;  %v2946_v28 = vor.u32 %v3591_v13, %v2943_v14 }
  0x45   :  { %v2973_v46 = vld [vmem:[#allocation2 + $0x420] sm:$0xf]  ;;  %v3601_v47 = vld [vmem:[#allocation2 + $0x42c] sm:$0xf0]  ;;  %v3374_v53 = vor.u32 %v3701_v44, %v3373_v43  ;;  %1659 = vmatmul.bf16.vlgmr.msra.gmra.mxu1 %v3846_v42  ;;  %v2543_v18 = vld [vmem:[#allocation2 + $0xd0] sm:$0xf0] }
  0x46   :  { %v3101_v50 = vld [vmem:[#allocation2 + $0x520] sm:$0xf]  ;;  %v3633_v51 = vld [vmem:[#allocation2 + $0x52c] sm:$0xf0]  ;;  %v2974_v59 = vor.u32 %v3601_v47, %v2973_v46  ;;  %1708 = vmatpush.bf16.msrb.mxu1 %v3118_v48  ;;  %1721 = vmatpush.bf16.msrb.mxu2 %v3246_v49  ;;  %v3523_v26 = vld [vmem:[#allocation2 + $0x1c4] sm:$0xf]  ;;  %v2546_v39 = vor.u32 %v3491_v17, %v2543_v18 }
  0x47   :  { %v62_v52 = vld [vmem:[%s4048_s0 + $0x8] sm:$0xff]  ;;  %v3665_v55 = vld [vmem:[#allocation2 + $0x62c] sm:$0xf0]  ;;  %v3102_v63 = vor.u32 %v3633_v51, %v3101_v50  ;;  %1734 = vmatpush.bf16.msrb.mxu3 %v3374_v53  ;;  %v2671_v29 = vld [vmem:[#allocation2 + $0x1d0] sm:$0xf0] }
  0x48   :  { %v3229_v54 = vld [vmem:[#allocation2 + $0x620] sm:$0xf]  ;;  %67 = vst [vmem:[#allocation1 + $0x20] ss:$4 sm:$0xff] %v62_v52  ;;  %v3697_v57 = vld [vmem:[#allocation2 + $0x72c] sm:$0xf0]  ;;  %1696 = vmatpush.bf16.msrb.mxu0 %v2974_v59  ;;  %v2674_v43 = vor.u32 %v3523_v26, %v2671_v29 }
  0x49   :  { %v3357_v56 = vld [vmem:[#allocation2 + $0x720] sm:$0xf]  ;;  %v3597_v60 = vld [vmem:[#allocation2 + $0x40c] sm:$0xf0]  ;;  %v3230_v0 = vor.u32 %v3665_v55, %v3229_v54  ;;  %v3555_v30 = vld [vmem:[#allocation2 + $0x2c4] sm:$0xf] }
  0x4a   :  { %v2957_v58 = vld [vmem:[#allocation2 + $0x400] sm:$0xf]  ;;  %v3629_v62 = vld [vmem:[#allocation2 + $0x50c] sm:$0xf0]  ;;  %v3358_v4 = vor.u32 %v3697_v57, %v3357_v56  ;;  %1709 = vmatpush.bf16.msrb.mxu1 %v3102_v63  ;;  %v2799_v31 = vld [vmem:[#allocation2 + $0x2d0] sm:$0xf0] }
  0x4b   :  { %v3085_v61 = vld [vmem:[#allocation2 + $0x500] sm:$0xf]  ;;  %v3661_v2 = vld [vmem:[#allocation2 + $0x60c] sm:$0xf0]  ;;  %v2958_v11 = vor.u32 %v3597_v60, %v2957_v58  ;;  %1722 = vmatpush.bf16.msrb.mxu2 %v3230_v0  ;;  %v3587_v35 = vld [vmem:[#allocation2 + $0x3c4] sm:$0xf]  ;;  %v2802_v44 = vor.u32 %v3555_v30, %v2799_v31 }
  0x4c   :  { %v3213_v1 = vld [vmem:[#allocation2 + $0x600] sm:$0xf]  ;;  %v3693_v5 = vld [vmem:[#allocation2 + $0x70c] sm:$0xf0]  ;;  %v3086_v15 = vor.u32 %v3629_v62, %v3085_v61  ;;  %1735 = vmatpush.bf16.msrb.mxu3 %v3358_v4  ;;  %v2927_v36 = vld [vmem:[#allocation2 + $0x3d0] sm:$0xf0] }
  0x4d   :  { %v3341_v3 = vld [vmem:[#allocation2 + $0x700] sm:$0xf]  ;;  %v3214_v16 = vor.u32 %v3661_v2, %v3213_v1  ;;  %1697 = vmatpush.bf16.msrb.mxu0 %v2958_v11  ;;  %v3487_v45 = vld [vmem:[#allocation2 + $0xa4] sm:$0xf]  ;;  %v2527_v46 = vld [vmem:[#allocation2 + $0xb0] sm:$0xf0]  ;;  %v2930_v48 = vor.u32 %v3587_v35, %v2927_v36 }
  0x4e   :  { %v3342_v20 = vor.u32 %v3693_v5, %v3341_v3  ;;  %1710 = vmatpush.bf16.msrb.mxu1 %v3086_v15  ;;  %v3519_v47 = vld [vmem:[#allocation2 + $0x1a4] sm:$0xf]  ;;  %v2655_v49 = vld [vmem:[#allocation2 + $0x1b0] sm:$0xf0]  ;;  %v2530_v54 = vor.u32 %v3487_v45, %v2527_v46 }
  0x4f   :  { %v74_v19 = vld.sshfl [vmem:[#allocation1 + $0x30] sm:$0xff pattern:$0x73625140]  ;;  %v72_v22 = vld.sshfl [vmem:[#allocation1 + $0x20] sm:$0xff pattern:$0x73625140]  ;;  %1723 = vmatpush.bf16.msrb.mxu2 %v3214_v16  ;;  %v2658_v55 = vor.u32 %v3519_v47, %v2655_v49 }
  0x50   :  { %v75_v23 = vld.sshfl [vmem:[#allocation1 + $0x38] sm:$0xff pattern:$0x73625140]  ;;  %v73_v27 = vld.sshfl [vmem:[#allocation1 + $0x28] sm:$0xff pattern:$0x73625140]  ;;  %v3855_v32 = vpack.c.bf16 %v74_v19, %v74_v19  ;;  %v3857_v37 = vpack.c.bf16 %v72_v22, %v72_v22  ;;  %1736 = vmatpush.bf16.msrb.mxu3 %v3342_v20 }
  0x51   :  { %v3859_v38 = vpack.c.bf16 %v75_v23, %v75_v23  ;;  %1742 = vmatpush.bf16.msra.mxu0 %v2562_v21  ;;  %v3861_v40 = vpack.c.bf16 %v73_v27, %v73_v27  ;;  %v3551_v50 = vld [vmem:[#allocation2 + $0x2a4] sm:$0xf]  ;;  %v2783_v51 = vld [vmem:[#allocation2 + $0x2b0] sm:$0xf0] }
  0x52   :  { %1755 = vmatpush.bf16.msra.mxu1 %v2690_v24  ;;  %v3583_v52 = vld [vmem:[#allocation2 + $0x3a4] sm:$0xf]  ;;  %v2911_v53 = vld [vmem:[#allocation2 + $0x3b0] sm:$0xf0]  ;;  %v2786_v56 = vor.u32 %v3551_v50, %v2783_v51 }
  0x53   :  { %1768 = vmatpush.bf16.msra.mxu2 %v2818_v25  ;;  %v3483_v57 = vld [vmem:[#allocation2 + $0x84] sm:$0xf]  ;;  %v2511_v58 = vld [vmem:[#allocation2 + $0x90] sm:$0xf0]  ;;  %v2914_v60 = vor.u32 %v3583_v52, %v2911_v53 }
  0x54   :  { %1781 = vmatpush.bf16.msra.mxu3 %v2946_v28  ;;  %1724 = vmatmul.bf16.vlgmr.msrb.gmra.mxu2 %v3855_v32  ;;  %v3515_v59 = vld [vmem:[#allocation2 + $0x184] sm:$0xf]  ;;  %v2639_v61 = vld [vmem:[#allocation2 + $0x190] sm:$0xf0]  ;;  %v2514_v2 = vor.u32 %v3483_v57, %v2511_v58 }
  0x55   :  { %1698 = vmatmul.bf16.vlgmr.msrb.gmra.mxu0 %v3857_v37  ;;  %1737 = vmatmul.bf16.vlgmr.msrb.gmra.mxu3 %v3859_v38  ;;  %v3547_v62 = vld [vmem:[#allocation2 + $0x284] sm:$0xf]  ;;  %v2767_v63 = vld [vmem:[#allocation2 + $0x290] sm:$0xf0]  ;;  %v2642_v3 = vor.u32 %v3515_v59, %v2639_v61 }
  0x56   :  { %1743 = vmatpush.bf16.msra.mxu0 %v2546_v39  ;;  %1711 = vmatmul.bf16.vlgmr.msrb.gmra.mxu1 %v3861_v40  ;;  %v3579_v0 = vld [vmem:[#allocation2 + $0x384] sm:$0xf]  ;;  %v2895_v1 = vld [vmem:[#allocation2 + $0x390] sm:$0xf0]  ;;  %v2770_v4 = vor.u32 %v3547_v62, %v2767_v63 }
  0x57   :  { %1756 = vmatpush.bf16.msra.mxu1 %v2674_v43  ;;  %1769 = vmatpush.bf16.msra.mxu2 %v2802_v44  ;;  %v3479_v5 = vld [vmem:[#allocation2 + $0x64] sm:$0xf]  ;;  %v2495_v6 = vld [vmem:[#allocation2 + $0x70] sm:$0xf0]  ;;  %v2898_v8 = vor.u32 %v3579_v0, %v2895_v1 }
  0x58   :  { %1782 = vmatpush.bf16.msra.mxu3 %v2930_v48  ;;  %v3511_v7 = vld [vmem:[#allocation2 + $0x164] sm:$0xf]  ;;  %v2623_v9 = vld [vmem:[#allocation2 + $0x170] sm:$0xf0]  ;;  %v2498_v14 = vor.u32 %v3479_v5, %v2495_v6 }
  0x59   :  { %v3543_v10 = vld [vmem:[#allocation2 + $0x264] sm:$0xf]  ;;  %v2751_v11 = vld [vmem:[#allocation2 + $0x270] sm:$0xf0]  ;;  %v2626_v15 = vor.u32 %v3511_v7, %v2623_v9 }
  0x5a   :  { %1744 = vmatpush.bf16.msra.mxu0 %v2530_v54  ;;  %v3575_v12 = vld [vmem:[#allocation2 + $0x364] sm:$0xf]  ;;  %v2879_v13 = vld [vmem:[#allocation2 + $0x370] sm:$0xf0]  ;;  %v2754_v16 = vor.u32 %v3543_v10, %v2751_v11 }
  0x5b   :  { %1757 = vmatpush.bf16.msra.mxu1 %v2658_v55  ;;  %1770 = vmatpush.bf16.msra.mxu2 %v2786_v56  ;;  %v3475_v17 = vld [vmem:[#allocation2 + $0x44] sm:$0xf]  ;;  %v2479_v18 = vld [vmem:[#allocation2 + $0x50] sm:$0xf0]  ;;  %v2882_v20 = vor.u32 %v3575_v12, %v2879_v13 }
  0x5c   :  { %1783 = vmatpush.bf16.msra.mxu3 %v2914_v60  ;;  %v3507_v19 = vld [vmem:[#allocation2 + $0x144] sm:$0xf]  ;;  %v2607_v21 = vld [vmem:[#allocation2 + $0x150] sm:$0xf0]  ;;  %v2482_v26 = vor.u32 %v3475_v17, %v2479_v18 }
  0x5d   :  { %v3539_v22 = vld [vmem:[#allocation2 + $0x244] sm:$0xf]  ;;  %v2735_v23 = vld [vmem:[#allocation2 + $0x250] sm:$0xf0]  ;;  %v2610_v27 = vor.u32 %v3507_v19, %v2607_v21 }
  0x5e   :  { %1745 = vmatpush.bf16.msra.mxu0 %v2514_v2  ;;  %v3571_v24 = vld [vmem:[#allocation2 + $0x344] sm:$0xf]  ;;  %v2863_v25 = vld [vmem:[#allocation2 + $0x350] sm:$0xf0]  ;;  %v2738_v28 = vor.u32 %v3539_v22, %v2735_v23 }
  0x5f   :  { %1758 = vmatpush.bf16.msra.mxu1 %v2642_v3  ;;  %1771 = vmatpush.bf16.msra.mxu2 %v2770_v4  ;;  %v3471_v29 = vld [vmem:[#allocation2 + $0x24] sm:$0xf]  ;;  %v2463_v30 = vld [vmem:[#allocation2 + $0x30] sm:$0xf0]  ;;  %v2866_v35 = vor.u32 %v3571_v24, %v2863_v25 }
  0x60   :  { %1784 = vmatpush.bf16.msra.mxu3 %v2898_v8  ;;  %v3503_v31 = vld [vmem:[#allocation2 + $0x124] sm:$0xf]  ;;  %v2591_v36 = vld [vmem:[#allocation2 + $0x130] sm:$0xf0]  ;;  %v2466_v46 = vor.u32 %v3471_v29, %v2463_v30 }
  0x61   :  { %v3535_v39 = vld [vmem:[#allocation2 + $0x224] sm:$0xf]  ;;  %v2719_v43 = vld [vmem:[#allocation2 + $0x230] sm:$0xf0]  ;;  %v2594_v49 = vor.u32 %v3503_v31, %v2591_v36 }
  0x62   :  { %1746 = vmatpush.bf16.msra.mxu0 %v2498_v14  ;;  %v3567_v44 = vld [vmem:[#allocation2 + $0x324] sm:$0xf]  ;;  %v2847_v45 = vld [vmem:[#allocation2 + $0x330] sm:$0xf0]  ;;  %v2722_v50 = vor.u32 %v3535_v39, %v2719_v43 }
  0x63   :  { %1759 = vmatpush.bf16.msra.mxu1 %v2626_v15  ;;  %1772 = vmatpush.bf16.msra.mxu2 %v2754_v16  ;;  %v3467_v47 = vld [vmem:[#allocation2 + $0x4] sm:$0xf]  ;;  %v2447_v48 = vld [vmem:[#allocation2 + $0x10] sm:$0xf0]  ;;  %v2850_v54 = vor.u32 %v3567_v44, %v2847_v45 }
  0x64   :  { %1785 = vmatpush.bf16.msra.mxu3 %v2882_v20  ;;  %v3499_v51 = vld [vmem:[#allocation2 + $0x104] sm:$0xf]  ;;  %v2575_v52 = vld [vmem:[#allocation2 + $0x110] sm:$0xf0]  ;;  %v2450_v61 = vor.u32 %v3467_v47, %v2447_v48 }
  0x65   :  { %v3531_v53 = vld [vmem:[#allocation2 + $0x204] sm:$0xf]  ;;  %v2703_v55 = vld [vmem:[#allocation2 + $0x210] sm:$0xf0]  ;;  %v2578_v1 = vor.u32 %v3499_v51, %v2575_v52 }
  0x66   :  { %1747 = vmatpush.bf16.msra.mxu0 %v2482_v26  ;;  %v3563_v56 = vld [vmem:[#allocation2 + $0x304] sm:$0xf]  ;;  %v2831_v57 = vld [vmem:[#allocation2 + $0x310] sm:$0xf0]  ;;  %v2706_v2 = vor.u32 %v3531_v53, %v2703_v55 }
  0x67   :  { %1760 = vmatpush.bf16.msra.mxu1 %v2610_v27  ;;  %1773 = vmatpush.bf16.msra.mxu2 %v2738_v28  ;;  %v3623_v58 = vld [vmem:[#allocation2 + $0x4e4] sm:$0xf]  ;;  %v3071_v59 = vld [vmem:[#allocation2 + $0x4f0] sm:$0xf0]  ;;  %v2834_v5 = vor.u32 %v3563_v56, %v2831_v57 }
  0x68   :  { %1786 = vmatpush.bf16.msra.mxu3 %v2866_v35  ;;  %v3655_v60 = vld [vmem:[#allocation2 + $0x5e4] sm:$0xf]  ;;  %v3199_v62 = vld [vmem:[#allocation2 + $0x5f0] sm:$0xf0]  ;;  %v3074_v6 = vor.u32 %v3623_v58, %v3071_v59 }
  0x69   :  { %v3687_v63 = vld [vmem:[#allocation2 + $0x6e4] sm:$0xf]  ;;  %v3327_v0 = vld [vmem:[#allocation2 + $0x6f0] sm:$0xf0]  ;;  %v3202_v7 = vor.u32 %v3655_v60, %v3199_v62 }
  0x6a   :  { %1748 = vmatpush.bf16.msra.mxu0 %v2466_v46  ;;  %v3719_v3 = vld [vmem:[#allocation2 + $0x7e4] sm:$0xf]  ;;  %v3455_v4 = vld [vmem:[#allocation2 + $0x7f0] sm:$0xf0]  ;;  %v3330_v8 = vor.u32 %v3687_v63, %v3327_v0 }
  0x6b   :  { %1761 = vmatpush.bf16.msra.mxu1 %v2594_v49  ;;  %1774 = vmatpush.bf16.msra.mxu2 %v2722_v50  ;;  %v3619_v9 = vld [vmem:[#allocation2 + $0x4c4] sm:$0xf]  ;;  %v3055_v10 = vld [vmem:[#allocation2 + $0x4d0] sm:$0xf0]  ;;  %v3458_v12 = vor.u32 %v3719_v3, %v3455_v4 }
  0x6c   :  { %1787 = vmatpush.bf16.msra.mxu3 %v2850_v54  ;;  %v3651_v11 = vld [vmem:[#allocation2 + $0x5c4] sm:$0xf]  ;;  %v3183_v13 = vld [vmem:[#allocation2 + $0x5d0] sm:$0xf0]  ;;  %v3058_v18 = vor.u32 %v3619_v9, %v3055_v10 }
  0x6d   :  { %v3683_v14 = vld [vmem:[#allocation2 + $0x6c4] sm:$0xf]  ;;  %v3311_v15 = vld [vmem:[#allocation2 + $0x6d0] sm:$0xf0]  ;;  %v3186_v20 = vor.u32 %v3651_v11, %v3183_v13 }
  0x6e   :  { %1749 = vmatpush.bf16.msra.mxu0 %v2450_v61  ;;  %v3715_v16 = vld [vmem:[#allocation2 + $0x7c4] sm:$0xf]  ;;  %v3439_v17 = vld [vmem:[#allocation2 + $0x7d0] sm:$0xf0]  ;;  %v3314_v21 = vor.u32 %v3683_v14, %v3311_v15 }
  0x6f   :  { %1762 = vmatpush.bf16.msra.mxu1 %v2578_v1  ;;  %1775 = vmatpush.bf16.msra.mxu2 %v2706_v2  ;;  %v3615_v19 = vld [vmem:[#allocation2 + $0x4a4] sm:$0xf]  ;;  %v3039_v22 = vld [vmem:[#allocation2 + $0x4b0] sm:$0xf0]  ;;  %v3442_v25 = vor.u32 %v3715_v16, %v3439_v17 }
  0x70   :  { %1788 = vmatpush.bf16.msra.mxu3 %v2834_v5  ;;  %v3647_v23 = vld [vmem:[#allocation2 + $0x5a4] sm:$0xf]  ;;  %v3167_v24 = vld [vmem:[#allocation2 + $0x5b0] sm:$0xf0]  ;;  %v3042_v30 = vor.u32 %v3615_v19, %v3039_v22 }
  0x71   :  { %v3679_v26 = vld [vmem:[#allocation2 + $0x6a4] sm:$0xf]  ;;  %v3295_v27 = vld [vmem:[#allocation2 + $0x6b0] sm:$0xf0]  ;;  %1750 = vmatmul.bf16.vlgmr.msra.gmra.mxu0 %v3842_v34  ;;  %v3170_v31 = vor.u32 %v3647_v23, %v3167_v24 }
  0x72   :  { %1794 = vmatpush.bf16.msrb.mxu0 %v3074_v6  ;;  %v3711_v28 = vld [vmem:[#allocation2 + $0x7a4] sm:$0xf]  ;;  %1776 = vmatmul.bf16.vlgmr.msra.gmra.mxu2 %v3840_v33  ;;  %v3423_v29 = vld [vmem:[#allocation2 + $0x7b0] sm:$0xf0]  ;;  %v3298_v35 = vor.u32 %v3679_v26, %v3295_v27 }
  0x73   :  { %1807 = vmatpush.bf16.msrb.mxu1 %v3202_v7  ;;  %1820 = vmatpush.bf16.msrb.mxu2 %v3330_v8  ;;  %v3611_v36 = vld [vmem:[#allocation2 + $0x484] sm:$0xf]  ;;  %v3023_v39 = vld [vmem:[#allocation2 + $0x490] sm:$0xf0]  ;;  %v3426_v44 = vor.u32 %v3711_v28, %v3423_v29 }
  0x74   :  { %1833 = vmatpush.bf16.msrb.mxu3 %v3458_v12  ;;  %1763 = vmatmul.bf16.vlgmr.msra.gmra.mxu1 %v3846_v42  ;;  %v3643_v43 = vld [vmem:[#allocation2 + $0x584] sm:$0xf]  ;;  %v3151_v45 = vld [vmem:[#allocation2 + $0x590] sm:$0xf0]  ;;  %v3026_v50 = vor.u32 %v3611_v36, %v3023_v39  ;;  %v2565_v39 = vld [vmem:[#allocation2 + $0xe8] sm:$0xf] }
  0x75   :  { %1789 = vmatmul.bf16.vlgmr.msra.gmra.mxu3 %v3844_v41  ;;  %v3675_v46 = vld [vmem:[#allocation2 + $0x684] sm:$0xf]  ;;  %v3279_v47 = vld [vmem:[#allocation2 + $0x690] sm:$0xf0]  ;;  %v3154_v51 = vor.u32 %v3643_v43, %v3151_v45  ;;  %v3498_v43 = vld [vmem:[#allocation2 + $0xf4] sm:$0xf0] }
  0x76   :  { %1795 = vmatpush.bf16.msrb.mxu0 %v3058_v18  ;;  %v3707_v48 = vld [vmem:[#allocation2 + $0x784] sm:$0xf]  ;;  %v3407_v49 = vld [vmem:[#allocation2 + $0x790] sm:$0xf0]  ;;  %v3282_v52 = vor.u32 %v3675_v46, %v3279_v47  ;;  %v3530_v46 = vld [vmem:[#allocation2 + $0x1f4] sm:$0xf0] }
  0x77   :  { %1808 = vmatpush.bf16.msrb.mxu1 %v3186_v20  ;;  %1821 = vmatpush.bf16.msrb.mxu2 %v3314_v21  ;;  %v3607_v53 = vld [vmem:[#allocation2 + $0x464] sm:$0xf]  ;;  %v3007_v54 = vld [vmem:[#allocation2 + $0x470] sm:$0xf0]  ;;  %v3410_v56 = vor.u32 %v3707_v48, %v3407_v49  ;;  %v2821_v47 = vld [vmem:[#allocation2 + $0x2e8] sm:$0xf] }
  0x78   :  { %1834 = vmatpush.bf16.msrb.mxu3 %v3442_v25  ;;  %v3639_v55 = vld [vmem:[#allocation2 + $0x564] sm:$0xf]  ;;  %v3135_v57 = vld [vmem:[#allocation2 + $0x570] sm:$0xf0]  ;;  %v3010_v62 = vor.u32 %v3607_v53, %v3007_v54  ;;  %v3562_v48 = vld [vmem:[#allocation2 + $0x2f4] sm:$0xf0]  ;;  %v2566_v54 = vor.u32 %v3498_v43, %v2565_v39 }
  0x79   :  { %v3671_v58 = vld [vmem:[#allocation2 + $0x664] sm:$0xf]  ;;  %v3263_v59 = vld [vmem:[#allocation2 + $0x670] sm:$0xf0]  ;;  %v3138_v63 = vor.u32 %v3639_v55, %v3135_v57  ;;  %v2549_v57 = vld [vmem:[#allocation2 + $0xc8] sm:$0xf] }
  0x7a   :  { %1796 = vmatpush.bf16.msrb.mxu0 %v3042_v30  ;;  %v3703_v60 = vld [vmem:[#allocation2 + $0x764] sm:$0xf]  ;;  %v3391_v61 = vld [vmem:[#allocation2 + $0x770] sm:$0xf0]  ;;  %v3266_v0 = vor.u32 %v3671_v58, %v3263_v59  ;;  %v3494_v58 = vld [vmem:[#allocation2 + $0xd4] sm:$0xf0] }
  0x7b   :  { %1809 = vmatpush.bf16.msrb.mxu1 %v3170_v31  ;;  %1822 = vmatpush.bf16.msrb.mxu2 %v3298_v35  ;;  %v3603_v1 = vld [vmem:[#allocation2 + $0x444] sm:$0xf]  ;;  %v2991_v2 = vld [vmem:[#allocation2 + $0x450] sm:$0xf0]  ;;  %v3394_v4 = vor.u32 %v3703_v60, %v3391_v61  ;;  %v2677_v59 = vld [vmem:[#allocation2 + $0x1c8] sm:$0xf] }
  0x7c   :  { %1835 = vmatpush.bf16.msrb.mxu3 %v3426_v44  ;;  %v3635_v3 = vld [vmem:[#allocation2 + $0x544] sm:$0xf]  ;;  %v3119_v5 = vld [vmem:[#allocation2 + $0x550] sm:$0xf0]  ;;  %v2994_v10 = vor.u32 %v3603_v1, %v2991_v2  ;;  %v2693_v44 = vld [vmem:[#allocation2 + $0x1e8] sm:$0xf]  ;;  %v2550_v2 = vor.u32 %v3494_v58, %v2549_v57 }
  0x7d   :  { %v3667_v6 = vld [vmem:[#allocation2 + $0x644] sm:$0xf]  ;;  %v3247_v7 = vld [vmem:[#allocation2 + $0x650] sm:$0xf0]  ;;  %v3122_v11 = vor.u32 %v3635_v3, %v3119_v5  ;;  %v2694_v55 = vor.u32 %v3530_v46, %v2693_v44  ;;  %v3526_v61 = vld [vmem:[#allocation2 + $0x1d4] sm:$0xf0] }
  0x7e   :  { %1797 = vmatpush.bf16.msrb.mxu0 %v3026_v50  ;;  %v3699_v8 = vld [vmem:[#allocation2 + $0x744] sm:$0xf]  ;;  %v3375_v9 = vld [vmem:[#allocation2 + $0x750] sm:$0xf0]  ;;  %v3250_v12 = vor.u32 %v3667_v6, %v3247_v7  ;;  %v3590_v1 = vld [vmem:[#allocation2 + $0x3d4] sm:$0xf0]  ;;  %v2678_v3 = vor.u32 %v3526_v61, %v2677_v59 }
  0x7f   :  { %1810 = vmatpush.bf16.msrb.mxu1 %v3154_v51  ;;  %1823 = vmatpush.bf16.msrb.mxu2 %v3282_v52  ;;  %v3599_v13 = vld [vmem:[#allocation2 + $0x424] sm:$0xf]  ;;  %v2975_v14 = vld [vmem:[#allocation2 + $0x430] sm:$0xf0]  ;;  %v3378_v16 = vor.u32 %v3699_v8, %v3375_v9  ;;  %v2949_v51 = vld [vmem:[#allocation2 + $0x3e8] sm:$0xf] }
  0x80   :  { %1836 = vmatpush.bf16.msrb.mxu3 %v3410_v56  ;;  %v3631_v15 = vld [vmem:[#allocation2 + $0x524] sm:$0xf]  ;;  %v3103_v17 = vld [vmem:[#allocation2 + $0x530] sm:$0xf0]  ;;  %v2978_v22 = vor.u32 %v3599_v13, %v2975_v14  ;;  %v3594_v52 = vld [vmem:[#allocation2 + $0x3f4] sm:$0xf0]  ;;  %v2822_v56 = vor.u32 %v3562_v48, %v2821_v47 }
  0x81   :  { %v3663_v18 = vld [vmem:[#allocation2 + $0x624] sm:$0xf]  ;;  %v3231_v19 = vld [vmem:[#allocation2 + $0x630] sm:$0xf0]  ;;  %v3106_v25 = vor.u32 %v3631_v15, %v3103_v17  ;;  %v2950_v60 = vor.u32 %v3594_v52, %v2949_v51  ;;  %v2533_v5 = vld [vmem:[#allocation2 + $0xa8] sm:$0xf] }
  0x82   :  { %1798 = vmatpush.bf16.msrb.mxu0 %v3010_v62  ;;  %v3695_v20 = vld [vmem:[#allocation2 + $0x724] sm:$0xf]  ;;  %v3359_v21 = vld [vmem:[#allocation2 + $0x730] sm:$0xf0]  ;;  %v3234_v26 = vor.u32 %v3663_v18, %v3231_v19  ;;  %v2805_v62 = vld [vmem:[#allocation2 + $0x2c8] sm:$0xf] }
  0x83   :  { %1811 = vmatpush.bf16.msrb.mxu1 %v3138_v63  ;;  %1824 = vmatpush.bf16.msrb.mxu2 %v3266_v0  ;;  %v3595_v23 = vld [vmem:[#allocation2 + $0x404] sm:$0xf]  ;;  %v2959_v24 = vld [vmem:[#allocation2 + $0x410] sm:$0xf0]  ;;  %v3362_v30 = vor.u32 %v3695_v20, %v3359_v21  ;;  %v3558_v63 = vld [vmem:[#allocation2 + $0x2d4] sm:$0xf0] }
  0x84   :  { %1837 = vmatpush.bf16.msrb.mxu3 %v3394_v4  ;;  %v3627_v27 = vld [vmem:[#allocation2 + $0x504] sm:$0xf]  ;;  %v3087_v28 = vld [vmem:[#allocation2 + $0x510] sm:$0xf0]  ;;  %v2962_v45 = vor.u32 %v3595_v23, %v2959_v24  ;;  %v2933_v0 = vld [vmem:[#allocation2 + $0x3c8] sm:$0xf]  ;;  %v2806_v4 = vor.u32 %v3558_v63, %v2805_v62 }
  0x85   :  { %v3659_v29 = vld [vmem:[#allocation2 + $0x604] sm:$0xf]  ;;  %v3215_v31 = vld [vmem:[#allocation2 + $0x610] sm:$0xf0]  ;;  %v3090_v49 = vor.u32 %v3627_v27, %v3087_v28  ;;  %v3490_v6 = vld [vmem:[#allocation2 + $0xb4] sm:$0xf0]  ;;  %v2934_v8 = vor.u32 %v3590_v1, %v2933_v0 }
  0x86   :  { %1799 = vmatpush.bf16.msrb.mxu0 %v2994_v10  ;;  %v3691_v35 = vld [vmem:[#allocation2 + $0x704] sm:$0xf]  ;;  %v3343_v36 = vld [vmem:[#allocation2 + $0x710] sm:$0xf0]  ;;  %v3218_v50 = vor.u32 %v3659_v29, %v3215_v31  ;;  %v2661_v7 = vld [vmem:[#allocation2 + $0x1a8] sm:$0xf]  ;;  %v2534_v14 = vor.u32 %v3490_v6, %v2533_v5 }
  0x87   :  { %1812 = vmatpush.bf16.msrb.mxu1 %v3122_v11  ;;  %1825 = vmatpush.bf16.msrb.mxu2 %v3250_v12  ;;  %v3346_v53 = vor.u32 %v3691_v35, %v3343_v36  ;;  %v3522_v9 = vld [vmem:[#allocation2 + $0x1b4] sm:$0xf0]  ;;  %v2789_v10 = vld [vmem:[#allocation2 + $0x2a8] sm:$0xf] }
  0x88   :  { %1838 = vmatpush.bf16.msrb.mxu3 %v3378_v16  ;;  %v3554_v11 = vld [vmem:[#allocation2 + $0x2b4] sm:$0xf0]  ;;  %v2917_v12 = vld [vmem:[#allocation2 + $0x3a8] sm:$0xf]  ;;  %v2662_v15 = vor.u32 %v3522_v9, %v2661_v7 }
  0x89   :  { %v3586_v13 = vld [vmem:[#allocation2 + $0x3b4] sm:$0xf0]  ;;  %v2790_v16 = vor.u32 %v3554_v11, %v2789_v10  ;;  %v2517_v17 = vld [vmem:[#allocation2 + $0x88] sm:$0xf] }
  0x8a   :  { %1800 = vmatpush.bf16.msrb.mxu0 %v2978_v22  ;;  %v3486_v18 = vld [vmem:[#allocation2 + $0x94] sm:$0xf0]  ;;  %v2645_v19 = vld [vmem:[#allocation2 + $0x188] sm:$0xf]  ;;  %v2918_v20 = vor.u32 %v3586_v13, %v2917_v12 }
  0x8b   :  { %1813 = vmatpush.bf16.msrb.mxu1 %v3106_v25  ;;  %1826 = vmatpush.bf16.msrb.mxu2 %v3234_v26  ;;  %v3518_v21 = vld [vmem:[#allocation2 + $0x194] sm:$0xf0]  ;;  %v2773_v22 = vld [vmem:[#allocation2 + $0x288] sm:$0xf]  ;;  %v2518_v26 = vor.u32 %v3486_v18, %v2517_v17 }
  0x8c   :  { %1839 = vmatpush.bf16.msrb.mxu3 %v3362_v30  ;;  %v3550_v23 = vld [vmem:[#allocation2 + $0x294] sm:$0xf0]  ;;  %v2901_v24 = vld [vmem:[#allocation2 + $0x388] sm:$0xf]  ;;  %v2646_v27 = vor.u32 %v3518_v21, %v2645_v19 }
  0x8d   :  { %v3582_v25 = vld [vmem:[#allocation2 + $0x394] sm:$0xf0]  ;;  %v2774_v28 = vor.u32 %v3550_v23, %v2773_v22  ;;  %v2501_v29 = vld [vmem:[#allocation2 + $0x68] sm:$0xf] }
  0x8e   :  { %1801 = vmatpush.bf16.msrb.mxu0 %v2962_v45  ;;  %v3482_v30 = vld [vmem:[#allocation2 + $0x74] sm:$0xf0]  ;;  %v2629_v31 = vld [vmem:[#allocation2 + $0x168] sm:$0xf]  ;;  %v2902_v35 = vor.u32 %v3582_v25, %v2901_v24 }
  0x8f   :  { %1814 = vmatpush.bf16.msrb.mxu1 %v3090_v49  ;;  %1827 = vmatpush.bf16.msrb.mxu2 %v3218_v50  ;;  %v3514_v36 = vld [vmem:[#allocation2 + $0x174] sm:$0xf0]  ;;  %v2757_v39 = vld [vmem:[#allocation2 + $0x268] sm:$0xf]  ;;  %v2502_v46 = vor.u32 %v3482_v30, %v2501_v29 }
  0x90   :  { %1840 = vmatpush.bf16.msrb.mxu3 %v3346_v53  ;;  %v3546_v43 = vld [vmem:[#allocation2 + $0x274] sm:$0xf0]  ;;  %v2885_v44 = vld [vmem:[#allocation2 + $0x368] sm:$0xf]  ;;  %v2630_v47 = vor.u32 %v3514_v36, %v2629_v31 }
  0x91   :  { %1802 = vmatmul.bf16.vlgmr.msrb.gmra.mxu0 %v3857_v37  ;;  %v3578_v45 = vld [vmem:[#allocation2 + $0x374] sm:$0xf0]  ;;  %v2758_v48 = vor.u32 %v3546_v43, %v2757_v39  ;;  %v2485_v49 = vld [vmem:[#allocation2 + $0x48] sm:$0xf] }
  0x92   :  { %1846 = vmatpush.bf16.msra.mxu0 %v2566_v54  ;;  %1828 = vmatmul.bf16.vlgmr.msrb.gmra.mxu2 %v3855_v32  ;;  %v3478_v50 = vld [vmem:[#allocation2 + $0x54] sm:$0xf0]  ;;  %v2613_v51 = vld [vmem:[#allocation2 + $0x148] sm:$0xf]  ;;  %v2886_v52 = vor.u32 %v3578_v45, %v2885_v44 }
  0x93   :  { %1859 = vmatpush.bf16.msra.mxu1 %v2694_v55  ;;  %1872 = vmatpush.bf16.msra.mxu2 %v2822_v56  ;;  %v3510_v53 = vld [vmem:[#allocation2 + $0x154] sm:$0xf0]  ;;  %v2741_v54 = vld [vmem:[#allocation2 + $0x248] sm:$0xf]  ;;  %v2486_v58 = vor.u32 %v3478_v50, %v2485_v49 }
  0x94   :  { %1885 = vmatpush.bf16.msra.mxu3 %v2950_v60  ;;  %1815 = vmatmul.bf16.vlgmr.msrb.gmra.mxu1 %v3861_v40  ;;  %v3542_v55 = vld [vmem:[#allocation2 + $0x254] sm:$0xf0]  ;;  %v2869_v56 = vld [vmem:[#allocation2 + $0x348] sm:$0xf]  ;;  %v2614_v59 = vor.u32 %v3510_v53, %v2613_v51 }
  0x95   :  { %1841 = vmatmul.bf16.vlgmr.msrb.gmra.mxu3 %v3859_v38  ;;  %v3574_v57 = vld [vmem:[#allocation2 + $0x354] sm:$0xf0]  ;;  %v2742_v60 = vor.u32 %v3542_v55, %v2741_v54  ;;  %v2469_v61 = vld [vmem:[#allocation2 + $0x28] sm:$0xf] }
  0x96   :  { %1847 = vmatpush.bf16.msra.mxu0 %v2550_v2  ;;  %v3474_v62 = vld [vmem:[#allocation2 + $0x34] sm:$0xf0]  ;;  %v2597_v63 = vld [vmem:[#allocation2 + $0x128] sm:$0xf]  ;;  %v2870_v0 = vor.u32 %v3574_v57, %v2869_v56 }
  0x97   :  { %1860 = vmatpush.bf16.msra.mxu1 %v2678_v3  ;;  %1873 = vmatpush.bf16.msra.mxu2 %v2806_v4  ;;  %v3506_v1 = vld [vmem:[#allocation2 + $0x134] sm:$0xf0]  ;;  %v2725_v2 = vld [vmem:[#allocation2 + $0x228] sm:$0xf]  ;;  %v2470_v6 = vor.u32 %v3474_v62, %v2469_v61 }
  0x98   :  { %1886 = vmatpush.bf16.msra.mxu3 %v2934_v8  ;;  %v3538_v3 = vld [vmem:[#allocation2 + $0x234] sm:$0xf0]  ;;  %v2853_v4 = vld [vmem:[#allocation2 + $0x328] sm:$0xf]  ;;  %v2598_v9 = vor.u32 %v3506_v1, %v2597_v63 }
  0x99   :  { %v3570_v5 = vld [vmem:[#allocation2 + $0x334] sm:$0xf0]  ;;  %v2453_v7 = vld [vmem:[#allocation2 + $0x8] sm:$0xf]  ;;  %v2726_v10 = vor.u32 %v3538_v3, %v2725_v2 }
  0x9a   :  { %1848 = vmatpush.bf16.msra.mxu0 %v2534_v14  ;;  %v3470_v8 = vld [vmem:[#allocation2 + $0x14] sm:$0xf0]  ;;  %v2581_v11 = vld [vmem:[#allocation2 + $0x108] sm:$0xf]  ;;  %v2854_v14 = vor.u32 %v3570_v5, %v2853_v4 }
  0x9b   :  { %1861 = vmatpush.bf16.msra.mxu1 %v2662_v15  ;;  %1874 = vmatpush.bf16.msra.mxu2 %v2790_v16  ;;  %v3502_v12 = vld [vmem:[#allocation2 + $0x114] sm:$0xf0]  ;;  %v2709_v13 = vld [vmem:[#allocation2 + $0x208] sm:$0xf]  ;;  %v2454_v21 = vor.u32 %v3470_v8, %v2453_v7 }
  0x9c   :  { %1887 = vmatpush.bf16.msra.mxu3 %v2918_v20  ;;  %v3534_v15 = vld [vmem:[#allocation2 + $0x214] sm:$0xf0]  ;;  %v2837_v16 = vld [vmem:[#allocation2 + $0x308] sm:$0xf]  ;;  %v2582_v25 = vor.u32 %v3502_v12, %v2581_v11 }
  0x9d   :  { %v3566_v17 = vld [vmem:[#allocation2 + $0x314] sm:$0xf0]  ;;  %v3077_v18 = vld [vmem:[#allocation2 + $0x4e8] sm:$0xf] }
  0x9e   :  { %1849 = vmatpush.bf16.msra.mxu0 %v2518_v26  ;;  %v3626_v19 = vld [vmem:[#allocation2 + $0x4f4] sm:$0xf0]  ;;  %v3205_v20 = vld [vmem:[#allocation2 + $0x5e8] sm:$0xf]  ;;  %v2710_v26 = vor.u32 %v3534_v15, %v2709_v13  ;;  %v2838_v29 = vor.u32 %v3566_v17, %v2837_v16 }
  0x9f   :  { %1862 = vmatpush.bf16.msra.mxu1 %v2646_v27  ;;  %1875 = vmatpush.bf16.msra.mxu2 %v2774_v28  ;;  %v3658_v22 = vld [vmem:[#allocation2 + $0x5f4] sm:$0xf0]  ;;  %v3333_v23 = vld [vmem:[#allocation2 + $0x6e8] sm:$0xf]  ;;  %v3078_v30 = vor.u32 %v3626_v19, %v3077_v18 }
  0xa0   :  { %1888 = vmatpush.bf16.msra.mxu3 %v2902_v35  ;;  %v3690_v24 = vld [vmem:[#allocation2 + $0x6f4] sm:$0xf0]  ;;  %v3461_v27 = vld [vmem:[#allocation2 + $0x7e8] sm:$0xf]  ;;  %v3206_v31 = vor.u32 %v3658_v22, %v3205_v20 }
  0xa1   :  { %v3722_v28 = vld [vmem:[#allocation2 + $0x7f4] sm:$0xf0]  ;;  %v3334_v35 = vor.u32 %v3690_v24, %v3333_v23  ;;  %v3061_v36 = vld [vmem:[#allocation2 + $0x4c8] sm:$0xf] }
  0xa2   :  { %1850 = vmatpush.bf16.msra.mxu0 %v2502_v46  ;;  %v3622_v39 = vld [vmem:[#allocation2 + $0x4d4] sm:$0xf0]  ;;  %v3189_v43 = vld [vmem:[#allocation2 + $0x5c8] sm:$0xf]  ;;  %v3462_v44 = vor.u32 %v3722_v28, %v3461_v27 }
  0xa3   :  { %1863 = vmatpush.bf16.msra.mxu1 %v2630_v47  ;;  %1876 = vmatpush.bf16.msra.mxu2 %v2758_v48  ;;  %v3654_v45 = vld [vmem:[#allocation2 + $0x5d4] sm:$0xf0]  ;;  %v3317_v46 = vld [vmem:[#allocation2 + $0x6c8] sm:$0xf]  ;;  %v3062_v50 = vor.u32 %v3622_v39, %v3061_v36 }
  0xa4   :  { %1889 = vmatpush.bf16.msra.mxu3 %v2886_v52  ;;  %v3686_v47 = vld [vmem:[#allocation2 + $0x6d4] sm:$0xf0]  ;;  %v3445_v48 = vld [vmem:[#allocation2 + $0x7c8] sm:$0xf]  ;;  %v3190_v51 = vor.u32 %v3654_v45, %v3189_v43 }
  0xa5   :  { %v3718_v49 = vld [vmem:[#allocation2 + $0x7d4] sm:$0xf0]  ;;  %v3318_v52 = vor.u32 %v3686_v47, %v3317_v46  ;;  %v3045_v53 = vld [vmem:[#allocation2 + $0x4a8] sm:$0xf] }
  0xa6   :  { %1851 = vmatpush.bf16.msra.mxu0 %v2486_v58  ;;  %v3618_v54 = vld [vmem:[#allocation2 + $0x4b4] sm:$0xf0]  ;;  %v3173_v55 = vld [vmem:[#allocation2 + $0x5a8] sm:$0xf]  ;;  %v3446_v56 = vor.u32 %v3718_v49, %v3445_v48 }
  0xa7   :  { %1864 = vmatpush.bf16.msra.mxu1 %v2614_v59  ;;  %1877 = vmatpush.bf16.msra.mxu2 %v2742_v60  ;;  %v3650_v57 = vld [vmem:[#allocation2 + $0x5b4] sm:$0xf0]  ;;  %v3301_v58 = vld [vmem:[#allocation2 + $0x6a8] sm:$0xf]  ;;  %v3046_v62 = vor.u32 %v3618_v54, %v3045_v53 }
  0xa8   :  { %1890 = vmatpush.bf16.msra.mxu3 %v2870_v0  ;;  %v3682_v59 = vld [vmem:[#allocation2 + $0x6b4] sm:$0xf0]  ;;  %v3429_v60 = vld [vmem:[#allocation2 + $0x7a8] sm:$0xf]  ;;  %v3174_v63 = vor.u32 %v3650_v57, %v3173_v55 }
  0xa9   :  { %v3714_v61 = vld [vmem:[#allocation2 + $0x7b4] sm:$0xf0]  ;;  %v3302_v0 = vor.u32 %v3682_v59, %v3301_v58  ;;  %v3029_v1 = vld [vmem:[#allocation2 + $0x488] sm:$0xf] }
  0xaa   :  { %1852 = vmatpush.bf16.msra.mxu0 %v2470_v6  ;;  %v3614_v2 = vld [vmem:[#allocation2 + $0x494] sm:$0xf0]  ;;  %v3157_v3 = vld [vmem:[#allocation2 + $0x588] sm:$0xf]  ;;  %v3430_v4 = vor.u32 %v3714_v61, %v3429_v60 }
  0xab   :  { %1865 = vmatpush.bf16.msra.mxu1 %v2598_v9  ;;  %1878 = vmatpush.bf16.msra.mxu2 %v2726_v10  ;;  %v3646_v5 = vld [vmem:[#allocation2 + $0x594] sm:$0xf0]  ;;  %v3285_v6 = vld [vmem:[#allocation2 + $0x688] sm:$0xf]  ;;  %v3030_v10 = vor.u32 %v3614_v2, %v3029_v1 }
  0xac   :  { %1891 = vmatpush.bf16.msra.mxu3 %v2854_v14  ;;  %v3678_v7 = vld [vmem:[#allocation2 + $0x694] sm:$0xf0]  ;;  %v3413_v8 = vld [vmem:[#allocation2 + $0x788] sm:$0xf]  ;;  %v3158_v11 = vor.u32 %v3646_v5, %v3157_v3 }
  0xad   :  { %v3710_v9 = vld [vmem:[#allocation2 + $0x794] sm:$0xf0]  ;;  %v3286_v12 = vor.u32 %v3678_v7, %v3285_v6  ;;  %v3013_v13 = vld [vmem:[#allocation2 + $0x468] sm:$0xf]  ;;  %v3496_v6 = vld [vmem:[#allocation2 + $0xec] sm:$0xf] }
  0xae   :  { %1853 = vmatpush.bf16.msra.mxu0 %v2454_v21  ;;  %v3610_v14 = vld [vmem:[#allocation2 + $0x474] sm:$0xf0]  ;;  %v3141_v15 = vld [vmem:[#allocation2 + $0x568] sm:$0xf]  ;;  %v3414_v16 = vor.u32 %v3710_v9, %v3413_v8  ;;  %v2567_v7 = vld [vmem:[#allocation2 + $0xf8] sm:$0xf0] }
  0xaf   :  { %1866 = vmatpush.bf16.msra.mxu1 %v2582_v25  ;;  %1879 = vmatpush.bf16.msra.mxu2 %v2710_v26  ;;  %v3642_v17 = vld [vmem:[#allocation2 + $0x574] sm:$0xf0]  ;;  %v3269_v18 = vld [vmem:[#allocation2 + $0x668] sm:$0xf]  ;;  %v3014_v22 = vor.u32 %v3610_v14, %v3013_v13  ;;  %v3528_v8 = vld [vmem:[#allocation2 + $0x1ec] sm:$0xf] }
  0xb0   :  { %1892 = vmatpush.bf16.msra.mxu3 %v2838_v29  ;;  %v3674_v19 = vld [vmem:[#allocation2 + $0x674] sm:$0xf0]  ;;  %v3397_v20 = vld [vmem:[#allocation2 + $0x768] sm:$0xf]  ;;  %v3142_v24 = vor.u32 %v3642_v17, %v3141_v15  ;;  %v2823_v13 = vld [vmem:[#allocation2 + $0x2f8] sm:$0xf0] }
  0xb1   :  { %1854 = vmatmul.bf16.vlgmr.msra.gmra.mxu0 %v3842_v34  ;;  %v3706_v21 = vld [vmem:[#allocation2 + $0x774] sm:$0xf0]  ;;  %v2997_v23 = vld [vmem:[#allocation2 + $0x448] sm:$0xf]  ;;  %v3270_v25 = vor.u32 %v3674_v19, %v3269_v18  ;;  %v3592_v17 = vld [vmem:[#allocation2 + $0x3ec] sm:$0xf] }
  0xb2   :  { %1898 = vmatpush.bf16.msrb.mxu0 %v3078_v30  ;;  %1880 = vmatmul.bf16.vlgmr.msra.gmra.mxu2 %v3840_v33  ;;  %v3606_v26 = vld [vmem:[#allocation2 + $0x454] sm:$0xf0]  ;;  %v3125_v27 = vld [vmem:[#allocation2 + $0x548] sm:$0xf]  ;;  %v3398_v29 = vor.u32 %v3706_v21, %v3397_v20  ;;  %v2951_v18 = vld [vmem:[#allocation2 + $0x3f8] sm:$0xf0]  ;;  %v2570_v20 = vor.u32 %v3496_v6, %v2567_v7 }
  0xb3   :  { %1911 = vmatpush.bf16.msrb.mxu1 %v3206_v31  ;;  %1924 = vmatpush.bf16.msrb.mxu2 %v3334_v35  ;;  %v3638_v28 = vld [vmem:[#allocation2 + $0x554] sm:$0xf0]  ;;  %v3253_v30 = vld [vmem:[#allocation2 + $0x648] sm:$0xf]  ;;  %v2998_v43 = vor.u32 %v3606_v26, %v2997_v23  ;;  %v3524_v26 = vld [vmem:[#allocation2 + $0x1cc] sm:$0xf] }
  0xb4   :  { %1937 = vmatpush.bf16.msrb.mxu3 %v3462_v44  ;;  %1867 = vmatmul.bf16.vlgmr.msra.gmra.mxu1 %v3846_v42  ;;  %v3670_v31 = vld [vmem:[#allocation2 + $0x654] sm:$0xf0]  ;;  %v3381_v36 = vld [vmem:[#allocation2 + $0x748] sm:$0xf]  ;;  %v3126_v45 = vor.u32 %v3638_v28, %v3125_v27  ;;  %v2775_v6 = vld [vmem:[#allocation2 + $0x298] sm:$0xf0] }
  0xb5   :  { %1893 = vmatmul.bf16.vlgmr.msra.gmra.mxu3 %v3844_v41  ;;  %v3882_v35 = vld [vmem:[%s4050_s2] sm:$0xf]  ;;  %v2981_v44 = vld [vmem:[#allocation2 + $0x428] sm:$0xf]  ;;  %v3254_v46 = vor.u32 %v3670_v31, %v3253_v30  ;;  %v2679_v30 = vld [vmem:[#allocation2 + $0x1d8] sm:$0xf0] }
  0xb6   :  { %1899 = vmatpush.bf16.msrb.mxu0 %v3062_v50  ;;  %v3702_v39 = vld [vmem:[#allocation2 + $0x754] sm:$0xf0]  ;;  %v3109_v48 = vld [vmem:[#allocation2 + $0x528] sm:$0xf]  ;;  %v350_v49 = vperm.slane %v3882_v35, 0 }
  0xb7   :  { %1912 = vmatpush.bf16.msrb.mxu1 %v3190_v51  ;;  %1925 = vmatpush.bf16.msrb.mxu2 %v3318_v52  ;;  %v3602_v47 = vld [vmem:[#allocation2 + $0x434] sm:$0xf0]  ;;  %v3382_v50 = vor.u32 %v3702_v39, %v3381_v36  ;;  %v3237_v52 = vld [vmem:[#allocation2 + $0x628] sm:$0xf]  ;;  %v3556_v31 = vld [vmem:[#allocation2 + $0x2cc] sm:$0xf] }
  0xb8   :  { %1938 = vmatpush.bf16.msrb.mxu3 %v3446_v56  ;;  %v3634_v51 = vld [vmem:[#allocation2 + $0x534] sm:$0xf0]  ;;  %v3365_v54 = vld [vmem:[#allocation2 + $0x728] sm:$0xf]  ;;  %v2982_v56 = vor.u32 %v3602_v47, %v2981_v44  ;;  %v2807_v36 = vld [vmem:[#allocation2 + $0x2d8] sm:$0xf0]  ;;  %v2682_v47 = vor.u32 %v3524_v26, %v2679_v30 }
  0xb9   :  { %v3666_v53 = vld [vmem:[#allocation2 + $0x634] sm:$0xf0]  ;;  %v2965_v57 = vld [vmem:[#allocation2 + $0x408] sm:$0xf]  ;;  %v3110_v60 = vor.u32 %v3634_v51, %v3109_v48  ;;  %v2935_v44 = vld [vmem:[#allocation2 + $0x3d8] sm:$0xf0]  ;;  %v2810_v48 = vor.u32 %v3556_v31, %v2807_v36 }
  0xba   :  { %1900 = vmatpush.bf16.msrb.mxu0 %v3046_v62  ;;  %v3698_v55 = vld [vmem:[#allocation2 + $0x734] sm:$0xf0]  ;;  %v3238_v61 = vor.u32 %v3666_v53, %v3237_v52  ;;  %v3093_v62 = vld [vmem:[#allocation2 + $0x508] sm:$0xf]  ;;  %v3520_v51 = vld [vmem:[#allocation2 + $0x1ac] sm:$0xf] }
  0xbb   :  { %1913 = vmatpush.bf16.msrb.mxu1 %v3174_v63  ;;  %1926 = vmatpush.bf16.msrb.mxu2 %v3302_v0  ;;  %v3598_v58 = vld [vmem:[#allocation2 + $0x414] sm:$0xf0]  ;;  %v3221_v0 = vld [vmem:[#allocation2 + $0x608] sm:$0xf]  ;;  %v3366_v2 = vor.u32 %v3698_v55, %v3365_v54  ;;  %v2663_v54 = vld [vmem:[#allocation2 + $0x1b8] sm:$0xf0] }
  0xbc   :  { %1939 = vmatpush.bf16.msrb.mxu3 %v3430_v4  ;;  %v3630_v63 = vld [vmem:[#allocation2 + $0x514] sm:$0xf0]  ;;  %v3349_v4 = vld [vmem:[#allocation2 + $0x708] sm:$0xf]  ;;  %v3552_v55 = vld [vmem:[#allocation2 + $0x2ac] sm:$0xf] }
  0xbd   :  { %v3662_v3 = vld [vmem:[#allocation2 + $0x614] sm:$0xf0]  ;;  %v3094_v15 = vor.u32 %v3630_v63, %v3093_v62  ;;  %v3484_v63 = vld [vmem:[#allocation2 + $0x8c] sm:$0xf] }
  0xbe   :  { %1901 = vmatpush.bf16.msrb.mxu0 %v3030_v10  ;;  %v3694_v5 = vld [vmem:[#allocation2 + $0x714] sm:$0xf0]  ;;  %v2966_v10 = vor.u32 %v3598_v58, %v2965_v57  ;;  %v3584_v57 = vld [vmem:[#allocation2 + $0x3ac] sm:$0xf]  ;;  %v2919_v58 = vld [vmem:[#allocation2 + $0x3b8] sm:$0xf0] }
  0xbf   :  { %1914 = vmatpush.bf16.msrb.mxu1 %v3158_v11  ;;  %1927 = vmatpush.bf16.msrb.mxu2 %v3286_v12  ;;  %v2695_v11 = vld [vmem:[#allocation2 + $0x1f8] sm:$0xf0]  ;;  %v3560_v12 = vld [vmem:[#allocation2 + $0x2ec] sm:$0xf]  ;;  %v3350_v19 = vor.u32 %v3694_v5, %v3349_v4 }
  0xc0   :  { %1940 = vmatpush.bf16.msrb.mxu3 %v3414_v16  ;;  %v3222_v16 = vor.u32 %v3662_v3, %v3221_v0  ;;  %v2826_v23 = vor.u32 %v3560_v12, %v2823_v13  ;;  %v2519_v0 = vld [vmem:[#allocation2 + $0x98] sm:$0xf0]  ;;  %v2922_v3 = vor.u32 %v3584_v57, %v2919_v58  ;;  %v3548_v5 = vld [vmem:[#allocation2 + $0x28c] sm:$0xf] }
  0xc1   :  { %v1647_v59 = vpop.f32.mrf.mxu0  ;;  %v2647_v4 = vld [vmem:[#allocation2 + $0x198] sm:$0xf0]  ;;  %v3580_v7 = vld [vmem:[#allocation2 + $0x38c] sm:$0xf]  ;;  %v2778_v12 = vor.u32 %v3548_v5, %v2775_v6 }
  0xc2   :  { %1902 = vmatpush.bf16.msrb.mxu0 %v3014_v22  ;;  %v1648_v1 = vadd.f32 %v1647_v59, %v350_v49  ;;  %v1660_v9 = vpop.f32.mrf.mxu1  ;;  %v2698_v22 = vor.u32 %v3528_v8, %v2695_v11  ;;  %v3488_v49 = vld [vmem:[#allocation2 + $0xac] sm:$0xf]  ;;  %v2903_v8 = vld [vmem:[#allocation2 + $0x398] sm:$0xf0] }
  0xc3   :  { %1915 = vmatpush.bf16.msrb.mxu1 %v3142_v24  ;;  %1928 = vmatpush.bf16.msrb.mxu2 %v3270_v25  ;;  %v3492_v24 = vld [vmem:[#allocation2 + $0xcc] sm:$0xf]  ;;  %v2551_v25 = vld [vmem:[#allocation2 + $0xd8] sm:$0xf0] }
  0xc4   :  { %1941 = vmatpush.bf16.msrb.mxu3 %v3398_v29  ;;  %v1661_v14 = vadd.f32 %v1660_v9, %v1648_v1  ;;  %v2954_v29 = vor.u32 %v3592_v17, %v2951_v18  ;;  %v3516_v1 = vld [vmem:[#allocation2 + $0x18c] sm:$0xf]  ;;  %v2522_v9 = vor.u32 %v3484_v63, %v2519_v0  ;;  %v2906_v18 = vor.u32 %v3580_v7, %v2903_v8  ;;  %v2855_v63 = vld [vmem:[#allocation2 + $0x338] sm:$0xf0] }
  0xc5   :  { %v2650_v11 = vor.u32 %v3516_v1, %v2647_v4  ;;  %v3480_v13 = vld [vmem:[#allocation2 + $0x6c] sm:$0xf]  ;;  %v2583_v6 = vld [vmem:[#allocation2 + $0x118] sm:$0xf0] }
  0xc6   :  { %1903 = vmatpush.bf16.msrb.mxu0 %v2998_v43  ;;  %v1673_v21 = vpop.f32.mrf.mxu2  ;;  %v3588_v43 = vld [vmem:[#allocation2 + $0x3cc] sm:$0xf] }
  0xc7   :  { %1916 = vmatpush.bf16.msrb.mxu1 %v3126_v45  ;;  %1929 = vmatpush.bf16.msrb.mxu2 %v3254_v46  ;;  %v1674_v27 = vadd.f32 %v1673_v21, %v1661_v14  ;;  %v1686_v28 = vpop.f32.mrf.mxu3  ;;  %v2554_v46 = vor.u32 %v3492_v24, %v2551_v25  ;;  %v2938_v53 = vor.u32 %v3588_v43, %v2935_v44  ;;  %v2503_v14 = vld [vmem:[#allocation2 + $0x78] sm:$0xf0]  ;;  %v3508_v30 = vld [vmem:[#allocation2 + $0x14c] sm:$0xf] }
  0xc8   :  { %1942 = vmatpush.bf16.msrb.mxu3 %v3382_v50  ;;  %v2535_v50 = vld [vmem:[#allocation2 + $0xb8] sm:$0xf0]  ;;  %v2506_v25 = vor.u32 %v3480_v13, %v2503_v14  ;;  %v3540_v43 = vld [vmem:[#allocation2 + $0x24c] sm:$0xf] }
  0xc9   :  { %v1649_v39 = vpop.f32.mrf.mxu0  ;;  %v1687_v45 = vadd.f32 %v1686_v28, %v1674_v27  ;;  %v2538_v59 = vor.u32 %v3488_v49, %v2535_v50  ;;  %v2759_v21 = vld [vmem:[#allocation2 + $0x278] sm:$0xf0]  ;;  %v3476_v28 = vld [vmem:[#allocation2 + $0x4c] sm:$0xf] }
  0xca   :  { %1904 = vmatpush.bf16.msrb.mxu0 %v2982_v56  ;;  %v1662_v52 = vpop.f32.mrf.mxu1  ;;  %v2791_v56 = vld [vmem:[#allocation2 + $0x2b8] sm:$0xf0]  ;;  %v3468_v1 = vld [vmem:[#allocation2 + $0xc] sm:$0xf] }
  0xcb   :  { %1917 = vmatpush.bf16.msrb.mxu1 %v3110_v60  ;;  %1930 = vmatpush.bf16.msrb.mxu2 %v3238_v61  ;;  %v2666_v61 = vor.u32 %v3520_v51, %v2663_v54  ;;  %v2794_v62 = vor.u32 %v3552_v55, %v2791_v56  ;;  %v2615_v39 = vld [vmem:[#allocation2 + $0x158] sm:$0xf0]  ;;  %v3472_v54 = vld [vmem:[#allocation2 + $0x2c] sm:$0xf] }
  0xcc   :  { %1943 = vmatpush.bf16.msrb.mxu3 %v3366_v2  ;;  %v2743_v44 = vld [vmem:[#allocation2 + $0x258] sm:$0xf0]  ;;  %v2618_v52 = vor.u32 %v3508_v30, %v2615_v39  ;;  %v3504_v56 = vld [vmem:[#allocation2 + $0x12c] sm:$0xf] }
  0xcd   :  { %v2471_v55 = vld [vmem:[#allocation2 + $0x38] sm:$0xf0]  ;;  %v3500_v5 = vld [vmem:[#allocation2 + $0x10c] sm:$0xf] }
  0xce   :  { %1905 = vmatpush.bf16.msrb.mxu0 %v2966_v10  ;;  %v1675_v60 = vpop.f32.mrf.mxu2  ;;  %v2474_v0 = vor.u32 %v3472_v54, %v2471_v55  ;;  %v3532_v7 = vld [vmem:[#allocation2 + $0x20c] sm:$0xf]  ;;  %v3063_v30 = vld [vmem:[#allocation2 + $0x4d8] sm:$0xf0] }
  0xcf   :  { %1918 = vmatpush.bf16.msrb.mxu1 %v3094_v15  ;;  %1931 = vmatpush.bf16.msrb.mxu2 %v3222_v16  ;;  %v1688_v2 = vpop.f32.mrf.mxu3  ;;  %v3512_v15 = vld [vmem:[#allocation2 + $0x16c] sm:$0xf]  ;;  %v3191_v39 = vld [vmem:[#allocation2 + $0x5d8] sm:$0xf0] }
  0xd0   :  { %1944 = vmatpush.bf16.msrb.mxu3 %v3350_v19  ;;  %v2631_v19 = vld [vmem:[#allocation2 + $0x178] sm:$0xf0]  ;;  %v3536_v60 = vld [vmem:[#allocation2 + $0x22c] sm:$0xf] }
  0xd1   :  { %1906 = vmatmul.bf16.vlgmr.msrb.gmra.mxu0 %v3857_v37  ;;  %v2634_v26 = vor.u32 %v3512_v15, %v2631_v19  ;;  %v2455_v2 = vld [vmem:[#allocation2 + $0x18] sm:$0xf0]  ;;  %v3624_v14 = vld [vmem:[#allocation2 + $0x4ec] sm:$0xf] }
  0xd2   :  { %1950 = vmatpush.bf16.msra.mxu0 %v2570_v20  ;;  %1932 = vmatmul.bf16.vlgmr.msrb.gmra.mxu2 %v3855_v32  ;;  %v1699_v10 = vpop.f32.mrf.mxu0  ;;  %v3544_v20 = vld [vmem:[#allocation2 + $0x26c] sm:$0xf]  ;;  %v3079_v15 = vld [vmem:[#allocation2 + $0x4f8] sm:$0xf0] }
  0xd3   :  { %1963 = vmatpush.bf16.msra.mxu1 %v2698_v22  ;;  %1976 = vmatpush.bf16.msra.mxu2 %v2826_v23  ;;  %v1700_v16 = vadd.f32 %v1699_v10, %v1687_v45  ;;  %v1712_v17 = vpop.f32.mrf.mxu1  ;;  %v3576_v22 = vld [vmem:[#allocation2 + $0x36c] sm:$0xf]  ;;  %v2887_v23 = vld [vmem:[#allocation2 + $0x378] sm:$0xf0]  ;;  %v2762_v27 = vor.u32 %v3544_v20, %v2759_v21  ;;  %v2586_v21 = vor.u32 %v3500_v5, %v2583_v6 }
  0xd4   :  { %1989 = vmatpush.bf16.msra.mxu3 %v2954_v29  ;;  %1919 = vmatmul.bf16.vlgmr.msrb.gmra.mxu1 %v3861_v40  ;;  %v2487_v29 = vld [vmem:[#allocation2 + $0x58] sm:$0xf0]  ;;  %v2890_v36 = vor.u32 %v3576_v22, %v2887_v23  ;;  %v3688_v19 = vld [vmem:[#allocation2 + $0x6ec] sm:$0xf] }
  0xd5   :  { %1945 = vmatmul.bf16.vlgmr.msrb.gmra.mxu3 %v3859_v38  ;;  %v1713_v24 = vadd.f32 %v1712_v17, %v1700_v16  ;;  %v2490_v49 = vor.u32 %v3476_v28, %v2487_v29  ;;  %v2711_v10 = vld [vmem:[#allocation2 + $0x218] sm:$0xf0]  ;;  %v3656_v16 = vld [vmem:[#allocation2 + $0x5ec] sm:$0xf]  ;;  %v2458_v17 = vor.u32 %v3468_v1, %v2455_v2 }
  0xd6   :  { %1951 = vmatpush.bf16.msra.mxu0 %v2554_v46  ;;  %v3335_v20 = vld [vmem:[#allocation2 + $0x6f8] sm:$0xf0]  ;;  %v2714_v22 = vor.u32 %v3532_v7, %v2711_v10  ;;  %v3720_v23 = vld [vmem:[#allocation2 + $0x7ec] sm:$0xf] }
  0xd7   :  { %1964 = vmatpush.bf16.msra.mxu1 %v2682_v47  ;;  %1977 = vmatpush.bf16.msra.mxu2 %v2810_v48  ;;  %v1725_v31 = vpop.f32.mrf.mxu2  ;;  %v3572_v47 = vld [vmem:[#allocation2 + $0x34c] sm:$0xf]  ;;  %v2871_v48 = vld [vmem:[#allocation2 + $0x358] sm:$0xf0]  ;;  %v3338_v28 = vor.u32 %v3688_v19, %v3335_v20 }
  0xd8   :  { %1990 = vmatpush.bf16.msra.mxu3 %v2938_v53  ;;  %v1726_v45 = vadd.f32 %v1725_v31, %v1713_v24  ;;  %v1738_v46 = vpop.f32.mrf.mxu3  ;;  %v2746_v53 = vor.u32 %v3540_v43, %v2743_v44  ;;  %v2874_v58 = vor.u32 %v3572_v47, %v2871_v48  ;;  %v3463_v24 = vld [vmem:[#allocation2 + $0x7f8] sm:$0xf0]  ;;  %v3620_v29 = vld [vmem:[#allocation2 + $0x4cc] sm:$0xf] }
  0xd9   :  { %v3652_v31 = vld [vmem:[#allocation2 + $0x5cc] sm:$0xf]  ;;  %v3319_v44 = vld [vmem:[#allocation2 + $0x6d8] sm:$0xf0]  ;;  %v3066_v47 = vor.u32 %v3620_v29, %v3063_v30 }
  0xda   :  { %1952 = vmatpush.bf16.msra.mxu0 %v2538_v59  ;;  %v3889_v50 = vadd.f32 %v1738_v46, %v1726_v45  ;;  %v1701_v51 = vpop.f32.mrf.mxu0  ;;  %v2599_v59 = vld [vmem:[#allocation2 + $0x138] sm:$0xf0]  ;;  %v3684_v43 = vld [vmem:[#allocation2 + $0x6cc] sm:$0xf]  ;;  %v3194_v48 = vor.u32 %v3652_v31, %v3191_v39 }
  0xdb   :  { %1965 = vmatpush.bf16.msra.mxu1 %v2666_v61  ;;  %1978 = vmatpush.bf16.msra.mxu2 %v2794_v62  ;;  %v1714_v57 = vpop.f32.mrf.mxu1  ;;  %v2727_v61 = vld [vmem:[#allocation2 + $0x238] sm:$0xf0]  ;;  %v3568_v62 = vld [vmem:[#allocation2 + $0x32c] sm:$0xf] }
  0xdc   :  { %1991 = vmatpush.bf16.msra.mxu3 %v2922_v3  ;;  %v2602_v3 = vor.u32 %v3504_v56, %v2599_v59  ;;  %v2730_v4 = vor.u32 %v3536_v60, %v2727_v61  ;;  %v3716_v45 = vld [vmem:[#allocation2 + $0x7cc] sm:$0xf]  ;;  %v3447_v46 = vld [vmem:[#allocation2 + $0x7d8] sm:$0xf0] }
  0xdd   :  { %v3616_v51 = vld [vmem:[#allocation2 + $0x4ac] sm:$0xf]  ;;  %v3450_v54 = vor.u32 %v3716_v45, %v3447_v46  ;;  %v3175_v55 = vld [vmem:[#allocation2 + $0x5b8] sm:$0xf0] }
  0xde   :  { %1953 = vmatpush.bf16.msra.mxu0 %v2522_v9  ;;  %v2858_v9 = vor.u32 %v3568_v62, %v2855_v63  ;;  %v3680_v56 = vld [vmem:[#allocation2 + $0x6ac] sm:$0xf]  ;;  %v3303_v57 = vld [vmem:[#allocation2 + $0x6b8] sm:$0xf0] }
  0xdf   :  { %1966 = vmatpush.bf16.msra.mxu1 %v2650_v11  ;;  %1979 = vmatpush.bf16.msra.mxu2 %v2778_v12  ;;  %v1727_v8 = vpop.f32.mrf.mxu2  ;;  %v3564_v11 = vld [vmem:[#allocation2 + $0x30c] sm:$0xf]  ;;  %v2839_v12 = vld [vmem:[#allocation2 + $0x318] sm:$0xf0]  ;;  %v3306_v62 = vor.u32 %v3680_v56, %v3303_v57 }
  0xe0   :  { %1992 = vmatpush.bf16.msra.mxu3 %v2906_v18  ;;  %v1740_v13 = vpop.f32.mrf.mxu3  ;;  %v3207_v18 = vld [vmem:[#allocation2 + $0x5f8] sm:$0xf0]  ;;  %v3612_v63 = vld [vmem:[#allocation2 + $0x48c] sm:$0xf] }
  0xe1   :  { %v3431_v59 = vld [vmem:[#allocation2 + $0x7b8] sm:$0xf0]  ;;  %v3708_v5 = vld [vmem:[#allocation2 + $0x78c] sm:$0xf] }
  0xe2   :  { %1954 = vmatpush.bf16.msra.mxu0 %v2506_v25  ;;  %v2842_v25 = vor.u32 %v3564_v11, %v2839_v12  ;;  %v3159_v2 = vld [vmem:[#allocation2 + $0x598] sm:$0xf0]  ;;  %v3608_v8 = vld [vmem:[#allocation2 + $0x46c] sm:$0xf] }
  0xe3   :  { %1967 = vmatpush.bf16.msra.mxu1 %v2634_v26  ;;  %1980 = vmatpush.bf16.msra.mxu2 %v2762_v27  ;;  %v3082_v26 = vor.u32 %v3624_v14, %v3079_v15  ;;  %v3210_v27 = vor.u32 %v3656_v16, %v3207_v18  ;;  %v3640_v10 = vld [vmem:[#allocation2 + $0x56c] sm:$0xf]  ;;  %v3143_v13 = vld [vmem:[#allocation2 + $0x578] sm:$0xf0] }
  0xe4   :  { %1993 = vmatpush.bf16.msra.mxu3 %v2890_v36  ;;  %v3466_v36 = vor.u32 %v3720_v23, %v3463_v24  ;;  %v3672_v14 = vld [vmem:[#allocation2 + $0x66c] sm:$0xf]  ;;  %v3271_v15 = vld [vmem:[#allocation2 + $0x678] sm:$0xf0]  ;;  %v3146_v19 = vor.u32 %v3640_v10, %v3143_v13  ;;  %v2120_v10 = vld [vmem:[#allocation4 + $0x1f0] sm:$0xff] }
  0xe5   :  { %v3704_v16 = vld [vmem:[#allocation2 + $0x76c] sm:$0xf]  ;;  %v3274_v20 = vor.u32 %v3672_v14, %v3271_v15  ;;  %v3383_v31 = vld [vmem:[#allocation2 + $0x758] sm:$0xf0]  ;;  %v2152_v14 = vld [vmem:[#allocation4 + $0x2f0] sm:$0xff] }
  0xe6   :  { %1955 = vmatpush.bf16.msra.mxu0 %v2490_v49  ;;  %v3322_v49 = vor.u32 %v3684_v43, %v3319_v44  ;;  %v3636_v23 = vld [vmem:[#allocation2 + $0x54c] sm:$0xf]  ;;  %v2983_v46 = vld [vmem:[#allocation2 + $0x438] sm:$0xf0]  ;;  %v2084_v15 = vld [vmem:[#allocation4 + $0xd0] sm:$0xff] }
  0xe7   :  { %1968 = vmatpush.bf16.msra.mxu1 %v2618_v52  ;;  %1981 = vmatpush.bf16.msra.mxu2 %v2746_v53  ;;  %v3047_v52 = vld [vmem:[#allocation2 + $0x4b8] sm:$0xf0]  ;;  %v3648_v53 = vld [vmem:[#allocation2 + $0x5ac] sm:$0xf] }
  0xe8   :  { %1994 = vmatpush.bf16.msra.mxu3 %v2874_v58  ;;  %v3712_v58 = vld [vmem:[#allocation2 + $0x7ac] sm:$0xf]  ;;  %v3050_v60 = vor.u32 %v3616_v51, %v3047_v52  ;;  %v3178_v61 = vor.u32 %v3648_v53, %v3175_v55  ;;  %v3111_v51 = vld [vmem:[#allocation2 + $0x538] sm:$0xf0] }
  0xe9   :  { %v3434_v1 = vor.u32 %v3712_v58, %v3431_v59  ;;  %v3700_v30 = vld [vmem:[#allocation2 + $0x74c] sm:$0xf]  ;;  %v3239_v53 = vld [vmem:[#allocation2 + $0x638] sm:$0xf0] }
  0xea   :  { %1956 = vmatpush.bf16.msra.mxu0 %v2474_v0  ;;  %v3031_v0 = vld [vmem:[#allocation2 + $0x498] sm:$0xf0]  ;;  %v3600_v45 = vld [vmem:[#allocation2 + $0x42c] sm:$0xf] }
  0xeb   :  { %1969 = vmatpush.bf16.msra.mxu1 %v2602_v3  ;;  %1982 = vmatpush.bf16.msra.mxu2 %v2730_v4  ;;  %v3676_v3 = vld [vmem:[#allocation2 + $0x68c] sm:$0xf]  ;;  %v3287_v4 = vld [vmem:[#allocation2 + $0x698] sm:$0xf0]  ;;  %v2986_v56 = vor.u32 %v3600_v45, %v2983_v46  ;;  %v2138_v45 = vld [vmem:[#allocation4 + $0x280] sm:$0xff] }
  0xec   :  { %1995 = vmatpush.bf16.msra.mxu3 %v2858_v9  ;;  %v3290_v7 = vor.u32 %v3676_v3, %v3287_v4  ;;  %v3015_v9 = vld [vmem:[#allocation2 + $0x478] sm:$0xf0]  ;;  %v3664_v52 = vld [vmem:[#allocation2 + $0x62c] sm:$0xf]  ;;  %v2070_v46 = vld [vmem:[#allocation4 + $0x60] sm:$0xff] }
  0xed   :  { %v3018_v18 = vor.u32 %v3608_v8, %v3015_v9  ;;  %v3367_v55 = vld [vmem:[#allocation2 + $0x738] sm:$0xf0]  ;;  %v3242_v58 = vor.u32 %v3664_v52, %v3239_v53  ;;  %v3596_v59 = vld [vmem:[#allocation2 + $0x40c] sm:$0xf]  ;;  %v2088_v8 = vld [vmem:[#allocation4 + $0xf0] sm:$0xff] }
  0xee   :  { %1957 = vmatpush.bf16.msra.mxu0 %v2458_v17  ;;  %v3895_v6 = vpop.f32.mrf.mxu0  ;;  %v3399_v17 = vld [vmem:[#allocation2 + $0x778] sm:$0xf0]  ;;  %v3692_v3 = vld [vmem:[#allocation2 + $0x70c] sm:$0xf]  ;;  %v2136_v52 = vld [vmem:[#allocation4 + $0x270] sm:$0xff] }
  0xef   :  { %1970 = vmatpush.bf16.msra.mxu1 %v2586_v21  ;;  %1983 = vmatpush.bf16.msra.mxu2 %v2714_v22  ;;  %v3604_v21 = vld [vmem:[#allocation2 + $0x44c] sm:$0xf]  ;;  %v2999_v22 = vld [vmem:[#allocation2 + $0x458] sm:$0xf0]  ;;  %v2068_v53 = vld [vmem:[#allocation4 + $0x50] sm:$0xff] }
  0xf0   :  { %1996 = vmatpush.bf16.msra.mxu3 %v2842_v25  ;;  %v3402_v25 = vor.u32 %v3704_v16, %v3399_v17  ;;  %v3351_v4 = vld [vmem:[#allocation2 + $0x718] sm:$0xf0]  ;;  %v2150_v16 = vld [vmem:[#allocation4 + $0x2e0] sm:$0xff] }
  0xf1   :  { %1958 = vmatmul.bf16.vlgmr.msra.gmra.mxu0 %v3842_v34  ;;  %v3415_v34 = vld [vmem:[#allocation2 + $0x798] sm:$0xf0]  ;;  %v3897_v11 = vpop.f32.mrf.mxu1  ;;  %v2082_v17 = vld [vmem:[#allocation4 + $0xc0] sm:$0xff] }
  0xf2   :  { %2002 = vmatpush.bf16.msrb.mxu0 %v3082_v26  ;;  %1984 = vmatmul.bf16.vlgmr.msra.gmra.mxu2 %v3840_v33  ;;  %v3644_v33 = vld [vmem:[#allocation2 + $0x58c] sm:$0xf]  ;;  %v3418_v12 = vor.u32 %v3708_v5, %v3415_v34  ;;  %v3127_v26 = vld [vmem:[#allocation2 + $0x558] sm:$0xf0]  ;;  %v351_v5 = vperm.slane %v3882_v35, 1  ;;  %v2118_v35 = vld [vmem:[#allocation4 + $0x1e0] sm:$0xff] }
  0xf3   :  { %2015 = vmatpush.bf16.msrb.mxu1 %v3210_v27  ;;  %2028 = vmatpush.bf16.msrb.mxu2 %v3338_v28  ;;  %v3668_v27 = vld [vmem:[#allocation2 + $0x64c] sm:$0xf]  ;;  %v3255_v28 = vld [vmem:[#allocation2 + $0x658] sm:$0xf0]  ;;  %v3130_v43 = vor.u32 %v3636_v23, %v3127_v26  ;;  %v2076_v26 = vld [vmem:[#allocation4 + $0x90] sm:$0xff] }
  0xf4   :  { %2041 = vmatpush.bf16.msrb.mxu3 %v3466_v36  ;;  %1971 = vmatmul.bf16.vlgmr.msra.gmra.mxu1 %v3846_v42  ;;  %v3162_v42 = vor.u32 %v3644_v33, %v3159_v2  ;;  %v3002_v36 = vor.u32 %v3604_v21, %v2999_v22  ;;  %v3258_v44 = vor.u32 %v3668_v27, %v3255_v28  ;;  %v3660_v33 = vld [vmem:[#allocation2 + $0x60c] sm:$0xf]  ;;  %v2110_v22 = vld [vmem:[#allocation4 + $0x1a0] sm:$0xff] }
  0xf5   :  { %1997 = vmatmul.bf16.vlgmr.msra.gmra.mxu3 %v3844_v41  ;;  %v3034_v41 = vor.u32 %v3612_v63, %v3031_v0  ;;  %v3899_v24 = vpop.f32.mrf.mxu2  ;;  %v3095_v0 = vld [vmem:[#allocation2 + $0x518] sm:$0xf0]  ;;  %v1752_v9 = vadd.f32 %v3895_v6, %v351_v5  ;;  %v2116_v6 = vld [vmem:[#allocation4 + $0x1d0] sm:$0xff]  ;;  %v2142_v27 = vld [vmem:[#allocation4 + $0x2a0] sm:$0xff] }
  0xf6   :  { %2003 = vmatpush.bf16.msrb.mxu0 %v3066_v47  ;;  %v1753_v39 = vpop.f32.mrf.mxu0  ;;  %v3632_v47 = vld [vmem:[#allocation2 + $0x52c] sm:$0xf]  ;;  %v2074_v28 = vld [vmem:[#allocation4 + $0x80] sm:$0xff]  ;;  %v2092_v5 = vld [vmem:[#allocation4 + $0x110] sm:$0xff] }
  0xf7   :  { %2016 = vmatpush.bf16.msrb.mxu1 %v3194_v48  ;;  %2029 = vmatpush.bf16.msrb.mxu2 %v3322_v49  ;;  %v3386_v49 = vor.u32 %v3700_v30, %v3383_v31  ;;  %v3114_v57 = vor.u32 %v3632_v47, %v3111_v51  ;;  %v1765_v13 = vadd.f32 %v3897_v11, %v1752_v9  ;;  %v2080_v11 = vld [vmem:[#allocation4 + $0xb0] sm:$0xff]  ;;  %v2106_v30 = vld [vmem:[#allocation4 + $0x180] sm:$0xff]  ;;  %v2089_v9 = vld [vmem:[#allocation4 + $0xf8] sm:$0xff] }
  0xf8   :  { %2042 = vmatpush.bf16.msrb.mxu3 %v3450_v54  ;;  %v3901_v29 = vpop.f32.mrf.mxu3  ;;  %v3696_v54 = vld [vmem:[#allocation2 + $0x72c] sm:$0xf]  ;;  %v2140_v39 = vld [vmem:[#allocation4 + $0x290] sm:$0xff] }
  0xf9   :  { %v1766_v48 = vpop.f32.mrf.mxu1  ;;  %v3370_v63 = vor.u32 %v3696_v54, %v3367_v55  ;;  %v2100_v54 = vld [vmem:[#allocation4 + $0x150] sm:$0xff]  ;;  %v2134_v55 = vld [vmem:[#allocation4 + $0x260] sm:$0xff] }
  0xfa   :  { %2004 = vmatpush.bf16.msrb.mxu0 %v3050_v60  ;;  %v2967_v60 = vld [vmem:[#allocation2 + $0x418] sm:$0xf0]  ;;  %v2102_v48 = vld [vmem:[#allocation4 + $0x160] sm:$0xff] }
  0xfb   :  { %2017 = vmatpush.bf16.msrb.mxu1 %v3178_v61  ;;  %2030 = vmatpush.bf16.msrb.mxu2 %v3306_v62  ;;  %v3628_v61 = vld [vmem:[#allocation2 + $0x50c] sm:$0xf]  ;;  %v2970_v34 = vor.u32 %v3596_v59, %v2967_v60  ;;  %v2132_v60 = vld [vmem:[#allocation4 + $0x250] sm:$0xff] }
  0xfc   :  { %2043 = vmatpush.bf16.msrb.mxu3 %v3434_v1  ;;  %v3223_v1 = vld [vmem:[#allocation2 + $0x618] sm:$0xf0] }
  0xfd   :  { %v1779_v62 = vpop.f32.mrf.mxu2 }
  0xfe   :  { %2005 = vmatpush.bf16.msrb.mxu0 %v3034_v41  ;;  %v3098_v41 = vor.u32 %v3628_v61, %v3095_v0  ;;  %v2064_v61 = vld [vmem:[#allocation4 + $0x30] sm:$0xff]  ;;  %v2130_v0 = vld [vmem:[#allocation4 + $0x240] sm:$0xff] }
  0xff   :  { %2018 = vmatpush.bf16.msrb.mxu1 %v3162_v42  ;;  %2031 = vmatpush.bf16.msrb.mxu2 %v3290_v7  ;;  %v3226_v42 = vor.u32 %v3660_v33, %v3223_v1  ;;  %v3354_v7 = vor.u32 %v3692_v3, %v3351_v4  ;;  %v2062_v33 = vld [vmem:[#allocation4 + $0x20] sm:$0xff]  ;;  %v2128_v3 = vld [vmem:[#allocation4 + $0x230] sm:$0xff] }
 0x100   :  { %2044 = vmatpush.bf16.msrb.mxu3 %v3418_v12  ;;  %v1792_v2 = vpop.f32.mrf.mxu3  ;;  %v2086_v12 = vld [vmem:[#allocation4 + $0xe0] sm:$0xff]  ;;  %v2060_v4 = vld [vmem:[#allocation4 + $0x10] sm:$0xff] }
 0x101   :  { %v2094_v2 = vld [vmem:[#allocation4 + $0x120] sm:$0xff] }
 0x102   :  { %2006 = vmatpush.bf16.msrb.mxu0 %v3018_v18  ;;  %v2114_v18 = vld [vmem:[#allocation4 + $0x1c0] sm:$0xff] }
 0x103   :  { %2019 = vmatpush.bf16.msrb.mxu1 %v3146_v19  ;;  %2032 = vmatpush.bf16.msrb.mxu2 %v3274_v20  ;;  %v2148_v19 = vld [vmem:[#allocation4 + $0x2d0] sm:$0xff]  ;;  %v2078_v20 = vld [vmem:[#allocation4 + $0xa0] sm:$0xff] }
 0x104   :  { %2045 = vmatpush.bf16.msrb.mxu3 %v3402_v25  ;;  %v2144_v25 = vld [vmem:[#allocation4 + $0x2b0] sm:$0xff] }
 0x106   :  { %2007 = vmatpush.bf16.msrb.mxu0 %v3002_v36 }
 0x107   :  { %2020 = vmatpush.bf16.msrb.mxu1 %v3130_v43  ;;  %2033 = vmatpush.bf16.msrb.mxu2 %v3258_v44  ;;  %v2072_v43 = vld [vmem:[#allocation4 + $0x70] sm:$0xff] }
 0x108   :  { %2046 = vmatpush.bf16.msrb.mxu3 %v3386_v49  ;;  %v2104_v44 = vld [vmem:[#allocation4 + $0x170] sm:$0xff] }
 0x10a   :  { %2008 = vmatpush.bf16.msrb.mxu0 %v2986_v56  ;;  %v2066_v56 = vld [vmem:[#allocation4 + $0x40] sm:$0xff] }
 0x10b   :  { %2021 = vmatpush.bf16.msrb.mxu1 %v3114_v57  ;;  %2034 = vmatpush.bf16.msrb.mxu2 %v3242_v58  ;;  %v2098_v57 = vld [vmem:[#allocation4 + $0x140] sm:$0xff] }
 0x10c   :  { %2047 = vmatpush.bf16.msrb.mxu3 %v3370_v63  ;;  %v2096_v63 = vld [vmem:[#allocation4 + $0x130] sm:$0xff] }
 0x10e   :  { %2009 = vmatpush.bf16.msrb.mxu0 %v2970_v34  ;;  %v2126_v34 = vld [vmem:[#allocation4 + $0x220] sm:$0xff] }
 0x10f   :  { %2022 = vmatpush.bf16.msrb.mxu1 %v3098_v41  ;;  %2035 = vmatpush.bf16.msrb.mxu2 %v3226_v42  ;;  %v2058_v41 = vld [vmem:[#allocation4] sm:$0xff] }
 0x110   :  { %2048 = vmatpush.bf16.msrb.mxu3 %v3354_v7  ;;  %v2090_v7 = vld [vmem:[#allocation4 + $0x100] sm:$0xff] }
 0x111   :  { %2010 = vmatmul.bf16.vlgmr.msrb.gmra.mxu0 %v3857_v37  ;;  %v1778_v37 = vadd.f32 %v3899_v24, %v1765_v13  ;;  %v1816_v23 = vpop.f32.mrf.mxu1  ;;  %v2108_v24 = vld [vmem:[#allocation4 + $0x190] sm:$0xff]  ;;  %v2119_v13 = vld [vmem:[#allocation4 + $0x1e8] sm:$0xff] }
 0x112   :  { %2192 = vmatpush.msra.mxu0 %v2088_v8  ;;  %2023 = vmatmul.bf16.vlgmr.msrb.gmra.mxu1 %v3861_v40  ;;  %v2112_v40 = vld [vmem:[#allocation4 + $0x1b0] sm:$0xff]  ;;  %v2054_v8 = vmax.f32 %v3889_v50, 0.0 }
 0x113   :  { %2212 = vmatpush.msra.mxu1 %v2120_v10  ;;  %2036 = vmatmul.bf16.vlgmr.msrb.gmra.mxu2 %v3855_v32  ;;  %v2146_v32 = vld [vmem:[#allocation4 + $0x2c0] sm:$0xff]  ;;  %v1791_v21 = vadd.f32 %v3901_v29, %v1778_v37  ;;  %v2121_v10 = vld [vmem:[#allocation4 + $0x1f8] sm:$0xff]  ;;  %v2115_v37 = vld [vmem:[#allocation4 + $0x1c8] sm:$0xff] }
 0x114   :  { %2049 = vmatmul.bf16.vlgmr.msrb.gmra.mxu3 %v3859_v38  ;;  %2193 = vmatpush.msra.mxu0 %v2086_v12  ;;  %v1803_v38 = vpop.f32.mrf.mxu0  ;;  %v2124_v12 = vld [vmem:[#allocation4 + $0x210] sm:$0xff] }
 0x115   :  { %2213 = vmatpush.msra.mxu1 %v2118_v35  ;;  %2232 = vmatpush.msra.mxu2 %v2152_v14  ;;  %v1804_v31 = vadd.f32 %v1803_v38, %v1791_v21  ;;  %v1829_v36 = vpop.f32.mrf.mxu2  ;;  %v2087_v35 = vld [vmem:[#allocation4 + $0xe8] sm:$0xff]  ;;  %v2122_v14 = vld [vmem:[#allocation4 + $0x200] sm:$0xff]  ;;  %v2164_v50 = vld [vmem:[#allocation4 + $0x350] sm:$0xff] }
 0x116   :  { %2194 = vmatpush.msra.mxu0 %v2084_v15  ;;  %v2085_v15 = vld [vmem:[#allocation4 + $0xd8] sm:$0xff]  ;;  %v2079_v38 = vld [vmem:[#allocation4 + $0xa8] sm:$0xff] }
 0x117   :  { %2214 = vmatpush.msra.mxu1 %v2116_v6  ;;  %2233 = vmatpush.msra.mxu2 %v2150_v16  ;;  %v1817_v49 = vadd.f32 %v1816_v23, %v1804_v31  ;;  %v2153_v6 = vld [vmem:[#allocation4 + $0x2f8] sm:$0xff]  ;;  %v2147_v21 = vld [vmem:[#allocation4 + $0x2c8] sm:$0xff] }
 0x118   :  { %2195 = vmatpush.msra.mxu0 %v2082_v17  ;;  %v1842_v29 = vpop.f32.mrf.mxu3  ;;  %v2117_v16 = vld [vmem:[#allocation4 + $0x1d8] sm:$0xff]  ;;  %v2083_v17 = vld [vmem:[#allocation4 + $0xc8] sm:$0xff] }
 0x119   :  { %2215 = vmatpush.msra.mxu1 %v2114_v18  ;;  %2234 = vmatpush.msra.mxu2 %v2148_v19  ;;  %v1818_v51 = vpop.f32.mrf.mxu1  ;;  %v1830_v58 = vadd.f32 %v1829_v36, %v1817_v49  ;;  %v2151_v18 = vld [vmem:[#allocation4 + $0x2e8] sm:$0xff]  ;;  %v2081_v19 = vld [vmem:[#allocation4 + $0xb8] sm:$0xff] }
 0x11a   :  { %2196 = vmatpush.msra.mxu0 %v2080_v11  ;;  %v2077_v23 = vld [vmem:[#allocation4 + $0x98] sm:$0xff]  ;;  %v2107_v31 = vld [vmem:[#allocation4 + $0x188] sm:$0xff] }
 0x11b   :  { %2216 = vmatpush.msra.mxu1 %v2112_v40  ;;  %2235 = vmatpush.msra.mxu2 %v2146_v32  ;;  %v3912_v1 = vadd.f32 %v1842_v29, %v1830_v58  ;;  %v2149_v40 = vld [vmem:[#allocation4 + $0x2d8] sm:$0xff]  ;;  %v2067_v58 = vld [vmem:[#allocation4 + $0x48] sm:$0xff] }
 0x11c   :  { %2197 = vmatpush.msra.mxu0 %v2078_v20  ;;  %v1805_v47 = vpop.f32.mrf.mxu0  ;;  %v2113_v32 = vld [vmem:[#allocation4 + $0x1b8] sm:$0xff] }
 0x11d   :  { %2217 = vmatpush.msra.mxu1 %v2110_v22  ;;  %2236 = vmatpush.msra.mxu2 %v2144_v25  ;;  %v1831_v59 = vpop.f32.mrf.mxu2  ;;  %v2055_v42 = vmax.f32 %v3912_v1, 0.0  ;;  %v2111_v22 = vld [vmem:[#allocation4 + $0x1a8] sm:$0xff]  ;;  %v2145_v25 = vld [vmem:[#allocation4 + $0x2b8] sm:$0xff]  ;;  %v2184_v47 = vld [vmem:[#allocation4 + $0x3f0] sm:$0xff] }
 0x11e   :  { %2198 = vmatpush.msra.mxu0 %v2076_v26  ;;  %v2109_v26 = vld [vmem:[#allocation4 + $0x198] sm:$0xff]  ;;  %2252 = vmatpush.msra.mxu3 %v2184_v47  ;;  %v2160_v1 = vld [vmem:[#allocation4 + $0x330] sm:$0xff] }
 0x11f   :  { %2218 = vmatpush.msra.mxu1 %v2108_v24  ;;  %2237 = vmatpush.msra.mxu2 %v2142_v27  ;;  %v2075_v27 = vld [vmem:[#allocation4 + $0x88] sm:$0xff]  ;;  %v2073_v36 = vld [vmem:[#allocation4 + $0x78] sm:$0xff] }
 0x120   :  { %2199 = vmatpush.msra.mxu0 %v2074_v28  ;;  %v1844_v62 = vpop.f32.mrf.mxu3  ;;  %v2105_v29 = vld [vmem:[#allocation4 + $0x178] sm:$0xff] }
 0x121   :  { %2219 = vmatpush.msra.mxu1 %v2106_v30  ;;  %2238 = vmatpush.msra.mxu2 %v2140_v39  ;;  %v2143_v30 = vld [vmem:[#allocation4 + $0x2a8] sm:$0xff]  ;;  %v3929_v49 = vld [vmem:[%s4050_s2] sm:$0xf] }
 0x122   :  { %2200 = vmatpush.msra.mxu0 %v2072_v43  ;;  %v2141_v43 = vld [vmem:[#allocation4 + $0x298] sm:$0xff]  ;;  %v352_v51 = vperm.slane %v3929_v49, 2 }
 0x123   :  { %2220 = vmatpush.msra.mxu1 %v2104_v44  ;;  %2239 = vmatpush.msra.mxu2 %v2138_v45  ;;  %v2071_v45 = vld [vmem:[#allocation4 + $0x68] sm:$0xff]  ;;  %v2173_v47 = vld [vmem:[#allocation4 + $0x398] sm:$0xff] }
 0x124   :  { %2201 = vmatpush.msra.mxu0 %v2070_v46  ;;  %v2139_v46 = vld [vmem:[#allocation4 + $0x288] sm:$0xff] }
 0x125   :  { %2221 = vmatpush.msra.mxu1 %v2102_v48  ;;  %2240 = vmatpush.msra.mxu2 %v2136_v52  ;;  %v2103_v48 = vld [vmem:[#allocation4 + $0x168] sm:$0xff]  ;;  %v2182_v52 = vld [vmem:[#allocation4 + $0x3e0] sm:$0xff] }
 0x126   :  { %2202 = vmatpush.msra.mxu0 %v2068_v53  ;;  %v2069_v53 = vld [vmem:[#allocation4 + $0x58] sm:$0xff]  ;;  %2253 = vmatpush.msra.mxu3 %v2182_v52  ;;  %v2171_v52 = vld [vmem:[#allocation4 + $0x388] sm:$0xff] }
 0x127   :  { %2222 = vmatpush.msra.mxu1 %v2100_v54  ;;  %2241 = vmatpush.msra.mxu2 %v2134_v55  ;;  %v2137_v54 = vld [vmem:[#allocation4 + $0x278] sm:$0xff] }
 0x128   :  { %2203 = vmatpush.msra.mxu0 %v2066_v56  ;;  %v2101_v55 = vld [vmem:[#allocation4 + $0x158] sm:$0xff] }
 0x129   :  { %2223 = vmatpush.msra.mxu1 %v2098_v57  ;;  %2242 = vmatpush.msra.mxu2 %v2132_v60  ;;  %v2180_v57 = vld [vmem:[#allocation4 + $0x3d0] sm:$0xff]  ;;  %v2135_v60 = vld [vmem:[#allocation4 + $0x268] sm:$0xff] }
 0x12a   :  { %2204 = vmatpush.msra.mxu0 %v2064_v61  ;;  %v2099_v61 = vld [vmem:[#allocation4 + $0x148] sm:$0xff]  ;;  %2254 = vmatpush.msra.mxu3 %v2180_v57 }
 0x12b   :  { %2224 = vmatpush.msra.mxu1 %v2096_v63  ;;  %2243 = vmatpush.msra.mxu2 %v2130_v0  ;;  %v2065_v63 = vld [vmem:[#allocation4 + $0x38] sm:$0xff] }
 0x12c   :  { %2205 = vmatpush.msra.mxu0 %v2062_v33  ;;  %v2133_v0 = vld [vmem:[#allocation4 + $0x258] sm:$0xff] }
 0x12d   :  { %2225 = vmatpush.msra.mxu1 %v2094_v2  ;;  %2244 = vmatpush.msra.mxu2 %v2128_v3  ;;  %v2097_v33 = vld [vmem:[#allocation4 + $0x138] sm:$0xff]  ;;  %v2063_v2 = vld [vmem:[#allocation4 + $0x28] sm:$0xff] }
 0x12e   :  { %2206 = vmatpush.msra.mxu0 %v2060_v4  ;;  %v1855_v11 = vpop.f32.mrf.mxu0  ;;  %v2131_v3 = vld [vmem:[#allocation4 + $0x248] sm:$0xff]  ;;  %v2178_v4 = vld [vmem:[#allocation4 + $0x3c0] sm:$0xff] }
 0x12f   :  { %2226 = vmatpush.msra.mxu1 %v2092_v5  ;;  %2245 = vmatpush.msra.mxu2 %v2126_v34  ;;  %v1856_v62 = vadd.f32 %v1855_v11, %v352_v51  ;;  %v2095_v34 = vld [vmem:[#allocation4 + $0x128] sm:$0xff] }
 0x130   :  { %2207 = vmatpush.msra.mxu0 %v2058_v41  ;;  %v2176_v41 = vld [vmem:[#allocation4 + $0x3b0] sm:$0xff]  ;;  %2255 = vmatpush.msra.mxu3 %v2178_v4  ;;  %v2155_v4 = vld [vmem:[#allocation4 + $0x308] sm:$0xff] }
 0x131   :  { %2227 = vmatpush.msra.mxu1 %v2090_v7  ;;  %2208 = vmatmul.f32.vlgmr.msra.gmra.mxu0 %v2054_v8  ;;  %v3920_v20 = vpop.f32.mrf.mxu1  ;;  %v2061_v7 = vld [vmem:[#allocation4 + $0x18] sm:$0xff] }
 0x132   :  { %2228 = vmatmul.f32.vlgmr.msra.gmra.mxu1 %v2055_v42  ;;  %2272 = vmatpush.msrb.mxu0 %v2089_v9  ;;  %v1869_v5 = vadd.f32 %v3920_v20, %v1856_v62  ;;  %v2129_v9 = vld [vmem:[#allocation4 + $0x238] sm:$0xff]  ;;  %v2166_v20 = vld [vmem:[#allocation4 + $0x360] sm:$0xff] }
 0x133   :  { %2292 = vmatpush.msrb.mxu1 %v2121_v10  ;;  %2246 = vmatpush.msra.mxu2 %v2124_v12  ;;  %v2093_v10 = vld [vmem:[#allocation4 + $0x118] sm:$0xff]  ;;  %v2174_v12 = vld [vmem:[#allocation4 + $0x3a0] sm:$0xff] }
 0x134   :  { %2273 = vmatpush.msrb.mxu0 %v2087_v35  ;;  %v2059_v35 = vld [vmem:[#allocation4 + $0x8] sm:$0xff]  ;;  %2256 = vmatpush.msra.mxu3 %v2176_v41  ;;  %v2161_v62 = vld [vmem:[#allocation4 + $0x338] sm:$0xff] }
 0x135   :  { %2293 = vmatpush.msrb.mxu1 %v2119_v13  ;;  %2247 = vmatpush.msra.mxu2 %v2122_v14  ;;  %v3922_v24 = vpop.f32.mrf.mxu2  ;;  %v2127_v13 = vld [vmem:[#allocation4 + $0x228] sm:$0xff] }
 0x136   :  { %2274 = vmatpush.msrb.mxu0 %v2085_v15  ;;  %v1857_v39 = vpop.f32.mrf.mxu0  ;;  %v1882_v14 = vadd.f32 %v3922_v24, %v1869_v5  ;;  %v2091_v15 = vld [vmem:[#allocation4 + $0x108] sm:$0xff]  ;;  %2257 = vmatpush.msra.mxu3 %v2174_v12  ;;  %v2158_v24 = vld [vmem:[#allocation4 + $0x320] sm:$0xff] }
 0x137   :  { %2312 = vmatpush.msrb.mxu2 %v2153_v6  ;;  %2294 = vmatpush.msrb.mxu1 %v2117_v16  ;;  %v2125_v6 = vld [vmem:[#allocation4 + $0x218] sm:$0xff]  ;;  %v2172_v16 = vld [vmem:[#allocation4 + $0x390] sm:$0xff] }
 0x138   :  { %2275 = vmatpush.msrb.mxu0 %v2083_v17  ;;  %v3924_v28 = vpop.f32.mrf.mxu3  ;;  %v2123_v17 = vld [vmem:[#allocation4 + $0x208] sm:$0xff]  ;;  %2258 = vmatpush.msra.mxu3 %v2172_v16  ;;  %v2185_v39 = vld [vmem:[#allocation4 + $0x3f8] sm:$0xff] }
 0x139   :  { %2313 = vmatpush.msrb.mxu2 %v2151_v18  ;;  %2295 = vmatpush.msrb.mxu1 %v2115_v37  ;;  %v1870_v44 = vpop.f32.mrf.mxu1  ;;  %v1895_v18 = vadd.f32 %v3924_v28, %v1882_v14  ;;  %v2170_v37 = vld [vmem:[#allocation4 + $0x380] sm:$0xff]  ;;  %v2156_v28 = vld [vmem:[#allocation4 + $0x310] sm:$0xff] }
 0x13a   :  { %2276 = vmatpush.msrb.mxu0 %v2081_v19  ;;  %v2168_v19 = vld [vmem:[#allocation4 + $0x370] sm:$0xff]  ;;  %2259 = vmatpush.msra.mxu3 %v2170_v37  ;;  %v2179_v44 = vld [vmem:[#allocation4 + $0x3c8] sm:$0xff] }
 0x13b   :  { %2314 = vmatpush.msrb.mxu2 %v2149_v40  ;;  %2296 = vmatpush.msrb.mxu1 %v2113_v32  ;;  %v2369_v37 = vld [vmem:[%s4053_s5 + $0x78] sm:$0xff] }
 0x13c   :  { %2277 = vmatpush.msrb.mxu0 %v2079_v38  ;;  %2260 = vmatpush.msra.mxu3 %v2168_v19  ;;  %v2368_v19 = vld [vmem:[%s4053_s5 + $0x70] sm:$0xff] }
 0x13d   :  { %2315 = vmatpush.msrb.mxu2 %v2147_v21  ;;  %2297 = vmatpush.msrb.mxu1 %v2111_v22  ;;  %v1883_v56 = vpop.f32.mrf.mxu2  ;;  %v2162_v21 = vld [vmem:[#allocation4 + $0x340] sm:$0xff] }
 0x13e   :  { %2278 = vmatpush.msrb.mxu0 %v2077_v23  ;;  %2261 = vmatpush.msra.mxu3 %v2166_v20  ;;  %v2167_v56 = vld [vmem:[#allocation4 + $0x368] sm:$0xff]  ;;  %v2383_v20 = vld [vmem:[%s4053_s5 + $0xe8] sm:$0xff] }
 0x13f   :  { %2316 = vmatpush.msrb.mxu2 %v2145_v25  ;;  %2298 = vmatpush.msrb.mxu1 %v2109_v26 }
 0x140   :  { %2279 = vmatpush.msrb.mxu0 %v2075_v27  ;;  %v1896_v59 = vpop.f32.mrf.mxu3  ;;  %2262 = vmatpush.msra.mxu3 %v2164_v50  ;;  %v2382_v50 = vld [vmem:[%s4053_s5 + $0xe0] sm:$0xff] }
 0x141   :  { %2317 = vmatpush.msrb.mxu2 %v2143_v30  ;;  %2299 = vmatpush.msrb.mxu1 %v2107_v31  ;;  %v2154_v31 = vld [vmem:[#allocation4 + $0x300] sm:$0xff] }
 0x142   :  { %2280 = vmatpush.msrb.mxu0 %v2073_v36  ;;  %2263 = vmatpush.msra.mxu3 %v2162_v21  ;;  %v2381_v21 = vld [vmem:[%s4053_s5 + $0xd8] sm:$0xff] }
 0x143   :  { %2318 = vmatpush.msrb.mxu2 %v2141_v43  ;;  %2300 = vmatpush.msrb.mxu1 %v2105_v29  ;;  %v2183_v43 = vld [vmem:[#allocation4 + $0x3e8] sm:$0xff]  ;;  %v2181_v29 = vld [vmem:[#allocation4 + $0x3d8] sm:$0xff] }
 0x144   :  { %2281 = vmatpush.msrb.mxu0 %v2071_v45  ;;  %2264 = vmatpush.msra.mxu3 %v2160_v1  ;;  %v2177_v45 = vld [vmem:[#allocation4 + $0x3b8] sm:$0xff]  ;;  %v2363_v1 = vld [vmem:[%s4053_s5 + $0x48] sm:$0xff] }
 0x145   :  { %2319 = vmatpush.msrb.mxu2 %v2139_v46  ;;  %2301 = vmatpush.msrb.mxu1 %v2103_v48  ;;  %v2175_v46 = vld [vmem:[#allocation4 + $0x3a8] sm:$0xff] }
 0x146   :  { %2282 = vmatpush.msrb.mxu0 %v2069_v53  ;;  %2265 = vmatpush.msra.mxu3 %v2158_v24  ;;  %v2361_v24 = vld [vmem:[%s4053_s5 + $0x38] sm:$0xff] }
 0x147   :  { %2320 = vmatpush.msrb.mxu2 %v2137_v54  ;;  %2302 = vmatpush.msrb.mxu1 %v2101_v55  ;;  %v2169_v54 = vld [vmem:[#allocation4 + $0x378] sm:$0xff] }
 0x148   :  { %2283 = vmatpush.msrb.mxu0 %v2067_v58  ;;  %2266 = vmatpush.msra.mxu3 %v2156_v28  ;;  %v2165_v58 = vld [vmem:[#allocation4 + $0x358] sm:$0xff]  ;;  %v2360_v28 = vld [vmem:[%s4053_s5 + $0x30] sm:$0xff] }
 0x149   :  { %2321 = vmatpush.msrb.mxu2 %v2135_v60  ;;  %2303 = vmatpush.msrb.mxu1 %v2099_v61  ;;  %v2163_v60 = vld [vmem:[#allocation4 + $0x348] sm:$0xff]  ;;  %v353_v61 = vperm.slane %v3929_v49, 3 }
 0x14a   :  { %2284 = vmatpush.msrb.mxu0 %v2065_v63  ;;  %2267 = vmatpush.msra.mxu3 %v2154_v31  ;;  %v2358_v31 = vld [vmem:[%s4053_s5 + $0x20] sm:$0xff] }
 0x14b   :  { %2322 = vmatpush.msrb.mxu2 %v2133_v0  ;;  %2304 = vmatpush.msrb.mxu1 %v2097_v33  ;;  %v2159_v0 = vld [vmem:[#allocation4 + $0x328] sm:$0xff] }
 0x14c   :  { %2285 = vmatpush.msrb.mxu0 %v2063_v2  ;;  %2332 = vmatpush.msrb.mxu3 %v2185_v39  ;;  %v2157_v2 = vld [vmem:[#allocation4 + $0x318] sm:$0xff]  ;;  %v2356_v39 = vld [vmem:[%s4053_s5 + $0x10] sm:$0xff] }
 0x14d   :  { %2323 = vmatpush.msrb.mxu2 %v2131_v3  ;;  %2305 = vmatpush.msrb.mxu1 %v2095_v34 }
 0x14e   :  { %2286 = vmatpush.msrb.mxu0 %v2061_v7  ;;  %v1907_v11 = vpop.f32.mrf.mxu0  ;;  %2333 = vmatpush.msrb.mxu3 %v2183_v43  ;;  %v2376_v43 = vld [vmem:[%s4053_s5 + $0xb0] sm:$0xff] }
 0x14f   :  { %2324 = vmatpush.msrb.mxu2 %v2129_v9  ;;  %2306 = vmatpush.msrb.mxu1 %v2093_v10  ;;  %v1908_v40 = vadd.f32 %v1907_v11, %v1895_v18  ;;  %v2385_v11 = vld [vmem:[%s4053_s5 + $0xf8] sm:$0xff] }
 0x150   :  { %2287 = vmatpush.msrb.mxu0 %v2059_v35  ;;  %2334 = vmatpush.msrb.mxu3 %v2181_v29  ;;  %v2355_v29 = vld [vmem:[%s4053_s5 + $0x8] sm:$0xff] }
 0x151   :  { %2325 = vmatpush.msrb.mxu2 %v2127_v13  ;;  %2307 = vmatpush.msrb.mxu1 %v2091_v15  ;;  %v1920_v32 = vpop.f32.mrf.mxu1 }
 0x152   :  { %2288 = vmatmul.f32.vlgmr.msrb.gmra.mxu0 %v2054_v8  ;;  %2308 = vmatmul.f32.vlgmr.msrb.gmra.mxu1 %v2055_v42  ;;  %v1921_v38 = vadd.f32 %v1920_v32, %v1908_v40  ;;  %v2367_v40 = vld [vmem:[%s4053_s5 + $0x68] sm:$0xff]  ;;  %v2384_v32 = vld [vmem:[%s4053_s5 + $0xf0] sm:$0xff] }
 0x153   :  { %2326 = vmatpush.msrb.mxu2 %v2125_v6  ;;  %2335 = vmatpush.msrb.mxu3 %v2179_v44  ;;  %v2375_v44 = vld [vmem:[%s4053_s5 + $0xa8] sm:$0xff] }
 0x154   :  { %2390 = vmatpush.msra.mxu0 %v2369_v37  ;;  %2410 = vmatpush.msra.mxu1 %v2385_v11 }
 0x155   :  { %2327 = vmatpush.msrb.mxu2 %v2123_v17  ;;  %v1933_v8 = vpop.f32.mrf.mxu2  ;;  %2336 = vmatpush.msrb.mxu3 %v2177_v45  ;;  %v2354_v45 = vld [vmem:[%s4053_s5] sm:$0xff] }
 0x156   :  { %v1934_v22 = vadd.f32 %v1933_v8, %v1921_v38  ;;  %v1909_v25 = vpop.f32.mrf.mxu0  ;;  %2391 = vmatpush.msra.mxu0 %v2368_v19  ;;  %v2366_v38 = vld [vmem:[%s4053_s5 + $0x60] sm:$0xff]  ;;  %2411 = vmatpush.msra.mxu1 %v2384_v32  ;;  %v2365_v8 = vld [vmem:[%s4053_s5 + $0x58] sm:$0xff] }
 0x157   :  { %2337 = vmatpush.msrb.mxu3 %v2175_v46  ;;  %v2362_v25 = vld [vmem:[%s4053_s5 + $0x40] sm:$0xff] }
 0x158   :  { %v1946_v23 = vpop.f32.mrf.mxu3  ;;  %2392 = vmatpush.msra.mxu0 %v2367_v40  ;;  %2412 = vmatpush.msra.mxu1 %v2383_v20  ;;  %v2374_v46 = vld [vmem:[%s4053_s5 + $0xa0] sm:$0xff] }
 0x159   :  { %v1947_v42 = vadd.f32 %v1946_v23, %v1934_v22  ;;  %v1922_v26 = vpop.f32.mrf.mxu1  ;;  %2338 = vmatpush.msrb.mxu3 %v2173_v47  ;;  %v2364_v22 = vld [vmem:[%s4053_s5 + $0x50] sm:$0xff]  ;;  %v2373_v47 = vld [vmem:[%s4053_s5 + $0x98] sm:$0xff] }
 0x15a   :  { %2393 = vmatpush.msra.mxu0 %v2366_v38  ;;  %2413 = vmatpush.msra.mxu1 %v2382_v50  ;;  %v2380_v23 = vld [vmem:[%s4053_s5 + $0xd0] sm:$0xff]  ;;  %v2378_v26 = vld [vmem:[%s4053_s5 + $0xc0] sm:$0xff] }
 0x15b   :  { %v2056_v27 = vmax.f32 %v1947_v42, 0.0  ;;  %2339 = vmatpush.msrb.mxu3 %v2171_v52  ;;  %v2379_v42 = vld [vmem:[%s4053_s5 + $0xc8] sm:$0xff]  ;;  %v2370_v52 = vld [vmem:[%s4053_s5 + $0x80] sm:$0xff] }
 0x15c   :  { %2394 = vmatpush.msra.mxu0 %v2365_v8  ;;  %2414 = vmatpush.msra.mxu1 %v2381_v21 }
 0x15d   :  { %2248 = vmatmul.f32.vlgmr.msra.gmra.mxu2 %v2056_v27  ;;  %v1935_v30 = vpop.f32.mrf.mxu2  ;;  %2340 = vmatpush.msrb.mxu3 %v2169_v54 }
 0x15e   :  { %2395 = vmatpush.msra.mxu0 %v2364_v22  ;;  %2415 = vmatpush.msra.mxu1 %v2380_v23  ;;  %v2359_v30 = vld [vmem:[%s4053_s5 + $0x28] sm:$0xff] }
 0x15f   :  { %2341 = vmatpush.msrb.mxu3 %v2167_v56 }
 0x160   :  { %v1948_v36 = vpop.f32.mrf.mxu3  ;;  %2396 = vmatpush.msra.mxu0 %v2363_v1  ;;  %2416 = vmatpush.msra.mxu1 %v2379_v42 }
 0x161   :  { %2342 = vmatpush.msrb.mxu3 %v2165_v58  ;;  %v2357_v36 = vld [vmem:[%s4053_s5 + $0x18] sm:$0xff] }
 0x162   :  { %2397 = vmatpush.msra.mxu0 %v2362_v25  ;;  %2417 = vmatpush.msra.mxu1 %v2378_v26 }
 0x163   :  { %2343 = vmatpush.msrb.mxu3 %v2163_v60 }
 0x164   :  { %2398 = vmatpush.msra.mxu0 %v2361_v24 }
 0x165   :  { %2328 = vmatmul.f32.vlgmr.msrb.gmra.mxu2 %v2056_v27  ;;  %2344 = vmatpush.msrb.mxu3 %v2161_v62  ;;  %v2377_v27 = vld [vmem:[%s4053_s5 + $0xb8] sm:$0xff] }
 0x166   :  { %2418 = vmatpush.msra.mxu1 %v2377_v27  ;;  %2399 = vmatpush.msra.mxu0 %v2360_v28 }
 0x167   :  { %2345 = vmatpush.msrb.mxu3 %v2159_v0 }
 0x168   :  { %2400 = vmatpush.msra.mxu0 %v2359_v30  ;;  %2419 = vmatpush.msra.mxu1 %v2376_v43 }
 0x169   :  { %2346 = vmatpush.msrb.mxu3 %v2157_v2 }
 0x16a   :  { %2401 = vmatpush.msra.mxu0 %v2358_v31  ;;  %2420 = vmatpush.msra.mxu1 %v2375_v44 }
 0x16b   :  { %2347 = vmatpush.msrb.mxu3 %v2155_v4 }
 0x16c   :  { %2402 = vmatpush.msra.mxu0 %v2357_v36  ;;  %2421 = vmatpush.msra.mxu1 %v2374_v46 }
 0x16e   :  { %v1959_v48 = vpop.f32.mrf.mxu0  ;;  %2403 = vmatpush.msra.mxu0 %v2356_v39  ;;  %2422 = vmatpush.msra.mxu1 %v2373_v47 }
 0x16f   :  { %v1960_v3 = vadd.f32 %v1959_v48, %v353_v61  ;;  %v2372_v48 = vld [vmem:[%s4053_s5 + $0x90] sm:$0xff] }
 0x170   :  { %2404 = vmatpush.msra.mxu0 %v2355_v29  ;;  %2423 = vmatpush.msra.mxu1 %v2372_v48 }
 0x171   :  { %v1972_v51 = vpop.f32.mrf.mxu1 }
 0x172   :  { %v1973_v5 = vadd.f32 %v1972_v51, %v1960_v3  ;;  %2405 = vmatpush.msra.mxu0 %v2354_v45  ;;  %v2371_v51 = vld [vmem:[%s4053_s5 + $0x88] sm:$0xff] }
 0x173   :  { %2424 = vmatpush.msra.mxu1 %v2371_v51 }
 0x175   :  { %v1985_v53 = vpop.f32.mrf.mxu2  ;;  %2425 = vmatpush.msra.mxu1 %v2370_v52 }
 0x176   :  { %v1961_v57 = vpop.f32.mrf.mxu0  ;;  %v1986_v34 = vadd.f32 %v1985_v53, %v1973_v5  ;;  %v2186_v53 = vld [vmem:[%s4052_s4] sm:$0x3] }
 0x177   :  { %v2188_v54 = vperm.slane %v2186_v53, 0  ;;  %v2189_v60 = vperm.slane %v2186_v53, 1 }
 0x178   :  { %v1998_v55 = vpop.f32.mrf.mxu3 }
 0x179   :  { %v1974_v59 = vpop.f32.mrf.mxu1  ;;  %v1999_v41 = vadd.f32 %v1998_v55, %v1986_v34 }
 0x17d   :  { %v1987_v63 = vpop.f32.mrf.mxu2 }
 0x180   :  { %v2000_v33 = vpop.f32.mrf.mxu3 }
 0x18e   :  { %v2011_v7 = vpop.f32.mrf.mxu0 }
 0x18f   :  { %v2024_v9 = vpop.f32.mrf.mxu1  ;;  %v2012_v10 = vadd.f32 %v2011_v7, %v1999_v41 }
 0x191   :  { %v2025_v12 = vadd.f32 %v2024_v9, %v2012_v10  ;;  %v3727_v10 = vld [vmem:[%s4054_s6] ss:$0 sm:$0xff] }
 0x196   :  { %v2037_v49 = vpop.f32.mrf.mxu2  ;;  %v2013_v14 = vpop.f32.mrf.mxu0 }
 0x197   :  { %v2038_v35 = vadd.f32 %v2037_v49, %v2025_v12  ;;  %v2050_v13 = vpop.f32.mrf.mxu3  ;;  %v2026_v15 = vpop.f32.mrf.mxu1 }
 0x199   :  { %v2051_v6 = vadd.f32 %v2050_v13, %v2038_v35  ;;  %v3728_v35 = vld [vmem:[%s4055_s7] ss:$0 sm:$0xff] }
 0x19b   :  { %v2057_v16 = vmax.f32 %v2051_v6, 0.0 }
 0x19d   :  { %2268 = vmatmul.f32.vlgmr.msra.gmra.mxu3 %v2057_v16 }
 0x19e   :  { %v2039_v17 = vpop.f32.mrf.mxu2 }
 0x19f   :  { %v2052_v18 = vpop.f32.mrf.mxu3 }
 0x1a5   :  { %2348 = vmatmul.f32.vlgmr.msrb.gmra.mxu3 %v2057_v16 }
 0x1ae   :  { %v2209_v55 = vpop.f32.mrf.mxu0 }
 0x1af   :  { %v2210_v56 = vadd.f32 %v2209_v55, %v2188_v54  ;;  %v2229_v58 = vpop.f32.mrf.mxu1 }
 0x1b1   :  { %v2230_v59 = vadd.f32 %v2229_v58, %v2210_v56 }
 0x1cf   :  { %v2289_v61 = vpop.f32.mrf.mxu0  ;;  %v2309_v3 = vpop.f32.mrf.mxu1 }
 0x1d0   :  { %v2290_v0 = vadd.f32 %v2289_v61, %v2189_v60 }
 0x1d2   :  { %v2310_v5 = vadd.f32 %v2309_v3, %v2290_v0 }
 0x1e0   :  { %v2249_v57 = vpop.f32.mrf.mxu2 }
 0x1e1   :  { %v2250_v62 = vadd.f32 %v2249_v57, %v2230_v59 }
 0x1e8   :  { %v2329_v4 = vpop.f32.mrf.mxu2 }
 0x1e9   :  { %v2330_v34 = vadd.f32 %v2329_v4, %v2310_v5 }
 0x220   :  { %v2269_v63 = vpop.f32.mrf.mxu3 }
 0x221   :  { %v2270_v33 = vadd.f32 %v2269_v63, %v2250_v62 }
 0x223   :  { %v2352_v2 = vmax.f32 %v2270_v33, 0.0 }
 0x225   :  { %2406 = vmatmul.f32.vlgmr.msra.gmra.mxu0 %v2352_v2 }
 0x228   :  { %v2349_v41 = vpop.f32.mrf.mxu3 }
 0x229   :  { %v2350_v7 = vadd.f32 %v2349_v41, %v2330_v34 }
 0x22b   :  { %v2353_v9 = vmax.f32 %v2350_v7, 0.0 }
 0x22d   :  { %2426 = vmatmul.f32.vlgmr.msra.gmra.mxu1 %v2353_v9 }
 0x2a2   :  { %v2407_v12 = vpop.f32.mrf.mxu0 }
 0x2a3   :  { %v2408_v49 = vadd.f32 %v3727_v10, %v2407_v12 }
 0x2aa   :  { %v2427_v13 = vpop.f32.mrf.mxu1 }
 0x2ab   :  { %v2428_v14 = vadd.f32 %v2427_v13, %v2408_v49 }
 0x2ad   :  { %v2434_v15 = vadd.f32 %v3728_v35, %v2428_v14 }
 0x2af   :  { %2436 = vst.msk [vmem:[%s4056_s8] sm:$0x3] %vm2435_vm0, %v2434_v15 }
 0x2b0   :  { %2441 = vsyncpa [#allocation3], 1 }
 0x2b1   :  { %2442 = vsyncpa [#allocation5], 1 }

// kernel: pointnet_cls_forward.7
= control target key start
LH: loop header
LB: loop body
LE: loop exit
PB: predicated region body
PF: predicated region fallthrough
CT: control target
= control target key end

     0   :  { %12 = vsyncpa [#allocation3], 0  ;;  %s4091_s0 = inlined_call_operand.vmem [shape: f32[2,1024], index: 0, kind: input, shape index: {}]   ;;  %s4092_s1 = inlined_call_operand.hbm [shape: bf16[1024,512], index: 1, kind: input, shape index: {}]   ;;  %s4093_s2 = inlined_call_operand.vmem [shape: f32[1,512], index: 2, kind: input, shape index: {}]   ;;  %s4094_s3 = inlined_call_operand.hbm [shape: f32[512,256], index: 3, kind: input, shape index: {}]   ;;  %s4095_s4 = inlined_call_operand.vmem [shape: f32[1,256], index: 4, kind: input, shape index: {}]   ;;  %s4096_s5 = inlined_call_operand.vmem [shape: f32[256,2], index: 5, kind: input, shape index: {}]   ;;  %s4097_s6 = inlined_call_operand.vmem [shape: f32[1,2], index: 6, kind: input, shape index: {}]   ;;  %s4098_s7 = inlined_call_operand.hbm [shape: f32[2,2], index: 7, kind: output, shape index: {}]  }
   0x1   :  { %13 = vsyncpa [#allocation6], 0 }
   0x2   :  { %14 = vsyncpa [#allocation4], 0  ;;  %s21_s26 = sshll.u32 %s4092_s1, 4  ;;  %s3829_s27 = smov [#allocation2]   ;;  %s22_s26 = int_to_ptr.hbm [resolvable:$true] %s21_s26 }
   0x3   :  { %s23_s28 = sshll.u32 %s3829_s27, 4  ;;  %s36_s8 = sshll.u32 %s4094_s3, 4  ;;  %s24_s28 = int_to_ptr.vmem [resolvable:$true] %s23_s28  ;;  %s37_s8 = int_to_ptr.hbm [resolvable:$true] %s36_s8 }
   0x4   :  { %s3830_s9 = smov 256   ;;  %s3831_s10 = smov 16  }
   0x5   :  { %29 = dma.hbm_to_vmem [thread:$0]  %s22_s26, 32768, %s24_s28, [#allocation3], %s3830_s9, %s3830_s9, %s3831_s10  }
   0x6   :  { %s3832_s11 = smov [#allocation5]  }
   0x7   :  { %s38_s12 = sshll.u32 %s3832_s11, 4  ;;  %s39_s12 = int_to_ptr.vmem [resolvable:$true] %s38_s12 }
   0x8   :  { %44 = dma.hbm_to_vmem [thread:$0]  %s37_s8, 16384, %s39_s12, [#allocation6], %s3830_s9, %s3830_s9, %s3831_s10  }
   0x9   :  { %3823 = dma.done.wait [#allocation3], 32768  }
   0xa   :  { %3824 = vsyncadd [#allocation3], 4294934528 }
   0xb   :  { %3825 = dma.done.wait [#allocation6], 16384  }
   0xc   :  { %3826 = vsyncadd [#allocation6], 4294950912  ;;  %v2574_v0 = vld [vmem:[#allocation2 + $0xe0] sm:$0xf]  ;;  %v3514_v1 = vld [vmem:[#allocation2 + $0xec] sm:$0xf0] }
   0xd   :  { %v2702_v2 = vld [vmem:[#allocation2 + $0x1e0] sm:$0xf]  ;;  %v2575_v3 = vor.u32 %v3514_v1, %v2574_v0  ;;  %v3546_v4 = vld [vmem:[#allocation2 + $0x1ec] sm:$0xf0]  ;;  %vm2428_vm0 = vcmask 9216   ;;  %s2449_s9 = sshll.u32 %s4098_s7, 4  ;;  %s2450_s9 = int_to_ptr.hbm [resolvable:$true] %s2449_s9 }
   0xe   :  { %v2830_v5 = vld [vmem:[#allocation2 + $0x2e0] sm:$0xf]  ;;  %v3578_v6 = vld [vmem:[#allocation2 + $0x2ec] sm:$0xf0]  ;;  %v2703_v7 = vor.u32 %v3546_v4, %v2702_v2 }
   0xf   :  { %v2831_v8 = vor.u32 %v3578_v6, %v2830_v5  ;;  %v2958_v9 = vld [vmem:[#allocation2 + $0x3e0] sm:$0xf]  ;;  %v3610_v10 = vld [vmem:[#allocation2 + $0x3ec] sm:$0xf0]  ;;  %1636 = vmatpush.bf16.msra.mxu0 %v2575_v3 }
  0x10   :  { %v2558_v11 = vld [vmem:[#allocation2 + $0xc0] sm:$0xf]  ;;  %v2959_v12 = vor.u32 %v3610_v10, %v2958_v9  ;;  %v3510_v13 = vld [vmem:[#allocation2 + $0xcc] sm:$0xf0]  ;;  %1649 = vmatpush.bf16.msra.mxu1 %v2703_v7 }
  0x11   :  { %v2686_v14 = vld [vmem:[#allocation2 + $0x1c0] sm:$0xf]  ;;  %v3542_v15 = vld [vmem:[#allocation2 + $0x1cc] sm:$0xf0]  ;;  %1662 = vmatpush.bf16.msra.mxu2 %v2831_v8  ;;  %v2559_v16 = vor.u32 %v3510_v13, %v2558_v11 }
  0x12   :  { %v2687_v17 = vor.u32 %v3542_v15, %v2686_v14  ;;  %v2814_v18 = vld [vmem:[#allocation2 + $0x2c0] sm:$0xf]  ;;  %v3574_v19 = vld [vmem:[#allocation2 + $0x2cc] sm:$0xf0]  ;;  %1675 = vmatpush.bf16.msra.mxu3 %v2959_v12 }
  0x13   :  { %v2942_v20 = vld [vmem:[#allocation2 + $0x3c0] sm:$0xf]  ;;  %v2815_v21 = vor.u32 %v3574_v19, %v2814_v18  ;;  %v3606_v22 = vld [vmem:[#allocation2 + $0x3cc] sm:$0xf0]  ;;  %1637 = vmatpush.bf16.msra.mxu0 %v2559_v16 }
  0x14   :  { %v2542_v23 = vld [vmem:[#allocation2 + $0xa0] sm:$0xf]  ;;  %v3506_v24 = vld [vmem:[#allocation2 + $0xac] sm:$0xf0]  ;;  %v2943_v25 = vor.u32 %v3606_v22, %v2942_v20  ;;  %1650 = vmatpush.bf16.msra.mxu1 %v2687_v17 }
  0x15   :  { %v2670_v26 = vld [vmem:[#allocation2 + $0x1a0] sm:$0xf]  ;;  %v3538_v27 = vld [vmem:[#allocation2 + $0x1ac] sm:$0xf0]  ;;  %v2543_v29 = vor.u32 %v3506_v24, %v2542_v23  ;;  %1663 = vmatpush.bf16.msra.mxu2 %v2815_v21 }
  0x16   :  { %v2798_v28 = vld [vmem:[#allocation2 + $0x2a0] sm:$0xf]  ;;  %v3570_v30 = vld [vmem:[#allocation2 + $0x2ac] sm:$0xf0]  ;;  %v2671_v33 = vor.u32 %v3538_v27, %v2670_v26  ;;  %1676 = vmatpush.bf16.msra.mxu3 %v2943_v25 }
  0x17   :  { %v2926_v31 = vld [vmem:[#allocation2 + $0x3a0] sm:$0xf]  ;;  %v3602_v32 = vld [vmem:[#allocation2 + $0x3ac] sm:$0xf0]  ;;  %v2799_v34 = vor.u32 %v3570_v30, %v2798_v28  ;;  %1638 = vmatpush.bf16.msra.mxu0 %v2543_v29 }
  0x18   :  { %v2526_v35 = vld [vmem:[#allocation2 + $0x80] sm:$0xf]  ;;  %v3502_v36 = vld [vmem:[#allocation2 + $0x8c] sm:$0xf0]  ;;  %v2927_v38 = vor.u32 %v3602_v32, %v2926_v31  ;;  %1651 = vmatpush.bf16.msra.mxu1 %v2671_v33 }
  0x19   :  { %v2654_v37 = vld [vmem:[#allocation2 + $0x180] sm:$0xf]  ;;  %v3534_v39 = vld [vmem:[#allocation2 + $0x18c] sm:$0xf0]  ;;  %v2527_v44 = vor.u32 %v3502_v36, %v2526_v35  ;;  %1664 = vmatpush.bf16.msra.mxu2 %v2799_v34 }
  0x1a   :  { %v2782_v40 = vld [vmem:[#allocation2 + $0x280] sm:$0xf]  ;;  %v3566_v41 = vld [vmem:[#allocation2 + $0x28c] sm:$0xf0]  ;;  %v2655_v45 = vor.u32 %v3534_v39, %v2654_v37  ;;  %1677 = vmatpush.bf16.msra.mxu3 %v2927_v38 }
  0x1b   :  { %v2910_v42 = vld [vmem:[#allocation2 + $0x380] sm:$0xf]  ;;  %v3598_v43 = vld [vmem:[#allocation2 + $0x38c] sm:$0xf0]  ;;  %v2783_v46 = vor.u32 %v3566_v41, %v2782_v40  ;;  %1639 = vmatpush.bf16.msra.mxu0 %v2527_v44 }
  0x1c   :  { %v2510_v47 = vld [vmem:[#allocation2 + $0x60] sm:$0xf]  ;;  %v3498_v48 = vld [vmem:[#allocation2 + $0x6c] sm:$0xf0]  ;;  %v2911_v50 = vor.u32 %v3598_v43, %v2910_v42  ;;  %1652 = vmatpush.bf16.msra.mxu1 %v2655_v45 }
  0x1d   :  { %v2638_v49 = vld [vmem:[#allocation2 + $0x160] sm:$0xf]  ;;  %v3530_v51 = vld [vmem:[#allocation2 + $0x16c] sm:$0xf0]  ;;  %v2511_v56 = vor.u32 %v3498_v48, %v2510_v47  ;;  %1665 = vmatpush.bf16.msra.mxu2 %v2783_v46 }
  0x1e   :  { %v2766_v52 = vld [vmem:[#allocation2 + $0x260] sm:$0xf]  ;;  %v3562_v53 = vld [vmem:[#allocation2 + $0x26c] sm:$0xf0]  ;;  %v2639_v57 = vor.u32 %v3530_v51, %v2638_v49  ;;  %1678 = vmatpush.bf16.msra.mxu3 %v2911_v50 }
  0x1f   :  { %v2894_v54 = vld [vmem:[#allocation2 + $0x360] sm:$0xf]  ;;  %v3594_v55 = vld [vmem:[#allocation2 + $0x36c] sm:$0xf0]  ;;  %v2767_v58 = vor.u32 %v3562_v53, %v2766_v52  ;;  %1640 = vmatpush.bf16.msra.mxu0 %v2511_v56 }
  0x20   :  { %v2494_v59 = vld [vmem:[#allocation2 + $0x40] sm:$0xf]  ;;  %v3494_v60 = vld [vmem:[#allocation2 + $0x4c] sm:$0xf0]  ;;  %v2895_v62 = vor.u32 %v3594_v55, %v2894_v54  ;;  %1653 = vmatpush.bf16.msra.mxu1 %v2639_v57 }
  0x21   :  { %v2622_v61 = vld [vmem:[#allocation2 + $0x140] sm:$0xf]  ;;  %v3526_v63 = vld [vmem:[#allocation2 + $0x14c] sm:$0xf0]  ;;  %v2495_v4 = vor.u32 %v3494_v60, %v2494_v59  ;;  %1666 = vmatpush.bf16.msra.mxu2 %v2767_v58 }
  0x22   :  { %v2750_v0 = vld [vmem:[#allocation2 + $0x240] sm:$0xf]  ;;  %v3558_v1 = vld [vmem:[#allocation2 + $0x24c] sm:$0xf0]  ;;  %v2623_v5 = vor.u32 %v3526_v63, %v2622_v61  ;;  %1679 = vmatpush.bf16.msra.mxu3 %v2895_v62 }
  0x23   :  { %v2878_v2 = vld [vmem:[#allocation2 + $0x340] sm:$0xf]  ;;  %v3590_v3 = vld [vmem:[#allocation2 + $0x34c] sm:$0xf0]  ;;  %v2751_v6 = vor.u32 %v3558_v1, %v2750_v0  ;;  %1641 = vmatpush.bf16.msra.mxu0 %v2495_v4 }
  0x24   :  { %v2478_v7 = vld [vmem:[#allocation2 + $0x20] sm:$0xf]  ;;  %v3490_v8 = vld [vmem:[#allocation2 + $0x2c] sm:$0xf0]  ;;  %v2879_v10 = vor.u32 %v3590_v3, %v2878_v2  ;;  %1654 = vmatpush.bf16.msra.mxu1 %v2623_v5  ;;  %v59_v2 = vld [vmem:[%s4091_s0] sm:$0xff] }
  0x25   :  { %v2606_v9 = vld [vmem:[#allocation2 + $0x120] sm:$0xf]  ;;  %v3522_v11 = vld [vmem:[#allocation2 + $0x12c] sm:$0xf0]  ;;  %v2479_v16 = vor.u32 %v3490_v8, %v2478_v7  ;;  %1667 = vmatpush.bf16.msra.mxu2 %v2751_v6  ;;  %63 = vst [vmem:[#allocation1] ss:$4 sm:$0xff] %v59_v2 }
  0x26   :  { %v2734_v12 = vld [vmem:[#allocation2 + $0x220] sm:$0xf]  ;;  %v3554_v13 = vld [vmem:[#allocation2 + $0x22c] sm:$0xf0]  ;;  %v2607_v19 = vor.u32 %v3522_v11, %v2606_v9  ;;  %1680 = vmatpush.bf16.msra.mxu3 %v2879_v10 }
  0x27   :  { %v2862_v14 = vld [vmem:[#allocation2 + $0x320] sm:$0xf]  ;;  %v3586_v15 = vld [vmem:[#allocation2 + $0x32c] sm:$0xf0]  ;;  %v2735_v20 = vor.u32 %v3554_v13, %v2734_v12  ;;  %1642 = vmatpush.bf16.msra.mxu0 %v2479_v16 }
  0x28   :  { %v2462_v17 = vld [vmem:[#allocation2] sm:$0xf]  ;;  %v3486_v18 = vld [vmem:[#allocation2 + $0xc] sm:$0xf0]  ;;  %v2863_v24 = vor.u32 %v3586_v15, %v2862_v14  ;;  %1655 = vmatpush.bf16.msra.mxu1 %v2607_v19 }
  0x29   :  { %v2590_v21 = vld [vmem:[#allocation2 + $0x100] sm:$0xf]  ;;  %v3518_v22 = vld [vmem:[#allocation2 + $0x10c] sm:$0xf0]  ;;  %v2463_v31 = vor.u32 %v3486_v18, %v2462_v17  ;;  %1668 = vmatpush.bf16.msra.mxu2 %v2735_v20 }
  0x2a   :  { %v2718_v23 = vld [vmem:[#allocation2 + $0x200] sm:$0xf]  ;;  %v3550_v25 = vld [vmem:[#allocation2 + $0x20c] sm:$0xf0]  ;;  %v2591_v35 = vor.u32 %v3518_v22, %v2590_v21  ;;  %1681 = vmatpush.bf16.msra.mxu3 %v2863_v24 }
  0x2b   :  { %v2846_v26 = vld [vmem:[#allocation2 + $0x300] sm:$0xf]  ;;  %v3582_v27 = vld [vmem:[#allocation2 + $0x30c] sm:$0xf0]  ;;  %v2719_v36 = vor.u32 %v3550_v25, %v2718_v23  ;;  %1643 = vmatpush.bf16.msra.mxu0 %v2463_v31 }
  0x2c   :  { %v3086_v28 = vld [vmem:[#allocation2 + $0x4e0] sm:$0xf]  ;;  %v3642_v29 = vld [vmem:[#allocation2 + $0x4ec] sm:$0xf0]  ;;  %v2847_v39 = vor.u32 %v3582_v27, %v2846_v26  ;;  %1656 = vmatpush.bf16.msra.mxu1 %v2591_v35 }
  0x2d   :  { %v3214_v30 = vld [vmem:[#allocation2 + $0x5e0] sm:$0xf]  ;;  %v3674_v32 = vld [vmem:[#allocation2 + $0x5ec] sm:$0xf0]  ;;  %v3087_v40 = vor.u32 %v3642_v29, %v3086_v28  ;;  %1669 = vmatpush.bf16.msra.mxu2 %v2719_v36 }
  0x2e   :  { %v3342_v33 = vld [vmem:[#allocation2 + $0x6e0] sm:$0xf]  ;;  %v3706_v34 = vld [vmem:[#allocation2 + $0x6ec] sm:$0xf0]  ;;  %v3215_v41 = vor.u32 %v3674_v32, %v3214_v30  ;;  %1682 = vmatpush.bf16.msra.mxu3 %v2847_v39 }
  0x2f   :  { %v3470_v37 = vld [vmem:[#allocation2 + $0x7e0] sm:$0xf]  ;;  %v3738_v38 = vld [vmem:[#allocation2 + $0x7ec] sm:$0xf0]  ;;  %v3343_v42 = vor.u32 %v3706_v34, %v3342_v33  ;;  %1688 = vmatpush.bf16.msrb.mxu0 %v3087_v40 }
  0x30   :  { %v3070_v43 = vld [vmem:[#allocation2 + $0x4c0] sm:$0xf]  ;;  %v3638_v44 = vld [vmem:[#allocation2 + $0x4cc] sm:$0xf0]  ;;  %v3471_v46 = vor.u32 %v3738_v38, %v3470_v37  ;;  %1701 = vmatpush.bf16.msrb.mxu1 %v3215_v41 }
  0x31   :  { %v3198_v45 = vld [vmem:[#allocation2 + $0x5c0] sm:$0xf]  ;;  %v3670_v47 = vld [vmem:[#allocation2 + $0x5cc] sm:$0xf0]  ;;  %v3071_v52 = vor.u32 %v3638_v44, %v3070_v43  ;;  %1714 = vmatpush.bf16.msrb.mxu2 %v3343_v42 }
  0x32   :  { %v3326_v48 = vld [vmem:[#allocation2 + $0x6c0] sm:$0xf]  ;;  %v3702_v49 = vld [vmem:[#allocation2 + $0x6cc] sm:$0xf0]  ;;  %v3199_v53 = vor.u32 %v3670_v47, %v3198_v45  ;;  %1727 = vmatpush.bf16.msrb.mxu3 %v3471_v46 }
  0x33   :  { %v3454_v50 = vld [vmem:[#allocation2 + $0x7c0] sm:$0xf]  ;;  %v3734_v51 = vld [vmem:[#allocation2 + $0x7cc] sm:$0xf0]  ;;  %v3327_v54 = vor.u32 %v3702_v49, %v3326_v48  ;;  %1689 = vmatpush.bf16.msrb.mxu0 %v3071_v52 }
  0x34   :  { %v3054_v55 = vld [vmem:[#allocation2 + $0x4a0] sm:$0xf]  ;;  %v3634_v56 = vld [vmem:[#allocation2 + $0x4ac] sm:$0xf0]  ;;  %v3455_v58 = vor.u32 %v3734_v51, %v3454_v50  ;;  %1702 = vmatpush.bf16.msrb.mxu1 %v3199_v53 }
  0x35   :  { %v3182_v57 = vld [vmem:[#allocation2 + $0x5a0] sm:$0xf]  ;;  %v3666_v59 = vld [vmem:[#allocation2 + $0x5ac] sm:$0xf0]  ;;  %v3055_v0 = vor.u32 %v3634_v56, %v3054_v55  ;;  %1715 = vmatpush.bf16.msrb.mxu2 %v3327_v54 }
  0x36   :  { %v3310_v60 = vld [vmem:[#allocation2 + $0x6a0] sm:$0xf]  ;;  %v3698_v61 = vld [vmem:[#allocation2 + $0x6ac] sm:$0xf0]  ;;  %v3183_v3 = vor.u32 %v3666_v59, %v3182_v57  ;;  %1728 = vmatpush.bf16.msrb.mxu3 %v3455_v58 }
  0x37   :  { %v3438_v62 = vld [vmem:[#allocation2 + $0x7a0] sm:$0xf]  ;;  %v3730_v63 = vld [vmem:[#allocation2 + $0x7ac] sm:$0xf0]  ;;  %v3311_v4 = vor.u32 %v3698_v61, %v3310_v60  ;;  %1690 = vmatpush.bf16.msrb.mxu0 %v3055_v0 }
  0x38   :  { %v3038_v1 = vld [vmem:[#allocation2 + $0x480] sm:$0xf]  ;;  %v3630_v5 = vld [vmem:[#allocation2 + $0x48c] sm:$0xf0]  ;;  %v3439_v7 = vor.u32 %v3730_v63, %v3438_v62  ;;  %1703 = vmatpush.bf16.msrb.mxu1 %v3183_v3 }
  0x39   :  { %v3166_v6 = vld [vmem:[#allocation2 + $0x580] sm:$0xf]  ;;  %v3662_v8 = vld [vmem:[#allocation2 + $0x58c] sm:$0xf0]  ;;  %v3039_v13 = vor.u32 %v3630_v5, %v3038_v1  ;;  %1716 = vmatpush.bf16.msrb.mxu2 %v3311_v4 }
  0x3a   :  { %v3294_v9 = vld [vmem:[#allocation2 + $0x680] sm:$0xf]  ;;  %v3694_v10 = vld [vmem:[#allocation2 + $0x68c] sm:$0xf0]  ;;  %v3167_v15 = vor.u32 %v3662_v8, %v3166_v6  ;;  %1729 = vmatpush.bf16.msrb.mxu3 %v3439_v7  ;;  %v3512_v6 = vld [vmem:[#allocation2 + $0xe4] sm:$0xf] }
  0x3b   :  { %v3422_v11 = vld [vmem:[#allocation2 + $0x780] sm:$0xf]  ;;  %v3726_v12 = vld [vmem:[#allocation2 + $0x78c] sm:$0xf0]  ;;  %v3295_v16 = vor.u32 %v3694_v10, %v3294_v9  ;;  %1691 = vmatpush.bf16.msrb.mxu0 %v3039_v13  ;;  %v2576_v7 = vld [vmem:[#allocation2 + $0xf0] sm:$0xf0] }
  0x3c   :  { %v3022_v14 = vld [vmem:[#allocation2 + $0x460] sm:$0xf]  ;;  %v3626_v17 = vld [vmem:[#allocation2 + $0x46c] sm:$0xf0]  ;;  %v3423_v20 = vor.u32 %v3726_v12, %v3422_v11  ;;  %1704 = vmatpush.bf16.msrb.mxu1 %v3167_v15  ;;  %v3544_v8 = vld [vmem:[#allocation2 + $0x1e4] sm:$0xf] }
  0x3d   :  { %v3150_v18 = vld [vmem:[#allocation2 + $0x560] sm:$0xf]  ;;  %v3658_v19 = vld [vmem:[#allocation2 + $0x56c] sm:$0xf0]  ;;  %v3023_v27 = vor.u32 %v3626_v17, %v3022_v14  ;;  %1717 = vmatpush.bf16.msrb.mxu2 %v3295_v16  ;;  %v2704_v9 = vld [vmem:[#allocation2 + $0x1f0] sm:$0xf0] }
  0x3e   :  { %v3278_v21 = vld [vmem:[#allocation2 + $0x660] sm:$0xf]  ;;  %v3690_v22 = vld [vmem:[#allocation2 + $0x66c] sm:$0xf0]  ;;  %v3151_v28 = vor.u32 %v3658_v19, %v3150_v18  ;;  %1730 = vmatpush.bf16.msrb.mxu3 %v3423_v20  ;;  %v3576_v10 = vld [vmem:[#allocation2 + $0x2e4] sm:$0xf] }
  0x3f   :  { %v3406_v23 = vld [vmem:[#allocation2 + $0x760] sm:$0xf]  ;;  %v3722_v24 = vld [vmem:[#allocation2 + $0x76c] sm:$0xf0]  ;;  %v3279_v32 = vor.u32 %v3690_v22, %v3278_v21  ;;  %1692 = vmatpush.bf16.msrb.mxu0 %v3023_v27  ;;  %v2832_v12 = vld [vmem:[#allocation2 + $0x2f0] sm:$0xf0]  ;;  %v2579_v21 = vor.u32 %v3512_v6, %v2576_v7 }
  0x40   :  { %v3006_v25 = vld [vmem:[#allocation2 + $0x440] sm:$0xf]  ;;  %v3622_v26 = vld [vmem:[#allocation2 + $0x44c] sm:$0xf0]  ;;  %v3407_v37 = vor.u32 %v3722_v24, %v3406_v23  ;;  %1705 = vmatpush.bf16.msrb.mxu1 %v3151_v28  ;;  %v3608_v13 = vld [vmem:[#allocation2 + $0x3e4] sm:$0xf]  ;;  %v2707_v24 = vor.u32 %v3544_v8, %v2704_v9 }
  0x41   :  { %v3134_v29 = vld [vmem:[#allocation2 + $0x540] sm:$0xf]  ;;  %v68_v30 = vld.sshfl [vmem:[#allocation1 + $0x10] sm:$0xff pattern:$0x73625140]  ;;  %v3007_v45 = vor.u32 %v3622_v26, %v3006_v25  ;;  %1718 = vmatpush.bf16.msrb.mxu2 %v3279_v32  ;;  %v2835_v25 = vor.u32 %v3576_v10, %v2832_v12 }
  0x42   :  { %v66_v31 = vld.sshfl [vmem:[#allocation1] sm:$0xff pattern:$0x73625140]  ;;  %v3883_v33 = vpack.c.bf16 %v68_v30, %v68_v30  ;;  %v69_v35 = vld.sshfl [vmem:[#allocation1 + $0x18] sm:$0xff pattern:$0x73625140]  ;;  %1731 = vmatpush.bf16.msrb.mxu3 %v3407_v37 }
  0x43   :  { %v3885_v34 = vpack.c.bf16 %v66_v31, %v66_v31  ;;  %v67_v36 = vld.sshfl [vmem:[#allocation1 + $0x8] sm:$0xff pattern:$0x73625140]  ;;  %v3654_v38 = vld [vmem:[#allocation2 + $0x54c] sm:$0xf0]  ;;  %v3887_v41 = vpack.c.bf16 %v69_v35, %v69_v35  ;;  %1693 = vmatpush.bf16.msrb.mxu0 %v3007_v45 }
  0x44   :  { %v3262_v39 = vld [vmem:[#allocation2 + $0x640] sm:$0xf]  ;;  %v3686_v40 = vld [vmem:[#allocation2 + $0x64c] sm:$0xf0]  ;;  %v3889_v42 = vpack.c.bf16 %v67_v36, %v67_v36  ;;  %1670 = vmatmul.bf16.vlgmr.msra.gmra.mxu2 %v3883_v33  ;;  %v3135_v48 = vor.u32 %v3654_v38, %v3134_v29  ;;  %v2960_v14 = vld [vmem:[#allocation2 + $0x3f0] sm:$0xf0] }
  0x45   :  { %v3390_v43 = vld [vmem:[#allocation2 + $0x740] sm:$0xf]  ;;  %v3718_v44 = vld [vmem:[#allocation2 + $0x74c] sm:$0xf0]  ;;  %1644 = vmatmul.bf16.vlgmr.msra.gmra.mxu0 %v3885_v34  ;;  %1683 = vmatmul.bf16.vlgmr.msra.gmra.mxu3 %v3887_v41  ;;  %v3263_v49 = vor.u32 %v3686_v40, %v3262_v39  ;;  %v3508_v17 = vld [vmem:[#allocation2 + $0xc4] sm:$0xf]  ;;  %v2963_v28 = vor.u32 %v3608_v13, %v2960_v14 }
  0x46   :  { %v2990_v46 = vld [vmem:[#allocation2 + $0x420] sm:$0xf]  ;;  %v3618_v47 = vld [vmem:[#allocation2 + $0x42c] sm:$0xf0]  ;;  %v3391_v53 = vor.u32 %v3718_v44, %v3390_v43  ;;  %1657 = vmatmul.bf16.vlgmr.msra.gmra.mxu1 %v3889_v42  ;;  %v2560_v18 = vld [vmem:[#allocation2 + $0xd0] sm:$0xf0] }
  0x47   :  { %v3118_v50 = vld [vmem:[#allocation2 + $0x520] sm:$0xf]  ;;  %v3650_v51 = vld [vmem:[#allocation2 + $0x52c] sm:$0xf0]  ;;  %v2991_v59 = vor.u32 %v3618_v47, %v2990_v46  ;;  %1706 = vmatpush.bf16.msrb.mxu1 %v3135_v48  ;;  %1719 = vmatpush.bf16.msrb.mxu2 %v3263_v49  ;;  %v3540_v26 = vld [vmem:[#allocation2 + $0x1c4] sm:$0xf]  ;;  %v2563_v39 = vor.u32 %v3508_v17, %v2560_v18 }
  0x48   :  { %v60_v52 = vld [vmem:[%s4091_s0 + $0x8] sm:$0xff]  ;;  %v3682_v55 = vld [vmem:[#allocation2 + $0x62c] sm:$0xf0]  ;;  %v3119_v63 = vor.u32 %v3650_v51, %v3118_v50  ;;  %1732 = vmatpush.bf16.msrb.mxu3 %v3391_v53  ;;  %v2688_v29 = vld [vmem:[#allocation2 + $0x1d0] sm:$0xf0] }
  0x49   :  { %v3246_v54 = vld [vmem:[#allocation2 + $0x620] sm:$0xf]  ;;  %65 = vst [vmem:[#allocation1 + $0x20] ss:$4 sm:$0xff] %v60_v52  ;;  %v3714_v57 = vld [vmem:[#allocation2 + $0x72c] sm:$0xf0]  ;;  %1694 = vmatpush.bf16.msrb.mxu0 %v2991_v59  ;;  %v2691_v43 = vor.u32 %v3540_v26, %v2688_v29 }
  0x4a   :  { %v3374_v56 = vld [vmem:[#allocation2 + $0x720] sm:$0xf]  ;;  %v3614_v60 = vld [vmem:[#allocation2 + $0x40c] sm:$0xf0]  ;;  %v3247_v0 = vor.u32 %v3682_v55, %v3246_v54  ;;  %v3572_v30 = vld [vmem:[#allocation2 + $0x2c4] sm:$0xf] }
  0x4b   :  { %v2974_v58 = vld [vmem:[#allocation2 + $0x400] sm:$0xf]  ;;  %v3646_v62 = vld [vmem:[#allocation2 + $0x50c] sm:$0xf0]  ;;  %v3375_v4 = vor.u32 %v3714_v57, %v3374_v56  ;;  %1707 = vmatpush.bf16.msrb.mxu1 %v3119_v63  ;;  %v2816_v31 = vld [vmem:[#allocation2 + $0x2d0] sm:$0xf0] }
  0x4c   :  { %v3102_v61 = vld [vmem:[#allocation2 + $0x500] sm:$0xf]  ;;  %v3678_v2 = vld [vmem:[#allocation2 + $0x60c] sm:$0xf0]  ;;  %v2975_v11 = vor.u32 %v3614_v60, %v2974_v58  ;;  %1720 = vmatpush.bf16.msrb.mxu2 %v3247_v0  ;;  %v3604_v35 = vld [vmem:[#allocation2 + $0x3c4] sm:$0xf]  ;;  %v2819_v44 = vor.u32 %v3572_v30, %v2816_v31 }
  0x4d   :  { %v3230_v1 = vld [vmem:[#allocation2 + $0x600] sm:$0xf]  ;;  %v3710_v5 = vld [vmem:[#allocation2 + $0x70c] sm:$0xf0]  ;;  %v3103_v15 = vor.u32 %v3646_v62, %v3102_v61  ;;  %1733 = vmatpush.bf16.msrb.mxu3 %v3375_v4  ;;  %v2944_v36 = vld [vmem:[#allocation2 + $0x3d0] sm:$0xf0] }
  0x4e   :  { %v3358_v3 = vld [vmem:[#allocation2 + $0x700] sm:$0xf]  ;;  %v3231_v16 = vor.u32 %v3678_v2, %v3230_v1  ;;  %1695 = vmatpush.bf16.msrb.mxu0 %v2975_v11  ;;  %v3504_v45 = vld [vmem:[#allocation2 + $0xa4] sm:$0xf]  ;;  %v2544_v46 = vld [vmem:[#allocation2 + $0xb0] sm:$0xf0]  ;;  %v2947_v48 = vor.u32 %v3604_v35, %v2944_v36 }
  0x4f   :  { %v3359_v20 = vor.u32 %v3710_v5, %v3358_v3  ;;  %1708 = vmatpush.bf16.msrb.mxu1 %v3103_v15  ;;  %v3536_v47 = vld [vmem:[#allocation2 + $0x1a4] sm:$0xf]  ;;  %v2672_v49 = vld [vmem:[#allocation2 + $0x1b0] sm:$0xf0]  ;;  %v2547_v54 = vor.u32 %v3504_v45, %v2544_v46 }
  0x50   :  { %v72_v19 = vld.sshfl [vmem:[#allocation1 + $0x30] sm:$0xff pattern:$0x73625140]  ;;  %v70_v22 = vld.sshfl [vmem:[#allocation1 + $0x20] sm:$0xff pattern:$0x73625140]  ;;  %1721 = vmatpush.bf16.msrb.mxu2 %v3231_v16  ;;  %v2675_v55 = vor.u32 %v3536_v47, %v2672_v49 }
  0x51   :  { %v73_v23 = vld.sshfl [vmem:[#allocation1 + $0x38] sm:$0xff pattern:$0x73625140]  ;;  %v71_v27 = vld.sshfl [vmem:[#allocation1 + $0x28] sm:$0xff pattern:$0x73625140]  ;;  %v3898_v32 = vpack.c.bf16 %v72_v19, %v72_v19  ;;  %v3900_v37 = vpack.c.bf16 %v70_v22, %v70_v22  ;;  %1734 = vmatpush.bf16.msrb.mxu3 %v3359_v20 }
  0x52   :  { %v3902_v38 = vpack.c.bf16 %v73_v23, %v73_v23  ;;  %1740 = vmatpush.bf16.msra.mxu0 %v2579_v21  ;;  %v3904_v40 = vpack.c.bf16 %v71_v27, %v71_v27  ;;  %v3568_v50 = vld [vmem:[#allocation2 + $0x2a4] sm:$0xf]  ;;  %v2800_v51 = vld [vmem:[#allocation2 + $0x2b0] sm:$0xf0] }
  0x53   :  { %1753 = vmatpush.bf16.msra.mxu1 %v2707_v24  ;;  %v3600_v52 = vld [vmem:[#allocation2 + $0x3a4] sm:$0xf]  ;;  %v2928_v53 = vld [vmem:[#allocation2 + $0x3b0] sm:$0xf0]  ;;  %v2803_v56 = vor.u32 %v3568_v50, %v2800_v51 }
  0x54   :  { %1766 = vmatpush.bf16.msra.mxu2 %v2835_v25  ;;  %v3500_v57 = vld [vmem:[#allocation2 + $0x84] sm:$0xf]  ;;  %v2528_v58 = vld [vmem:[#allocation2 + $0x90] sm:$0xf0]  ;;  %v2931_v60 = vor.u32 %v3600_v52, %v2928_v53 }
  0x55   :  { %1779 = vmatpush.bf16.msra.mxu3 %v2963_v28  ;;  %1722 = vmatmul.bf16.vlgmr.msrb.gmra.mxu2 %v3898_v32  ;;  %v3532_v59 = vld [vmem:[#allocation2 + $0x184] sm:$0xf]  ;;  %v2656_v61 = vld [vmem:[#allocation2 + $0x190] sm:$0xf0]  ;;  %v2531_v2 = vor.u32 %v3500_v57, %v2528_v58 }
  0x56   :  { %1696 = vmatmul.bf16.vlgmr.msrb.gmra.mxu0 %v3900_v37  ;;  %1735 = vmatmul.bf16.vlgmr.msrb.gmra.mxu3 %v3902_v38  ;;  %v3564_v62 = vld [vmem:[#allocation2 + $0x284] sm:$0xf]  ;;  %v2784_v63 = vld [vmem:[#allocation2 + $0x290] sm:$0xf0]  ;;  %v2659_v3 = vor.u32 %v3532_v59, %v2656_v61 }
  0x57   :  { %1741 = vmatpush.bf16.msra.mxu0 %v2563_v39  ;;  %1709 = vmatmul.bf16.vlgmr.msrb.gmra.mxu1 %v3904_v40  ;;  %v3596_v0 = vld [vmem:[#allocation2 + $0x384] sm:$0xf]  ;;  %v2912_v1 = vld [vmem:[#allocation2 + $0x390] sm:$0xf0]  ;;  %v2787_v4 = vor.u32 %v3564_v62, %v2784_v63 }
  0x58   :  { %1754 = vmatpush.bf16.msra.mxu1 %v2691_v43  ;;  %1767 = vmatpush.bf16.msra.mxu2 %v2819_v44  ;;  %v3496_v5 = vld [vmem:[#allocation2 + $0x64] sm:$0xf]  ;;  %v2512_v6 = vld [vmem:[#allocation2 + $0x70] sm:$0xf0]  ;;  %v2915_v8 = vor.u32 %v3596_v0, %v2912_v1 }
  0x59   :  { %1780 = vmatpush.bf16.msra.mxu3 %v2947_v48  ;;  %v3528_v7 = vld [vmem:[#allocation2 + $0x164] sm:$0xf]  ;;  %v2640_v9 = vld [vmem:[#allocation2 + $0x170] sm:$0xf0]  ;;  %v2515_v14 = vor.u32 %v3496_v5, %v2512_v6 }
  0x5a   :  { %v3560_v10 = vld [vmem:[#allocation2 + $0x264] sm:$0xf]  ;;  %v2768_v11 = vld [vmem:[#allocation2 + $0x270] sm:$0xf0]  ;;  %v2643_v15 = vor.u32 %v3528_v7, %v2640_v9 }
  0x5b   :  { %1742 = vmatpush.bf16.msra.mxu0 %v2547_v54  ;;  %v3592_v12 = vld [vmem:[#allocation2 + $0x364] sm:$0xf]  ;;  %v2896_v13 = vld [vmem:[#allocation2 + $0x370] sm:$0xf0]  ;;  %v2771_v16 = vor.u32 %v3560_v10, %v2768_v11 }
  0x5c   :  { %1755 = vmatpush.bf16.msra.mxu1 %v2675_v55  ;;  %1768 = vmatpush.bf16.msra.mxu2 %v2803_v56  ;;  %v3492_v17 = vld [vmem:[#allocation2 + $0x44] sm:$0xf]  ;;  %v2496_v18 = vld [vmem:[#allocation2 + $0x50] sm:$0xf0]  ;;  %v2899_v20 = vor.u32 %v3592_v12, %v2896_v13 }
  0x5d   :  { %1781 = vmatpush.bf16.msra.mxu3 %v2931_v60  ;;  %v3524_v19 = vld [vmem:[#allocation2 + $0x144] sm:$0xf]  ;;  %v2624_v21 = vld [vmem:[#allocation2 + $0x150] sm:$0xf0]  ;;  %v2499_v26 = vor.u32 %v3492_v17, %v2496_v18 }
  0x5e   :  { %v3556_v22 = vld [vmem:[#allocation2 + $0x244] sm:$0xf]  ;;  %v2752_v23 = vld [vmem:[#allocation2 + $0x250] sm:$0xf0]  ;;  %v2627_v27 = vor.u32 %v3524_v19, %v2624_v21 }
  0x5f   :  { %1743 = vmatpush.bf16.msra.mxu0 %v2531_v2  ;;  %v3588_v24 = vld [vmem:[#allocation2 + $0x344] sm:$0xf]  ;;  %v2880_v25 = vld [vmem:[#allocation2 + $0x350] sm:$0xf0]  ;;  %v2755_v28 = vor.u32 %v3556_v22, %v2752_v23 }
  0x60   :  { %1756 = vmatpush.bf16.msra.mxu1 %v2659_v3  ;;  %1769 = vmatpush.bf16.msra.mxu2 %v2787_v4  ;;  %v3488_v29 = vld [vmem:[#allocation2 + $0x24] sm:$0xf]  ;;  %v2480_v30 = vld [vmem:[#allocation2 + $0x30] sm:$0xf0]  ;;  %v2883_v35 = vor.u32 %v3588_v24, %v2880_v25 }
  0x61   :  { %1782 = vmatpush.bf16.msra.mxu3 %v2915_v8  ;;  %v3520_v31 = vld [vmem:[#allocation2 + $0x124] sm:$0xf]  ;;  %v2608_v36 = vld [vmem:[#allocation2 + $0x130] sm:$0xf0]  ;;  %v2483_v46 = vor.u32 %v3488_v29, %v2480_v30 }
  0x62   :  { %v3552_v39 = vld [vmem:[#allocation2 + $0x224] sm:$0xf]  ;;  %v2736_v43 = vld [vmem:[#allocation2 + $0x230] sm:$0xf0]  ;;  %v2611_v49 = vor.u32 %v3520_v31, %v2608_v36 }
  0x63   :  { %1744 = vmatpush.bf16.msra.mxu0 %v2515_v14  ;;  %v3584_v44 = vld [vmem:[#allocation2 + $0x324] sm:$0xf]  ;;  %v2864_v45 = vld [vmem:[#allocation2 + $0x330] sm:$0xf0]  ;;  %v2739_v50 = vor.u32 %v3552_v39, %v2736_v43 }
  0x64   :  { %1757 = vmatpush.bf16.msra.mxu1 %v2643_v15  ;;  %1770 = vmatpush.bf16.msra.mxu2 %v2771_v16  ;;  %v3484_v47 = vld [vmem:[#allocation2 + $0x4] sm:$0xf]  ;;  %v2464_v48 = vld [vmem:[#allocation2 + $0x10] sm:$0xf0]  ;;  %v2867_v54 = vor.u32 %v3584_v44, %v2864_v45 }
  0x65   :  { %1783 = vmatpush.bf16.msra.mxu3 %v2899_v20  ;;  %v3516_v51 = vld [vmem:[#allocation2 + $0x104] sm:$0xf]  ;;  %v2592_v52 = vld [vmem:[#allocation2 + $0x110] sm:$0xf0]  ;;  %v2467_v61 = vor.u32 %v3484_v47, %v2464_v48 }
  0x66   :  { %v3548_v53 = vld [vmem:[#allocation2 + $0x204] sm:$0xf]  ;;  %v2720_v55 = vld [vmem:[#allocation2 + $0x210] sm:$0xf0]  ;;  %v2595_v1 = vor.u32 %v3516_v51, %v2592_v52 }
  0x67   :  { %1745 = vmatpush.bf16.msra.mxu0 %v2499_v26  ;;  %v3580_v56 = vld [vmem:[#allocation2 + $0x304] sm:$0xf]  ;;  %v2848_v57 = vld [vmem:[#allocation2 + $0x310] sm:$0xf0]  ;;  %v2723_v2 = vor.u32 %v3548_v53, %v2720_v55 }
  0x68   :  { %1758 = vmatpush.bf16.msra.mxu1 %v2627_v27  ;;  %1771 = vmatpush.bf16.msra.mxu2 %v2755_v28  ;;  %v3640_v58 = vld [vmem:[#allocation2 + $0x4e4] sm:$0xf]  ;;  %v3088_v59 = vld [vmem:[#allocation2 + $0x4f0] sm:$0xf0]  ;;  %v2851_v5 = vor.u32 %v3580_v56, %v2848_v57 }
  0x69   :  { %1784 = vmatpush.bf16.msra.mxu3 %v2883_v35  ;;  %v3672_v60 = vld [vmem:[#allocation2 + $0x5e4] sm:$0xf]  ;;  %v3216_v62 = vld [vmem:[#allocation2 + $0x5f0] sm:$0xf0]  ;;  %v3091_v6 = vor.u32 %v3640_v58, %v3088_v59 }
  0x6a   :  { %v3704_v63 = vld [vmem:[#allocation2 + $0x6e4] sm:$0xf]  ;;  %v3344_v0 = vld [vmem:[#allocation2 + $0x6f0] sm:$0xf0]  ;;  %v3219_v7 = vor.u32 %v3672_v60, %v3216_v62 }
  0x6b   :  { %1746 = vmatpush.bf16.msra.mxu0 %v2483_v46  ;;  %v3736_v3 = vld [vmem:[#allocation2 + $0x7e4] sm:$0xf]  ;;  %v3472_v4 = vld [vmem:[#allocation2 + $0x7f0] sm:$0xf0]  ;;  %v3347_v8 = vor.u32 %v3704_v63, %v3344_v0 }
  0x6c   :  { %1759 = vmatpush.bf16.msra.mxu1 %v2611_v49  ;;  %1772 = vmatpush.bf16.msra.mxu2 %v2739_v50  ;;  %v3636_v9 = vld [vmem:[#allocation2 + $0x4c4] sm:$0xf]  ;;  %v3072_v10 = vld [vmem:[#allocation2 + $0x4d0] sm:$0xf0]  ;;  %v3475_v12 = vor.u32 %v3736_v3, %v3472_v4 }
  0x6d   :  { %1785 = vmatpush.bf16.msra.mxu3 %v2867_v54  ;;  %v3668_v11 = vld [vmem:[#allocation2 + $0x5c4] sm:$0xf]  ;;  %v3200_v13 = vld [vmem:[#allocation2 + $0x5d0] sm:$0xf0]  ;;  %v3075_v18 = vor.u32 %v3636_v9, %v3072_v10 }
  0x6e   :  { %v3700_v14 = vld [vmem:[#allocation2 + $0x6c4] sm:$0xf]  ;;  %v3328_v15 = vld [vmem:[#allocation2 + $0x6d0] sm:$0xf0]  ;;  %v3203_v19 = vor.u32 %v3668_v11, %v3200_v13 }
  0x6f   :  { %1747 = vmatpush.bf16.msra.mxu0 %v2467_v61  ;;  %v3732_v16 = vld [vmem:[#allocation2 + $0x7c4] sm:$0xf]  ;;  %v3456_v17 = vld [vmem:[#allocation2 + $0x7d0] sm:$0xf0]  ;;  %v3331_v20 = vor.u32 %v3700_v14, %v3328_v15 }
  0x70   :  { %1760 = vmatpush.bf16.msra.mxu1 %v2595_v1  ;;  %1773 = vmatpush.bf16.msra.mxu2 %v2723_v2  ;;  %v3632_v21 = vld [vmem:[#allocation2 + $0x4a4] sm:$0xf]  ;;  %v3056_v22 = vld [vmem:[#allocation2 + $0x4b0] sm:$0xf0]  ;;  %v3459_v24 = vor.u32 %v3732_v16, %v3456_v17 }
  0x71   :  { %1786 = vmatpush.bf16.msra.mxu3 %v2851_v5  ;;  %v3664_v23 = vld [vmem:[#allocation2 + $0x5a4] sm:$0xf]  ;;  %v3184_v25 = vld [vmem:[#allocation2 + $0x5b0] sm:$0xf0]  ;;  %v3059_v30 = vor.u32 %v3632_v21, %v3056_v22 }
  0x72   :  { %v3696_v26 = vld [vmem:[#allocation2 + $0x6a4] sm:$0xf]  ;;  %v3312_v27 = vld [vmem:[#allocation2 + $0x6b0] sm:$0xf0]  ;;  %1748 = vmatmul.bf16.vlgmr.msra.gmra.mxu0 %v3885_v34  ;;  %v3187_v31 = vor.u32 %v3664_v23, %v3184_v25 }
  0x73   :  { %1792 = vmatpush.bf16.msrb.mxu0 %v3091_v6  ;;  %1774 = vmatmul.bf16.vlgmr.msra.gmra.mxu2 %v3883_v33  ;;  %v3728_v28 = vld [vmem:[#allocation2 + $0x7a4] sm:$0xf]  ;;  %v3440_v29 = vld [vmem:[#allocation2 + $0x7b0] sm:$0xf0]  ;;  %v3315_v35 = vor.u32 %v3696_v26, %v3312_v27 }
  0x74   :  { %1805 = vmatpush.bf16.msrb.mxu1 %v3219_v7  ;;  %1818 = vmatpush.bf16.msrb.mxu2 %v3347_v8  ;;  %v3628_v36 = vld [vmem:[#allocation2 + $0x484] sm:$0xf]  ;;  %v3040_v39 = vld [vmem:[#allocation2 + $0x490] sm:$0xf0]  ;;  %v3443_v44 = vor.u32 %v3728_v28, %v3440_v29 }
  0x75   :  { %1831 = vmatpush.bf16.msrb.mxu3 %v3475_v12  ;;  %1761 = vmatmul.bf16.vlgmr.msra.gmra.mxu1 %v3889_v42  ;;  %v3660_v43 = vld [vmem:[#allocation2 + $0x584] sm:$0xf]  ;;  %v3168_v45 = vld [vmem:[#allocation2 + $0x590] sm:$0xf0]  ;;  %v3043_v50 = vor.u32 %v3628_v36, %v3040_v39  ;;  %v2582_v39 = vld [vmem:[#allocation2 + $0xe8] sm:$0xf] }
  0x76   :  { %1787 = vmatmul.bf16.vlgmr.msra.gmra.mxu3 %v3887_v41  ;;  %v3692_v46 = vld [vmem:[#allocation2 + $0x684] sm:$0xf]  ;;  %v3296_v47 = vld [vmem:[#allocation2 + $0x690] sm:$0xf0]  ;;  %v3171_v51 = vor.u32 %v3660_v43, %v3168_v45  ;;  %v3515_v43 = vld [vmem:[#allocation2 + $0xf4] sm:$0xf0] }
  0x77   :  { %1793 = vmatpush.bf16.msrb.mxu0 %v3075_v18  ;;  %v3724_v48 = vld [vmem:[#allocation2 + $0x784] sm:$0xf]  ;;  %v3424_v49 = vld [vmem:[#allocation2 + $0x790] sm:$0xf0]  ;;  %v3299_v52 = vor.u32 %v3692_v46, %v3296_v47  ;;  %v3547_v46 = vld [vmem:[#allocation2 + $0x1f4] sm:$0xf0] }
  0x78   :  { %1806 = vmatpush.bf16.msrb.mxu1 %v3203_v19  ;;  %1819 = vmatpush.bf16.msrb.mxu2 %v3331_v20  ;;  %v3624_v53 = vld [vmem:[#allocation2 + $0x464] sm:$0xf]  ;;  %v3024_v54 = vld [vmem:[#allocation2 + $0x470] sm:$0xf0]  ;;  %v3427_v56 = vor.u32 %v3724_v48, %v3424_v49  ;;  %v2838_v47 = vld [vmem:[#allocation2 + $0x2e8] sm:$0xf] }
  0x79   :  { %1832 = vmatpush.bf16.msrb.mxu3 %v3459_v24  ;;  %v3656_v55 = vld [vmem:[#allocation2 + $0x564] sm:$0xf]  ;;  %v3152_v57 = vld [vmem:[#allocation2 + $0x570] sm:$0xf0]  ;;  %v3027_v62 = vor.u32 %v3624_v53, %v3024_v54  ;;  %v3579_v48 = vld [vmem:[#allocation2 + $0x2f4] sm:$0xf0]  ;;  %v2583_v54 = vor.u32 %v3515_v43, %v2582_v39 }
  0x7a   :  { %v3688_v58 = vld [vmem:[#allocation2 + $0x664] sm:$0xf]  ;;  %v3280_v59 = vld [vmem:[#allocation2 + $0x670] sm:$0xf0]  ;;  %v3155_v63 = vor.u32 %v3656_v55, %v3152_v57  ;;  %v2566_v57 = vld [vmem:[#allocation2 + $0xc8] sm:$0xf] }
  0x7b   :  { %1794 = vmatpush.bf16.msrb.mxu0 %v3059_v30  ;;  %v3720_v60 = vld [vmem:[#allocation2 + $0x764] sm:$0xf]  ;;  %v3408_v61 = vld [vmem:[#allocation2 + $0x770] sm:$0xf0]  ;;  %v3283_v0 = vor.u32 %v3688_v58, %v3280_v59  ;;  %v3511_v58 = vld [vmem:[#allocation2 + $0xd4] sm:$0xf0] }
  0x7c   :  { %1807 = vmatpush.bf16.msrb.mxu1 %v3187_v31  ;;  %1820 = vmatpush.bf16.msrb.mxu2 %v3315_v35  ;;  %v3620_v1 = vld [vmem:[#allocation2 + $0x444] sm:$0xf]  ;;  %v3008_v2 = vld [vmem:[#allocation2 + $0x450] sm:$0xf0]  ;;  %v3411_v4 = vor.u32 %v3720_v60, %v3408_v61  ;;  %v2694_v59 = vld [vmem:[#allocation2 + $0x1c8] sm:$0xf] }
  0x7d   :  { %1833 = vmatpush.bf16.msrb.mxu3 %v3443_v44  ;;  %v3652_v3 = vld [vmem:[#allocation2 + $0x544] sm:$0xf]  ;;  %v3136_v5 = vld [vmem:[#allocation2 + $0x550] sm:$0xf0]  ;;  %v3011_v10 = vor.u32 %v3620_v1, %v3008_v2  ;;  %v2710_v44 = vld [vmem:[#allocation2 + $0x1e8] sm:$0xf]  ;;  %v2567_v2 = vor.u32 %v3511_v58, %v2566_v57 }
  0x7e   :  { %v3684_v6 = vld [vmem:[#allocation2 + $0x644] sm:$0xf]  ;;  %v3264_v7 = vld [vmem:[#allocation2 + $0x650] sm:$0xf0]  ;;  %v3139_v11 = vor.u32 %v3652_v3, %v3136_v5  ;;  %v2711_v55 = vor.u32 %v3547_v46, %v2710_v44  ;;  %v3543_v61 = vld [vmem:[#allocation2 + $0x1d4] sm:$0xf0] }
  0x7f   :  { %1795 = vmatpush.bf16.msrb.mxu0 %v3043_v50  ;;  %v3716_v8 = vld [vmem:[#allocation2 + $0x744] sm:$0xf]  ;;  %v3392_v9 = vld [vmem:[#allocation2 + $0x750] sm:$0xf0]  ;;  %v3267_v12 = vor.u32 %v3684_v6, %v3264_v7  ;;  %v3607_v1 = vld [vmem:[#allocation2 + $0x3d4] sm:$0xf0]  ;;  %v2695_v3 = vor.u32 %v3543_v61, %v2694_v59 }
  0x80   :  { %1808 = vmatpush.bf16.msrb.mxu1 %v3171_v51  ;;  %1821 = vmatpush.bf16.msrb.mxu2 %v3299_v52  ;;  %v3616_v13 = vld [vmem:[#allocation2 + $0x424] sm:$0xf]  ;;  %v2992_v14 = vld [vmem:[#allocation2 + $0x430] sm:$0xf0]  ;;  %v3395_v16 = vor.u32 %v3716_v8, %v3392_v9  ;;  %v2966_v51 = vld [vmem:[#allocation2 + $0x3e8] sm:$0xf] }
  0x81   :  { %1834 = vmatpush.bf16.msrb.mxu3 %v3427_v56  ;;  %v3648_v15 = vld [vmem:[#allocation2 + $0x524] sm:$0xf]  ;;  %v3120_v17 = vld [vmem:[#allocation2 + $0x530] sm:$0xf0]  ;;  %v2995_v22 = vor.u32 %v3616_v13, %v2992_v14  ;;  %v3611_v52 = vld [vmem:[#allocation2 + $0x3f4] sm:$0xf0]  ;;  %v2839_v56 = vor.u32 %v3579_v48, %v2838_v47 }
  0x82   :  { %v3680_v18 = vld [vmem:[#allocation2 + $0x624] sm:$0xf]  ;;  %v3248_v19 = vld [vmem:[#allocation2 + $0x630] sm:$0xf0]  ;;  %v3123_v25 = vor.u32 %v3648_v15, %v3120_v17  ;;  %v2967_v60 = vor.u32 %v3611_v52, %v2966_v51  ;;  %v2550_v5 = vld [vmem:[#allocation2 + $0xa8] sm:$0xf] }
  0x83   :  { %1796 = vmatpush.bf16.msrb.mxu0 %v3027_v62  ;;  %v3712_v20 = vld [vmem:[#allocation2 + $0x724] sm:$0xf]  ;;  %v3376_v21 = vld [vmem:[#allocation2 + $0x730] sm:$0xf0]  ;;  %v3251_v26 = vor.u32 %v3680_v18, %v3248_v19  ;;  %v2822_v62 = vld [vmem:[#allocation2 + $0x2c8] sm:$0xf] }
  0x84   :  { %1809 = vmatpush.bf16.msrb.mxu1 %v3155_v63  ;;  %1822 = vmatpush.bf16.msrb.mxu2 %v3283_v0  ;;  %v3612_v23 = vld [vmem:[#allocation2 + $0x404] sm:$0xf]  ;;  %v2976_v24 = vld [vmem:[#allocation2 + $0x410] sm:$0xf0]  ;;  %v3379_v30 = vor.u32 %v3712_v20, %v3376_v21  ;;  %v3575_v63 = vld [vmem:[#allocation2 + $0x2d4] sm:$0xf0] }
  0x85   :  { %1835 = vmatpush.bf16.msrb.mxu3 %v3411_v4  ;;  %v3644_v27 = vld [vmem:[#allocation2 + $0x504] sm:$0xf]  ;;  %v3104_v28 = vld [vmem:[#allocation2 + $0x510] sm:$0xf0]  ;;  %v2979_v45 = vor.u32 %v3612_v23, %v2976_v24  ;;  %v2950_v0 = vld [vmem:[#allocation2 + $0x3c8] sm:$0xf]  ;;  %v2823_v4 = vor.u32 %v3575_v63, %v2822_v62 }
  0x86   :  { %v3676_v29 = vld [vmem:[#allocation2 + $0x604] sm:$0xf]  ;;  %v3232_v31 = vld [vmem:[#allocation2 + $0x610] sm:$0xf0]  ;;  %v3107_v49 = vor.u32 %v3644_v27, %v3104_v28  ;;  %v3507_v6 = vld [vmem:[#allocation2 + $0xb4] sm:$0xf0]  ;;  %v2951_v8 = vor.u32 %v3607_v1, %v2950_v0 }
  0x87   :  { %1797 = vmatpush.bf16.msrb.mxu0 %v3011_v10  ;;  %v3708_v35 = vld [vmem:[#allocation2 + $0x704] sm:$0xf]  ;;  %v3360_v36 = vld [vmem:[#allocation2 + $0x710] sm:$0xf0]  ;;  %v3235_v50 = vor.u32 %v3676_v29, %v3232_v31  ;;  %v2678_v7 = vld [vmem:[#allocation2 + $0x1a8] sm:$0xf]  ;;  %v2551_v14 = vor.u32 %v3507_v6, %v2550_v5 }
  0x88   :  { %1810 = vmatpush.bf16.msrb.mxu1 %v3139_v11  ;;  %1823 = vmatpush.bf16.msrb.mxu2 %v3267_v12  ;;  %v3363_v53 = vor.u32 %v3708_v35, %v3360_v36  ;;  %v3539_v9 = vld [vmem:[#allocation2 + $0x1b4] sm:$0xf0]  ;;  %v2806_v10 = vld [vmem:[#allocation2 + $0x2a8] sm:$0xf] }
  0x89   :  { %1836 = vmatpush.bf16.msrb.mxu3 %v3395_v16  ;;  %v3571_v11 = vld [vmem:[#allocation2 + $0x2b4] sm:$0xf0]  ;;  %v2934_v12 = vld [vmem:[#allocation2 + $0x3a8] sm:$0xf]  ;;  %v2679_v15 = vor.u32 %v3539_v9, %v2678_v7 }
  0x8a   :  { %v3603_v13 = vld [vmem:[#allocation2 + $0x3b4] sm:$0xf0]  ;;  %v2807_v16 = vor.u32 %v3571_v11, %v2806_v10  ;;  %v2534_v17 = vld [vmem:[#allocation2 + $0x88] sm:$0xf] }
  0x8b   :  { %1798 = vmatpush.bf16.msrb.mxu0 %v2995_v22  ;;  %v3503_v18 = vld [vmem:[#allocation2 + $0x94] sm:$0xf0]  ;;  %v2662_v19 = vld [vmem:[#allocation2 + $0x188] sm:$0xf]  ;;  %v2935_v20 = vor.u32 %v3603_v13, %v2934_v12 }
  0x8c   :  { %1811 = vmatpush.bf16.msrb.mxu1 %v3123_v25  ;;  %1824 = vmatpush.bf16.msrb.mxu2 %v3251_v26  ;;  %v3535_v21 = vld [vmem:[#allocation2 + $0x194] sm:$0xf0]  ;;  %v2790_v22 = vld [vmem:[#allocation2 + $0x288] sm:$0xf]  ;;  %v2535_v26 = vor.u32 %v3503_v18, %v2534_v17 }
  0x8d   :  { %1837 = vmatpush.bf16.msrb.mxu3 %v3379_v30  ;;  %v3567_v23 = vld [vmem:[#allocation2 + $0x294] sm:$0xf0]  ;;  %v2918_v24 = vld [vmem:[#allocation2 + $0x388] sm:$0xf]  ;;  %v2663_v27 = vor.u32 %v3535_v21, %v2662_v19 }
  0x8e   :  { %v3599_v25 = vld [vmem:[#allocation2 + $0x394] sm:$0xf0]  ;;  %v2791_v28 = vor.u32 %v3567_v23, %v2790_v22  ;;  %v2518_v29 = vld [vmem:[#allocation2 + $0x68] sm:$0xf] }
  0x8f   :  { %1799 = vmatpush.bf16.msrb.mxu0 %v2979_v45  ;;  %v3499_v30 = vld [vmem:[#allocation2 + $0x74] sm:$0xf0]  ;;  %v2646_v31 = vld [vmem:[#allocation2 + $0x168] sm:$0xf]  ;;  %v2919_v35 = vor.u32 %v3599_v25, %v2918_v24 }
  0x90   :  { %1812 = vmatpush.bf16.msrb.mxu1 %v3107_v49  ;;  %1825 = vmatpush.bf16.msrb.mxu2 %v3235_v50  ;;  %v3531_v36 = vld [vmem:[#allocation2 + $0x174] sm:$0xf0]  ;;  %v2774_v39 = vld [vmem:[#allocation2 + $0x268] sm:$0xf]  ;;  %v2519_v46 = vor.u32 %v3499_v30, %v2518_v29 }
  0x91   :  { %1838 = vmatpush.bf16.msrb.mxu3 %v3363_v53  ;;  %v3563_v43 = vld [vmem:[#allocation2 + $0x274] sm:$0xf0]  ;;  %v2902_v44 = vld [vmem:[#allocation2 + $0x368] sm:$0xf]  ;;  %v2647_v47 = vor.u32 %v3531_v36, %v2646_v31 }
  0x92   :  { %1800 = vmatmul.bf16.vlgmr.msrb.gmra.mxu0 %v3900_v37  ;;  %v3595_v45 = vld [vmem:[#allocation2 + $0x374] sm:$0xf0]  ;;  %v2775_v48 = vor.u32 %v3563_v43, %v2774_v39  ;;  %v2502_v49 = vld [vmem:[#allocation2 + $0x48] sm:$0xf] }
  0x93   :  { %1844 = vmatpush.bf16.msra.mxu0 %v2583_v54  ;;  %1826 = vmatmul.bf16.vlgmr.msrb.gmra.mxu2 %v3898_v32  ;;  %v3495_v50 = vld [vmem:[#allocation2 + $0x54] sm:$0xf0]  ;;  %v2630_v51 = vld [vmem:[#allocation2 + $0x148] sm:$0xf]  ;;  %v2903_v52 = vor.u32 %v3595_v45, %v2902_v44 }
  0x94   :  { %1857 = vmatpush.bf16.msra.mxu1 %v2711_v55  ;;  %1870 = vmatpush.bf16.msra.mxu2 %v2839_v56  ;;  %v3527_v53 = vld [vmem:[#allocation2 + $0x154] sm:$0xf0]  ;;  %v2758_v54 = vld [vmem:[#allocation2 + $0x248] sm:$0xf]  ;;  %v2503_v58 = vor.u32 %v3495_v50, %v2502_v49 }
  0x95   :  { %1883 = vmatpush.bf16.msra.mxu3 %v2967_v60  ;;  %1813 = vmatmul.bf16.vlgmr.msrb.gmra.mxu1 %v3904_v40  ;;  %v3559_v55 = vld [vmem:[#allocation2 + $0x254] sm:$0xf0]  ;;  %v2886_v56 = vld [vmem:[#allocation2 + $0x348] sm:$0xf]  ;;  %v2631_v59 = vor.u32 %v3527_v53, %v2630_v51 }
  0x96   :  { %1839 = vmatmul.bf16.vlgmr.msrb.gmra.mxu3 %v3902_v38  ;;  %v3591_v57 = vld [vmem:[#allocation2 + $0x354] sm:$0xf0]  ;;  %v2759_v60 = vor.u32 %v3559_v55, %v2758_v54  ;;  %v2486_v61 = vld [vmem:[#allocation2 + $0x28] sm:$0xf] }
  0x97   :  { %1845 = vmatpush.bf16.msra.mxu0 %v2567_v2  ;;  %v3491_v62 = vld [vmem:[#allocation2 + $0x34] sm:$0xf0]  ;;  %v2614_v63 = vld [vmem:[#allocation2 + $0x128] sm:$0xf]  ;;  %v2887_v0 = vor.u32 %v3591_v57, %v2886_v56 }
  0x98   :  { %1858 = vmatpush.bf16.msra.mxu1 %v2695_v3  ;;  %1871 = vmatpush.bf16.msra.mxu2 %v2823_v4  ;;  %v3523_v1 = vld [vmem:[#allocation2 + $0x134] sm:$0xf0]  ;;  %v2742_v2 = vld [vmem:[#allocation2 + $0x228] sm:$0xf]  ;;  %v2487_v6 = vor.u32 %v3491_v62, %v2486_v61 }
  0x99   :  { %1884 = vmatpush.bf16.msra.mxu3 %v2951_v8  ;;  %v3555_v3 = vld [vmem:[#allocation2 + $0x234] sm:$0xf0]  ;;  %v2870_v4 = vld [vmem:[#allocation2 + $0x328] sm:$0xf]  ;;  %v2615_v9 = vor.u32 %v3523_v1, %v2614_v63 }
  0x9a   :  { %v3587_v5 = vld [vmem:[#allocation2 + $0x334] sm:$0xf0]  ;;  %v2470_v7 = vld [vmem:[#allocation2 + $0x8] sm:$0xf]  ;;  %v2743_v10 = vor.u32 %v3555_v3, %v2742_v2 }
  0x9b   :  { %1846 = vmatpush.bf16.msra.mxu0 %v2551_v14  ;;  %v3487_v8 = vld [vmem:[#allocation2 + $0x14] sm:$0xf0]  ;;  %v2598_v11 = vld [vmem:[#allocation2 + $0x108] sm:$0xf]  ;;  %v2871_v14 = vor.u32 %v3587_v5, %v2870_v4 }
  0x9c   :  { %1859 = vmatpush.bf16.msra.mxu1 %v2679_v15  ;;  %1872 = vmatpush.bf16.msra.mxu2 %v2807_v16  ;;  %v3519_v12 = vld [vmem:[#allocation2 + $0x114] sm:$0xf0]  ;;  %v2726_v13 = vld [vmem:[#allocation2 + $0x208] sm:$0xf]  ;;  %v2471_v21 = vor.u32 %v3487_v8, %v2470_v7 }
  0x9d   :  { %1885 = vmatpush.bf16.msra.mxu3 %v2935_v20  ;;  %v3551_v15 = vld [vmem:[#allocation2 + $0x214] sm:$0xf0]  ;;  %v2854_v16 = vld [vmem:[#allocation2 + $0x308] sm:$0xf]  ;;  %v2599_v25 = vor.u32 %v3519_v12, %v2598_v11 }
  0x9e   :  { %v3583_v17 = vld [vmem:[#allocation2 + $0x314] sm:$0xf0]  ;;  %v3094_v18 = vld [vmem:[#allocation2 + $0x4e8] sm:$0xf] }
  0x9f   :  { %1847 = vmatpush.bf16.msra.mxu0 %v2535_v26  ;;  %v3643_v19 = vld [vmem:[#allocation2 + $0x4f4] sm:$0xf0]  ;;  %v3222_v20 = vld [vmem:[#allocation2 + $0x5e8] sm:$0xf]  ;;  %v2727_v26 = vor.u32 %v3551_v15, %v2726_v13  ;;  %v2855_v29 = vor.u32 %v3583_v17, %v2854_v16 }
  0xa0   :  { %1860 = vmatpush.bf16.msra.mxu1 %v2663_v27  ;;  %1873 = vmatpush.bf16.msra.mxu2 %v2791_v28  ;;  %v3675_v22 = vld [vmem:[#allocation2 + $0x5f4] sm:$0xf0]  ;;  %v3350_v23 = vld [vmem:[#allocation2 + $0x6e8] sm:$0xf]  ;;  %v3095_v30 = vor.u32 %v3643_v19, %v3094_v18 }
  0xa1   :  { %1886 = vmatpush.bf16.msra.mxu3 %v2919_v35  ;;  %v3707_v24 = vld [vmem:[#allocation2 + $0x6f4] sm:$0xf0]  ;;  %v3478_v27 = vld [vmem:[#allocation2 + $0x7e8] sm:$0xf]  ;;  %v3223_v31 = vor.u32 %v3675_v22, %v3222_v20 }
  0xa2   :  { %v3739_v28 = vld [vmem:[#allocation2 + $0x7f4] sm:$0xf0]  ;;  %v3351_v35 = vor.u32 %v3707_v24, %v3350_v23  ;;  %v3078_v36 = vld [vmem:[#allocation2 + $0x4c8] sm:$0xf] }
  0xa3   :  { %1848 = vmatpush.bf16.msra.mxu0 %v2519_v46  ;;  %v3639_v39 = vld [vmem:[#allocation2 + $0x4d4] sm:$0xf0]  ;;  %v3206_v43 = vld [vmem:[#allocation2 + $0x5c8] sm:$0xf]  ;;  %v3479_v44 = vor.u32 %v3739_v28, %v3478_v27 }
  0xa4   :  { %1861 = vmatpush.bf16.msra.mxu1 %v2647_v47  ;;  %1874 = vmatpush.bf16.msra.mxu2 %v2775_v48  ;;  %v3671_v45 = vld [vmem:[#allocation2 + $0x5d4] sm:$0xf0]  ;;  %v3334_v46 = vld [vmem:[#allocation2 + $0x6c8] sm:$0xf]  ;;  %v3079_v50 = vor.u32 %v3639_v39, %v3078_v36 }
  0xa5   :  { %1887 = vmatpush.bf16.msra.mxu3 %v2903_v52  ;;  %v3703_v47 = vld [vmem:[#allocation2 + $0x6d4] sm:$0xf0]  ;;  %v3462_v48 = vld [vmem:[#allocation2 + $0x7c8] sm:$0xf]  ;;  %v3207_v51 = vor.u32 %v3671_v45, %v3206_v43 }
  0xa6   :  { %v3735_v49 = vld [vmem:[#allocation2 + $0x7d4] sm:$0xf0]  ;;  %v3335_v52 = vor.u32 %v3703_v47, %v3334_v46  ;;  %v3062_v53 = vld [vmem:[#allocation2 + $0x4a8] sm:$0xf] }
  0xa7   :  { %1849 = vmatpush.bf16.msra.mxu0 %v2503_v58  ;;  %v3635_v54 = vld [vmem:[#allocation2 + $0x4b4] sm:$0xf0]  ;;  %v3190_v55 = vld [vmem:[#allocation2 + $0x5a8] sm:$0xf]  ;;  %v3463_v56 = vor.u32 %v3735_v49, %v3462_v48 }
  0xa8   :  { %1862 = vmatpush.bf16.msra.mxu1 %v2631_v59  ;;  %1875 = vmatpush.bf16.msra.mxu2 %v2759_v60  ;;  %v3667_v57 = vld [vmem:[#allocation2 + $0x5b4] sm:$0xf0]  ;;  %v3318_v58 = vld [vmem:[#allocation2 + $0x6a8] sm:$0xf]  ;;  %v3063_v62 = vor.u32 %v3635_v54, %v3062_v53 }
  0xa9   :  { %1888 = vmatpush.bf16.msra.mxu3 %v2887_v0  ;;  %v3699_v59 = vld [vmem:[#allocation2 + $0x6b4] sm:$0xf0]  ;;  %v3446_v60 = vld [vmem:[#allocation2 + $0x7a8] sm:$0xf]  ;;  %v3191_v63 = vor.u32 %v3667_v57, %v3190_v55 }
  0xaa   :  { %v3731_v61 = vld [vmem:[#allocation2 + $0x7b4] sm:$0xf0]  ;;  %v3319_v0 = vor.u32 %v3699_v59, %v3318_v58  ;;  %v3046_v1 = vld [vmem:[#allocation2 + $0x488] sm:$0xf] }
  0xab   :  { %1850 = vmatpush.bf16.msra.mxu0 %v2487_v6  ;;  %v3631_v2 = vld [vmem:[#allocation2 + $0x494] sm:$0xf0]  ;;  %v3174_v3 = vld [vmem:[#allocation2 + $0x588] sm:$0xf]  ;;  %v3447_v4 = vor.u32 %v3731_v61, %v3446_v60 }
  0xac   :  { %1863 = vmatpush.bf16.msra.mxu1 %v2615_v9  ;;  %1876 = vmatpush.bf16.msra.mxu2 %v2743_v10  ;;  %v3663_v5 = vld [vmem:[#allocation2 + $0x594] sm:$0xf0]  ;;  %v3302_v6 = vld [vmem:[#allocation2 + $0x688] sm:$0xf]  ;;  %v3047_v10 = vor.u32 %v3631_v2, %v3046_v1 }
  0xad   :  { %1889 = vmatpush.bf16.msra.mxu3 %v2871_v14  ;;  %v3695_v7 = vld [vmem:[#allocation2 + $0x694] sm:$0xf0]  ;;  %v3430_v8 = vld [vmem:[#allocation2 + $0x788] sm:$0xf]  ;;  %v3175_v11 = vor.u32 %v3663_v5, %v3174_v3 }
  0xae   :  { %v3727_v9 = vld [vmem:[#allocation2 + $0x794] sm:$0xf0]  ;;  %v3303_v12 = vor.u32 %v3695_v7, %v3302_v6  ;;  %v3030_v13 = vld [vmem:[#allocation2 + $0x468] sm:$0xf]  ;;  %v3513_v6 = vld [vmem:[#allocation2 + $0xec] sm:$0xf] }
  0xaf   :  { %1851 = vmatpush.bf16.msra.mxu0 %v2471_v21  ;;  %v3627_v14 = vld [vmem:[#allocation2 + $0x474] sm:$0xf0]  ;;  %v3158_v15 = vld [vmem:[#allocation2 + $0x568] sm:$0xf]  ;;  %v3431_v16 = vor.u32 %v3727_v9, %v3430_v8  ;;  %v2584_v7 = vld [vmem:[#allocation2 + $0xf8] sm:$0xf0] }
  0xb0   :  { %1864 = vmatpush.bf16.msra.mxu1 %v2599_v25  ;;  %1877 = vmatpush.bf16.msra.mxu2 %v2727_v26  ;;  %v3659_v17 = vld [vmem:[#allocation2 + $0x574] sm:$0xf0]  ;;  %v3286_v18 = vld [vmem:[#allocation2 + $0x668] sm:$0xf]  ;;  %v3031_v22 = vor.u32 %v3627_v14, %v3030_v13  ;;  %v3545_v8 = vld [vmem:[#allocation2 + $0x1ec] sm:$0xf] }
  0xb1   :  { %1890 = vmatpush.bf16.msra.mxu3 %v2855_v29  ;;  %v3691_v19 = vld [vmem:[#allocation2 + $0x674] sm:$0xf0]  ;;  %v3414_v20 = vld [vmem:[#allocation2 + $0x768] sm:$0xf]  ;;  %v3159_v24 = vor.u32 %v3659_v17, %v3158_v15  ;;  %v2840_v13 = vld [vmem:[#allocation2 + $0x2f8] sm:$0xf0] }
  0xb2   :  { %1852 = vmatmul.bf16.vlgmr.msra.gmra.mxu0 %v3885_v34  ;;  %v3723_v21 = vld [vmem:[#allocation2 + $0x774] sm:$0xf0]  ;;  %v3014_v23 = vld [vmem:[#allocation2 + $0x448] sm:$0xf]  ;;  %v3287_v25 = vor.u32 %v3691_v19, %v3286_v18  ;;  %v3609_v17 = vld [vmem:[#allocation2 + $0x3ec] sm:$0xf] }
  0xb3   :  { %1896 = vmatpush.bf16.msrb.mxu0 %v3095_v30  ;;  %1878 = vmatmul.bf16.vlgmr.msra.gmra.mxu2 %v3883_v33  ;;  %v3623_v26 = vld [vmem:[#allocation2 + $0x454] sm:$0xf0]  ;;  %v3142_v27 = vld [vmem:[#allocation2 + $0x548] sm:$0xf]  ;;  %v3415_v29 = vor.u32 %v3723_v21, %v3414_v20  ;;  %v2968_v18 = vld [vmem:[#allocation2 + $0x3f8] sm:$0xf0]  ;;  %v2587_v20 = vor.u32 %v3513_v6, %v2584_v7 }
  0xb4   :  { %1909 = vmatpush.bf16.msrb.mxu1 %v3223_v31  ;;  %1922 = vmatpush.bf16.msrb.mxu2 %v3351_v35  ;;  %v3655_v28 = vld [vmem:[#allocation2 + $0x554] sm:$0xf0]  ;;  %v3270_v30 = vld [vmem:[#allocation2 + $0x648] sm:$0xf]  ;;  %v3015_v43 = vor.u32 %v3623_v26, %v3014_v23  ;;  %v3541_v26 = vld [vmem:[#allocation2 + $0x1cc] sm:$0xf] }
  0xb5   :  { %1935 = vmatpush.bf16.msrb.mxu3 %v3479_v44  ;;  %1865 = vmatmul.bf16.vlgmr.msra.gmra.mxu1 %v3889_v42  ;;  %v3687_v31 = vld [vmem:[#allocation2 + $0x654] sm:$0xf0]  ;;  %v3398_v36 = vld [vmem:[#allocation2 + $0x748] sm:$0xf]  ;;  %v3143_v45 = vor.u32 %v3655_v28, %v3142_v27  ;;  %v2792_v6 = vld [vmem:[#allocation2 + $0x298] sm:$0xf0] }
  0xb6   :  { %1891 = vmatmul.bf16.vlgmr.msra.gmra.mxu3 %v3887_v41  ;;  %v3925_v35 = vld [vmem:[%s4093_s2] sm:$0xf]  ;;  %v2998_v44 = vld [vmem:[#allocation2 + $0x428] sm:$0xf]  ;;  %v3271_v46 = vor.u32 %v3687_v31, %v3270_v30  ;;  %v2696_v30 = vld [vmem:[#allocation2 + $0x1d8] sm:$0xf0] }
  0xb7   :  { %1897 = vmatpush.bf16.msrb.mxu0 %v3079_v50  ;;  %v3719_v39 = vld [vmem:[#allocation2 + $0x754] sm:$0xf0]  ;;  %v3126_v48 = vld [vmem:[#allocation2 + $0x528] sm:$0xf]  ;;  %v348_v49 = vperm.slane %v3925_v35, 0 }
  0xb8   :  { %1910 = vmatpush.bf16.msrb.mxu1 %v3207_v51  ;;  %1923 = vmatpush.bf16.msrb.mxu2 %v3335_v52  ;;  %v3619_v47 = vld [vmem:[#allocation2 + $0x434] sm:$0xf0]  ;;  %v3399_v50 = vor.u32 %v3719_v39, %v3398_v36  ;;  %v3254_v52 = vld [vmem:[#allocation2 + $0x628] sm:$0xf]  ;;  %v3573_v31 = vld [vmem:[#allocation2 + $0x2cc] sm:$0xf] }
  0xb9   :  { %1936 = vmatpush.bf16.msrb.mxu3 %v3463_v56  ;;  %v3651_v51 = vld [vmem:[#allocation2 + $0x534] sm:$0xf0]  ;;  %v3382_v54 = vld [vmem:[#allocation2 + $0x728] sm:$0xf]  ;;  %v2999_v56 = vor.u32 %v3619_v47, %v2998_v44  ;;  %v2824_v36 = vld [vmem:[#allocation2 + $0x2d8] sm:$0xf0]  ;;  %v2699_v47 = vor.u32 %v3541_v26, %v2696_v30 }
  0xba   :  { %v3683_v53 = vld [vmem:[#allocation2 + $0x634] sm:$0xf0]  ;;  %v2982_v57 = vld [vmem:[#allocation2 + $0x408] sm:$0xf]  ;;  %v3127_v60 = vor.u32 %v3651_v51, %v3126_v48  ;;  %v2952_v44 = vld [vmem:[#allocation2 + $0x3d8] sm:$0xf0]  ;;  %v2827_v48 = vor.u32 %v3573_v31, %v2824_v36 }
  0xbb   :  { %1898 = vmatpush.bf16.msrb.mxu0 %v3063_v62  ;;  %v3715_v55 = vld [vmem:[#allocation2 + $0x734] sm:$0xf0]  ;;  %v3255_v61 = vor.u32 %v3683_v53, %v3254_v52  ;;  %v3110_v62 = vld [vmem:[#allocation2 + $0x508] sm:$0xf]  ;;  %v3537_v51 = vld [vmem:[#allocation2 + $0x1ac] sm:$0xf] }
  0xbc   :  { %1911 = vmatpush.bf16.msrb.mxu1 %v3191_v63  ;;  %1924 = vmatpush.bf16.msrb.mxu2 %v3319_v0  ;;  %v3615_v58 = vld [vmem:[#allocation2 + $0x414] sm:$0xf0]  ;;  %v3238_v0 = vld [vmem:[#allocation2 + $0x608] sm:$0xf]  ;;  %v3383_v2 = vor.u32 %v3715_v55, %v3382_v54  ;;  %v2680_v54 = vld [vmem:[#allocation2 + $0x1b8] sm:$0xf0] }
  0xbd   :  { %1937 = vmatpush.bf16.msrb.mxu3 %v3447_v4  ;;  %v3647_v63 = vld [vmem:[#allocation2 + $0x514] sm:$0xf0]  ;;  %v3366_v4 = vld [vmem:[#allocation2 + $0x708] sm:$0xf]  ;;  %v3569_v55 = vld [vmem:[#allocation2 + $0x2ac] sm:$0xf] }
  0xbe   :  { %v3679_v3 = vld [vmem:[#allocation2 + $0x614] sm:$0xf0]  ;;  %v3111_v15 = vor.u32 %v3647_v63, %v3110_v62  ;;  %v3501_v63 = vld [vmem:[#allocation2 + $0x8c] sm:$0xf] }
  0xbf   :  { %1899 = vmatpush.bf16.msrb.mxu0 %v3047_v10  ;;  %v3711_v5 = vld [vmem:[#allocation2 + $0x714] sm:$0xf0]  ;;  %v2983_v10 = vor.u32 %v3615_v58, %v2982_v57  ;;  %v3601_v57 = vld [vmem:[#allocation2 + $0x3ac] sm:$0xf]  ;;  %v2936_v58 = vld [vmem:[#allocation2 + $0x3b8] sm:$0xf0] }
  0xc0   :  { %1912 = vmatpush.bf16.msrb.mxu1 %v3175_v11  ;;  %1925 = vmatpush.bf16.msrb.mxu2 %v3303_v12  ;;  %v2712_v11 = vld [vmem:[#allocation2 + $0x1f8] sm:$0xf0]  ;;  %v3577_v12 = vld [vmem:[#allocation2 + $0x2ec] sm:$0xf]  ;;  %v3367_v19 = vor.u32 %v3711_v5, %v3366_v4 }
  0xc1   :  { %1938 = vmatpush.bf16.msrb.mxu3 %v3431_v16  ;;  %v3239_v16 = vor.u32 %v3679_v3, %v3238_v0  ;;  %v2843_v23 = vor.u32 %v3577_v12, %v2840_v13  ;;  %v2536_v0 = vld [vmem:[#allocation2 + $0x98] sm:$0xf0]  ;;  %v2939_v3 = vor.u32 %v3601_v57, %v2936_v58  ;;  %v3565_v5 = vld [vmem:[#allocation2 + $0x28c] sm:$0xf] }
  0xc2   :  { %v1645_v59 = vpop.f32.mrf.mxu0  ;;  %v2664_v4 = vld [vmem:[#allocation2 + $0x198] sm:$0xf0]  ;;  %v3597_v7 = vld [vmem:[#allocation2 + $0x38c] sm:$0xf]  ;;  %v2795_v12 = vor.u32 %v3565_v5, %v2792_v6 }
  0xc3   :  { %1900 = vmatpush.bf16.msrb.mxu0 %v3031_v22  ;;  %v1646_v1 = vadd.f32 %v1645_v59, %v348_v49  ;;  %v1658_v9 = vpop.f32.mrf.mxu1  ;;  %v2715_v22 = vor.u32 %v3545_v8, %v2712_v11  ;;  %v3505_v49 = vld [vmem:[#allocation2 + $0xac] sm:$0xf]  ;;  %v2920_v8 = vld [vmem:[#allocation2 + $0x398] sm:$0xf0] }
  0xc4   :  { %1913 = vmatpush.bf16.msrb.mxu1 %v3159_v24  ;;  %1926 = vmatpush.bf16.msrb.mxu2 %v3287_v25  ;;  %v3509_v24 = vld [vmem:[#allocation2 + $0xcc] sm:$0xf]  ;;  %v2568_v25 = vld [vmem:[#allocation2 + $0xd8] sm:$0xf0] }
  0xc5   :  { %1939 = vmatpush.bf16.msrb.mxu3 %v3415_v29  ;;  %v1659_v14 = vadd.f32 %v1658_v9, %v1646_v1  ;;  %v2971_v29 = vor.u32 %v3609_v17, %v2968_v18  ;;  %v3533_v1 = vld [vmem:[#allocation2 + $0x18c] sm:$0xf]  ;;  %v2539_v9 = vor.u32 %v3501_v63, %v2536_v0  ;;  %v2923_v18 = vor.u32 %v3597_v7, %v2920_v8  ;;  %v2872_v63 = vld [vmem:[#allocation2 + $0x338] sm:$0xf0] }
  0xc6   :  { %v2667_v11 = vor.u32 %v3533_v1, %v2664_v4  ;;  %v3497_v13 = vld [vmem:[#allocation2 + $0x6c] sm:$0xf]  ;;  %v2600_v6 = vld [vmem:[#allocation2 + $0x118] sm:$0xf0] }
  0xc7   :  { %1901 = vmatpush.bf16.msrb.mxu0 %v3015_v43  ;;  %v1671_v21 = vpop.f32.mrf.mxu2  ;;  %v3605_v43 = vld [vmem:[#allocation2 + $0x3cc] sm:$0xf] }
  0xc8   :  { %1914 = vmatpush.bf16.msrb.mxu1 %v3143_v45  ;;  %1927 = vmatpush.bf16.msrb.mxu2 %v3271_v46  ;;  %v1672_v27 = vadd.f32 %v1671_v21, %v1659_v14  ;;  %v1684_v28 = vpop.f32.mrf.mxu3  ;;  %v2571_v46 = vor.u32 %v3509_v24, %v2568_v25  ;;  %v2955_v53 = vor.u32 %v3605_v43, %v2952_v44  ;;  %v2520_v14 = vld [vmem:[#allocation2 + $0x78] sm:$0xf0]  ;;  %v3525_v30 = vld [vmem:[#allocation2 + $0x14c] sm:$0xf] }
  0xc9   :  { %1940 = vmatpush.bf16.msrb.mxu3 %v3399_v50  ;;  %v2552_v50 = vld [vmem:[#allocation2 + $0xb8] sm:$0xf0]  ;;  %v2523_v25 = vor.u32 %v3497_v13, %v2520_v14  ;;  %v3557_v43 = vld [vmem:[#allocation2 + $0x24c] sm:$0xf] }
  0xca   :  { %v1647_v39 = vpop.f32.mrf.mxu0  ;;  %v1685_v45 = vadd.f32 %v1684_v28, %v1672_v27  ;;  %v2555_v59 = vor.u32 %v3505_v49, %v2552_v50  ;;  %v2776_v21 = vld [vmem:[#allocation2 + $0x278] sm:$0xf0]  ;;  %v3493_v28 = vld [vmem:[#allocation2 + $0x4c] sm:$0xf] }
  0xcb   :  { %1902 = vmatpush.bf16.msrb.mxu0 %v2999_v56  ;;  %v1660_v52 = vpop.f32.mrf.mxu1  ;;  %v2808_v56 = vld [vmem:[#allocation2 + $0x2b8] sm:$0xf0]  ;;  %v3485_v1 = vld [vmem:[#allocation2 + $0xc] sm:$0xf] }
  0xcc   :  { %1915 = vmatpush.bf16.msrb.mxu1 %v3127_v60  ;;  %1928 = vmatpush.bf16.msrb.mxu2 %v3255_v61  ;;  %v2683_v61 = vor.u32 %v3537_v51, %v2680_v54  ;;  %v2811_v62 = vor.u32 %v3569_v55, %v2808_v56  ;;  %v2632_v39 = vld [vmem:[#allocation2 + $0x158] sm:$0xf0]  ;;  %v3489_v54 = vld [vmem:[#allocation2 + $0x2c] sm:$0xf] }
  0xcd   :  { %1941 = vmatpush.bf16.msrb.mxu3 %v3383_v2  ;;  %v2760_v44 = vld [vmem:[#allocation2 + $0x258] sm:$0xf0]  ;;  %v2635_v52 = vor.u32 %v3525_v30, %v2632_v39  ;;  %v3521_v56 = vld [vmem:[#allocation2 + $0x12c] sm:$0xf] }
  0xce   :  { %v2488_v55 = vld [vmem:[#allocation2 + $0x38] sm:$0xf0]  ;;  %v3517_v5 = vld [vmem:[#allocation2 + $0x10c] sm:$0xf] }
  0xcf   :  { %1903 = vmatpush.bf16.msrb.mxu0 %v2983_v10  ;;  %v1673_v60 = vpop.f32.mrf.mxu2  ;;  %v2491_v0 = vor.u32 %v3489_v54, %v2488_v55  ;;  %v3549_v7 = vld [vmem:[#allocation2 + $0x20c] sm:$0xf]  ;;  %v3080_v30 = vld [vmem:[#allocation2 + $0x4d8] sm:$0xf0] }
  0xd0   :  { %1916 = vmatpush.bf16.msrb.mxu1 %v3111_v15  ;;  %1929 = vmatpush.bf16.msrb.mxu2 %v3239_v16  ;;  %v1686_v2 = vpop.f32.mrf.mxu3  ;;  %v3529_v15 = vld [vmem:[#allocation2 + $0x16c] sm:$0xf]  ;;  %v3208_v39 = vld [vmem:[#allocation2 + $0x5d8] sm:$0xf0] }
  0xd1   :  { %1942 = vmatpush.bf16.msrb.mxu3 %v3367_v19  ;;  %v2648_v19 = vld [vmem:[#allocation2 + $0x178] sm:$0xf0]  ;;  %v3553_v60 = vld [vmem:[#allocation2 + $0x22c] sm:$0xf] }
  0xd2   :  { %1904 = vmatmul.bf16.vlgmr.msrb.gmra.mxu0 %v3900_v37  ;;  %v2651_v26 = vor.u32 %v3529_v15, %v2648_v19  ;;  %v2472_v2 = vld [vmem:[#allocation2 + $0x18] sm:$0xf0]  ;;  %v3641_v14 = vld [vmem:[#allocation2 + $0x4ec] sm:$0xf] }
  0xd3   :  { %1948 = vmatpush.bf16.msra.mxu0 %v2587_v20  ;;  %1930 = vmatmul.bf16.vlgmr.msrb.gmra.mxu2 %v3898_v32  ;;  %v1697_v10 = vpop.f32.mrf.mxu0  ;;  %v3561_v20 = vld [vmem:[#allocation2 + $0x26c] sm:$0xf]  ;;  %v3096_v15 = vld [vmem:[#allocation2 + $0x4f8] sm:$0xf0] }
  0xd4   :  { %1961 = vmatpush.bf16.msra.mxu1 %v2715_v22  ;;  %1974 = vmatpush.bf16.msra.mxu2 %v2843_v23  ;;  %v1698_v16 = vadd.f32 %v1697_v10, %v1685_v45  ;;  %v1710_v17 = vpop.f32.mrf.mxu1  ;;  %v3593_v22 = vld [vmem:[#allocation2 + $0x36c] sm:$0xf]  ;;  %v2904_v23 = vld [vmem:[#allocation2 + $0x378] sm:$0xf0]  ;;  %v2779_v27 = vor.u32 %v3561_v20, %v2776_v21  ;;  %v2603_v21 = vor.u32 %v3517_v5, %v2600_v6 }
  0xd5   :  { %1987 = vmatpush.bf16.msra.mxu3 %v2971_v29  ;;  %1917 = vmatmul.bf16.vlgmr.msrb.gmra.mxu1 %v3904_v40  ;;  %v2504_v29 = vld [vmem:[#allocation2 + $0x58] sm:$0xf0]  ;;  %v2907_v36 = vor.u32 %v3593_v22, %v2904_v23  ;;  %v3705_v19 = vld [vmem:[#allocation2 + $0x6ec] sm:$0xf] }
  0xd6   :  { %1943 = vmatmul.bf16.vlgmr.msrb.gmra.mxu3 %v3902_v38  ;;  %v1711_v24 = vadd.f32 %v1710_v17, %v1698_v16  ;;  %v2507_v49 = vor.u32 %v3493_v28, %v2504_v29  ;;  %v2728_v10 = vld [vmem:[#allocation2 + $0x218] sm:$0xf0]  ;;  %v3673_v16 = vld [vmem:[#allocation2 + $0x5ec] sm:$0xf]  ;;  %v2475_v17 = vor.u32 %v3485_v1, %v2472_v2 }
  0xd7   :  { %1949 = vmatpush.bf16.msra.mxu0 %v2571_v46  ;;  %v3352_v20 = vld [vmem:[#allocation2 + $0x6f8] sm:$0xf0]  ;;  %v2731_v22 = vor.u32 %v3549_v7, %v2728_v10  ;;  %v3737_v23 = vld [vmem:[#allocation2 + $0x7ec] sm:$0xf] }
  0xd8   :  { %1962 = vmatpush.bf16.msra.mxu1 %v2699_v47  ;;  %1975 = vmatpush.bf16.msra.mxu2 %v2827_v48  ;;  %v1723_v31 = vpop.f32.mrf.mxu2  ;;  %v3589_v47 = vld [vmem:[#allocation2 + $0x34c] sm:$0xf]  ;;  %v2888_v48 = vld [vmem:[#allocation2 + $0x358] sm:$0xf0]  ;;  %v3355_v28 = vor.u32 %v3705_v19, %v3352_v20 }
  0xd9   :  { %1988 = vmatpush.bf16.msra.mxu3 %v2955_v53  ;;  %v1724_v45 = vadd.f32 %v1723_v31, %v1711_v24  ;;  %v1736_v46 = vpop.f32.mrf.mxu3  ;;  %v2763_v53 = vor.u32 %v3557_v43, %v2760_v44  ;;  %v2891_v58 = vor.u32 %v3589_v47, %v2888_v48  ;;  %v3480_v24 = vld [vmem:[#allocation2 + $0x7f8] sm:$0xf0]  ;;  %v3637_v29 = vld [vmem:[#allocation2 + $0x4cc] sm:$0xf] }
  0xda   :  { %v3669_v31 = vld [vmem:[#allocation2 + $0x5cc] sm:$0xf]  ;;  %v3336_v44 = vld [vmem:[#allocation2 + $0x6d8] sm:$0xf0]  ;;  %v3083_v47 = vor.u32 %v3637_v29, %v3080_v30 }
  0xdb   :  { %1950 = vmatpush.bf16.msra.mxu0 %v2555_v59  ;;  %v3932_v50 = vadd.f32 %v1736_v46, %v1724_v45  ;;  %v1699_v51 = vpop.f32.mrf.mxu0  ;;  %v2616_v59 = vld [vmem:[#allocation2 + $0x138] sm:$0xf0]  ;;  %v3701_v43 = vld [vmem:[#allocation2 + $0x6cc] sm:$0xf]  ;;  %v3211_v48 = vor.u32 %v3669_v31, %v3208_v39 }
  0xdc   :  { %1963 = vmatpush.bf16.msra.mxu1 %v2683_v61  ;;  %1976 = vmatpush.bf16.msra.mxu2 %v2811_v62  ;;  %v1712_v57 = vpop.f32.mrf.mxu1  ;;  %v2744_v61 = vld [vmem:[#allocation2 + $0x238] sm:$0xf0]  ;;  %v3585_v62 = vld [vmem:[#allocation2 + $0x32c] sm:$0xf] }
  0xdd   :  { %1989 = vmatpush.bf16.msra.mxu3 %v2939_v3  ;;  %v2619_v3 = vor.u32 %v3521_v56, %v2616_v59  ;;  %v2747_v4 = vor.u32 %v3553_v60, %v2744_v61  ;;  %v3733_v45 = vld [vmem:[#allocation2 + $0x7cc] sm:$0xf]  ;;  %v3464_v46 = vld [vmem:[#allocation2 + $0x7d8] sm:$0xf0] }
  0xde   :  { %v3633_v51 = vld [vmem:[#allocation2 + $0x4ac] sm:$0xf]  ;;  %v3467_v54 = vor.u32 %v3733_v45, %v3464_v46  ;;  %v3192_v55 = vld [vmem:[#allocation2 + $0x5b8] sm:$0xf0] }
  0xdf   :  { %1951 = vmatpush.bf16.msra.mxu0 %v2539_v9  ;;  %v2875_v9 = vor.u32 %v3585_v62, %v2872_v63  ;;  %v3697_v56 = vld [vmem:[#allocation2 + $0x6ac] sm:$0xf]  ;;  %v3320_v57 = vld [vmem:[#allocation2 + $0x6b8] sm:$0xf0] }
  0xe0   :  { %1964 = vmatpush.bf16.msra.mxu1 %v2667_v11  ;;  %1977 = vmatpush.bf16.msra.mxu2 %v2795_v12  ;;  %v1725_v8 = vpop.f32.mrf.mxu2  ;;  %v3581_v11 = vld [vmem:[#allocation2 + $0x30c] sm:$0xf]  ;;  %v2856_v12 = vld [vmem:[#allocation2 + $0x318] sm:$0xf0]  ;;  %v3323_v62 = vor.u32 %v3697_v56, %v3320_v57 }
  0xe1   :  { %1990 = vmatpush.bf16.msra.mxu3 %v2923_v18  ;;  %v1738_v13 = vpop.f32.mrf.mxu3  ;;  %v3224_v18 = vld [vmem:[#allocation2 + $0x5f8] sm:$0xf0]  ;;  %v3629_v63 = vld [vmem:[#allocation2 + $0x48c] sm:$0xf] }
  0xe2   :  { %v3448_v59 = vld [vmem:[#allocation2 + $0x7b8] sm:$0xf0]  ;;  %v3725_v5 = vld [vmem:[#allocation2 + $0x78c] sm:$0xf] }
  0xe3   :  { %1952 = vmatpush.bf16.msra.mxu0 %v2523_v25  ;;  %v2859_v25 = vor.u32 %v3581_v11, %v2856_v12  ;;  %v3176_v2 = vld [vmem:[#allocation2 + $0x598] sm:$0xf0]  ;;  %v3625_v8 = vld [vmem:[#allocation2 + $0x46c] sm:$0xf] }
  0xe4   :  { %1965 = vmatpush.bf16.msra.mxu1 %v2651_v26  ;;  %1978 = vmatpush.bf16.msra.mxu2 %v2779_v27  ;;  %v3099_v26 = vor.u32 %v3641_v14, %v3096_v15  ;;  %v3227_v27 = vor.u32 %v3673_v16, %v3224_v18  ;;  %v3657_v10 = vld [vmem:[#allocation2 + $0x56c] sm:$0xf]  ;;  %v3160_v13 = vld [vmem:[#allocation2 + $0x578] sm:$0xf0] }
  0xe5   :  { %1991 = vmatpush.bf16.msra.mxu3 %v2907_v36  ;;  %v3483_v36 = vor.u32 %v3737_v23, %v3480_v24  ;;  %v3689_v14 = vld [vmem:[#allocation2 + $0x66c] sm:$0xf]  ;;  %v3288_v15 = vld [vmem:[#allocation2 + $0x678] sm:$0xf0]  ;;  %v3163_v19 = vor.u32 %v3657_v10, %v3160_v13  ;;  %v2118_v10 = vld [vmem:[#allocation5 + $0x1f0] sm:$0xff] }
  0xe6   :  { %v3721_v16 = vld [vmem:[#allocation2 + $0x76c] sm:$0xf]  ;;  %v3291_v20 = vor.u32 %v3689_v14, %v3288_v15  ;;  %v3400_v31 = vld [vmem:[#allocation2 + $0x758] sm:$0xf0]  ;;  %v2150_v14 = vld [vmem:[#allocation5 + $0x2f0] sm:$0xff] }
  0xe7   :  { %1953 = vmatpush.bf16.msra.mxu0 %v2507_v49  ;;  %v3339_v49 = vor.u32 %v3701_v43, %v3336_v44  ;;  %v3653_v23 = vld [vmem:[#allocation2 + $0x54c] sm:$0xf]  ;;  %v3000_v46 = vld [vmem:[#allocation2 + $0x438] sm:$0xf0]  ;;  %v2082_v15 = vld [vmem:[#allocation5 + $0xd0] sm:$0xff] }
  0xe8   :  { %1966 = vmatpush.bf16.msra.mxu1 %v2635_v52  ;;  %1979 = vmatpush.bf16.msra.mxu2 %v2763_v53  ;;  %v3064_v52 = vld [vmem:[#allocation2 + $0x4b8] sm:$0xf0]  ;;  %v3665_v53 = vld [vmem:[#allocation2 + $0x5ac] sm:$0xf] }
  0xe9   :  { %1992 = vmatpush.bf16.msra.mxu3 %v2891_v58  ;;  %v3729_v58 = vld [vmem:[#allocation2 + $0x7ac] sm:$0xf]  ;;  %v3067_v60 = vor.u32 %v3633_v51, %v3064_v52  ;;  %v3195_v61 = vor.u32 %v3665_v53, %v3192_v55  ;;  %v3128_v51 = vld [vmem:[#allocation2 + $0x538] sm:$0xf0] }
  0xea   :  { %v3451_v1 = vor.u32 %v3729_v58, %v3448_v59  ;;  %v3717_v30 = vld [vmem:[#allocation2 + $0x74c] sm:$0xf]  ;;  %v3256_v53 = vld [vmem:[#allocation2 + $0x638] sm:$0xf0] }
  0xeb   :  { %1954 = vmatpush.bf16.msra.mxu0 %v2491_v0  ;;  %v3048_v0 = vld [vmem:[#allocation2 + $0x498] sm:$0xf0]  ;;  %v3617_v45 = vld [vmem:[#allocation2 + $0x42c] sm:$0xf] }
  0xec   :  { %1967 = vmatpush.bf16.msra.mxu1 %v2619_v3  ;;  %1980 = vmatpush.bf16.msra.mxu2 %v2747_v4  ;;  %v3693_v3 = vld [vmem:[#allocation2 + $0x68c] sm:$0xf]  ;;  %v3304_v4 = vld [vmem:[#allocation2 + $0x698] sm:$0xf0]  ;;  %v3003_v56 = vor.u32 %v3617_v45, %v3000_v46  ;;  %v2136_v45 = vld [vmem:[#allocation5 + $0x280] sm:$0xff] }
  0xed   :  { %1993 = vmatpush.bf16.msra.mxu3 %v2875_v9  ;;  %v3307_v7 = vor.u32 %v3693_v3, %v3304_v4  ;;  %v3032_v9 = vld [vmem:[#allocation2 + $0x478] sm:$0xf0]  ;;  %v3681_v52 = vld [vmem:[#allocation2 + $0x62c] sm:$0xf]  ;;  %v2068_v46 = vld [vmem:[#allocation5 + $0x60] sm:$0xff] }
  0xee   :  { %v3035_v18 = vor.u32 %v3625_v8, %v3032_v9  ;;  %v3384_v55 = vld [vmem:[#allocation2 + $0x738] sm:$0xf0]  ;;  %v3259_v58 = vor.u32 %v3681_v52, %v3256_v53  ;;  %v3613_v59 = vld [vmem:[#allocation2 + $0x40c] sm:$0xf]  ;;  %v2086_v8 = vld [vmem:[#allocation5 + $0xf0] sm:$0xff] }
  0xef   :  { %1955 = vmatpush.bf16.msra.mxu0 %v2475_v17  ;;  %v3938_v6 = vpop.f32.mrf.mxu0  ;;  %v3416_v17 = vld [vmem:[#allocation2 + $0x778] sm:$0xf0]  ;;  %v3709_v3 = vld [vmem:[#allocation2 + $0x70c] sm:$0xf]  ;;  %v2134_v52 = vld [vmem:[#allocation5 + $0x270] sm:$0xff] }
  0xf0   :  { %1968 = vmatpush.bf16.msra.mxu1 %v2603_v21  ;;  %1981 = vmatpush.bf16.msra.mxu2 %v2731_v22  ;;  %v3621_v21 = vld [vmem:[#allocation2 + $0x44c] sm:$0xf]  ;;  %v3016_v22 = vld [vmem:[#allocation2 + $0x458] sm:$0xf0]  ;;  %v2066_v53 = vld [vmem:[#allocation5 + $0x50] sm:$0xff] }
  0xf1   :  { %1994 = vmatpush.bf16.msra.mxu3 %v2859_v25  ;;  %v3419_v25 = vor.u32 %v3721_v16, %v3416_v17  ;;  %v3368_v4 = vld [vmem:[#allocation2 + $0x718] sm:$0xf0]  ;;  %v2148_v16 = vld [vmem:[#allocation5 + $0x2e0] sm:$0xff] }
  0xf2   :  { %1956 = vmatmul.bf16.vlgmr.msra.gmra.mxu0 %v3885_v34  ;;  %v3432_v34 = vld [vmem:[#allocation2 + $0x798] sm:$0xf0]  ;;  %v3940_v11 = vpop.f32.mrf.mxu1  ;;  %v2080_v17 = vld [vmem:[#allocation5 + $0xc0] sm:$0xff] }
  0xf3   :  { %2000 = vmatpush.bf16.msrb.mxu0 %v3099_v26  ;;  %1982 = vmatmul.bf16.vlgmr.msra.gmra.mxu2 %v3883_v33  ;;  %v3661_v33 = vld [vmem:[#allocation2 + $0x58c] sm:$0xf]  ;;  %v3435_v12 = vor.u32 %v3725_v5, %v3432_v34  ;;  %v3144_v26 = vld [vmem:[#allocation2 + $0x558] sm:$0xf0]  ;;  %v349_v5 = vperm.slane %v3925_v35, 1  ;;  %v2116_v35 = vld [vmem:[#allocation5 + $0x1e0] sm:$0xff] }
  0xf4   :  { %2013 = vmatpush.bf16.msrb.mxu1 %v3227_v27  ;;  %2026 = vmatpush.bf16.msrb.mxu2 %v3355_v28  ;;  %v3685_v27 = vld [vmem:[#allocation2 + $0x64c] sm:$0xf]  ;;  %v3272_v28 = vld [vmem:[#allocation2 + $0x658] sm:$0xf0]  ;;  %v3147_v43 = vor.u32 %v3653_v23, %v3144_v26  ;;  %v2074_v26 = vld [vmem:[#allocation5 + $0x90] sm:$0xff] }
  0xf5   :  { %2039 = vmatpush.bf16.msrb.mxu3 %v3483_v36  ;;  %1969 = vmatmul.bf16.vlgmr.msra.gmra.mxu1 %v3889_v42  ;;  %v3179_v42 = vor.u32 %v3661_v33, %v3176_v2  ;;  %v3019_v36 = vor.u32 %v3621_v21, %v3016_v22  ;;  %v3275_v44 = vor.u32 %v3685_v27, %v3272_v28  ;;  %v3677_v33 = vld [vmem:[#allocation2 + $0x60c] sm:$0xf]  ;;  %v2108_v22 = vld [vmem:[#allocation5 + $0x1a0] sm:$0xff] }
  0xf6   :  { %1995 = vmatmul.bf16.vlgmr.msra.gmra.mxu3 %v3887_v41  ;;  %v3051_v41 = vor.u32 %v3629_v63, %v3048_v0  ;;  %v3942_v24 = vpop.f32.mrf.mxu2  ;;  %v3112_v0 = vld [vmem:[#allocation2 + $0x518] sm:$0xf0]  ;;  %v1750_v9 = vadd.f32 %v3938_v6, %v349_v5  ;;  %v2114_v6 = vld [vmem:[#allocation5 + $0x1d0] sm:$0xff]  ;;  %v2140_v27 = vld [vmem:[#allocation5 + $0x2a0] sm:$0xff] }
  0xf7   :  { %2001 = vmatpush.bf16.msrb.mxu0 %v3083_v47  ;;  %v1751_v39 = vpop.f32.mrf.mxu0  ;;  %v3649_v47 = vld [vmem:[#allocation2 + $0x52c] sm:$0xf]  ;;  %v2072_v28 = vld [vmem:[#allocation5 + $0x80] sm:$0xff]  ;;  %v2090_v5 = vld [vmem:[#allocation5 + $0x110] sm:$0xff] }
  0xf8   :  { %2014 = vmatpush.bf16.msrb.mxu1 %v3211_v48  ;;  %2027 = vmatpush.bf16.msrb.mxu2 %v3339_v49  ;;  %v3403_v49 = vor.u32 %v3717_v30, %v3400_v31  ;;  %v3131_v57 = vor.u32 %v3649_v47, %v3128_v51  ;;  %v1763_v13 = vadd.f32 %v3940_v11, %v1750_v9  ;;  %v2078_v11 = vld [vmem:[#allocation5 + $0xb0] sm:$0xff]  ;;  %v2104_v30 = vld [vmem:[#allocation5 + $0x180] sm:$0xff]  ;;  %v2087_v9 = vld [vmem:[#allocation5 + $0xf8] sm:$0xff] }
  0xf9   :  { %2040 = vmatpush.bf16.msrb.mxu3 %v3467_v54  ;;  %v3944_v29 = vpop.f32.mrf.mxu3  ;;  %v3713_v54 = vld [vmem:[#allocation2 + $0x72c] sm:$0xf]  ;;  %v2138_v39 = vld [vmem:[#allocation5 + $0x290] sm:$0xff] }
  0xfa   :  { %v1764_v48 = vpop.f32.mrf.mxu1  ;;  %v3387_v63 = vor.u32 %v3713_v54, %v3384_v55  ;;  %v2098_v54 = vld [vmem:[#allocation5 + $0x150] sm:$0xff]  ;;  %v2132_v55 = vld [vmem:[#allocation5 + $0x260] sm:$0xff] }
  0xfb   :  { %2002 = vmatpush.bf16.msrb.mxu0 %v3067_v60  ;;  %v2984_v60 = vld [vmem:[#allocation2 + $0x418] sm:$0xf0]  ;;  %v2100_v48 = vld [vmem:[#allocation5 + $0x160] sm:$0xff] }
  0xfc   :  { %2015 = vmatpush.bf16.msrb.mxu1 %v3195_v61  ;;  %2028 = vmatpush.bf16.msrb.mxu2 %v3323_v62  ;;  %v3645_v61 = vld [vmem:[#allocation2 + $0x50c] sm:$0xf]  ;;  %v2987_v34 = vor.u32 %v3613_v59, %v2984_v60  ;;  %v2130_v60 = vld [vmem:[#allocation5 + $0x250] sm:$0xff] }
  0xfd   :  { %2041 = vmatpush.bf16.msrb.mxu3 %v3451_v1  ;;  %v3240_v1 = vld [vmem:[#allocation2 + $0x618] sm:$0xf0] }
  0xfe   :  { %v1777_v62 = vpop.f32.mrf.mxu2 }
  0xff   :  { %2003 = vmatpush.bf16.msrb.mxu0 %v3051_v41  ;;  %v3115_v41 = vor.u32 %v3645_v61, %v3112_v0  ;;  %v2062_v61 = vld [vmem:[#allocation5 + $0x30] sm:$0xff]  ;;  %v2128_v0 = vld [vmem:[#allocation5 + $0x240] sm:$0xff] }
 0x100   :  { %2016 = vmatpush.bf16.msrb.mxu1 %v3179_v42  ;;  %2029 = vmatpush.bf16.msrb.mxu2 %v3307_v7  ;;  %v3243_v42 = vor.u32 %v3677_v33, %v3240_v1  ;;  %v3371_v7 = vor.u32 %v3709_v3, %v3368_v4  ;;  %v2060_v33 = vld [vmem:[#allocation5 + $0x20] sm:$0xff]  ;;  %v2126_v3 = vld [vmem:[#allocation5 + $0x230] sm:$0xff] }
 0x101   :  { %2042 = vmatpush.bf16.msrb.mxu3 %v3435_v12  ;;  %v1790_v2 = vpop.f32.mrf.mxu3  ;;  %v2084_v12 = vld [vmem:[#allocation5 + $0xe0] sm:$0xff]  ;;  %v2058_v4 = vld [vmem:[#allocation5 + $0x10] sm:$0xff] }
 0x102   :  { %v2092_v2 = vld [vmem:[#allocation5 + $0x120] sm:$0xff] }
 0x103   :  { %2004 = vmatpush.bf16.msrb.mxu0 %v3035_v18  ;;  %v2112_v18 = vld [vmem:[#allocation5 + $0x1c0] sm:$0xff] }
 0x104   :  { %2017 = vmatpush.bf16.msrb.mxu1 %v3163_v19  ;;  %2030 = vmatpush.bf16.msrb.mxu2 %v3291_v20  ;;  %v2146_v19 = vld [vmem:[#allocation5 + $0x2d0] sm:$0xff]  ;;  %v2076_v20 = vld [vmem:[#allocation5 + $0xa0] sm:$0xff] }
 0x105   :  { %2043 = vmatpush.bf16.msrb.mxu3 %v3419_v25  ;;  %v2142_v25 = vld [vmem:[#allocation5 + $0x2b0] sm:$0xff] }
 0x107   :  { %2005 = vmatpush.bf16.msrb.mxu0 %v3019_v36 }
 0x108   :  { %2018 = vmatpush.bf16.msrb.mxu1 %v3147_v43  ;;  %2031 = vmatpush.bf16.msrb.mxu2 %v3275_v44  ;;  %v2070_v43 = vld [vmem:[#allocation5 + $0x70] sm:$0xff] }
 0x109   :  { %2044 = vmatpush.bf16.msrb.mxu3 %v3403_v49  ;;  %v2102_v44 = vld [vmem:[#allocation5 + $0x170] sm:$0xff] }
 0x10b   :  { %2006 = vmatpush.bf16.msrb.mxu0 %v3003_v56  ;;  %v2064_v56 = vld [vmem:[#allocation5 + $0x40] sm:$0xff] }
 0x10c   :  { %2019 = vmatpush.bf16.msrb.mxu1 %v3131_v57  ;;  %2032 = vmatpush.bf16.msrb.mxu2 %v3259_v58  ;;  %v2096_v57 = vld [vmem:[#allocation5 + $0x140] sm:$0xff] }
 0x10d   :  { %2045 = vmatpush.bf16.msrb.mxu3 %v3387_v63  ;;  %v2094_v63 = vld [vmem:[#allocation5 + $0x130] sm:$0xff] }
 0x10f   :  { %2007 = vmatpush.bf16.msrb.mxu0 %v2987_v34  ;;  %v2124_v34 = vld [vmem:[#allocation5 + $0x220] sm:$0xff] }
 0x110   :  { %2020 = vmatpush.bf16.msrb.mxu1 %v3115_v41  ;;  %2033 = vmatpush.bf16.msrb.mxu2 %v3243_v42  ;;  %v2056_v41 = vld [vmem:[#allocation5] sm:$0xff] }
 0x111   :  { %2046 = vmatpush.bf16.msrb.mxu3 %v3371_v7  ;;  %v2088_v7 = vld [vmem:[#allocation5 + $0x100] sm:$0xff] }
 0x112   :  { %2008 = vmatmul.bf16.vlgmr.msrb.gmra.mxu0 %v3900_v37  ;;  %v1776_v37 = vadd.f32 %v3942_v24, %v1763_v13  ;;  %v1814_v23 = vpop.f32.mrf.mxu1  ;;  %v2106_v24 = vld [vmem:[#allocation5 + $0x190] sm:$0xff]  ;;  %v2117_v13 = vld [vmem:[#allocation5 + $0x1e8] sm:$0xff] }
 0x113   :  { %2190 = vmatpush.msra.mxu0 %v2086_v8  ;;  %2021 = vmatmul.bf16.vlgmr.msrb.gmra.mxu1 %v3904_v40  ;;  %v2110_v40 = vld [vmem:[#allocation5 + $0x1b0] sm:$0xff]  ;;  %v2052_v8 = vmax.f32 %v3932_v50, 0.0 }
 0x114   :  { %2210 = vmatpush.msra.mxu1 %v2118_v10  ;;  %2034 = vmatmul.bf16.vlgmr.msrb.gmra.mxu2 %v3898_v32  ;;  %v2144_v32 = vld [vmem:[#allocation5 + $0x2c0] sm:$0xff]  ;;  %v1789_v21 = vadd.f32 %v3944_v29, %v1776_v37  ;;  %v2119_v10 = vld [vmem:[#allocation5 + $0x1f8] sm:$0xff]  ;;  %v2113_v37 = vld [vmem:[#allocation5 + $0x1c8] sm:$0xff] }
 0x115   :  { %2047 = vmatmul.bf16.vlgmr.msrb.gmra.mxu3 %v3902_v38  ;;  %2191 = vmatpush.msra.mxu0 %v2084_v12  ;;  %v1801_v38 = vpop.f32.mrf.mxu0  ;;  %v2122_v12 = vld [vmem:[#allocation5 + $0x210] sm:$0xff] }
 0x116   :  { %2211 = vmatpush.msra.mxu1 %v2116_v35  ;;  %2230 = vmatpush.msra.mxu2 %v2150_v14  ;;  %v1802_v31 = vadd.f32 %v1801_v38, %v1789_v21  ;;  %v1827_v36 = vpop.f32.mrf.mxu2  ;;  %v2085_v35 = vld [vmem:[#allocation5 + $0xe8] sm:$0xff]  ;;  %v2120_v14 = vld [vmem:[#allocation5 + $0x200] sm:$0xff]  ;;  %v2162_v50 = vld [vmem:[#allocation5 + $0x350] sm:$0xff] }
 0x117   :  { %2192 = vmatpush.msra.mxu0 %v2082_v15  ;;  %v2083_v15 = vld [vmem:[#allocation5 + $0xd8] sm:$0xff]  ;;  %v2077_v38 = vld [vmem:[#allocation5 + $0xa8] sm:$0xff] }
 0x118   :  { %2212 = vmatpush.msra.mxu1 %v2114_v6  ;;  %2231 = vmatpush.msra.mxu2 %v2148_v16  ;;  %v1815_v49 = vadd.f32 %v1814_v23, %v1802_v31  ;;  %v2151_v6 = vld [vmem:[#allocation5 + $0x2f8] sm:$0xff]  ;;  %v2145_v21 = vld [vmem:[#allocation5 + $0x2c8] sm:$0xff] }
 0x119   :  { %2193 = vmatpush.msra.mxu0 %v2080_v17  ;;  %v1840_v29 = vpop.f32.mrf.mxu3  ;;  %v2115_v16 = vld [vmem:[#allocation5 + $0x1d8] sm:$0xff]  ;;  %v2081_v17 = vld [vmem:[#allocation5 + $0xc8] sm:$0xff] }
 0x11a   :  { %2213 = vmatpush.msra.mxu1 %v2112_v18  ;;  %2232 = vmatpush.msra.mxu2 %v2146_v19  ;;  %v1816_v51 = vpop.f32.mrf.mxu1  ;;  %v1828_v58 = vadd.f32 %v1827_v36, %v1815_v49  ;;  %v2149_v18 = vld [vmem:[#allocation5 + $0x2e8] sm:$0xff]  ;;  %v2079_v19 = vld [vmem:[#allocation5 + $0xb8] sm:$0xff] }
 0x11b   :  { %2194 = vmatpush.msra.mxu0 %v2078_v11  ;;  %v2075_v23 = vld [vmem:[#allocation5 + $0x98] sm:$0xff]  ;;  %v2105_v31 = vld [vmem:[#allocation5 + $0x188] sm:$0xff] }
 0x11c   :  { %2214 = vmatpush.msra.mxu1 %v2110_v40  ;;  %2233 = vmatpush.msra.mxu2 %v2144_v32  ;;  %v3955_v1 = vadd.f32 %v1840_v29, %v1828_v58  ;;  %v2147_v40 = vld [vmem:[#allocation5 + $0x2d8] sm:$0xff]  ;;  %v2065_v58 = vld [vmem:[#allocation5 + $0x48] sm:$0xff] }
 0x11d   :  { %2195 = vmatpush.msra.mxu0 %v2076_v20  ;;  %v1803_v47 = vpop.f32.mrf.mxu0  ;;  %v2111_v32 = vld [vmem:[#allocation5 + $0x1b8] sm:$0xff] }
 0x11e   :  { %2215 = vmatpush.msra.mxu1 %v2108_v22  ;;  %2234 = vmatpush.msra.mxu2 %v2142_v25  ;;  %v1829_v59 = vpop.f32.mrf.mxu2  ;;  %v2053_v42 = vmax.f32 %v3955_v1, 0.0  ;;  %v2109_v22 = vld [vmem:[#allocation5 + $0x1a8] sm:$0xff]  ;;  %v2143_v25 = vld [vmem:[#allocation5 + $0x2b8] sm:$0xff]  ;;  %v2182_v47 = vld [vmem:[#allocation5 + $0x3f0] sm:$0xff] }
 0x11f   :  { %2196 = vmatpush.msra.mxu0 %v2074_v26  ;;  %v2107_v26 = vld [vmem:[#allocation5 + $0x198] sm:$0xff]  ;;  %2250 = vmatpush.msra.mxu3 %v2182_v47  ;;  %v2158_v1 = vld [vmem:[#allocation5 + $0x330] sm:$0xff] }
 0x120   :  { %2216 = vmatpush.msra.mxu1 %v2106_v24  ;;  %2235 = vmatpush.msra.mxu2 %v2140_v27  ;;  %v2073_v27 = vld [vmem:[#allocation5 + $0x88] sm:$0xff]  ;;  %v2071_v36 = vld [vmem:[#allocation5 + $0x78] sm:$0xff] }
 0x121   :  { %2197 = vmatpush.msra.mxu0 %v2072_v28  ;;  %v1842_v62 = vpop.f32.mrf.mxu3  ;;  %v2103_v29 = vld [vmem:[#allocation5 + $0x178] sm:$0xff] }
 0x122   :  { %2217 = vmatpush.msra.mxu1 %v2104_v30  ;;  %2236 = vmatpush.msra.mxu2 %v2138_v39  ;;  %v2141_v30 = vld [vmem:[#allocation5 + $0x2a8] sm:$0xff]  ;;  %v3972_v49 = vld [vmem:[%s4093_s2] sm:$0xf] }
 0x123   :  { %2198 = vmatpush.msra.mxu0 %v2070_v43  ;;  %v2139_v43 = vld [vmem:[#allocation5 + $0x298] sm:$0xff]  ;;  %v350_v51 = vperm.slane %v3972_v49, 2 }
 0x124   :  { %2218 = vmatpush.msra.mxu1 %v2102_v44  ;;  %2237 = vmatpush.msra.mxu2 %v2136_v45  ;;  %v2069_v45 = vld [vmem:[#allocation5 + $0x68] sm:$0xff]  ;;  %v2171_v47 = vld [vmem:[#allocation5 + $0x398] sm:$0xff] }
 0x125   :  { %2199 = vmatpush.msra.mxu0 %v2068_v46  ;;  %v2137_v46 = vld [vmem:[#allocation5 + $0x288] sm:$0xff] }
 0x126   :  { %2219 = vmatpush.msra.mxu1 %v2100_v48  ;;  %2238 = vmatpush.msra.mxu2 %v2134_v52  ;;  %v2101_v48 = vld [vmem:[#allocation5 + $0x168] sm:$0xff]  ;;  %v2180_v52 = vld [vmem:[#allocation5 + $0x3e0] sm:$0xff] }
 0x127   :  { %2200 = vmatpush.msra.mxu0 %v2066_v53  ;;  %v2067_v53 = vld [vmem:[#allocation5 + $0x58] sm:$0xff]  ;;  %2251 = vmatpush.msra.mxu3 %v2180_v52  ;;  %v2169_v52 = vld [vmem:[#allocation5 + $0x388] sm:$0xff] }
 0x128   :  { %2220 = vmatpush.msra.mxu1 %v2098_v54  ;;  %2239 = vmatpush.msra.mxu2 %v2132_v55  ;;  %v2135_v54 = vld [vmem:[#allocation5 + $0x278] sm:$0xff] }
 0x129   :  { %2201 = vmatpush.msra.mxu0 %v2064_v56  ;;  %v2099_v55 = vld [vmem:[#allocation5 + $0x158] sm:$0xff] }
 0x12a   :  { %2221 = vmatpush.msra.mxu1 %v2096_v57  ;;  %2240 = vmatpush.msra.mxu2 %v2130_v60  ;;  %v2178_v57 = vld [vmem:[#allocation5 + $0x3d0] sm:$0xff]  ;;  %v2133_v60 = vld [vmem:[#allocation5 + $0x268] sm:$0xff] }
 0x12b   :  { %2202 = vmatpush.msra.mxu0 %v2062_v61  ;;  %v2097_v61 = vld [vmem:[#allocation5 + $0x148] sm:$0xff]  ;;  %2252 = vmatpush.msra.mxu3 %v2178_v57 }
 0x12c   :  { %2222 = vmatpush.msra.mxu1 %v2094_v63  ;;  %2241 = vmatpush.msra.mxu2 %v2128_v0  ;;  %v2063_v63 = vld [vmem:[#allocation5 + $0x38] sm:$0xff] }
 0x12d   :  { %2203 = vmatpush.msra.mxu0 %v2060_v33  ;;  %v2131_v0 = vld [vmem:[#allocation5 + $0x258] sm:$0xff] }
 0x12e   :  { %2223 = vmatpush.msra.mxu1 %v2092_v2  ;;  %2242 = vmatpush.msra.mxu2 %v2126_v3  ;;  %v2095_v33 = vld [vmem:[#allocation5 + $0x138] sm:$0xff]  ;;  %v2061_v2 = vld [vmem:[#allocation5 + $0x28] sm:$0xff] }
 0x12f   :  { %2204 = vmatpush.msra.mxu0 %v2058_v4  ;;  %v1853_v11 = vpop.f32.mrf.mxu0  ;;  %v2129_v3 = vld [vmem:[#allocation5 + $0x248] sm:$0xff]  ;;  %v2176_v4 = vld [vmem:[#allocation5 + $0x3c0] sm:$0xff] }
 0x130   :  { %2224 = vmatpush.msra.mxu1 %v2090_v5  ;;  %2243 = vmatpush.msra.mxu2 %v2124_v34  ;;  %v1854_v62 = vadd.f32 %v1853_v11, %v350_v51  ;;  %v2093_v34 = vld [vmem:[#allocation5 + $0x128] sm:$0xff] }
 0x131   :  { %2205 = vmatpush.msra.mxu0 %v2056_v41  ;;  %v2174_v41 = vld [vmem:[#allocation5 + $0x3b0] sm:$0xff]  ;;  %2253 = vmatpush.msra.mxu3 %v2176_v4  ;;  %v2153_v4 = vld [vmem:[#allocation5 + $0x308] sm:$0xff] }
 0x132   :  { %2225 = vmatpush.msra.mxu1 %v2088_v7  ;;  %2206 = vmatmul.f32.vlgmr.msra.gmra.mxu0 %v2052_v8  ;;  %v3963_v20 = vpop.f32.mrf.mxu1  ;;  %v2059_v7 = vld [vmem:[#allocation5 + $0x18] sm:$0xff] }
 0x133   :  { %2226 = vmatmul.f32.vlgmr.msra.gmra.mxu1 %v2053_v42  ;;  %2270 = vmatpush.msrb.mxu0 %v2087_v9  ;;  %v1867_v5 = vadd.f32 %v3963_v20, %v1854_v62  ;;  %v2127_v9 = vld [vmem:[#allocation5 + $0x238] sm:$0xff]  ;;  %v2164_v20 = vld [vmem:[#allocation5 + $0x360] sm:$0xff] }
 0x134   :  { %2290 = vmatpush.msrb.mxu1 %v2119_v10  ;;  %2244 = vmatpush.msra.mxu2 %v2122_v12  ;;  %v2091_v10 = vld [vmem:[#allocation5 + $0x118] sm:$0xff]  ;;  %v2172_v12 = vld [vmem:[#allocation5 + $0x3a0] sm:$0xff] }
 0x135   :  { %2271 = vmatpush.msrb.mxu0 %v2085_v35  ;;  %v2057_v35 = vld [vmem:[#allocation5 + $0x8] sm:$0xff]  ;;  %2254 = vmatpush.msra.mxu3 %v2174_v41  ;;  %v2159_v62 = vld [vmem:[#allocation5 + $0x338] sm:$0xff] }
 0x136   :  { %2291 = vmatpush.msrb.mxu1 %v2117_v13  ;;  %2245 = vmatpush.msra.mxu2 %v2120_v14  ;;  %v3965_v24 = vpop.f32.mrf.mxu2  ;;  %v2125_v13 = vld [vmem:[#allocation5 + $0x228] sm:$0xff] }
 0x137   :  { %2272 = vmatpush.msrb.mxu0 %v2083_v15  ;;  %v1855_v39 = vpop.f32.mrf.mxu0  ;;  %v1880_v14 = vadd.f32 %v3965_v24, %v1867_v5  ;;  %v2089_v15 = vld [vmem:[#allocation5 + $0x108] sm:$0xff]  ;;  %2255 = vmatpush.msra.mxu3 %v2172_v12  ;;  %v2156_v24 = vld [vmem:[#allocation5 + $0x320] sm:$0xff] }
 0x138   :  { %2310 = vmatpush.msrb.mxu2 %v2151_v6  ;;  %2292 = vmatpush.msrb.mxu1 %v2115_v16  ;;  %v2123_v6 = vld [vmem:[#allocation5 + $0x218] sm:$0xff]  ;;  %v2170_v16 = vld [vmem:[#allocation5 + $0x390] sm:$0xff] }
 0x139   :  { %2273 = vmatpush.msrb.mxu0 %v2081_v17  ;;  %v3967_v28 = vpop.f32.mrf.mxu3  ;;  %v2121_v17 = vld [vmem:[#allocation5 + $0x208] sm:$0xff]  ;;  %2256 = vmatpush.msra.mxu3 %v2170_v16  ;;  %v2183_v39 = vld [vmem:[#allocation5 + $0x3f8] sm:$0xff] }
 0x13a   :  { %2311 = vmatpush.msrb.mxu2 %v2149_v18  ;;  %2293 = vmatpush.msrb.mxu1 %v2113_v37  ;;  %v1868_v44 = vpop.f32.mrf.mxu1  ;;  %v1893_v18 = vadd.f32 %v3967_v28, %v1880_v14  ;;  %v2168_v37 = vld [vmem:[#allocation5 + $0x380] sm:$0xff]  ;;  %v2154_v28 = vld [vmem:[#allocation5 + $0x310] sm:$0xff] }
 0x13b   :  { %2274 = vmatpush.msrb.mxu0 %v2079_v19  ;;  %v2166_v19 = vld [vmem:[#allocation5 + $0x370] sm:$0xff]  ;;  %2257 = vmatpush.msra.mxu3 %v2168_v37  ;;  %v2177_v44 = vld [vmem:[#allocation5 + $0x3c8] sm:$0xff] }
 0x13c   :  { %2312 = vmatpush.msrb.mxu2 %v2147_v40  ;;  %2294 = vmatpush.msrb.mxu1 %v2111_v32  ;;  %v2367_v37 = vld [vmem:[%s4096_s5 + $0x78] sm:$0xff] }
 0x13d   :  { %2275 = vmatpush.msrb.mxu0 %v2077_v38  ;;  %2258 = vmatpush.msra.mxu3 %v2166_v19  ;;  %v2366_v19 = vld [vmem:[%s4096_s5 + $0x70] sm:$0xff] }
 0x13e   :  { %2313 = vmatpush.msrb.mxu2 %v2145_v21  ;;  %2295 = vmatpush.msrb.mxu1 %v2109_v22  ;;  %v1881_v56 = vpop.f32.mrf.mxu2  ;;  %v2160_v21 = vld [vmem:[#allocation5 + $0x340] sm:$0xff] }
 0x13f   :  { %2276 = vmatpush.msrb.mxu0 %v2075_v23  ;;  %2259 = vmatpush.msra.mxu3 %v2164_v20  ;;  %v2165_v56 = vld [vmem:[#allocation5 + $0x368] sm:$0xff]  ;;  %v2381_v20 = vld [vmem:[%s4096_s5 + $0xe8] sm:$0xff] }
 0x140   :  { %2314 = vmatpush.msrb.mxu2 %v2143_v25  ;;  %2296 = vmatpush.msrb.mxu1 %v2107_v26 }
 0x141   :  { %2277 = vmatpush.msrb.mxu0 %v2073_v27  ;;  %v1894_v59 = vpop.f32.mrf.mxu3  ;;  %2260 = vmatpush.msra.mxu3 %v2162_v50  ;;  %v2380_v50 = vld [vmem:[%s4096_s5 + $0xe0] sm:$0xff] }
 0x142   :  { %2315 = vmatpush.msrb.mxu2 %v2141_v30  ;;  %2297 = vmatpush.msrb.mxu1 %v2105_v31  ;;  %v2152_v31 = vld [vmem:[#allocation5 + $0x300] sm:$0xff] }
 0x143   :  { %2278 = vmatpush.msrb.mxu0 %v2071_v36  ;;  %2261 = vmatpush.msra.mxu3 %v2160_v21  ;;  %v2379_v21 = vld [vmem:[%s4096_s5 + $0xd8] sm:$0xff] }
 0x144   :  { %2316 = vmatpush.msrb.mxu2 %v2139_v43  ;;  %2298 = vmatpush.msrb.mxu1 %v2103_v29  ;;  %v2181_v43 = vld [vmem:[#allocation5 + $0x3e8] sm:$0xff]  ;;  %v2179_v29 = vld [vmem:[#allocation5 + $0x3d8] sm:$0xff] }
 0x145   :  { %2279 = vmatpush.msrb.mxu0 %v2069_v45  ;;  %2262 = vmatpush.msra.mxu3 %v2158_v1  ;;  %v2175_v45 = vld [vmem:[#allocation5 + $0x3b8] sm:$0xff]  ;;  %v2361_v1 = vld [vmem:[%s4096_s5 + $0x48] sm:$0xff] }
 0x146   :  { %2317 = vmatpush.msrb.mxu2 %v2137_v46  ;;  %2299 = vmatpush.msrb.mxu1 %v2101_v48  ;;  %v2173_v46 = vld [vmem:[#allocation5 + $0x3a8] sm:$0xff] }
 0x147   :  { %2280 = vmatpush.msrb.mxu0 %v2067_v53  ;;  %2263 = vmatpush.msra.mxu3 %v2156_v24  ;;  %v2359_v24 = vld [vmem:[%s4096_s5 + $0x38] sm:$0xff] }
 0x148   :  { %2318 = vmatpush.msrb.mxu2 %v2135_v54  ;;  %2300 = vmatpush.msrb.mxu1 %v2099_v55  ;;  %v2167_v54 = vld [vmem:[#allocation5 + $0x378] sm:$0xff] }
 0x149   :  { %2281 = vmatpush.msrb.mxu0 %v2065_v58  ;;  %2264 = vmatpush.msra.mxu3 %v2154_v28  ;;  %v2163_v58 = vld [vmem:[#allocation5 + $0x358] sm:$0xff]  ;;  %v2358_v28 = vld [vmem:[%s4096_s5 + $0x30] sm:$0xff] }
 0x14a   :  { %2319 = vmatpush.msrb.mxu2 %v2133_v60  ;;  %2301 = vmatpush.msrb.mxu1 %v2097_v61  ;;  %v2161_v60 = vld [vmem:[#allocation5 + $0x348] sm:$0xff]  ;;  %v351_v61 = vperm.slane %v3972_v49, 3 }
 0x14b   :  { %2282 = vmatpush.msrb.mxu0 %v2063_v63  ;;  %2265 = vmatpush.msra.mxu3 %v2152_v31  ;;  %v2356_v31 = vld [vmem:[%s4096_s5 + $0x20] sm:$0xff] }
 0x14c   :  { %2320 = vmatpush.msrb.mxu2 %v2131_v0  ;;  %2302 = vmatpush.msrb.mxu1 %v2095_v33  ;;  %v2157_v0 = vld [vmem:[#allocation5 + $0x328] sm:$0xff] }
 0x14d   :  { %2283 = vmatpush.msrb.mxu0 %v2061_v2  ;;  %2330 = vmatpush.msrb.mxu3 %v2183_v39  ;;  %v2155_v2 = vld [vmem:[#allocation5 + $0x318] sm:$0xff]  ;;  %v2354_v39 = vld [vmem:[%s4096_s5 + $0x10] sm:$0xff] }
 0x14e   :  { %2321 = vmatpush.msrb.mxu2 %v2129_v3  ;;  %2303 = vmatpush.msrb.mxu1 %v2093_v34 }
 0x14f   :  { %2284 = vmatpush.msrb.mxu0 %v2059_v7  ;;  %v1905_v11 = vpop.f32.mrf.mxu0  ;;  %2331 = vmatpush.msrb.mxu3 %v2181_v43  ;;  %v2374_v43 = vld [vmem:[%s4096_s5 + $0xb0] sm:$0xff] }
 0x150   :  { %2322 = vmatpush.msrb.mxu2 %v2127_v9  ;;  %2304 = vmatpush.msrb.mxu1 %v2091_v10  ;;  %v1906_v40 = vadd.f32 %v1905_v11, %v1893_v18  ;;  %v2383_v11 = vld [vmem:[%s4096_s5 + $0xf8] sm:$0xff] }
 0x151   :  { %2285 = vmatpush.msrb.mxu0 %v2057_v35  ;;  %2332 = vmatpush.msrb.mxu3 %v2179_v29  ;;  %v2353_v29 = vld [vmem:[%s4096_s5 + $0x8] sm:$0xff] }
 0x152   :  { %2323 = vmatpush.msrb.mxu2 %v2125_v13  ;;  %2305 = vmatpush.msrb.mxu1 %v2089_v15  ;;  %v1918_v32 = vpop.f32.mrf.mxu1 }
 0x153   :  { %2286 = vmatmul.f32.vlgmr.msrb.gmra.mxu0 %v2052_v8  ;;  %2306 = vmatmul.f32.vlgmr.msrb.gmra.mxu1 %v2053_v42  ;;  %v1919_v38 = vadd.f32 %v1918_v32, %v1906_v40  ;;  %v2365_v40 = vld [vmem:[%s4096_s5 + $0x68] sm:$0xff]  ;;  %v2382_v32 = vld [vmem:[%s4096_s5 + $0xf0] sm:$0xff] }
 0x154   :  { %2324 = vmatpush.msrb.mxu2 %v2123_v6  ;;  %2333 = vmatpush.msrb.mxu3 %v2177_v44  ;;  %v2373_v44 = vld [vmem:[%s4096_s5 + $0xa8] sm:$0xff] }
 0x155   :  { %2388 = vmatpush.msra.mxu0 %v2367_v37  ;;  %2408 = vmatpush.msra.mxu1 %v2383_v11 }
 0x156   :  { %2325 = vmatpush.msrb.mxu2 %v2121_v17  ;;  %v1931_v8 = vpop.f32.mrf.mxu2  ;;  %2334 = vmatpush.msrb.mxu3 %v2175_v45  ;;  %v2352_v45 = vld [vmem:[%s4096_s5] sm:$0xff] }
 0x157   :  { %v1932_v22 = vadd.f32 %v1931_v8, %v1919_v38  ;;  %v1907_v25 = vpop.f32.mrf.mxu0  ;;  %2389 = vmatpush.msra.mxu0 %v2366_v19  ;;  %v2364_v38 = vld [vmem:[%s4096_s5 + $0x60] sm:$0xff]  ;;  %2409 = vmatpush.msra.mxu1 %v2382_v32  ;;  %v2363_v8 = vld [vmem:[%s4096_s5 + $0x58] sm:$0xff] }
 0x158   :  { %2335 = vmatpush.msrb.mxu3 %v2173_v46  ;;  %v2360_v25 = vld [vmem:[%s4096_s5 + $0x40] sm:$0xff] }
 0x159   :  { %v1944_v23 = vpop.f32.mrf.mxu3  ;;  %2390 = vmatpush.msra.mxu0 %v2365_v40  ;;  %2410 = vmatpush.msra.mxu1 %v2381_v20  ;;  %v2372_v46 = vld [vmem:[%s4096_s5 + $0xa0] sm:$0xff] }
 0x15a   :  { %v1945_v42 = vadd.f32 %v1944_v23, %v1932_v22  ;;  %v1920_v26 = vpop.f32.mrf.mxu1  ;;  %2336 = vmatpush.msrb.mxu3 %v2171_v47  ;;  %v2362_v22 = vld [vmem:[%s4096_s5 + $0x50] sm:$0xff]  ;;  %v2371_v47 = vld [vmem:[%s4096_s5 + $0x98] sm:$0xff] }
 0x15b   :  { %2391 = vmatpush.msra.mxu0 %v2364_v38  ;;  %2411 = vmatpush.msra.mxu1 %v2380_v50  ;;  %v2378_v23 = vld [vmem:[%s4096_s5 + $0xd0] sm:$0xff]  ;;  %v2376_v26 = vld [vmem:[%s4096_s5 + $0xc0] sm:$0xff] }
 0x15c   :  { %v2054_v27 = vmax.f32 %v1945_v42, 0.0  ;;  %2337 = vmatpush.msrb.mxu3 %v2169_v52  ;;  %v2377_v42 = vld [vmem:[%s4096_s5 + $0xc8] sm:$0xff]  ;;  %v2368_v52 = vld [vmem:[%s4096_s5 + $0x80] sm:$0xff] }
 0x15d   :  { %2392 = vmatpush.msra.mxu0 %v2363_v8  ;;  %2412 = vmatpush.msra.mxu1 %v2379_v21 }
 0x15e   :  { %2246 = vmatmul.f32.vlgmr.msra.gmra.mxu2 %v2054_v27  ;;  %v1933_v30 = vpop.f32.mrf.mxu2  ;;  %2338 = vmatpush.msrb.mxu3 %v2167_v54 }
 0x15f   :  { %2393 = vmatpush.msra.mxu0 %v2362_v22  ;;  %2413 = vmatpush.msra.mxu1 %v2378_v23  ;;  %v2357_v30 = vld [vmem:[%s4096_s5 + $0x28] sm:$0xff] }
 0x160   :  { %2339 = vmatpush.msrb.mxu3 %v2165_v56 }
 0x161   :  { %v1946_v36 = vpop.f32.mrf.mxu3  ;;  %2394 = vmatpush.msra.mxu0 %v2361_v1  ;;  %2414 = vmatpush.msra.mxu1 %v2377_v42 }
 0x162   :  { %2340 = vmatpush.msrb.mxu3 %v2163_v58  ;;  %v2355_v36 = vld [vmem:[%s4096_s5 + $0x18] sm:$0xff] }
 0x163   :  { %2395 = vmatpush.msra.mxu0 %v2360_v25  ;;  %2415 = vmatpush.msra.mxu1 %v2376_v26 }
 0x164   :  { %2341 = vmatpush.msrb.mxu3 %v2161_v60 }
 0x165   :  { %2396 = vmatpush.msra.mxu0 %v2359_v24 }
 0x166   :  { %2326 = vmatmul.f32.vlgmr.msrb.gmra.mxu2 %v2054_v27  ;;  %2342 = vmatpush.msrb.mxu3 %v2159_v62  ;;  %v2375_v27 = vld [vmem:[%s4096_s5 + $0xb8] sm:$0xff] }
 0x167   :  { %2416 = vmatpush.msra.mxu1 %v2375_v27  ;;  %2397 = vmatpush.msra.mxu0 %v2358_v28 }
 0x168   :  { %2343 = vmatpush.msrb.mxu3 %v2157_v0 }
 0x169   :  { %2398 = vmatpush.msra.mxu0 %v2357_v30  ;;  %2417 = vmatpush.msra.mxu1 %v2374_v43 }
 0x16a   :  { %2344 = vmatpush.msrb.mxu3 %v2155_v2 }
 0x16b   :  { %2399 = vmatpush.msra.mxu0 %v2356_v31  ;;  %2418 = vmatpush.msra.mxu1 %v2373_v44 }
 0x16c   :  { %2345 = vmatpush.msrb.mxu3 %v2153_v4 }
 0x16d   :  { %2400 = vmatpush.msra.mxu0 %v2355_v36  ;;  %2419 = vmatpush.msra.mxu1 %v2372_v46 }
 0x16f   :  { %v1957_v48 = vpop.f32.mrf.mxu0  ;;  %2401 = vmatpush.msra.mxu0 %v2354_v39  ;;  %2420 = vmatpush.msra.mxu1 %v2371_v47 }
 0x170   :  { %v1958_v3 = vadd.f32 %v1957_v48, %v351_v61  ;;  %v2370_v48 = vld [vmem:[%s4096_s5 + $0x90] sm:$0xff] }
 0x171   :  { %2402 = vmatpush.msra.mxu0 %v2353_v29  ;;  %2421 = vmatpush.msra.mxu1 %v2370_v48 }
 0x172   :  { %v1970_v51 = vpop.f32.mrf.mxu1 }
 0x173   :  { %v1971_v5 = vadd.f32 %v1970_v51, %v1958_v3  ;;  %2403 = vmatpush.msra.mxu0 %v2352_v45  ;;  %v2369_v51 = vld [vmem:[%s4096_s5 + $0x88] sm:$0xff] }
 0x174   :  { %2422 = vmatpush.msra.mxu1 %v2369_v51 }
 0x176   :  { %v1983_v53 = vpop.f32.mrf.mxu2  ;;  %2423 = vmatpush.msra.mxu1 %v2368_v52 }
 0x177   :  { %v1959_v57 = vpop.f32.mrf.mxu0  ;;  %v1984_v34 = vadd.f32 %v1983_v53, %v1971_v5  ;;  %v2184_v53 = vld [vmem:[%s4095_s4] sm:$0x3] }
 0x178   :  { %v2186_v54 = vperm.slane %v2184_v53, 0  ;;  %v2187_v60 = vperm.slane %v2184_v53, 1 }
 0x179   :  { %v1996_v55 = vpop.f32.mrf.mxu3 }
 0x17a   :  { %v1972_v59 = vpop.f32.mrf.mxu1  ;;  %v1997_v41 = vadd.f32 %v1996_v55, %v1984_v34 }
 0x17e   :  { %v1985_v63 = vpop.f32.mrf.mxu2 }
 0x181   :  { %v1998_v33 = vpop.f32.mrf.mxu3 }
 0x18f   :  { %v2009_v7 = vpop.f32.mrf.mxu0 }
 0x190   :  { %v2022_v9 = vpop.f32.mrf.mxu1  ;;  %v2010_v10 = vadd.f32 %v2009_v7, %v1997_v41 }
 0x192   :  { %v2023_v12 = vadd.f32 %v2022_v9, %v2010_v10  ;;  %v3745_v10 = vld [vmem:[%s4097_s6] ss:$0 sm:$0xff]  ;;  %s3833_s6 = smov [#allocation7]  }
 0x193   :  { %s2447_s29 = sshll.u32 %s3833_s6, 4  ;;  %s2448_s29 = int_to_ptr.vmem [resolvable:$true] %s2447_s29 }
 0x197   :  { %v2035_v49 = vpop.f32.mrf.mxu2  ;;  %v2011_v14 = vpop.f32.mrf.mxu0 }
 0x198   :  { %v2036_v35 = vadd.f32 %v2035_v49, %v2023_v12  ;;  %v2048_v13 = vpop.f32.mrf.mxu3  ;;  %v2024_v15 = vpop.f32.mrf.mxu1 }
 0x19a   :  { %v2049_v6 = vadd.f32 %v2048_v13, %v2036_v35 }
 0x19c   :  { %v2055_v16 = vmax.f32 %v2049_v6, 0.0 }
 0x19e   :  { %2266 = vmatmul.f32.vlgmr.msra.gmra.mxu3 %v2055_v16 }
 0x19f   :  { %v2037_v17 = vpop.f32.mrf.mxu2 }
 0x1a0   :  { %v2050_v18 = vpop.f32.mrf.mxu3 }
 0x1a6   :  { %2346 = vmatmul.f32.vlgmr.msrb.gmra.mxu3 %v2055_v16 }
 0x1af   :  { %v2207_v55 = vpop.f32.mrf.mxu0 }
 0x1b0   :  { %v2208_v56 = vadd.f32 %v2207_v55, %v2186_v54  ;;  %v2227_v58 = vpop.f32.mrf.mxu1 }
 0x1b2   :  { %v2228_v59 = vadd.f32 %v2227_v58, %v2208_v56 }
 0x1d0   :  { %v2287_v61 = vpop.f32.mrf.mxu0  ;;  %v2307_v3 = vpop.f32.mrf.mxu1 }
 0x1d1   :  { %v2288_v0 = vadd.f32 %v2287_v61, %v2187_v60 }
 0x1d3   :  { %v2308_v5 = vadd.f32 %v2307_v3, %v2288_v0 }
 0x1e1   :  { %v2247_v57 = vpop.f32.mrf.mxu2 }
 0x1e2   :  { %v2248_v62 = vadd.f32 %v2247_v57, %v2228_v59 }
 0x1e9   :  { %v2327_v4 = vpop.f32.mrf.mxu2 }
 0x1ea   :  { %v2328_v34 = vadd.f32 %v2327_v4, %v2308_v5 }
 0x221   :  { %v2267_v63 = vpop.f32.mrf.mxu3 }
 0x222   :  { %v2268_v33 = vadd.f32 %v2267_v63, %v2248_v62 }
 0x224   :  { %v2350_v2 = vmax.f32 %v2268_v33, 0.0 }
 0x226   :  { %2404 = vmatmul.f32.vlgmr.msra.gmra.mxu0 %v2350_v2 }
 0x229   :  { %v2347_v41 = vpop.f32.mrf.mxu3 }
 0x22a   :  { %v2348_v7 = vadd.f32 %v2347_v41, %v2328_v34 }
 0x22c   :  { %v2351_v9 = vmax.f32 %v2348_v7, 0.0 }
 0x22e   :  { %2424 = vmatmul.f32.vlgmr.msra.gmra.mxu1 %v2351_v9 }
 0x2a3   :  { %v2405_v12 = vpop.f32.mrf.mxu0 }
 0x2a4   :  { %v2406_v49 = vadd.f32 %v3745_v10, %v2405_v12 }
 0x2ab   :  { %v2425_v35 = vpop.f32.mrf.mxu1 }
 0x2ac   :  { %v2426_v13 = vadd.f32 %v2425_v35, %v2406_v49 }
 0x2ae   :  { %v2429_v14 = vsel %vm2428_vm0, %v2426_v13, -inf }
 0x2af   :  { %2430 = vmax.xlane.f32.xlu0 %v2429_v14 }
 0x322   :  { %v2431_v15 = vpop.xlane.xlu0 %2430 }
 0x323   :  { %v2432_v6 = vsub.f32 %v2426_v13, %v2431_v15 }
 0x325   :  { %v2433_v16 = vmul.f32 1.442695, %v2432_v6 }
 0x327   :  { %3746 = vpow2.f32 %v2433_v16 }
 0x32d   :  { %v3747_v17 = vpop.eup %3746 }
 0x32e   :  { %v2435_v18 = vsel %vm2428_vm0, %v3747_v17, 0.0 }
 0x32f   :  { %2436 = vadd.xlane.f32.xlu0 %v2435_v18 }
 0x3a2   :  { %v2437_v37 = vpop.xlane.xlu0 %2436 }
 0x3a3   :  { %3748 = vlog2.f32 %v2437_v37 }
 0x3a9   :  { %v3749_v19 = vpop.eup %3748 }
 0x3aa   :  { %v2439_v11 = vmul.f32 0.6931472, %v3749_v19 }
 0x3ac   :  { %v2440_v40 = vsub.f32 %v2432_v6, %v2439_v11 }
 0x3ae   :  { %2441 = vst.msk [vmem:[#allocation7] sm:$0x3] %vm2428_vm0, %v2440_v40 }
 0x3af   :  { %2452 = dma.vmem_to_hbm [thread:$0]  %s2448_s29, 32, %s2450_s9, [#allocation4]  }
 0x3b0   :  { %3827 = dma.done.wait [#allocation4], 32  }
 0x3b1   :  { %3828 = vsyncadd [#allocation4], 4294967264 }
 0x3b2   :  { %2457 = vsyncpa [#allocation3], 1 }
 0x3b3   :  { %2458 = vsyncpa [#allocation6], 1 }
 0x3b4   :  { %2459 = vsyncpa [#allocation4], 1 }

</bundles_post_ra>
